<compile_context>
chip_gen: v7x
topology: tpu7x:2x2x1
jax: 0.10.0
libtpu: 0.0.40
codegen_flags: <defaults>
</compile_context>

<pallas_src>
import functools

import numpy as np
import jax
import jax.numpy as jnp
from jax.experimental import pallas as pl
from jax.experimental.pallas import tpu as pltpu


# --------------------------- folded-weight construction ---------------------

def _pool_conv_gather(in_hw: int, pooled_hw: int) -> np.ndarray:
    """G[p, a, b, u, v, kh, kw] = 1 iff input pixel p (= i*in_hw + j) feeds the
    3x3/pad=1 conv output pixel (2u+a, 2v+b) through tap (kh, kw)."""
    g = np.zeros((in_hw * in_hw, 2, 2, pooled_hw, pooled_hw, 3, 3), np.float32)
    for a in range(2):
        for b in range(2):
            for u in range(pooled_hw):
                for v in range(pooled_hw):
                    for kh in range(3):
                        for kw in range(3):
                            i = 2 * u + a + kh - 1
                            j = 2 * v + b + kw - 1
                            if 0 <= i < in_hw and 0 <= j < in_hw:
                                g[i * in_hw + j, a, b, u, v, kh, kw] = 1.0
    return g


_G1 = _pool_conv_gather(8, 4)   # (64, 2, 2, 4, 4, 3, 3)
_G2 = _pool_conv_gather(4, 2)   # (16, 2, 2, 2, 2, 3, 3)


def fold_params(params, num_class=10):
    """One-time folding of PyTorch-layout params into fused-kernel operands."""
    assert num_class <= 128
    f32 = jnp.float32
    w1 = params["w1"].astype(f32)           # (32, 1, 3, 3)   OIHW
    b1 = params["b1"].astype(f32)           # (32,)
    w2 = params["w2"].astype(f32)           # (128, 32, 3, 3) OIHW
    b2 = params["b2"].astype(f32)           # (128,)
    wf = params["wf"].astype(f32)           # (num_class, 128) (out, in)
    bf = params["bf"].astype(f32)           # (num_class,)

    # conv1 (+ 2x2 max-pool grouping): cols = a*1024 + b*512 + u*128 + v*32 + co
    # rows (flattened 8x8 image) zero-padded 64 -> 128 for a lane-dense K dim.
    w1big = jnp.einsum("pabuvkl,okl->pabuvo",
                       jnp.asarray(_G1), w1[:, 0]).reshape(64, 2048)
    w1big = jnp.concatenate([w1big, jnp.zeros((64, 2048), f32)], axis=0)
    # bias applied AFTER the max-pool -> only one (ho,wo,co) group of 512 cols.
    b1big = jnp.tile(b1, 16).reshape(1, 512)

    # conv2 (+ 2x2 max-pool grouping): rows = h*128 + w*32 + ci,
    # cols = a*1024 + b*512 + u*256 + v*128 + co
    w2big = jnp.einsum("pabuvkl,oikl->piabuvo",
                       jnp.asarray(_G2), w2).reshape(512, 2048)
    b2big = jnp.tile(b2, 4).reshape(1, 512)

    # eval-mode BatchNorm1d and the AvgPool 1/4 scale folded into the Linear;
    # classes padded to 128 lanes.
    eps = 1e-5
    scale = params["bn_gamma"] / jnp.sqrt(params["bn_var"] + eps)
    shift = params["bn_beta"] - params["bn_mean"] * scale
    wf_eff = wf.T * scale[:, None] * 0.25               # (128, num_class)
    bf_eff = shift @ wf.T + bf                          # (num_class,)
    wf_pad = jnp.zeros((128, 128), f32).at[:, :num_class].set(wf_eff)
    bf_pad = jnp.zeros((1, 128), f32).at[0, :num_class].set(bf_eff)

    return dict(
        w1=w1big.astype(jnp.bfloat16), b1=b1big,
        w2=w2big.astype(jnp.bfloat16), b2=b2big,
        wf=wf_pad.astype(jnp.bfloat16), bf=bf_pad,
    )


# ------------------------------- Pallas kernel -------------------------------

def _fused_cnn_kernel(x_ref, w1_ref, b1_ref, w2_ref, b2_ref, wf_ref, bf_ref, o_ref):
    """Whole CNN_NORMAL forward for one batch tile, entirely in VMEM.

    x_ref : (TB, 128)   bf16  flattened 8x8 image (row-major h*8+w), zero-padded
    w1_ref: (128, 2048) bf16  folded conv1; cols = (a,b,ho,wo,co), a,b = pool offset
    b1_ref: (1, 512)    f32   conv1 bias in (ho,wo,co) order (applied post-pool)
    w2_ref: (512, 2048) bf16  folded conv2; rows = (h,w,ci)
    b2_ref: (1, 512)    f32
    wf_ref: (128, 128)  bf16  BN(eval)+AvgPool(1/4)-folded linear weight, padded
    bf_ref: (1, 128)    f32   BN(eval)-folded linear bias, zero-padded
    o_ref : (TB, 128)   f32   logits (columns >= num_class are padding)
    """
    # conv1: the 4 max-pool window offsets live in lane groups of 512
    y1 = jnp.dot(x_ref[...], w1_ref[...], preferred_element_type=jnp.float32)
    # MaxPool2d(2,2) first, then bias + ReLU (exact: bias is identical across
    # the 4 pool-offset groups and ReLU/max are monotone) -> (TB,512)=(ho,wo,co)
    m1 = jnp.maximum(jnp.maximum(y1[:, 0:512], y1[:, 512:1024]),
                     jnp.maximum(y1[:, 1024:1536], y1[:, 1536:2048]))
    m1 = jnp.maximum(m1 + b1_ref[...], 0.0)

    # conv2 (+ pool, bias, ReLU), same layout trick
    y2 = jnp.dot(m1.astype(jnp.bfloat16), w2_ref[...],
                 preferred_element_type=jnp.float32)
    m2 = jnp.maximum(jnp.maximum(y2[:, 0:512], y2[:, 512:1024]),
                     jnp.maximum(y2[:, 1024:1536], y2[:, 1536:2048]))
    m2 = jnp.maximum(m2 + b2_ref[...], 0.0)                           # (TB, 512)

    # AvgPool2d(2,2): the 1/4 scale is folded into wf -> plain 4-way add.
    feat = m2[:, 0:128] + m2[:, 128:256] + m2[:, 256:384] + m2[:, 384:512]

    # BatchNorm1d(eval, folded) + Dropout(eval = identity) + Linear (lane-dense)
    o_ref[...] = jnp.dot(feat.astype(jnp.bfloat16), wf_ref[...],
                         preferred_element_type=jnp.float32) + bf_ref[...]


# ------------------------------ tiling / wrappers -----------------------------

def _round_up(x: int, m: int) -> int:
    return ((x + m - 1) // m) * m


@functools.lru_cache(maxsize=1)
def _tpu_config():
    """(tb_max, vmem_limit_bytes, tensorcores_per_chip) per TPU generation."""
    kind = ""
    try:
        kind = jax.devices()[0].device_kind.lower()
    except Exception:  # pragma: no cover - defensive
        pass
    if "v7" in kind:
        # 64 MiB physical VMEM, 2 TensorCores/chip: cap tile, leave headroom.
        return 512, 48 * 1024 * 1024, 2
    if "v5 lite" in kind or "v5e" in kind or "v6" in kind:
        # 128 MiB VMEM, 1 TensorCore/chip: big tiles amortize weight re-pushes.
        return 1024, 64 * 1024 * 1024, 1
    if "v4" in kind or "v5p" in kind or "v5" in kind:
        # 128 MiB VMEM, megacore (2 TCs).
        return 1024, 64 * 1024 * 1024, 2
    # Unknown device: conservative defaults.
    return 512, 32 * 1024 * 1024, 1


def _batch_tile(n: int, tb_max: int, cores: int) -> int:
    """Batch-tile size: as large as allowed (amortizes per-step overhead and
    MXU weight re-pushes) while keeping the grid an even multiple of the
    TensorCore count so no core idles; rows rounded to 16 (bf16 sublanes)."""
    n = max(int(n), 1)
    steps = max(1, -(-n // tb_max))
    if cores > 1:
        steps = _round_up(steps, cores)
    tb = _round_up(-(-n // steps), 16)
    return max(16, min(tb, tb_max))


# Flips to False automatically if pl.Buffered(1) is unsupported by this jax.
_SINGLE_BUFFER_WEIGHTS = [True]


@functools.partial(
    jax.jit,
    static_argnames=("num_class", "tb", "vmem_limit", "single_buffer_weights"))
def _forward_jit(folded, x_nchw, num_class, tb, vmem_limit, single_buffer_weights):
    n = x_nchw.shape[0]
    x = x_nchw.astype(jnp.float32).reshape(n, 64).astype(jnp.bfloat16)
    n_pad = _round_up(n, tb)
    # pad K dim 64 -> 128 lanes and batch to a multiple of the tile size
    x = jnp.pad(x, ((0, n_pad - n), (0, 64)))

    const_map = lambda i: (0, 0)   # weights: fetched once, VMEM-resident
    if single_buffer_weights:
        def wspec(shape):
            return pl.BlockSpec(shape, const_map, pipeline_mode=pl.Buffered(1))
    else:
        def wspec(shape):
            return pl.BlockSpec(shape, const_map)

    logits = pl.pallas_call(
        _fused_cnn_kernel,
        out_shape=jax.ShapeDtypeStruct((n_pad, 128), jnp.float32),
        grid=(n_pad // tb,),
        in_specs=[
            pl.BlockSpec((tb, 128), lambda i: (i, 0)),   # activation stream
            wspec((128, 2048)),
            wspec((1, 512)),
            wspec((512, 2048)),
            wspec((1, 512)),
            wspec((128, 128)),
            wspec((1, 128)),
        ],
        out_specs=pl.BlockSpec((tb, 128), lambda i: (i, 0)),
        compiler_params=pltpu.CompilerParams(
            dimension_semantics=("parallel",),   # shards batch tiles across TCs
            vmem_limit_bytes=vmem_limit,
        ),
    )(x, folded["w1"], folded["b1"], folded["w2"], folded["b2"],
      folded["wf"], folded["bf"])
    return logits[:n, :num_class]


def forward_folded(folded, x_nchw, num_class=10):
    """Fused forward pass.  `folded` comes from fold_params (call that once)."""
    n = x_nchw.shape[0]
    tb_max, vmem_limit, cores = _tpu_config()
    tb = _batch_tile(n, tb_max, cores)
    try:
        return _forward_jit(folded, x_nchw, num_class, tb, vmem_limit,
                            _SINGLE_BUFFER_WEIGHTS[0])
    except Exception:
        if _SINGLE_BUFFER_WEIGHTS[0]:
            # pl.Buffered(1) not supported on this jax/Mosaic: fall back to the
            # default double-buffered weight specs (slightly more VMEM).
            _SINGLE_BUFFER_WEIGHTS[0] = False
            return _forward_jit(folded, x_nchw, num_class, tb, vmem_limit, False)
        raise


def cnn_normal_forward(params, x_nchw, num_class=10):
    """Convenience one-shot wrapper.  For repeated inference, call fold_params
    once and reuse its result with forward_folded."""
    return forward_folded(fold_params(params, num_class), x_nchw, num_class=num_class)


# ------------------------------ params / reference ---------------------------

def init_params(key, num_class=10):
    ks = jax.random.split(key, 6)
    return dict(
        # PyTorch layouts: conv OIHW, linear (out, in)
        w1=jax.random.normal(ks[0], (32, 1, 3, 3), jnp.float32) * 0.1,
        b1=jax.random.normal(ks[1], (32,), jnp.float32) * 0.1,
        w2=jax.random.normal(ks[2], (128, 32, 3, 3), jnp.float32) * 0.05,
        b2=jax.random.normal(ks[3], (128,), jnp.float32) * 0.05,
        bn_gamma=jnp.ones((128,), jnp.float32),
        bn_beta=jnp.zeros((128,), jnp.float32),
        bn_mean=jnp.zeros((128,), jnp.float32),
        bn_var=jnp.ones((128,), jnp.float32),
        wf=jax.random.normal(ks[4], (num_class, 128), jnp.float32) * 0.05,
        bf=jax.random.normal(ks[5], (num_class,), jnp.float32) * 0.05,
    )


def _reference_forward(params, x_nchw):
    """Pure-JAX f32 reference of the PyTorch module (eval mode)."""
    dn = ("NCHW", "OIHW", "NCHW")
    x = x_nchw.astype(jnp.float32)
    y = jax.lax.conv_general_dilated(x, params["w1"], (1, 1), ((1, 1), (1, 1)),
                                     dimension_numbers=dn)
    y = jnp.maximum(y + params["b1"][None, :, None, None], 0.0)
    y = jax.lax.reduce_window(y, -jnp.inf, jax.lax.max, (1, 1, 2, 2), (1, 1, 2, 2), "VALID")
    y = jax.lax.conv_general_dilated(y, params["w2"], (1, 1), ((1, 1), (1, 1)),
                                     dimension_numbers=dn)
    y = jnp.maximum(y + params["b2"][None, :, None, None], 0.0)
    y = jax.lax.reduce_window(y, -jnp.inf, jax.lax.max, (1, 1, 2, 2), (1, 1, 2, 2), "VALID")
    y = jnp.mean(y, axis=(2, 3))                                   # AvgPool2d(2,2) on 2x2
    eps = 1e-5
    scale = params["bn_gamma"] / jnp.sqrt(params["bn_var"] + eps)
    y = (y - params["bn_mean"]) * scale + params["bn_beta"]        # BN eval; Dropout = id
    return y @ params["wf"].T + params["bf"]


if __name__ == "__main__":
    key = jax.random.PRNGKey(0)
    pkey, xkey = jax.random.split(key)
    num_class = 10

    params = init_params(pkey, num_class=num_class)
    folded = fold_params(params, num_class=num_class)      # one-time weight folding

    # PyTorch module (head_payload=False) expects NCHW input, 1 channel, 8x8.
    x = jax.random.normal(xkey, (2, 1, 8, 8), jnp.float32)
    y = forward_folded(folded, x, num_class=num_class)
    jax.block_until_ready(y)

    assert y.shape == (2, num_class) and y.dtype == jnp.float32
    # Numerics sanity check vs. pure-JAX f32 reference (bf16-matmul tolerance).
    y_ref = _reference_forward(params, x)
    max_err = float(jnp.max(jnp.abs(y - y_ref)))
    assert max_err < 5e-2, f"max abs error {max_err}"
    print("KERNEL_OK")
</pallas_src>

<mosaic_0001>
module attributes {stable_mosaic.version = 11 : i64} {
  func.func @_fused_cnn_kernel(%arg0: i32, %arg1: memref<16x128xbf16, #tpu.memory_space<vmem>>, %arg2: memref<128x2048xbf16, #tpu.memory_space<vmem>>, %arg3: memref<1x512xf32, #tpu.memory_space<vmem>>, %arg4: memref<512x2048xbf16, #tpu.memory_space<vmem>>, %arg5: memref<1x512xf32, #tpu.memory_space<vmem>>, %arg6: memref<128x128xbf16, #tpu.memory_space<vmem>>, %arg7: memref<1x128xf32, #tpu.memory_space<vmem>>, %arg8: memref<16x128xf32, #tpu.memory_space<vmem>>) attributes {dimension_semantics = [#tpu.dimension_semantics<parallel>], iteration_bounds = array<i64: 1>, scalar_prefetch = 0 : i64, scratch_operands = 0 : i64, tpu.core_type = #tpu.core_type<tc>, window_params = [{transform_indices = @transform_0, window_bounds = array<i64: 16, 128>}, {pipeline_mode = #tpu.pipeline_mode<synchronous>, transform_indices = @transform_1, window_bounds = array<i64: 128, 2048>}, {pipeline_mode = #tpu.pipeline_mode<synchronous>, transform_indices = @transform_2, window_bounds = array<i64: 1, 512>}, {pipeline_mode = #tpu.pipeline_mode<synchronous>, transform_indices = @transform_3, window_bounds = array<i64: 512, 2048>}, {pipeline_mode = #tpu.pipeline_mode<synchronous>, transform_indices = @transform_4, window_bounds = array<i64: 1, 512>}, {pipeline_mode = #tpu.pipeline_mode<synchronous>, transform_indices = @transform_5, window_bounds = array<i64: 128, 128>}, {pipeline_mode = #tpu.pipeline_mode<synchronous>, transform_indices = @transform_6, window_bounds = array<i64: 1, 128>}, {transform_indices = @transform_7, window_bounds = array<i64: 16, 128>}]} {
    %c0 = arith.constant 0 : index
    %c0_0 = arith.constant 0 : index
    %0 = vector.load %arg1[%c0, %c0_0] : memref<16x128xbf16, #tpu.memory_space<vmem>>, vector<16x128xbf16>
    %c0_1 = arith.constant 0 : index
    %c0_2 = arith.constant 0 : index
    %1 = vector.load %arg2[%c0_1, %c0_2] : memref<128x2048xbf16, #tpu.memory_space<vmem>>, vector<128x2048xbf16>
    %cst = arith.constant dense<0.000000e+00> : vector<16x2048xf32>
    %2 = tpu.matmul %0, %1, %cst {dimension_numbers = #tpu.dot_dimension_numbers<[1], [0], [0], [1], [0, 0, 1, 1], [], []>} : vector<16x128xbf16>, vector<128x2048xbf16>, vector<16x2048xf32> -> vector<16x2048xf32>
    %3 = vector.extract_strided_slice %2 {offsets = [0, 0], sizes = [16, 512], strides = [1, 1]} : vector<16x2048xf32> to vector<16x512xf32>
    %4 = vector.extract_strided_slice %2 {offsets = [0, 512], sizes = [16, 512], strides = [1, 1]} : vector<16x2048xf32> to vector<16x512xf32>
    %5 = arith.maximumf %3, %4 : vector<16x512xf32>
    %6 = vector.extract_strided_slice %2 {offsets = [0, 1024], sizes = [16, 512], strides = [1, 1]} : vector<16x2048xf32> to vector<16x512xf32>
    %7 = vector.extract_strided_slice %2 {offsets = [0, 1536], sizes = [16, 512], strides = [1, 1]} : vector<16x2048xf32> to vector<16x512xf32>
    %8 = arith.maximumf %6, %7 : vector<16x512xf32>
    %9 = arith.maximumf %5, %8 : vector<16x512xf32>
    %c0_3 = arith.constant 0 : index
    %c0_4 = arith.constant 0 : index
    %10 = vector.load %arg3[%c0_3, %c0_4] : memref<1x512xf32, #tpu.memory_space<vmem>>, vector<1x512xf32>
    %11 = vector.broadcast %10 : vector<1x512xf32> to vector<16x512xf32>
    %12 = arith.addf %9, %11 : vector<16x512xf32>
    %cst_5 = arith.constant 0.000000e+00 : f32
    %13 = vector.broadcast %cst_5 : f32 to vector<16x512xf32>
    %14 = arith.maximumf %12, %13 : vector<16x512xf32>
    %15 = arith.truncf %14 : vector<16x512xf32> to vector<16x512xbf16>
    %c0_6 = arith.constant 0 : index
    %c0_7 = arith.constant 0 : index
    %16 = vector.load %arg4[%c0_6, %c0_7] : memref<512x2048xbf16, #tpu.memory_space<vmem>>, vector<512x2048xbf16>
    %cst_8 = arith.constant dense<0.000000e+00> : vector<16x2048xf32>
    %17 = tpu.matmul %15, %16, %cst_8 {dimension_numbers = #tpu.dot_dimension_numbers<[1], [0], [0], [1], [0, 0, 1, 1], [], []>} : vector<16x512xbf16>, vector<512x2048xbf16>, vector<16x2048xf32> -> vector<16x2048xf32>
    %18 = vector.extract_strided_slice %17 {offsets = [0, 0], sizes = [16, 512], strides = [1, 1]} : vector<16x2048xf32> to vector<16x512xf32>
    %19 = vector.extract_strided_slice %17 {offsets = [0, 512], sizes = [16, 512], strides = [1, 1]} : vector<16x2048xf32> to vector<16x512xf32>
    %20 = arith.maximumf %18, %19 : vector<16x512xf32>
    %21 = vector.extract_strided_slice %17 {offsets = [0, 1024], sizes = [16, 512], strides = [1, 1]} : vector<16x2048xf32> to vector<16x512xf32>
    %22 = vector.extract_strided_slice %17 {offsets = [0, 1536], sizes = [16, 512], strides = [1, 1]} : vector<16x2048xf32> to vector<16x512xf32>
    %23 = arith.maximumf %21, %22 : vector<16x512xf32>
    %24 = arith.maximumf %20, %23 : vector<16x512xf32>
    %c0_9 = arith.constant 0 : index
    %c0_10 = arith.constant 0 : index
    %25 = vector.load %arg5[%c0_9, %c0_10] : memref<1x512xf32, #tpu.memory_space<vmem>>, vector<1x512xf32>
    %26 = vector.broadcast %25 : vector<1x512xf32> to vector<16x512xf32>
    %27 = arith.addf %24, %26 : vector<16x512xf32>
    %cst_11 = arith.constant 0.000000e+00 : f32
    %28 = vector.broadcast %cst_11 : f32 to vector<16x512xf32>
    %29 = arith.maximumf %27, %28 : vector<16x512xf32>
    %30 = vector.extract_strided_slice %29 {offsets = [0, 0], sizes = [16, 128], strides = [1, 1]} : vector<16x512xf32> to vector<16x128xf32>
    %31 = vector.extract_strided_slice %29 {offsets = [0, 128], sizes = [16, 128], strides = [1, 1]} : vector<16x512xf32> to vector<16x128xf32>
    %32 = arith.addf %30, %31 : vector<16x128xf32>
    %33 = vector.extract_strided_slice %29 {offsets = [0, 256], sizes = [16, 128], strides = [1, 1]} : vector<16x512xf32> to vector<16x128xf32>
    %34 = arith.addf %32, %33 : vector<16x128xf32>
    %35 = vector.extract_strided_slice %29 {offsets = [0, 384], sizes = [16, 128], strides = [1, 1]} : vector<16x512xf32> to vector<16x128xf32>
    %36 = arith.addf %34, %35 : vector<16x128xf32>
    %37 = arith.truncf %36 : vector<16x128xf32> to vector<16x128xbf16>
    %c0_12 = arith.constant 0 : index
    %c0_13 = arith.constant 0 : index
    %38 = vector.load %arg6[%c0_12, %c0_13] : memref<128x128xbf16, #tpu.memory_space<vmem>>, vector<128x128xbf16>
    %cst_14 = arith.constant dense<0.000000e+00> : vector<16x128xf32>
    %39 = tpu.matmul %37, %38, %cst_14 {dimension_numbers = #tpu.dot_dimension_numbers<[1], [0], [0], [1], [0, 0, 1, 1], [], []>} : vector<16x128xbf16>, vector<128x128xbf16>, vector<16x128xf32> -> vector<16x128xf32>
    %c0_15 = arith.constant 0 : index
    %c0_16 = arith.constant 0 : index
    %40 = vector.load %arg7[%c0_15, %c0_16] : memref<1x128xf32, #tpu.memory_space<vmem>>, vector<1x128xf32>
    %41 = vector.broadcast %40 : vector<1x128xf32> to vector<16x128xf32>
    %42 = arith.addf %39, %41 : vector<16x128xf32>
    %c0_17 = arith.constant 0 : index
    %c0_18 = arith.constant 0 : index
    %43 = vector.load %arg8[%c0_17, %c0_18] : memref<16x128xf32, #tpu.memory_space<vmem>>, vector<16x128xf32>
    tpu.vector_store %arg8[%c0_17, %c0_18], %42 {strides = array<i32>} : memref<16x128xf32, #tpu.memory_space<vmem>>, vector<16x128xf32>,
    return
  }
  func.func @transform_0(%arg0: i32) -> (i32, i32) {
    %c0_i32 = arith.constant 0 : i32
    %c0_i32_0 = arith.constant 0 : i32
    return %arg0, %c0_i32 : i32, i32
  }
  func.func @transform_1(%arg0: i32) -> (i32, i32) {
    %c0_i32 = arith.constant 0 : i32
    %c0_i32_0 = arith.constant 0 : i32
    %c0_i32_1 = arith.constant 0 : i32
    return %c0_i32, %c0_i32_0 : i32, i32
  }
  func.func @transform_2(%arg0: i32) -> (i32, i32) {
    %c0_i32 = arith.constant 0 : i32
    %c0_i32_0 = arith.constant 0 : i32
    %c0_i32_1 = arith.constant 0 : i32
    return %c0_i32, %c0_i32_0 : i32, i32
  }
  func.func @transform_3(%arg0: i32) -> (i32, i32) {
    %c0_i32 = arith.constant 0 : i32
    %c0_i32_0 = arith.constant 0 : i32
    %c0_i32_1 = arith.constant 0 : i32
    return %c0_i32, %c0_i32_0 : i32, i32
  }
  func.func @transform_4(%arg0: i32) -> (i32, i32) {
    %c0_i32 = arith.constant 0 : i32
    %c0_i32_0 = arith.constant 0 : i32
    %c0_i32_1 = arith.constant 0 : i32
    return %c0_i32, %c0_i32_0 : i32, i32
  }
  func.func @transform_5(%arg0: i32) -> (i32, i32) {
    %c0_i32 = arith.constant 0 : i32
    %c0_i32_0 = arith.constant 0 : i32
    %c0_i32_1 = arith.constant 0 : i32
    return %c0_i32, %c0_i32_0 : i32, i32
  }
  func.func @transform_6(%arg0: i32) -> (i32, i32) {
    %c0_i32 = arith.constant 0 : i32
    %c0_i32_0 = arith.constant 0 : i32
    %c0_i32_1 = arith.constant 0 : i32
    return %c0_i32, %c0_i32_0 : i32, i32
  }
  func.func @transform_7(%arg0: i32) -> (i32, i32) {
    %c0_i32 = arith.constant 0 : i32
    %c0_i32_0 = arith.constant 0 : i32
    return %arg0, %c0_i32 : i32, i32
  }
}

module attributes {stable_mosaic.version = 11 : i64} {
  func.func @_fused_cnn_kernel(%arg0: i32, %arg1: memref<16x128xbf16, #tpu.memory_space<vmem>>, %arg2: memref<128x2048xbf16, #tpu.memory_space<vmem>>, %arg3: memref<1x512xf32, #tpu.memory_space<vmem>>, %arg4: memref<512x2048xbf16, #tpu.memory_space<vmem>>, %arg5: memref<1x512xf32, #tpu.memory_space<vmem>>, %arg6: memref<128x128xbf16, #tpu.memory_space<vmem>>, %arg7: memref<1x128xf32, #tpu.memory_space<vmem>>, %arg8: memref<16x128xf32, #tpu.memory_space<vmem>>) attributes {dimension_semantics = [#tpu.dimension_semantics<parallel>], iteration_bounds = array<i64: 1>, scalar_prefetch = 0 : i64, scratch_operands = 0 : i64, tpu.core_type = #tpu.core_type<tc>, window_params = [{transform_indices = @transform_0, window_bounds = array<i64: 16, 128>}, {pipeline_mode = #tpu.pipeline_mode<synchronous>, transform_indices = @transform_1, window_bounds = array<i64: 128, 2048>}, {pipeline_mode = #tpu.pipeline_mode<synchronous>, transform_indices = @transform_2, window_bounds = array<i64: 1, 512>}, {pipeline_mode = #tpu.pipeline_mode<synchronous>, transform_indices = @transform_3, window_bounds = array<i64: 512, 2048>}, {pipeline_mode = #tpu.pipeline_mode<synchronous>, transform_indices = @transform_4, window_bounds = array<i64: 1, 512>}, {pipeline_mode = #tpu.pipeline_mode<synchronous>, transform_indices = @transform_5, window_bounds = array<i64: 128, 128>}, {pipeline_mode = #tpu.pipeline_mode<synchronous>, transform_indices = @transform_6, window_bounds = array<i64: 1, 128>}, {transform_indices = @transform_7, window_bounds = array<i64: 16, 128>}]} {
    %c0 = arith.constant 0 : index
    %c0_0 = arith.constant 0 : index
    %0 = vector.load %arg1[%c0, %c0_0] : memref<16x128xbf16, #tpu.memory_space<vmem>>, vector<16x128xbf16>
    %c0_1 = arith.constant 0 : index
    %c0_2 = arith.constant 0 : index
    %1 = vector.load %arg2[%c0_1, %c0_2] : memref<128x2048xbf16, #tpu.memory_space<vmem>>, vector<128x2048xbf16>
    %cst = arith.constant dense<0.000000e+00> : vector<16x2048xf32>
    %2 = tpu.matmul %0, %1, %cst {dimension_numbers = #tpu.dot_dimension_numbers<[1], [0], [0], [1], [0, 0, 1, 1], [], []>} : vector<16x128xbf16>, vector<128x2048xbf16>, vector<16x2048xf32> -> vector<16x2048xf32>
    %3 = vector.extract_strided_slice %2 {offsets = [0, 0], sizes = [16, 512], strides = [1, 1]} : vector<16x2048xf32> to vector<16x512xf32>
    %4 = vector.extract_strided_slice %2 {offsets = [0, 512], sizes = [16, 512], strides = [1, 1]} : vector<16x2048xf32> to vector<16x512xf32>
    %5 = arith.maximumf %3, %4 : vector<16x512xf32>
    %6 = vector.extract_strided_slice %2 {offsets = [0, 1024], sizes = [16, 512], strides = [1, 1]} : vector<16x2048xf32> to vector<16x512xf32>
    %7 = vector.extract_strided_slice %2 {offsets = [0, 1536], sizes = [16, 512], strides = [1, 1]} : vector<16x2048xf32> to vector<16x512xf32>
    %8 = arith.maximumf %6, %7 : vector<16x512xf32>
    %9 = arith.maximumf %5, %8 : vector<16x512xf32>
    %c0_3 = arith.constant 0 : index
    %c0_4 = arith.constant 0 : index
    %10 = vector.load %arg3[%c0_3, %c0_4] : memref<1x512xf32, #tpu.memory_space<vmem>>, vector<1x512xf32>
    %11 = vector.broadcast %10 : vector<1x512xf32> to vector<16x512xf32>
    %12 = arith.addf %9, %11 : vector<16x512xf32>
    %cst_5 = arith.constant 0.000000e+00 : f32
    %13 = vector.broadcast %cst_5 : f32 to vector<16x512xf32>
    %14 = arith.maximumf %12, %13 : vector<16x512xf32>
    %15 = arith.truncf %14 : vector<16x512xf32> to vector<16x512xbf16>
    %c0_6 = arith.constant 0 : index
    %c0_7 = arith.constant 0 : index
    %16 = vector.load %arg4[%c0_6, %c0_7] : memref<512x2048xbf16, #tpu.memory_space<vmem>>, vector<512x2048xbf16>
    %cst_8 = arith.constant dense<0.000000e+00> : vector<16x2048xf32>
    %17 = tpu.matmul %15, %16, %cst_8 {dimension_numbers = #tpu.dot_dimension_numbers<[1], [0], [0], [1], [0, 0, 1, 1], [], []>} : vector<16x512xbf16>, vector<512x2048xbf16>, vector<16x2048xf32> -> vector<16x2048xf32>
    %18 = vector.extract_strided_slice %17 {offsets = [0, 0], sizes = [16, 512], strides = [1, 1]} : vector<16x2048xf32> to vector<16x512xf32>
    %19 = vector.extract_strided_slice %17 {offsets = [0, 512], sizes = [16, 512], strides = [1, 1]} : vector<16x2048xf32> to vector<16x512xf32>
    %20 = arith.maximumf %18, %19 : vector<16x512xf32>
    %21 = vector.extract_strided_slice %17 {offsets = [0, 1024], sizes = [16, 512], strides = [1, 1]} : vector<16x2048xf32> to vector<16x512xf32>
    %22 = vector.extract_strided_slice %17 {offsets = [0, 1536], sizes = [16, 512], strides = [1, 1]} : vector<16x2048xf32> to vector<16x512xf32>
    %23 = arith.maximumf %21, %22 : vector<16x512xf32>
    %24 = arith.maximumf %20, %23 : vector<16x512xf32>
    %c0_9 = arith.constant 0 : index
    %c0_10 = arith.constant 0 : index
    %25 = vector.load %arg5[%c0_9, %c0_10] : memref<1x512xf32, #tpu.memory_space<vmem>>, vector<1x512xf32>
    %26 = vector.broadcast %25 : vector<1x512xf32> to vector<16x512xf32>
    %27 = arith.addf %24, %26 : vector<16x512xf32>
    %cst_11 = arith.constant 0.000000e+00 : f32
    %28 = vector.broadcast %cst_11 : f32 to vector<16x512xf32>
    %29 = arith.maximumf %27, %28 : vector<16x512xf32>
    %30 = vector.extract_strided_slice %29 {offsets = [0, 0], sizes = [16, 128], strides = [1, 1]} : vector<16x512xf32> to vector<16x128xf32>
    %31 = vector.extract_strided_slice %29 {offsets = [0, 128], sizes = [16, 128], strides = [1, 1]} : vector<16x512xf32> to vector<16x128xf32>
    %32 = arith.addf %30, %31 : vector<16x128xf32>
    %33 = vector.extract_strided_slice %29 {offsets = [0, 256], sizes = [16, 128], strides = [1, 1]} : vector<16x512xf32> to vector<16x128xf32>
    %34 = arith.addf %32, %33 : vector<16x128xf32>
    %35 = vector.extract_strided_slice %29 {offsets = [0, 384], sizes = [16, 128], strides = [1, 1]} : vector<16x512xf32> to vector<16x128xf32>
    %36 = arith.addf %34, %35 : vector<16x128xf32>
    %37 = arith.truncf %36 : vector<16x128xf32> to vector<16x128xbf16>
    %c0_12 = arith.constant 0 : index
    %c0_13 = arith.constant 0 : index
    %38 = vector.load %arg6[%c0_12, %c0_13] : memref<128x128xbf16, #tpu.memory_space<vmem>>, vector<128x128xbf16>
    %cst_14 = arith.constant dense<0.000000e+00> : vector<16x128xf32>
    %39 = tpu.matmul %37, %38, %cst_14 {dimension_numbers = #tpu.dot_dimension_numbers<[1], [0], [0], [1], [0, 0, 1, 1], [], []>} : vector<16x128xbf16>, vector<128x128xbf16>, vector<16x128xf32> -> vector<16x128xf32>
    %c0_15 = arith.constant 0 : index
    %c0_16 = arith.constant 0 : index
    %40 = vector.load %arg7[%c0_15, %c0_16] : memref<1x128xf32, #tpu.memory_space<vmem>>, vector<1x128xf32>
    %41 = vector.broadcast %40 : vector<1x128xf32> to vector<16x128xf32>
    %42 = arith.addf %39, %41 : vector<16x128xf32>
    %c0_17 = arith.constant 0 : index
    %c0_18 = arith.constant 0 : index
    %43 = vector.load %arg8[%c0_17, %c0_18] : memref<16x128xf32, #tpu.memory_space<vmem>>, vector<16x128xf32>
    tpu.vector_store %arg8[%c0_17, %c0_18], %42 {strides = array<i32>} : memref<16x128xf32, #tpu.memory_space<vmem>>, vector<16x128xf32>,
    return
  }
  func.func @transform_0(%arg0: i32) -> (i32, i32) {
    %c0_i32 = arith.constant 0 : i32
    %c0_i32_0 = arith.constant 0 : i32
    return %arg0, %c0_i32 : i32, i32
  }
  func.func @transform_1(%arg0: i32) -> (i32, i32) {
    %c0_i32 = arith.constant 0 : i32
    %c0_i32_0 = arith.constant 0 : i32
    %c0_i32_1 = arith.constant 0 : i32
    return %c0_i32, %c0_i32_0 : i32, i32
  }
  func.func @transform_2(%arg0: i32) -> (i32, i32) {
    %c0_i32 = arith.constant 0 : i32
    %c0_i32_0 = arith.constant 0 : i32
    %c0_i32_1 = arith.constant 0 : i32
    return %c0_i32, %c0_i32_0 : i32, i32
  }
  func.func @transform_3(%arg0: i32) -> (i32, i32) {
    %c0_i32 = arith.constant 0 : i32
    %c0_i32_0 = arith.constant 0 : i32
    %c0_i32_1 = arith.constant 0 : i32
    return %c0_i32, %c0_i32_0 : i32, i32
  }
  func.func @transform_4(%arg0: i32) -> (i32, i32) {
    %c0_i32 = arith.constant 0 : i32
    %c0_i32_0 = arith.constant 0 : i32
    %c0_i32_1 = arith.constant 0 : i32
    return %c0_i32, %c0_i32_0 : i32, i32
  }
  func.func @transform_5(%arg0: i32) -> (i32, i32) {
    %c0_i32 = arith.constant 0 : i32
    %c0_i32_0 = arith.constant 0 : i32
    %c0_i32_1 = arith.constant 0 : i32
    return %c0_i32, %c0_i32_0 : i32, i32
  }
  func.func @transform_6(%arg0: i32) -> (i32, i32) {
    %c0_i32 = arith.constant 0 : i32
    %c0_i32_0 = arith.constant 0 : i32
    %c0_i32_1 = arith.constant 0 : i32
    return %c0_i32, %c0_i32_0 : i32, i32
  }
  func.func @transform_7(%arg0: i32) -> (i32, i32) {
    %c0_i32 = arith.constant 0 : i32
    %c0_i32_0 = arith.constant 0 : i32
    return %arg0, %c0_i32 : i32, i32
  }
}

</mosaic_0001>

<bundles_post_ra>
// kernel: _forward_jit.1
= control target key start
LH: loop header
LB: loop body
LE: loop exit
PB: predicated region body
PF: predicated region fallthrough
CT: control target
= control target key end

     0   :  { %12 = vsyncpa [#allocation3], 0  ;;  %s6429_s0 = inlined_call_operand.vmem [shape: bf16[16,128], index: 0, kind: input, shape index: {}]   ;;  %s6430_s1 = inlined_call_operand.hbm [shape: bf16[128,2048], index: 1, kind: input, shape index: {}]   ;;  %s6431_s2 = inlined_call_operand.hbm [shape: f32[1,512], index: 2, kind: input, shape index: {}]   ;;  %s6432_s3 = inlined_call_operand.hbm [shape: bf16[512,2048], index: 3, kind: input, shape index: {}]   ;;  %s6433_s4 = inlined_call_operand.hbm [shape: f32[1,512], index: 4, kind: input, shape index: {}]   ;;  %s6434_s5 = inlined_call_operand.hbm [shape: bf16[128,128], index: 5, kind: input, shape index: {}]   ;;  %s6435_s6 = inlined_call_operand.hbm [shape: f32[1,128], index: 6, kind: input, shape index: {}]   ;;  %s6436_s7 = inlined_call_operand.vmem [shape: f32[16,128], index: 7, kind: output, shape index: {}]  }
   0x1   :  { %13 = vsyncpa [#allocation5], 0 }
   0x2   :  { %14 = vsyncpa [#allocation8], 0 }
   0x3   :  { %15 = vsyncpa [#allocation11], 0  ;;  %s6112_s24 = smov [#allocation4]   ;;  %s6113_s26 = smov [#allocation7]  }
   0x4   :  { %s36_s25 = sshll.u32 %s6112_s24, 4  ;;  %s58_s27 = sshll.u32 %s6113_s26, 4  ;;  %s37_s25 = int_to_ptr.vmem [resolvable:$true] %s36_s25  ;;  %s59_s27 = int_to_ptr.vmem [resolvable:$true] %s58_s27 }
   0x5   :  { %s5972_s30 = scalar_lea.hbm %s6431_s2, 64 }
   0x6   :  { %p5973_p0 = scmp.ne.s32.totalorder %s6431_s2, %s5972_s30  ;;  %p5976_p1 = scmp.lt.u32.totalorder %s5972_s30, %s6431_s2 }
   0x8   :  { %p5978_p2 = pnand %p5976_p1, %p5973_p0 }
   0xa   :  { %5981 = shalt.err (!%p5978_p2)
}
   0xb   :  { %s5982_s12 = scalar_lea.vmem %s37_s25, 64  ;;  %p5987_p4 = scmp.lt.s32.totalorder %s37_s25, %s37_s25 }
   0xc   :  { %p5983_p3 = scmp.ne.s32.totalorder %s37_s25, %s5982_s12  ;;  %p5988_p5 = scmp.lt.s32.totalorder %s5982_s12, %s5982_s12 }
   0xe   :  { %p5989_p6 = por %p5988_p5, %p5987_p4 }
  0x10   :  { %p5990_p7 = pnand %p5989_p6, %p5983_p3 }
  0x12   :  { %5993 = shalt.err (!%p5990_p7)
}
  0x13   :  { %39 = dma.hbm_to_vmem [thread:$0]  %s6431_s2, 64, %s37_s25, [#allocation5]  }
  0x14   :  { %s5994_s17 = scalar_lea.hbm %s6433_s4, 64 }
  0x15   :  { %p5995_p8 = scmp.ne.s32.totalorder %s6433_s4, %s5994_s17  ;;  %p5998_p9 = scmp.lt.u32.totalorder %s5994_s17, %s6433_s4 }
  0x17   :  { %p6000_p10 = pnand %p5998_p9, %p5995_p8 }
  0x19   :  { %6003 = shalt.err (!%p6000_p10)
}
  0x1a   :  { %s6004_s22 = scalar_lea.vmem %s59_s27, 64  ;;  %p6009_p12 = scmp.lt.s32.totalorder %s59_s27, %s59_s27 }
  0x1b   :  { %p6005_p11 = scmp.ne.s32.totalorder %s59_s27, %s6004_s22  ;;  %p6010_p13 = scmp.lt.s32.totalorder %s6004_s22, %s6004_s22 }
  0x1d   :  { %p6011_p0 = por %p6010_p13, %p6009_p12 }
  0x1f   :  { %p6012_p1 = pnand %p6011_p0, %p6005_p11 }
  0x21   :  { %6015 = shalt.err (!%p6012_p1)
}
  0x22   :  { %61 = dma.hbm_to_vmem [thread:$0]  %s6433_s4, 64, %s59_s27, [#allocation8]  }
  0x23   :  { %s6114_s24 = smov [#allocation2]   ;;  %s6016_s29 = scalar_lea.hbm %s6430_s1, 16384 }
  0x24   :  { %s23_s25 = sshll.u32 %s6114_s24, 4  ;;  %p6017_p2 = scmp.ne.s32.totalorder %s6430_s1, %s6016_s29  ;;  %s24_s25 = int_to_ptr.vmem [resolvable:$true] %s23_s25 }
  0x25   :  { %p6020_p3 = scmp.lt.u32.totalorder %s6016_s29, %s6430_s1 }
  0x27   :  { %p6022_p4 = pnand %p6020_p3, %p6017_p2 }
  0x29   :  { %6025 = shalt.err (!%p6022_p4)
}
  0x2a   :  { %s6026_s11 = scalar_lea.vmem %s24_s25, 16384  ;;  %p6031_p6 = scmp.lt.s32.totalorder %s24_s25, %s24_s25 }
  0x2b   :  { %p6027_p5 = scmp.ne.s32.totalorder %s24_s25, %s6026_s11  ;;  %p6032_p7 = scmp.lt.s32.totalorder %s6026_s11, %s6026_s11 }
  0x2d   :  { %p6033_p8 = por %p6032_p7, %p6031_p6 }
  0x2f   :  { %p6034_p9 = pnand %p6033_p8, %p6027_p5 }
  0x31   :  { %6037 = shalt.err (!%p6034_p9)
}
  0x32   :  { %s6115_s4 = smov 1024   ;;  %s6116_s27 = smov 64  }
  0x33   :  { %29 = dma.hbm_to_vmem [thread:$0]  %s6430_s1, 16384, %s24_s25, [#allocation3], %s6115_s4, %s6115_s4, %s6116_s27  }
  0x34   :  { %s6117_s14 = smov [#allocation6]   ;;  %s6118_s16 = smov [#allocation9]  }
  0x35   :  { %s45_s15 = sshll.u32 %s6117_s14, 4  ;;  %s67_s17 = sshll.u32 %s6118_s16, 4  ;;  %s46_s15 = int_to_ptr.vmem [resolvable:$true] %s45_s15  ;;  %s68_s17 = int_to_ptr.vmem [resolvable:$true] %s67_s17 }
  0x36   :  { %s6038_s20 = scalar_lea.hbm %s6432_s3, 65536 }
  0x37   :  { %p6039_p10 = scmp.ne.s32.totalorder %s6432_s3, %s6038_s20  ;;  %p6042_p11 = scmp.lt.u32.totalorder %s6038_s20, %s6432_s3 }
  0x39   :  { %p6044_p12 = pnand %p6042_p11, %p6039_p10 }
  0x3b   :  { %6047 = shalt.err (!%p6044_p12)
}
  0x3c   :  { %s6048_s1 = scalar_lea.vmem %s46_s15, 65536  ;;  %p6053_p0 = scmp.lt.s32.totalorder %s46_s15, %s46_s15 }
  0x3d   :  { %p6049_p13 = scmp.ne.s32.totalorder %s46_s15, %s6048_s1  ;;  %p6054_p1 = scmp.lt.s32.totalorder %s6048_s1, %s6048_s1 }
  0x3f   :  { %p6055_p2 = por %p6054_p1, %p6053_p0 }
  0x41   :  { %p6056_p3 = pnand %p6055_p2, %p6049_p13 }
  0x43   :  { %6059 = shalt.err (!%p6056_p3)
}
  0x44   :  { %51 = dma.hbm_to_vmem [thread:$0]  %s6432_s3, 65536, %s46_s15, [#allocation5], %s6115_s4, %s6115_s4, %s6116_s27  }
  0x45   :  { %s6060_s29 = scalar_lea.hbm %s6434_s5, 1024 }
  0x46   :  { %p6061_p4 = scmp.ne.s32.totalorder %s6434_s5, %s6060_s29  ;;  %p6064_p5 = scmp.lt.u32.totalorder %s6060_s29, %s6434_s5 }
  0x48   :  { %p6066_p6 = pnand %p6064_p5, %p6061_p4 }
  0x4a   :  { %6069 = shalt.err (!%p6066_p6)
}
  0x4b   :  { %s6070_s11 = scalar_lea.vmem %s68_s17, 1024  ;;  %p6075_p8 = scmp.lt.s32.totalorder %s68_s17, %s68_s17 }
  0x4c   :  { %p6071_p7 = scmp.ne.s32.totalorder %s68_s17, %s6070_s11  ;;  %p6076_p9 = scmp.lt.s32.totalorder %s6070_s11, %s6070_s11 }
  0x4e   :  { %p6077_p10 = por %p6076_p9, %p6075_p8 }
  0x50   :  { %p6078_p11 = pnand %p6077_p10, %p6071_p7 }
  0x52   :  { %6081 = shalt.err (!%p6078_p11)
}
  0x53   :  { %s6119_s3 = smov 4   ;;  %s6120_s13 = smov [#allocation10]  }
  0x54   :  { %73 = dma.hbm_to_vmem [thread:$0]  %s6434_s5, 1024, %s68_s17, [#allocation8], %s6116_s27, %s6116_s27, %s6119_s3  }
  0x55   :  { %s80_s14 = sshll.u32 %s6120_s13, 4  ;;  %s6082_s18 = scalar_lea.hbm %s6435_s6, 16  ;;  %s81_s14 = int_to_ptr.vmem [resolvable:$true] %s80_s14 }
  0x56   :  { %p6083_p12 = scmp.ne.s32.totalorder %s6435_s6, %s6082_s18  ;;  %p6086_p13 = scmp.lt.u32.totalorder %s6082_s18, %s6435_s6 }
  0x58   :  { %p6088_p0 = pnand %p6086_p13, %p6083_p12 }
  0x5a   :  { %6091 = shalt.err (!%p6088_p0)
}
  0x5b   :  { %s6092_s2 = scalar_lea.vmem %s81_s14, 16  ;;  %s6096_s5 = scalar_lea.vmem %s81_s14, 32 }
  0x5c   :  { %p6093_p1 = scmp.ne.s32.totalorder %s81_s14, %s6092_s2  ;;  %p6097_p2 = scmp.lt.s32.totalorder %s81_s14, %s81_s14 }
  0x5d   :  { %p6098_p3 = scmp.lt.s32.totalorder %s6096_s5, %s6092_s2 }
  0x5f   :  { %p6099_p4 = por %p6098_p3, %p6097_p2 }
  0x61   :  { %p6100_p5 = pnand %p6099_p4, %p6093_p1 }
  0x63   :  { %6103 = shalt.err (!%p6100_p5)
}
  0x64   :  { %83 = dma.hbm_to_vmem [thread:$0]  %s6435_s6, 16, %s81_s14, [#allocation11]  }
  0x65   :  { %6104 = dma.done.wait [#allocation3], 16384  }
  0x66   :  { %6105 = vsyncadd [#allocation3], 4294950912 }
  0x67   :  { %6106 = dma.done.wait [#allocation5], 65600  }
  0x68   :  { %6107 = vsyncadd [#allocation5], 4294901696 }
  0x69   :  { %6108 = dma.done.wait [#allocation8], 1088  }
  0x6a   :  { %6109 = vsyncadd [#allocation8], 4294966208 }
  0x6b   :  { %6110 = dma.done.wait [#allocation11], 16  }
  0x6c   :  { %6111 = vsyncadd [#allocation11], 4294967280  ;;  %v6121_v0 = vmov 0   ;;  %v105_v1 = vld [vmem:[#allocation2] sm:$0xff]  ;;  %v106_v3 = vld [vmem:[#allocation2 + $0x8] sm:$0xff]  ;;  %vm6123_vm0 = vmmov 0  }
  0x6d   :  { %911 = vmatprep.mubr.bf16.mxu0 %v6121_v0  ;;  %954 = vmatprep.mubr.bf16.mxu1 %v6121_v0  ;;  %v113_v2 = vld [vmem:[#allocation2 + $0x40] sm:$0xff]  ;;  %v114_v5 = vld [vmem:[#allocation2 + $0x48] sm:$0xff]  ;;  %v107_v63 = vld [vmem:[#allocation2 + $0x10] sm:$0xff] }
  0x6e   :  { %v5242_v4 = vcombine.high %v105_v1, %v113_v2  ;;  %v5241_v6 = vcombine.low %v105_v1, %v113_v2  ;;  %v121_v7 = vld [vmem:[#allocation2 + $0x80] sm:$0xff]  ;;  %v5244_v9 = vcombine.high %v106_v3, %v114_v5  ;;  %v5243_v10 = vcombine.low %v106_v3, %v114_v5  ;;  %v122_v12 = vld [vmem:[#allocation2 + $0x88] sm:$0xff]  ;;  %v115_v1 = vld [vmem:[#allocation2 + $0x50] sm:$0xff] }
  0x6f   :  { %v129_v8 = vld [vmem:[#allocation2 + $0xc0] sm:$0xff]  ;;  %v130_v13 = vld [vmem:[#allocation2 + $0xc8] sm:$0xff]  ;;  %v108_v2 = vld [vmem:[#allocation2 + $0x18] sm:$0xff] }
  0x70   :  { %v5258_v11 = vcombine.high %v121_v7, %v129_v8  ;;  %v137_v14 = vld [vmem:[#allocation2 + $0x100] sm:$0xff]  ;;  %879 = vmatprep.subr.bf16.mxu0 %v5242_v4  ;;  %v5260_v15 = vcombine.high %v122_v12, %v130_v13  ;;  %v138_v17 = vld [vmem:[#allocation2 + $0x108] sm:$0xff]  ;;  %922 = vmatprep.subr.bf16.mxu1 %v5244_v9  ;;  %v5257_v19 = vcombine.low %v121_v7, %v129_v8  ;;  %v116_v3 = vld [vmem:[#allocation2 + $0x58] sm:$0xff] }
  0x71   :  { %v145_v16 = vld [vmem:[#allocation2 + $0x140] sm:$0xff]  ;;  %v146_v18 = vld [vmem:[#allocation2 + $0x148] sm:$0xff]  ;;  %880 = vmatpush1.bf16.msra.mxu0 %v5241_v6  ;;  %923 = vmatpush1.bf16.msra.mxu1 %v5243_v10  ;;  %v5259_v20 = vcombine.low %v122_v12, %v130_v13  ;;  %v5246_v6 = vcombine.high %v107_v63, %v115_v1  ;;  %v5248_v7 = vcombine.high %v108_v2, %v116_v3  ;;  %v123_v8 = vld [vmem:[#allocation2 + $0x90] sm:$0xff] }
  0x72   :  { %881 = vmatprep.subr.bf16.mxu0 %v5258_v11  ;;  %v5274_v21 = vcombine.high %v137_v14, %v145_v16  ;;  %924 = vmatprep.subr.bf16.mxu1 %v5260_v15  ;;  %v5276_v22 = vcombine.high %v138_v17, %v146_v18  ;;  %v153_v23 = vld [vmem:[#allocation2 + $0x180] sm:$0xff]  ;;  %v154_v25 = vld [vmem:[#allocation2 + $0x188] sm:$0xff]  ;;  %v5273_v27 = vcombine.low %v137_v14, %v145_v16  ;;  %v131_v9 = vld [vmem:[#allocation2 + $0xd0] sm:$0xff] }
  0x73   :  { %v161_v24 = vld [vmem:[#allocation2 + $0x1c0] sm:$0xff]  ;;  %v162_v26 = vld [vmem:[#allocation2 + $0x1c8] sm:$0xff]  ;;  %v5275_v28 = vcombine.low %v138_v17, %v146_v18  ;;  %v124_v11 = vld [vmem:[#allocation2 + $0x98] sm:$0xff]  ;;  %v5245_v13 = vcombine.low %v107_v63, %v115_v1  ;;  %v5247_v14 = vcombine.low %v108_v2, %v116_v3  ;;  %v5262_v15 = vcombine.high %v123_v8, %v131_v9 }
  0x74   :  { %v5290_v29 = vcombine.high %v153_v23, %v161_v24  ;;  %v5292_v30 = vcombine.high %v154_v25, %v162_v26  ;;  %v169_v31 = vld [vmem:[#allocation2 + $0x200] sm:$0xff]  ;;  %v170_v33 = vld [vmem:[#allocation2 + $0x208] sm:$0xff]  ;;  %v5289_v35 = vcombine.low %v153_v23, %v161_v24  ;;  %v5291_v36 = vcombine.low %v154_v25, %v162_v26  ;;  %v132_v12 = vld [vmem:[#allocation2 + $0xd8] sm:$0xff] }
  0x75   :  { %882 = vmatpush1.bf16.msra.mxu0 %v5257_v19  ;;  %925 = vmatpush1.bf16.msra.mxu1 %v5259_v20  ;;  %v177_v32 = vld [vmem:[#allocation2 + $0x240] sm:$0xff]  ;;  %v178_v34 = vld [vmem:[#allocation2 + $0x248] sm:$0xff]  ;;  %v5264_v16 = vcombine.high %v124_v11, %v132_v12  ;;  %v139_v17 = vld [vmem:[#allocation2 + $0x110] sm:$0xff] }
  0x76   :  { %883 = vmatprep.subr.bf16.mxu0 %v5274_v21  ;;  %926 = vmatprep.subr.bf16.mxu1 %v5276_v22  ;;  %v5306_v37 = vcombine.high %v169_v31, %v177_v32  ;;  %v5308_v38 = vcombine.high %v170_v33, %v178_v34  ;;  %v185_v39 = vld [vmem:[#allocation2 + $0x280] sm:$0xff]  ;;  %v186_v41 = vld [vmem:[#allocation2 + $0x288] sm:$0xff]  ;;  %v5305_v43 = vcombine.low %v169_v31, %v177_v32  ;;  %v147_v18 = vld [vmem:[#allocation2 + $0x150] sm:$0xff] }
  0x77   :  { %v193_v40 = vld [vmem:[#allocation2 + $0x2c0] sm:$0xff]  ;;  %v194_v42 = vld [vmem:[#allocation2 + $0x2c8] sm:$0xff]  ;;  %v5307_v44 = vcombine.low %v170_v33, %v178_v34  ;;  %v140_v19 = vld [vmem:[#allocation2 + $0x118] sm:$0xff]  ;;  %v5261_v21 = vcombine.low %v123_v8, %v131_v9  ;;  %v5263_v22 = vcombine.low %v124_v11, %v132_v12  ;;  %v5278_v23 = vcombine.high %v139_v17, %v147_v18 }
  0x78   :  { %v5322_v45 = vcombine.high %v185_v39, %v193_v40  ;;  %v5324_v46 = vcombine.high %v186_v41, %v194_v42  ;;  %v201_v47 = vld [vmem:[#allocation2 + $0x300] sm:$0xff]  ;;  %v202_v49 = vld [vmem:[#allocation2 + $0x308] sm:$0xff]  ;;  %v5321_v51 = vcombine.low %v185_v39, %v193_v40  ;;  %v5323_v52 = vcombine.low %v186_v41, %v194_v42  ;;  %v148_v20 = vld [vmem:[#allocation2 + $0x158] sm:$0xff] }
  0x79   :  { %884 = vmatpush1.bf16.msra.mxu0 %v5273_v27  ;;  %927 = vmatpush1.bf16.msra.mxu1 %v5275_v28  ;;  %v209_v48 = vld [vmem:[#allocation2 + $0x340] sm:$0xff]  ;;  %v210_v50 = vld [vmem:[#allocation2 + $0x348] sm:$0xff]  ;;  %v5280_v24 = vcombine.high %v140_v19, %v148_v20  ;;  %v155_v25 = vld [vmem:[#allocation2 + $0x190] sm:$0xff] }
  0x7a   :  { %885 = vmatprep.subr.bf16.mxu0 %v5290_v29  ;;  %928 = vmatprep.subr.bf16.mxu1 %v5292_v30  ;;  %v5338_v53 = vcombine.high %v201_v47, %v209_v48  ;;  %v5340_v54 = vcombine.high %v202_v49, %v210_v50  ;;  %v217_v55 = vld [vmem:[#allocation2 + $0x380] sm:$0xff]  ;;  %v218_v57 = vld [vmem:[#allocation2 + $0x388] sm:$0xff]  ;;  %v5337_v59 = vcombine.low %v201_v47, %v209_v48  ;;  %v163_v26 = vld [vmem:[#allocation2 + $0x1d0] sm:$0xff] }
  0x7b   :  { %v225_v56 = vld [vmem:[#allocation2 + $0x3c0] sm:$0xff]  ;;  %v226_v58 = vld [vmem:[#allocation2 + $0x3c8] sm:$0xff]  ;;  %v5339_v60 = vcombine.low %v202_v49, %v210_v50  ;;  %v156_v27 = vld [vmem:[#allocation2 + $0x198] sm:$0xff]  ;;  %v5277_v29 = vcombine.low %v139_v17, %v147_v18  ;;  %v5279_v30 = vcombine.low %v140_v19, %v148_v20  ;;  %v5294_v31 = vcombine.high %v155_v25, %v163_v26 }
  0x7c   :  { %v5354_v61 = vcombine.high %v217_v55, %v225_v56  ;;  %v5356_v62 = vcombine.high %v218_v57, %v226_v58  ;;  %v5353_v4 = vcombine.low %v217_v55, %v225_v56  ;;  %v5355_v5 = vcombine.low %v218_v57, %v226_v58  ;;  %v6245_v10 = vld [vmem:[%s6429_s0] sm:$0xff]   ;;  %v164_v28 = vld [vmem:[#allocation2 + $0x1d8] sm:$0xff]  ;;  %v171_v33 = vld [vmem:[#allocation2 + $0x210] sm:$0xff] }
  0x7d   :  { %886 = vmatpush1.bf16.msra.mxu0 %v5289_v35  ;;  %929 = vmatpush1.bf16.msra.mxu1 %v5291_v36  ;;  %v5296_v32 = vcombine.high %v156_v27, %v164_v28  ;;  %v179_v34 = vld [vmem:[#allocation2 + $0x250] sm:$0xff]  ;;  %v172_v35 = vld [vmem:[#allocation2 + $0x218] sm:$0xff]  ;;  %v5295_v40 = vcombine.low %v156_v27, %v164_v28  ;;  %v109_v2 = vld [vmem:[#allocation2 + $0x20] sm:$0xff] }
  0x7e   :  { %887 = vmatprep.subr.bf16.mxu0 %v5306_v37  ;;  %930 = vmatprep.subr.bf16.mxu1 %v5308_v38  ;;  %v180_v36 = vld [vmem:[#allocation2 + $0x258] sm:$0xff]  ;;  %v5293_v37 = vcombine.low %v155_v25, %v163_v26  ;;  %v187_v38 = vld [vmem:[#allocation2 + $0x290] sm:$0xff]  ;;  %v5310_v41 = vcombine.high %v171_v33, %v179_v34  ;;  %v117_v3 = vld [vmem:[#allocation2 + $0x60] sm:$0xff] }
  0x7f   :  { %v195_v39 = vld [vmem:[#allocation2 + $0x2d0] sm:$0xff]  ;;  %v188_v42 = vld [vmem:[#allocation2 + $0x298] sm:$0xff]  ;;  %v5250_v8 = vcombine.high %v109_v2, %v117_v3  ;;  %v125_v11 = vld [vmem:[#allocation2 + $0xa0] sm:$0xff] }
  0x80   :  { %v5326_v47 = vcombine.high %v187_v38, %v195_v39  ;;  %v203_v49 = vld [vmem:[#allocation2 + $0x310] sm:$0xff]  ;;  %v133_v12 = vld [vmem:[#allocation2 + $0xe0] sm:$0xff] }
  0x81   :  { %888 = vmatpush1.bf16.msra.mxu0 %v5305_v43  ;;  %931 = vmatpush1.bf16.msra.mxu1 %v5307_v44  ;;  %v196_v43 = vld [vmem:[#allocation2 + $0x2d8] sm:$0xff]  ;;  %v5312_v44 = vcombine.high %v172_v35, %v180_v36  ;;  %v211_v50 = vld [vmem:[#allocation2 + $0x350] sm:$0xff]  ;;  %v5266_v17 = vcombine.high %v125_v11, %v133_v12  ;;  %v141_v19 = vld [vmem:[#allocation2 + $0x120] sm:$0xff] }
  0x82   :  { %889 = vmatprep.subr.bf16.mxu0 %v5322_v45  ;;  %932 = vmatprep.subr.bf16.mxu1 %v5324_v46  ;;  %v5309_v45 = vcombine.low %v171_v33, %v179_v34  ;;  %v5311_v46 = vcombine.low %v172_v35, %v180_v36  ;;  %v5328_v48 = vcombine.high %v188_v42, %v196_v43  ;;  %v219_v57 = vld [vmem:[#allocation2 + $0x390] sm:$0xff]  ;;  %v149_v20 = vld [vmem:[#allocation2 + $0x160] sm:$0xff] }
  0x83   :  { %v5342_v55 = vcombine.high %v203_v49, %v211_v50  ;;  %v227_v58 = vld [vmem:[#allocation2 + $0x3d0] sm:$0xff]  ;;  %v5282_v25 = vcombine.high %v141_v19, %v149_v20  ;;  %v157_v27 = vld [vmem:[#allocation2 + $0x1a0] sm:$0xff] }
  0x84   :  { %v5358_v63 = vcombine.high %v219_v57, %v227_v58  ;;  %v165_v28 = vld [vmem:[#allocation2 + $0x1e0] sm:$0xff] }
  0x85   :  { %890 = vmatpush1.bf16.msra.mxu0 %v5321_v51  ;;  %933 = vmatpush1.bf16.msra.mxu1 %v5323_v52  ;;  %v204_v51 = vld [vmem:[#allocation2 + $0x318] sm:$0xff]  ;;  %v5298_v33 = vcombine.high %v157_v27, %v165_v28  ;;  %v173_v35 = vld [vmem:[#allocation2 + $0x220] sm:$0xff] }
  0x86   :  { %891 = vmatprep.subr.bf16.mxu0 %v5338_v53  ;;  %934 = vmatprep.subr.bf16.mxu1 %v5340_v54  ;;  %v212_v52 = vld [vmem:[#allocation2 + $0x358] sm:$0xff]  ;;  %v5325_v53 = vcombine.low %v187_v38, %v195_v39  ;;  %v5327_v54 = vcombine.low %v188_v42, %v196_v43  ;;  %v181_v36 = vld [vmem:[#allocation2 + $0x260] sm:$0xff]  ;;  %v182_v38 = vld [vmem:[#allocation2 + $0x268] sm:$0xff]  ;;  %v5297_v39 = vcombine.low %v157_v27, %v165_v28 }
  0x87   :  { %v5344_v56 = vcombine.high %v204_v51, %v212_v52  ;;  %v189_v43 = vld [vmem:[#allocation2 + $0x2a0] sm:$0xff] }
  0x89   :  { %892 = vmatpush1.bf16.msra.mxu0 %v5337_v59  ;;  %935 = vmatpush1.bf16.msra.mxu1 %v5339_v60  ;;  %v220_v59 = vld [vmem:[#allocation2 + $0x398] sm:$0xff] }
  0x8a   :  { %893 = vmatprep.subr.bf16.mxu0 %v5354_v61  ;;  %936 = vmatprep.subr.bf16.mxu1 %v5356_v62  ;;  %v228_v60 = vld [vmem:[#allocation2 + $0x3d8] sm:$0xff]  ;;  %v5341_v61 = vcombine.low %v203_v49, %v211_v50  ;;  %v5343_v62 = vcombine.low %v204_v51, %v212_v52  ;;  %v205_v51 = vld [vmem:[#allocation2 + $0x320] sm:$0xff] }
  0x8b   :  { %v5360_v1 = vcombine.high %v220_v59, %v228_v60  ;;  %v213_v52 = vld [vmem:[#allocation2 + $0x360] sm:$0xff] }
  0x8d   :  { %894 = vmatpush1.bf16.msra.mxu0 %v5353_v4  ;;  %937 = vmatpush1.bf16.msra.mxu1 %v5355_v5  ;;  %v110_v4 = vld [vmem:[#allocation2 + $0x28] sm:$0xff] }
  0x8e   :  { %965 = vmatprep.subr.bf16.mxu0 %v5246_v6  ;;  %1008 = vmatprep.subr.bf16.mxu1 %v5248_v7  ;;  %v118_v5 = vld [vmem:[#allocation2 + $0x68] sm:$0xff]  ;;  %v5357_v6 = vcombine.low %v219_v57, %v227_v58  ;;  %v5359_v7 = vcombine.low %v220_v59, %v228_v60  ;;  %v5346_v57 = vcombine.high %v205_v51, %v213_v52  ;;  %v221_v59 = vld [vmem:[#allocation2 + $0x3a0] sm:$0xff] }
  0x8f   :  { %v5252_v9 = vcombine.high %v110_v4, %v118_v5  ;;  %v229_v60 = vld [vmem:[#allocation2 + $0x3e0] sm:$0xff] }
  0x90   :  { %912 = vmatmul.mubr.bf16.vlgmr.msra.gmra.mrb[0].mxu0 %v6245_v10  ;;  %955 = vmatmul.mubr.bf16.vlgmr.msra.gmra.mrb[0].mxu1 %v6245_v10 }
  0x91   :  { %966 = vmatpush1.bf16.msra.mxu0 %v5245_v13  ;;  %1009 = vmatpush1.bf16.msra.mxu1 %v5247_v14  ;;  %v126_v13 = vld [vmem:[#allocation2 + $0xa8] sm:$0xff] }
  0x92   :  { %967 = vmatprep.subr.bf16.mxu0 %v5262_v15  ;;  %1010 = vmatprep.subr.bf16.mxu1 %v5264_v16  ;;  %v134_v14 = vld [vmem:[#allocation2 + $0xe8] sm:$0xff]  ;;  %v5249_v15 = vcombine.low %v109_v2, %v117_v3  ;;  %v5251_v16 = vcombine.low %v110_v4, %v118_v5  ;;  %v5362_v2 = vcombine.high %v221_v59, %v229_v60  ;;  %v111_v4 = vld [vmem:[#allocation2 + $0x30] sm:$0xff] }
  0x93   :  { %997 = vmatprep.mubr.bf16.mxu0 %v6121_v0  ;;  %1040 = vmatprep.mubr.bf16.mxu1 %v6121_v0  ;;  %v5268_v18 = vcombine.high %v126_v13, %v134_v14  ;;  %v119_v5 = vld [vmem:[#allocation2 + $0x70] sm:$0xff] }
  0x95   :  { %968 = vmatpush1.bf16.msra.mxu0 %v5261_v21  ;;  %1011 = vmatpush1.bf16.msra.mxu1 %v5263_v22  ;;  %v142_v21 = vld [vmem:[#allocation2 + $0x128] sm:$0xff] }
  0x96   :  { %969 = vmatprep.subr.bf16.mxu0 %v5278_v23  ;;  %1012 = vmatprep.subr.bf16.mxu1 %v5280_v24  ;;  %v150_v22 = vld [vmem:[#allocation2 + $0x168] sm:$0xff]  ;;  %v5265_v23 = vcombine.low %v125_v11, %v133_v12  ;;  %v5267_v24 = vcombine.low %v126_v13, %v134_v14  ;;  %v5254_v11 = vcombine.high %v111_v4, %v119_v5  ;;  %v127_v13 = vld [vmem:[#allocation2 + $0xb0] sm:$0xff] }
  0x97   :  { %v5284_v26 = vcombine.high %v142_v21, %v150_v22  ;;  %v135_v14 = vld [vmem:[#allocation2 + $0xf0] sm:$0xff] }
  0x99   :  { %970 = vmatpush1.bf16.msra.mxu0 %v5277_v29  ;;  %1013 = vmatpush1.bf16.msra.mxu1 %v5279_v30  ;;  %v158_v29 = vld [vmem:[#allocation2 + $0x1a8] sm:$0xff] }
  0x9a   :  { %971 = vmatprep.subr.bf16.mxu0 %v5294_v31  ;;  %1014 = vmatprep.subr.bf16.mxu1 %v5296_v32  ;;  %v166_v30 = vld [vmem:[#allocation2 + $0x1e8] sm:$0xff]  ;;  %v5281_v31 = vcombine.low %v141_v19, %v149_v20  ;;  %v5283_v32 = vcombine.low %v142_v21, %v150_v22  ;;  %v5270_v19 = vcombine.high %v127_v13, %v135_v14  ;;  %v143_v21 = vld [vmem:[#allocation2 + $0x130] sm:$0xff] }
  0x9b   :  { %v5300_v34 = vcombine.high %v158_v29, %v166_v30  ;;  %v151_v22 = vld [vmem:[#allocation2 + $0x170] sm:$0xff] }
  0x9c   :  { %v5286_v27 = vcombine.high %v143_v21, %v151_v22 }
  0x9d   :  { %972 = vmatpush1.bf16.msra.mxu0 %v5293_v37  ;;  %1015 = vmatpush1.bf16.msra.mxu1 %v5295_v40  ;;  %v174_v37 = vld [vmem:[#allocation2 + $0x228] sm:$0xff]  ;;  %v5299_v40 = vcombine.low %v158_v29, %v166_v30  ;;  %v159_v29 = vld [vmem:[#allocation2 + $0x1b0] sm:$0xff] }
  0x9e   :  { %973 = vmatprep.subr.bf16.mxu0 %v5310_v41  ;;  %1016 = vmatprep.subr.bf16.mxu1 %v5312_v44  ;;  %v5314_v41 = vcombine.high %v173_v35, %v181_v36  ;;  %v5316_v42 = vcombine.high %v174_v37, %v182_v38  ;;  %v197_v44 = vld [vmem:[#allocation2 + $0x2e0] sm:$0xff]  ;;  %v167_v30 = vld [vmem:[#allocation2 + $0x1f0] sm:$0xff] }
  0x9f   :  { %v5330_v49 = vcombine.high %v189_v43, %v197_v44 }
  0xa1   :  { %974 = vmatpush1.bf16.msra.mxu0 %v5309_v45  ;;  %1017 = vmatpush1.bf16.msra.mxu1 %v5311_v46  ;;  %v190_v45 = vld [vmem:[#allocation2 + $0x2a8] sm:$0xff] }
  0xa2   :  { %975 = vmatprep.subr.bf16.mxu0 %v5326_v47  ;;  %1018 = vmatprep.subr.bf16.mxu1 %v5328_v48  ;;  %v198_v46 = vld [vmem:[#allocation2 + $0x2e8] sm:$0xff]  ;;  %v5313_v47 = vcombine.low %v173_v35, %v181_v36  ;;  %v5315_v48 = vcombine.low %v174_v37, %v182_v38  ;;  %v5302_v35 = vcombine.high %v159_v29, %v167_v30  ;;  %v175_v37 = vld [vmem:[#allocation2 + $0x230] sm:$0xff] }
  0xa3   :  { %v5332_v50 = vcombine.high %v190_v45, %v198_v46  ;;  %v183_v38 = vld [vmem:[#allocation2 + $0x270] sm:$0xff] }
  0xa5   :  { %976 = vmatpush1.bf16.msra.mxu0 %v5325_v53  ;;  %1019 = vmatpush1.bf16.msra.mxu1 %v5327_v54  ;;  %v206_v53 = vld [vmem:[#allocation2 + $0x328] sm:$0xff] }
  0xa6   :  { %977 = vmatprep.subr.bf16.mxu0 %v5342_v55  ;;  %1020 = vmatprep.subr.bf16.mxu1 %v5344_v56  ;;  %v214_v54 = vld [vmem:[#allocation2 + $0x368] sm:$0xff]  ;;  %v5329_v55 = vcombine.low %v189_v43, %v197_v44  ;;  %v5331_v56 = vcombine.low %v190_v45, %v198_v46  ;;  %v5318_v43 = vcombine.high %v175_v37, %v183_v38  ;;  %v191_v44 = vld [vmem:[#allocation2 + $0x2b0] sm:$0xff]  ;;  %v192_v46 = vld [vmem:[#allocation2 + $0x2b8] sm:$0xff] }
  0xa7   :  { %v5348_v58 = vcombine.high %v206_v53, %v214_v54  ;;  %v199_v45 = vld [vmem:[#allocation2 + $0x2f0] sm:$0xff] }
  0xa9   :  { %978 = vmatpush1.bf16.msra.mxu0 %v5341_v61  ;;  %1021 = vmatpush1.bf16.msra.mxu1 %v5343_v62  ;;  %v222_v61 = vld [vmem:[#allocation2 + $0x3a8] sm:$0xff] }
  0xaa   :  { %979 = vmatprep.subr.bf16.mxu0 %v5358_v63  ;;  %1022 = vmatprep.subr.bf16.mxu1 %v5360_v1  ;;  %v230_v62 = vld [vmem:[#allocation2 + $0x3e8] sm:$0xff]  ;;  %v5345_v63 = vcombine.low %v205_v51, %v213_v52  ;;  %v5347_v1 = vcombine.low %v206_v53, %v214_v54  ;;  %v207_v52 = vld [vmem:[#allocation2 + $0x330] sm:$0xff]  ;;  %v208_v54 = vld [vmem:[#allocation2 + $0x338] sm:$0xff] }
  0xab   :  { %v5364_v3 = vcombine.high %v222_v61, %v230_v62  ;;  %v215_v53 = vld [vmem:[#allocation2 + $0x370] sm:$0xff] }
  0xad   :  { %980 = vmatpush1.bf16.msra.mxu0 %v5357_v6  ;;  %1023 = vmatpush1.bf16.msra.mxu1 %v5359_v7  ;;  %v112_v6 = vld [vmem:[#allocation2 + $0x38] sm:$0xff] }
  0xae   :  { %1051 = vmatprep.subr.bf16.mxu0 %v5250_v8  ;;  %1094 = vmatprep.subr.bf16.mxu1 %v5252_v9  ;;  %v120_v7 = vld [vmem:[#allocation2 + $0x78] sm:$0xff]  ;;  %v5361_v8 = vcombine.low %v221_v59, %v229_v60  ;;  %v5363_v9 = vcombine.low %v222_v61, %v230_v62  ;;  %v223_v60 = vld [vmem:[#allocation2 + $0x3b0] sm:$0xff] }
  0xaf   :  { %v5256_v12 = vcombine.high %v112_v6, %v120_v7  ;;  %v231_v61 = vld [vmem:[#allocation2 + $0x3f0] sm:$0xff]  ;;  %v224_v62 = vld [vmem:[#allocation2 + $0x3b8] sm:$0xff] }
  0xb0   :  { %998 = vmatmul.mubr.bf16.vlgmr.msra.gmra.mrb[4].mxu0 %v6245_v10  ;;  %1041 = vmatmul.mubr.bf16.vlgmr.msra.gmra.mrb[4].mxu1 %v6245_v10 }
  0xb1   :  { %1052 = vmatpush1.bf16.msra.mxu0 %v5249_v15  ;;  %1095 = vmatpush1.bf16.msra.mxu1 %v5251_v16  ;;  %v128_v15 = vld [vmem:[#allocation2 + $0xb8] sm:$0xff] }
  0xb2   :  { %1053 = vmatprep.subr.bf16.mxu0 %v5266_v17  ;;  %1096 = vmatprep.subr.bf16.mxu1 %v5268_v18  ;;  %v136_v16 = vld [vmem:[#allocation2 + $0xf8] sm:$0xff]  ;;  %v5253_v17 = vcombine.low %v111_v4, %v119_v5  ;;  %v5255_v18 = vcombine.low %v112_v6, %v120_v7  ;;  %v5365_v5 = vcombine.low %v223_v60, %v231_v61  ;;  %v1289_v7 = vld [vmem:[#allocation6] sm:$0xff] }
  0xb3   :  { %1083 = vmatprep.mubr.bf16.mxu0 %v6121_v0  ;;  %1126 = vmatprep.mubr.bf16.mxu1 %v6121_v0  ;;  %v5272_v20 = vcombine.high %v128_v15, %v136_v16 }
  0xb5   :  { %1054 = vmatpush1.bf16.msra.mxu0 %v5265_v23  ;;  %1097 = vmatpush1.bf16.msra.mxu1 %v5267_v24  ;;  %v144_v23 = vld [vmem:[#allocation2 + $0x138] sm:$0xff] }
  0xb6   :  { %1055 = vmatprep.subr.bf16.mxu0 %v5282_v25  ;;  %1098 = vmatprep.subr.bf16.mxu1 %v5284_v26  ;;  %v152_v24 = vld [vmem:[#allocation2 + $0x178] sm:$0xff]  ;;  %v5269_v25 = vcombine.low %v127_v13, %v135_v14  ;;  %v5271_v26 = vcombine.low %v128_v15, %v136_v16  ;;  %v1298_v13 = vld [vmem:[#allocation6 + $0x48] sm:$0xff]  ;;  %v1305_v14 = vld [vmem:[#allocation6 + $0x80] sm:$0xff] }
  0xb7   :  { %v5288_v28 = vcombine.high %v144_v23, %v152_v24  ;;  %v1313_v15 = vld [vmem:[#allocation6 + $0xc0] sm:$0xff] }
  0xb9   :  { %1056 = vmatpush1.bf16.msra.mxu0 %v5281_v31  ;;  %1099 = vmatpush1.bf16.msra.mxu1 %v5283_v32  ;;  %v160_v31 = vld [vmem:[#allocation2 + $0x1b8] sm:$0xff] }
  0xba   :  { %1057 = vmatprep.subr.bf16.mxu0 %v5298_v33  ;;  %1100 = vmatprep.subr.bf16.mxu1 %v5300_v34  ;;  %v168_v32 = vld [vmem:[#allocation2 + $0x1f8] sm:$0xff]  ;;  %v5285_v33 = vcombine.low %v143_v21, %v151_v22  ;;  %v5287_v34 = vcombine.low %v144_v23, %v152_v24  ;;  %v1321_v21 = vld [vmem:[#allocation6 + $0x100] sm:$0xff]  ;;  %v1322_v24 = vld [vmem:[#allocation6 + $0x108] sm:$0xff] }
  0xbb   :  { %v5304_v36 = vcombine.high %v160_v31, %v168_v32  ;;  %v1329_v23 = vld [vmem:[#allocation6 + $0x140] sm:$0xff] }
  0xbd   :  { %1058 = vmatpush1.bf16.msra.mxu0 %v5297_v39  ;;  %1101 = vmatpush1.bf16.msra.mxu1 %v5299_v40  ;;  %v176_v39 = vld [vmem:[#allocation2 + $0x238] sm:$0xff] }
  0xbe   :  { %1059 = vmatprep.subr.bf16.mxu0 %v5314_v41  ;;  %1102 = vmatprep.subr.bf16.mxu1 %v5316_v42  ;;  %v184_v40 = vld [vmem:[#allocation2 + $0x278] sm:$0xff]  ;;  %v5301_v41 = vcombine.low %v159_v29, %v167_v30  ;;  %v5303_v42 = vcombine.low %v160_v31, %v168_v32  ;;  %v1337_v29 = vld [vmem:[#allocation6 + $0x180] sm:$0xff]  ;;  %v1338_v31 = vld [vmem:[#allocation6 + $0x188] sm:$0xff] }
  0xbf   :  { %v1345_v30 = vld [vmem:[#allocation6 + $0x1c0] sm:$0xff]  ;;  %v1346_v32 = vld [vmem:[#allocation6 + $0x1c8] sm:$0xff] }
  0xc1   :  { %1060 = vmatpush1.bf16.msra.mxu0 %v5313_v47  ;;  %1103 = vmatpush1.bf16.msra.mxu1 %v5315_v48  ;;  %v200_v47 = vld [vmem:[#allocation2 + $0x2f8] sm:$0xff]  ;;  %v5317_v48 = vcombine.low %v175_v37, %v183_v38  ;;  %v1353_v37 = vld [vmem:[#allocation6 + $0x200] sm:$0xff] }
  0xc2   :  { %1061 = vmatprep.subr.bf16.mxu0 %v5330_v49  ;;  %1104 = vmatprep.subr.bf16.mxu1 %v5332_v50  ;;  %v5319_v49 = vcombine.low %v176_v39, %v184_v40  ;;  %v5334_v50 = vcombine.high %v191_v44, %v199_v45  ;;  %v5336_v51 = vcombine.high %v192_v46, %v200_v47  ;;  %v1361_v38 = vld [vmem:[#allocation6 + $0x240] sm:$0xff] }
  0xc5   :  { %1062 = vmatpush1.bf16.msra.mxu0 %v5329_v55  ;;  %1105 = vmatpush1.bf16.msra.mxu1 %v5331_v56  ;;  %v216_v55 = vld [vmem:[#allocation2 + $0x378] sm:$0xff]  ;;  %v5333_v56 = vcombine.low %v191_v44, %v199_v45  ;;  %v5433_v44 = vcombine.low %v1353_v37, %v1361_v38 }
  0xc6   :  { %1063 = vmatprep.subr.bf16.mxu0 %v5346_v57  ;;  %1106 = vmatprep.subr.bf16.mxu1 %v5348_v58  ;;  %v5335_v57 = vcombine.low %v192_v46, %v200_v47  ;;  %v5350_v58 = vcombine.high %v207_v52, %v215_v53  ;;  %v5352_v59 = vcombine.high %v208_v54, %v216_v55  ;;  %v1369_v46 = vld [vmem:[#allocation6 + $0x280] sm:$0xff] }
  0xc7   :  { %v1377_v47 = vld [vmem:[#allocation6 + $0x2c0] sm:$0xff] }
  0xc9   :  { %1064 = vmatpush1.bf16.msra.mxu0 %v5345_v63  ;;  %1107 = vmatpush1.bf16.msra.mxu1 %v5347_v1  ;;  %v232_v63 = vld [vmem:[#allocation2 + $0x3f8] sm:$0xff]  ;;  %v5349_v1 = vcombine.low %v207_v52, %v215_v53 }
  0xca   :  { %1065 = vmatprep.subr.bf16.mxu0 %v5362_v2  ;;  %1108 = vmatprep.subr.bf16.mxu1 %v5364_v3  ;;  %v5351_v2 = vcombine.low %v208_v54, %v216_v55  ;;  %v5366_v3 = vcombine.high %v223_v60, %v231_v61  ;;  %v5368_v4 = vcombine.high %v224_v62, %v232_v63  ;;  %v1385_v54 = vld [vmem:[#allocation6 + $0x300] sm:$0xff] }
  0xcb   :  { %v5367_v6 = vcombine.low %v224_v62, %v232_v63  ;;  %v1393_v55 = vld [vmem:[#allocation6 + $0x340] sm:$0xff] }
  0xcc   :  { %v1401_v60 = vld [vmem:[#allocation6 + $0x380] sm:$0xff] }
  0xcd   :  { %1066 = vmatpush1.bf16.msra.mxu0 %v5361_v8  ;;  %1109 = vmatpush1.bf16.msra.mxu1 %v5363_v9  ;;  %v1297_v8 = vld [vmem:[#allocation6 + $0x40] sm:$0xff]  ;;  %v1290_v9 = vld [vmem:[#allocation6 + $0x8] sm:$0xff] }
  0xce   :  { %1137 = vmatprep.subr.bf16.mxu0 %v5254_v11  ;;  %1180 = vmatprep.subr.bf16.mxu1 %v5256_v12  ;;  %v5369_v11 = vcombine.low %v1289_v7, %v1297_v8  ;;  %v5370_v12 = vcombine.high %v1289_v7, %v1297_v8  ;;  %v5371_v16 = vcombine.low %v1290_v9, %v1298_v13  ;;  %v1409_v61 = vld [vmem:[#allocation6 + $0x3c0] sm:$0xff]  ;;  %v1418_v7 = vld [vmem:[#allocation6 + $0x408] sm:$0xff] }
  0xcf   :  { %v1426_v8 = vld [vmem:[#allocation6 + $0x448] sm:$0xff] }
  0xd0   :  { %1084 = vmatmul.mubr.bf16.vlgmr.msra.gmra.mrb[8].mxu0 %v6245_v10  ;;  %1127 = vmatmul.mubr.bf16.vlgmr.msra.gmra.mrb[8].mxu1 %v6245_v10 }
  0xd1   :  { %1138 = vmatpush1.bf16.msra.mxu0 %v5253_v17  ;;  %1181 = vmatpush1.bf16.msra.mxu1 %v5255_v18  ;;  %v5372_v17 = vcombine.high %v1290_v9, %v1298_v13  ;;  %v5386_v18 = vcombine.high %v1305_v14, %v1313_v15  ;;  %v5481_v9 = vcombine.low %v1401_v60, %v1409_v61 }
  0xd2   :  { %1139 = vmatprep.subr.bf16.mxu0 %v5270_v19  ;;  %1182 = vmatprep.subr.bf16.mxu1 %v5272_v20  ;;  %v1306_v19 = vld [vmem:[#allocation6 + $0x88] sm:$0xff]  ;;  %v5500_v13 = vcombine.high %v1418_v7, %v1426_v8 }
  0xd3   :  { %1169 = vmatprep.mubr.bf16.mxu0 %v6121_v0  ;;  %1212 = vmatprep.mubr.bf16.mxu1 %v6121_v0  ;;  %v5320_v0 = vcombine.high %v176_v39, %v184_v40  ;;  %v1314_v20 = vld [vmem:[#allocation6 + $0xc8] sm:$0xff] }
  0xd4   :  { %v5388_v22 = vcombine.high %v1306_v19, %v1314_v20  ;;  %v1354_v39 = vld [vmem:[#allocation6 + $0x208] sm:$0xff] }
  0xd5   :  { %1140 = vmatpush1.bf16.msra.mxu0 %v5269_v25  ;;  %1183 = vmatpush1.bf16.msra.mxu1 %v5271_v26  ;;  %v1330_v25 = vld [vmem:[#allocation6 + $0x148] sm:$0xff]  ;;  %v5387_v26 = vcombine.low %v1306_v19, %v1314_v20  ;;  %v5499_v19 = vcombine.low %v1418_v7, %v1426_v8  ;;  %v6261_v7 = vld [vmem:[#allocation6 + $0x800] sm:$0xff] }
  0xd6   :  { %1141 = vmatprep.subr.bf16.mxu0 %v5286_v27  ;;  %1184 = vmatprep.subr.bf16.mxu1 %v5288_v28  ;;  %v5402_v27 = vcombine.high %v1321_v21, %v1329_v23  ;;  %v5404_v28 = vcombine.high %v1322_v24, %v1330_v25  ;;  %v1362_v40 = vld [vmem:[#allocation6 + $0x248] sm:$0xff]  ;;  %v6263_v8 = vld [vmem:[#allocation6 + $0x840] sm:$0xff] }
  0xd7   :  { %v5435_v45 = vcombine.low %v1354_v39, %v1362_v40 }
  0xd9   :  { %1142 = vmatpush1.bf16.msra.mxu0 %v5285_v33  ;;  %1185 = vmatpush1.bf16.msra.mxu1 %v5287_v34  ;;  %v5401_v33 = vcombine.low %v1321_v21, %v1329_v23  ;;  %v5403_v34 = vcombine.low %v1322_v24, %v1330_v25  ;;  %v1457_v23 = vld [vmem:[#allocation6 + $0x540] sm:$0xff]  ;;  %v1450_v24 = vld [vmem:[#allocation6 + $0x508] sm:$0xff] }
  0xda   :  { %1143 = vmatprep.subr.bf16.mxu0 %v5302_v35  ;;  %1186 = vmatprep.subr.bf16.mxu1 %v5304_v36  ;;  %v5418_v35 = vcombine.high %v1337_v29, %v1345_v30  ;;  %v5420_v36 = vcombine.high %v1338_v31, %v1346_v32  ;;  %v1458_v25 = vld [vmem:[#allocation6 + $0x548] sm:$0xff] }
  0xdd   :  { %1144 = vmatpush1.bf16.msra.mxu0 %v5301_v41  ;;  %1187 = vmatpush1.bf16.msra.mxu1 %v5303_v42  ;;  %v5417_v41 = vcombine.low %v1337_v29, %v1345_v30  ;;  %v5419_v42 = vcombine.low %v1338_v31, %v1346_v32  ;;  %v1465_v29 = vld [vmem:[#allocation6 + $0x580] sm:$0xff]  ;;  %v1466_v31 = vld [vmem:[#allocation6 + $0x588] sm:$0xff] }
  0xde   :  { %1145 = vmatprep.subr.bf16.mxu0 %v5318_v43  ;;  %1188 = vmatprep.subr.bf16.mxu1 %v5320_v0  ;;  %v5434_v43 = vcombine.high %v1353_v37, %v1361_v38  ;;  %v5436_v0 = vcombine.high %v1354_v39, %v1362_v40  ;;  %v1473_v30 = vld [vmem:[#allocation6 + $0x5c0] sm:$0xff]  ;;  %v1474_v32 = vld [vmem:[#allocation6 + $0x5c8] sm:$0xff] }
  0xdf   :  { %v1481_v37 = vld [vmem:[#allocation6 + $0x600] sm:$0xff]  ;;  %v1482_v39 = vld [vmem:[#allocation6 + $0x608] sm:$0xff] }
  0xe0   :  { %v1489_v38 = vld [vmem:[#allocation6 + $0x640] sm:$0xff]  ;;  %v1490_v40 = vld [vmem:[#allocation6 + $0x648] sm:$0xff] }
  0xe1   :  { %1146 = vmatpush1.bf16.msra.mxu0 %v5317_v48  ;;  %1189 = vmatpush1.bf16.msra.mxu1 %v5319_v49  ;;  %v1370_v48 = vld [vmem:[#allocation6 + $0x288] sm:$0xff]  ;;  %v5450_v49 = vcombine.high %v1369_v46, %v1377_v47 }
  0xe2   :  { %1147 = vmatprep.subr.bf16.mxu0 %v5334_v50  ;;  %1190 = vmatprep.subr.bf16.mxu1 %v5336_v51  ;;  %v1378_v50 = vld [vmem:[#allocation6 + $0x2c8] sm:$0xff]  ;;  %v5449_v51 = vcombine.low %v1369_v46, %v1377_v47  ;;  %v1497_v46 = vld [vmem:[#allocation6 + $0x680] sm:$0xff] }
  0xe3   :  { %v5451_v52 = vcombine.low %v1370_v48, %v1378_v50  ;;  %v5452_v53 = vcombine.high %v1370_v48, %v1378_v50  ;;  %v1505_v47 = vld [vmem:[#allocation6 + $0x6c0] sm:$0xff]  ;;  %v1498_v48 = vld [vmem:[#allocation6 + $0x688] sm:$0xff] }
  0xe4   :  { %v1506_v50 = vld [vmem:[#allocation6 + $0x6c8] sm:$0xff] }
  0xe5   :  { %1148 = vmatpush1.bf16.msra.mxu0 %v5333_v56  ;;  %1191 = vmatpush1.bf16.msra.mxu1 %v5335_v57  ;;  %v1386_v56 = vld [vmem:[#allocation6 + $0x308] sm:$0xff]  ;;  %v5465_v57 = vcombine.low %v1385_v54, %v1393_v55 }
  0xe6   :  { %1149 = vmatprep.subr.bf16.mxu0 %v5350_v58  ;;  %1192 = vmatprep.subr.bf16.mxu1 %v5352_v59  ;;  %v5466_v58 = vcombine.high %v1385_v54, %v1393_v55  ;;  %v1394_v59 = vld [vmem:[#allocation6 + $0x348] sm:$0xff]  ;;  %v1513_v54 = vld [vmem:[#allocation6 + $0x700] sm:$0xff] }
  0xe7   :  { %v5467_v62 = vcombine.low %v1386_v56, %v1394_v59  ;;  %v5468_v63 = vcombine.high %v1386_v56, %v1394_v59  ;;  %v1521_v55 = vld [vmem:[#allocation6 + $0x740] sm:$0xff]  ;;  %v1514_v56 = vld [vmem:[#allocation6 + $0x708] sm:$0xff] }
  0xe8   :  { %v5593_v59 = vcombine.low %v1513_v54, %v1521_v55 }
  0xe9   :  { %1150 = vmatpush1.bf16.msra.mxu0 %v5349_v1  ;;  %1193 = vmatpush1.bf16.msra.mxu1 %v5351_v2  ;;  %v5482_v1 = vcombine.high %v1401_v60, %v1409_v61  ;;  %v1402_v2 = vld [vmem:[#allocation6 + $0x388] sm:$0xff] }
  0xea   :  { %1151 = vmatprep.subr.bf16.mxu0 %v5366_v3  ;;  %1194 = vmatprep.subr.bf16.mxu1 %v5368_v4  ;;  %v1410_v3 = vld [vmem:[#allocation6 + $0x3c8] sm:$0xff] }
  0xeb   :  { %v5484_v4 = vcombine.high %v1402_v2, %v1410_v3 }
  0xed   :  { %1152 = vmatpush1.bf16.msra.mxu0 %v5365_v5  ;;  %1195 = vmatpush1.bf16.msra.mxu1 %v5367_v6  ;;  %v1417_v5 = vld [vmem:[#allocation6 + $0x400] sm:$0xff] }
  0xee   :  { %4361 = vmatprep.subr.bf16.mxu0 %v5370_v12  ;;  %4447 = vmatprep.subr.bf16.mxu1 %v5372_v17  ;;  %v1425_v6 = vld [vmem:[#allocation6 + $0x440] sm:$0xff]  ;;  %v1442_v17 = vld [vmem:[#allocation6 + $0x4c8] sm:$0xff] }
  0xef   :  { %v5498_v12 = vcombine.high %v1417_v5, %v1425_v6 }
  0xf0   :  { %1170 = vmatmul.mubr.bf16.vlgmr.msra.gmra.mrb[12].mxu0 %v6245_v10  ;;  %1213 = vmatmul.mubr.bf16.vlgmr.msra.gmra.mrb[12].mxu1 %v6245_v10  ;;  %v5385_v10 = vcombine.low %v1305_v14, %v1313_v15  ;;  %v1433_v14 = vld [vmem:[#allocation6 + $0x480] sm:$0xff] }
  0xf1   :  { %4362 = vmatpush1.bf16.msra.mxu0 %v5369_v11  ;;  %4448 = vmatpush1.bf16.msra.mxu1 %v5371_v16  ;;  %v5483_v11 = vcombine.low %v1402_v2, %v1410_v3  ;;  %v1441_v15 = vld [vmem:[#allocation6 + $0x4c0] sm:$0xff]  ;;  %v1434_v16 = vld [vmem:[#allocation6 + $0x488] sm:$0xff] }
  0xf2   :  { %4363 = vmatprep.subr.bf16.mxu0 %v5386_v18  ;;  %4449 = vmatprep.subr.bf16.mxu1 %v5388_v22  ;;  %v5497_v18 = vcombine.low %v1417_v5, %v1425_v6  ;;  %v5514_v20 = vcombine.high %v1433_v14, %v1441_v15  ;;  %v5516_v21 = vcombine.high %v1434_v16, %v1442_v17  ;;  %v1449_v22 = vld [vmem:[#allocation6 + $0x500] sm:$0xff]  ;;  %v1538_v3 = vld [vmem:[#allocation6 + $0x7c8] sm:$0xff] }
  0xf5   :  { %4364 = vmatpush1.bf16.msra.mxu0 %v5385_v10  ;;  %4450 = vmatpush1.bf16.msra.mxu1 %v5387_v26  ;;  %v5513_v10 = vcombine.low %v1433_v14, %v1441_v15  ;;  %v5515_v26 = vcombine.low %v1434_v16, %v1442_v17 }
  0xf6   :  { %4365 = vmatprep.subr.bf16.mxu0 %v5402_v27  ;;  %4451 = vmatprep.subr.bf16.mxu1 %v5404_v28  ;;  %v5530_v27 = vcombine.high %v1449_v22, %v1457_v23  ;;  %v5532_v28 = vcombine.high %v1450_v24, %v1458_v25 }
  0xf9   :  { %4366 = vmatpush1.bf16.msra.mxu0 %v5401_v33  ;;  %4452 = vmatpush1.bf16.msra.mxu1 %v5403_v34  ;;  %v5529_v33 = vcombine.low %v1449_v22, %v1457_v23  ;;  %v5531_v34 = vcombine.low %v1450_v24, %v1458_v25 }
  0xfa   :  { %4367 = vmatprep.subr.bf16.mxu0 %v5418_v35  ;;  %4453 = vmatprep.subr.bf16.mxu1 %v5420_v36  ;;  %v5546_v35 = vcombine.high %v1465_v29, %v1473_v30  ;;  %v5548_v36 = vcombine.high %v1466_v31, %v1474_v32 }
  0xfd   :  { %4368 = vmatpush1.bf16.msra.mxu0 %v5417_v41  ;;  %4454 = vmatpush1.bf16.msra.mxu1 %v5419_v42  ;;  %v5545_v41 = vcombine.low %v1465_v29, %v1473_v30  ;;  %v5547_v42 = vcombine.low %v1466_v31, %v1474_v32 }
  0xfe   :  { %4369 = vmatprep.subr.bf16.mxu0 %v5434_v43  ;;  %4455 = vmatprep.subr.bf16.mxu1 %v5436_v0  ;;  %v5562_v43 = vcombine.high %v1481_v37, %v1489_v38  ;;  %v5564_v0 = vcombine.high %v1482_v39, %v1490_v40 }
 0x101   :  { %4370 = vmatpush1.bf16.msra.mxu0 %v5433_v44  ;;  %4456 = vmatpush1.bf16.msra.mxu1 %v5435_v45  ;;  %v5561_v44 = vcombine.low %v1481_v37, %v1489_v38  ;;  %v5563_v45 = vcombine.low %v1482_v39, %v1490_v40 }
 0x102   :  { %4371 = vmatprep.subr.bf16.mxu0 %v5450_v49  ;;  %4457 = vmatprep.subr.bf16.mxu1 %v5452_v53  ;;  %v5578_v49 = vcombine.high %v1497_v46, %v1505_v47  ;;  %v5580_v53 = vcombine.high %v1498_v48, %v1506_v50 }
 0x105   :  { %4372 = vmatpush1.bf16.msra.mxu0 %v5449_v51  ;;  %4458 = vmatpush1.bf16.msra.mxu1 %v5451_v52  ;;  %v5577_v51 = vcombine.low %v1497_v46, %v1505_v47  ;;  %v5579_v52 = vcombine.low %v1498_v48, %v1506_v50  ;;  %v1249_v46 = vlaneseq }
 0x106   :  { %4373 = vmatprep.subr.bf16.mxu0 %v5466_v58  ;;  %4459 = vmatprep.subr.bf16.mxu1 %v5468_v63  ;;  %v1522_v58 = vld [vmem:[#allocation6 + $0x748] sm:$0xff]  ;;  %v1537_v63 = vld [vmem:[#allocation6 + $0x7c0] sm:$0xff] }
 0x107   :  { %v5595_v60 = vcombine.low %v1514_v56, %v1522_v58  ;;  %v5596_v61 = vcombine.high %v1514_v56, %v1522_v58  ;;  %v6283_v47 = vshrl.u32 %v1249_v46, 7 }
 0x109   :  { %4374 = vmatpush1.bf16.msra.mxu0 %v5465_v57  ;;  %4460 = vmatpush1.bf16.msra.mxu1 %v5467_v62  ;;  %v5594_v57 = vcombine.high %v1513_v54, %v1521_v55  ;;  %v1529_v62 = vld [vmem:[#allocation6 + $0x780] sm:$0xff]  ;;  %v1251_v48 = vsub.s32 0, %v6283_v47  ;;  %v1259_v50 = vsub.s32 2, %v6283_v47 }
 0x10a   :  { %4375 = vmatprep.subr.bf16.mxu0 %v5482_v1  ;;  %4461 = vmatprep.subr.bf16.mxu1 %v5484_v4  ;;  %v1530_v1 = vld [vmem:[#allocation6 + $0x788] sm:$0xff]  ;;  %v5610_v2 = vcombine.high %v1529_v62, %v1537_v63  ;;  %v5609_v4 = vcombine.low %v1529_v62, %v1537_v63 }
 0x10b   :  { %v5611_v5 = vcombine.low %v1530_v1, %v1538_v3  ;;  %v5612_v6 = vcombine.high %v1530_v1, %v1538_v3 }
 0x10d   :  { %4376 = vmatpush1.bf16.msra.mxu0 %v5481_v9  ;;  %4462 = vmatpush1.bf16.msra.mxu1 %v5483_v11  ;;  %v6265_v9 = vld [vmem:[#allocation6 + $0x808] sm:$0xff]  ;;  %v5626_v11 = vcombine.high %v6261_v7, %v6263_v8 }
 0x10e   :  { %4377 = vmatprep.subr.bf16.mxu0 %v5498_v12  ;;  %4463 = vmatprep.subr.bf16.mxu1 %v5500_v13  ;;  %v6269_v12 = vld [vmem:[#allocation6 + $0x848] sm:$0xff]  ;;  %v5625_v13 = vcombine.low %v6261_v7, %v6263_v8 }
 0x10f   :  { %v5627_v14 = vcombine.low %v6265_v9, %v6269_v12  ;;  %v5628_v15 = vcombine.high %v6265_v9, %v6269_v12 }
 0x111   :  { %4378 = vmatpush1.bf16.msra.mxu0 %v5497_v18  ;;  %4464 = vmatpush1.bf16.msra.mxu1 %v5499_v19 }
 0x112   :  { %4379 = vmatprep.subr.bf16.mxu0 %v5514_v20  ;;  %4465 = vmatprep.subr.bf16.mxu1 %v5516_v21 }
 0x115   :  { %4380 = vmatpush1.bf16.msra.mxu0 %v5513_v10  ;;  %4466 = vmatpush1.bf16.msra.mxu1 %v5515_v26 }
 0x116   :  { %4381 = vmatprep.subr.bf16.mxu0 %v5530_v27  ;;  %4467 = vmatprep.subr.bf16.mxu1 %v5532_v28 }
 0x119   :  { %4382 = vmatpush1.bf16.msra.mxu0 %v5529_v33  ;;  %4468 = vmatpush1.bf16.msra.mxu1 %v5531_v34 }
 0x11a   :  { %4383 = vmatprep.subr.bf16.mxu0 %v5546_v35  ;;  %4469 = vmatprep.subr.bf16.mxu1 %v5548_v36 }
 0x11d   :  { %4384 = vmatpush1.bf16.msra.mxu0 %v5545_v41  ;;  %4470 = vmatpush1.bf16.msra.mxu1 %v5547_v42 }
 0x11e   :  { %4385 = vmatprep.subr.bf16.mxu0 %v5562_v43  ;;  %4471 = vmatprep.subr.bf16.mxu1 %v5564_v0 }
 0x121   :  { %4386 = vmatpush1.bf16.msra.mxu0 %v5561_v44  ;;  %4472 = vmatpush1.bf16.msra.mxu1 %v5563_v45 }
 0x122   :  { %4387 = vmatprep.subr.bf16.mxu0 %v5578_v49  ;;  %4473 = vmatprep.subr.bf16.mxu1 %v5580_v53  ;;  %v1247_v49 = vld [vmem:[#allocation4] sm:$0xf] }
 0x123   :  { %v1252_v55 = vrot.slane %v1247_v49, %v1251_v48 }
 0x125   :  { %4388 = vmatpush1.bf16.msra.mxu0 %v5577_v51  ;;  %4474 = vmatpush1.bf16.msra.mxu1 %v5579_v52  ;;  %v1255_v51 = vsub.s32 1, %v6283_v47  ;;  %v1263_v52 = vsub.s32 3, %v6283_v47 }
 0x126   :  { %4389 = vmatprep.subr.bf16.mxu0 %v5594_v57  ;;  %4475 = vmatprep.subr.bf16.mxu1 %v5596_v61 }
 0x127   :  { %v1256_v61 = vrot.slane %v1247_v49, %v1255_v51  ;;  %v1264_v3 = vrot.slane %v1247_v49, %v1263_v52 }
 0x129   :  { %4390 = vmatpush1.bf16.msra.mxu0 %v5593_v59  ;;  %4476 = vmatpush1.bf16.msra.mxu1 %v5595_v60  ;;  %v1260_v59 = vrot.slane %v1247_v49, %v1259_v50  ;;  %v1577_v49 = vld [vmem:[#allocation6 + $0x900] sm:$0xff] }
 0x12a   :  { %4391 = vmatprep.subr.bf16.mxu0 %v5610_v2  ;;  %4477 = vmatprep.subr.bf16.mxu1 %v5612_v6 }
 0x12d   :  { %4392 = vmatpush1.bf16.msra.mxu0 %v5609_v4  ;;  %4478 = vmatpush1.bf16.msra.mxu1 %v5611_v5 }
 0x12e   :  { %4404 = vmatprep.subr.bf16.mxu0 %v5626_v11  ;;  %4490 = vmatprep.subr.bf16.mxu1 %v5628_v15 }
 0x163   :  { %v913_v16 = vpop.f32.mrb[0].mxu0  ;;  %v956_v18 = vpop.f32.mrb[0].mxu1 }
 0x164   :  { %v915_v17 = vpop.f32.mrb[1].mxu0  ;;  %v958_v20 = vpop.f32.mrb[1].mxu1 }
 0x165   :  { %v917_v19 = vpop.f32.mrb[2].mxu0  ;;  %v960_v22 = vpop.f32.mrb[2].mxu1 }
 0x166   :  { %v6277_v21 = vpop.f32.mrb[3].mxu0  ;;  %v6279_v23 = vpop.f32.mrb[3].mxu1 }
 0x183   :  { %v999_v24 = vpop.f32.mrb[4].mxu0  ;;  %v1042_v26 = vpop.f32.mrb[4].mxu1 }
 0x184   :  { %v1223_v25 = vmax.f32 %v913_v16, %v999_v24  ;;  %v1001_v10 = vpop.f32.mrb[5].mxu0  ;;  %v1225_v29 = vmax.f32 %v956_v18, %v1042_v26  ;;  %v1044_v30 = vpop.f32.mrb[5].mxu1 }
 0x185   :  { %v1224_v27 = vmax.f32 %v915_v17, %v1001_v10  ;;  %v1003_v28 = vpop.f32.mrb[6].mxu0  ;;  %v1226_v33 = vmax.f32 %v958_v20, %v1044_v30  ;;  %v1046_v34 = vpop.f32.mrb[6].mxu1 }
 0x186   :  { %v1227_v31 = vmax.f32 %v917_v19, %v1003_v28  ;;  %v1005_v32 = vpop.f32.mrb[7].mxu0  ;;  %v1229_v36 = vmax.f32 %v960_v22, %v1046_v34  ;;  %v1048_v37 = vpop.f32.mrb[7].mxu1 }
 0x187   :  { %v1228_v35 = vmax.f32 %v6277_v21, %v1005_v32  ;;  %v1230_v38 = vmax.f32 %v6279_v23, %v1048_v37 }
 0x1a3   :  { %v1085_v39 = vpop.f32.mrb[8].mxu0  ;;  %v1128_v41 = vpop.f32.mrb[8].mxu1 }
 0x1a4   :  { %v1087_v40 = vpop.f32.mrb[9].mxu0  ;;  %v1130_v43 = vpop.f32.mrb[9].mxu1 }
 0x1a5   :  { %v1089_v42 = vpop.f32.mrb[10].mxu0  ;;  %v1132_v44 = vpop.f32.mrb[10].mxu1 }
 0x1a6   :  { %v1091_v0 = vpop.f32.mrb[11].mxu0  ;;  %v1134_v45 = vpop.f32.mrb[11].mxu1 }
 0x1c3   :  { %v1171_v53 = vpop.f32.mrb[12].mxu0  ;;  %v1214_v56 = vpop.f32.mrb[12].mxu1 }
 0x1c4   :  { %v1231_v54 = vmax.f32 %v1085_v39, %v1171_v53  ;;  %v1173_v57 = vpop.f32.mrb[13].mxu0  ;;  %v1233_v58 = vmax.f32 %v1128_v41, %v1214_v56  ;;  %v1216_v62 = vpop.f32.mrb[13].mxu1  ;;  %v1578_v56 = vld [vmem:[#allocation6 + $0x908] sm:$0xff] }
 0x1c5   :  { %v1232_v60 = vmax.f32 %v1087_v40, %v1173_v57  ;;  %v1175_v63 = vpop.f32.mrb[14].mxu0  ;;  %v1234_v2 = vmax.f32 %v1130_v43, %v1216_v62  ;;  %v1218_v5 = vpop.f32.mrb[14].mxu1  ;;  %v1561_v43 = vld [vmem:[#allocation6 + $0x880] sm:$0xff]  ;;  %v1586_v57 = vld [vmem:[#allocation6 + $0x948] sm:$0xff] }
 0x1c6   :  { %v1239_v1 = vmax.f32 %v1223_v25, %v1231_v54  ;;  %v1235_v4 = vmax.f32 %v1089_v42, %v1175_v63  ;;  %v1177_v6 = vpop.f32.mrb[15].mxu0  ;;  %v1241_v11 = vmax.f32 %v1225_v29, %v1233_v58  ;;  %v1237_v16 = vmax.f32 %v1132_v44, %v1218_v5  ;;  %v1220_v18 = vpop.f32.mrb[15].mxu1  ;;  %v1569_v44 = vld [vmem:[#allocation6 + $0x8c0] sm:$0xff] }
 0x1c7   :  { %v1240_v15 = vmax.f32 %v1224_v27, %v1232_v60  ;;  %v1236_v17 = vmax.f32 %v1091_v0, %v1177_v6  ;;  %v1242_v20 = vmax.f32 %v1226_v33, %v1234_v2  ;;  %v1238_v22 = vmax.f32 %v1134_v45, %v1220_v18  ;;  %v1593_v62 = vld [vmem:[#allocation6 + $0x980] sm:$0xff]  ;;  %v1602_v2 = vld [vmem:[#allocation6 + $0x9c8] sm:$0xff] }
 0x1c8   :  { %v1269_v19 = vadd.f32 %v1252_v55, %v1239_v1  ;;  %v1243_v21 = vmax.f32 %v1227_v31, %v1235_v4  ;;  %v1271_v23 = vadd.f32 %v1260_v59, %v1241_v11  ;;  %v1245_v10 = vmax.f32 %v1229_v36, %v1237_v16  ;;  %v1562_v36 = vld [vmem:[#allocation6 + $0x888] sm:$0xff]  ;;  %v1601_v63 = vld [vmem:[#allocation6 + $0x9c0] sm:$0xff] }
 0x1c9   :  { %v1270_v24 = vadd.f32 %v1256_v61, %v1240_v15  ;;  %v1244_v25 = vmax.f32 %v1228_v35, %v1236_v17  ;;  %v1272_v26 = vadd.f32 %v1264_v3, %v1242_v20  ;;  %v1246_v30 = vmax.f32 %v1230_v38, %v1238_v22  ;;  %v1570_v35 = vld [vmem:[#allocation6 + $0x8c8] sm:$0xff]  ;;  %v1625_v16 = vld [vmem:[#allocation6 + $0xa80] sm:$0xff] }
 0x1ca   :  { %v1273_v28 = vadd.f32 %v1252_v55, %v1243_v21  ;;  %v1275_v32 = vadd.f32 %v1260_v59, %v1245_v10  ;;  %v1277_v37 = vmax.f32 %v1269_v19, 0.0  ;;  %v1279_v27 = vmax.f32 %v1271_v23, 0.0  ;;  %v1585_v55 = vld [vmem:[#allocation6 + $0x940] sm:$0xff]  ;;  %v1594_v1 = vld [vmem:[#allocation6 + $0x988] sm:$0xff] }
 0x1cb   :  { %v1274_v34 = vadd.f32 %v1256_v61, %v1244_v25  ;;  %v1276_v29 = vadd.f32 %v1264_v3, %v1246_v30  ;;  %v1278_v40 = vmax.f32 %v1270_v24, 0.0  ;;  %v1280_v33 = vmax.f32 %v1272_v26, 0.0  ;;  %v1610_v3 = vld [vmem:[#allocation6 + $0xa08] sm:$0xff]  ;;  %v1633_v17 = vld [vmem:[#allocation6 + $0xac0] sm:$0xff] }
 0x1cc   :  { %v1281_v39 = vmax.f32 %v1273_v28, 0.0  ;;  %v1283_v41 = vmax.f32 %v1275_v32, 0.0  ;;  %v5642_v53 = vcombine.high %v1561_v43, %v1569_v44  ;;  %v5644_v54 = vcombine.high %v1562_v36, %v1570_v35  ;;  %v1618_v4 = vld [vmem:[#allocation6 + $0xa48] sm:$0xff]  ;;  %v1641_v24 = vld [vmem:[#allocation6 + $0xb00] sm:$0xff] }
 0x1cd   :  { %v1282_v42 = vmax.f32 %v1274_v34, 0.0  ;;  %v1284_v0 = vmax.f32 %v1276_v29, 0.0  ;;  %v5641_v58 = vcombine.low %v1561_v43, %v1569_v44  ;;  %v5643_v59 = vcombine.low %v1562_v36, %v1570_v35  ;;  %v1626_v18 = vld [vmem:[#allocation6 + $0xa88] sm:$0xff]  ;;  %v1649_v10 = vld [vmem:[#allocation6 + $0xb40] sm:$0xff] }
 0x1ce   :  { %v6297_v31 = vpack.c.bf16 %v1281_v39, %v1277_v37  ;;  %v6299_v45 = vpack.c.bf16 %v1283_v41, %v1279_v27  ;;  %v5658_v60 = vcombine.high %v1577_v49, %v1585_v55  ;;  %v5660_v61 = vcombine.high %v1578_v56, %v1586_v57  ;;  %v1634_v19 = vld [vmem:[#allocation6 + $0xac8] sm:$0xff]  ;;  %v1657_v37 = vld [vmem:[#allocation6 + $0xb80] sm:$0xff] }
 0x1cf   :  { %v6301_v38 = vpack.c.bf16 %v1282_v42, %v1278_v40  ;;  %v6303_v46 = vpack.c.bf16 %v1284_v0, %v1280_v33  ;;  %v5657_v7 = vcombine.low %v1577_v49, %v1585_v55  ;;  %v5659_v8 = vcombine.low %v1578_v56, %v1586_v57  ;;  %v1642_v25 = vld [vmem:[#allocation6 + $0xb08] sm:$0xff]  ;;  %v1665_v39 = vld [vmem:[#allocation6 + $0xbc0] sm:$0xff] }
 0x1d0   :  { %v5674_v9 = vcombine.high %v1593_v62, %v1601_v63  ;;  %v5676_v12 = vcombine.high %v1594_v1, %v1602_v2  ;;  %v5673_v5 = vcombine.low %v1593_v62, %v1601_v63  ;;  %v5675_v6 = vcombine.low %v1594_v1, %v1602_v2  ;;  %v1650_v26 = vld [vmem:[#allocation6 + $0xb48] sm:$0xff]  ;;  %v1673_v33 = vld [vmem:[#allocation6 + $0xc00] sm:$0xff] }
 0x1d1   :  { %4393 = vmatprep.mubr.bf16.mxu0 %v6301_v38  ;;  %4479 = vmatprep.mubr.bf16.mxu1 %v6301_v38  ;;  %v5692_v15 = vcombine.high %v1610_v3, %v1618_v4  ;;  %v5691_v21 = vcombine.low %v1610_v3, %v1618_v4  ;;  %v5706_v22 = vcombine.high %v1625_v16, %v1633_v17  ;;  %v1658_v29 = vld [vmem:[#allocation6 + $0xb88] sm:$0xff]  ;;  %v1681_v0 = vld [vmem:[#allocation6 + $0xc40] sm:$0xff] }
 0x1d2   :  { %4394 = vmatmul.mubr.bf16.vlgmr.msra.gmra.mrb[16].mxu0 %v6297_v31  ;;  %4480 = vmatmul.mubr.bf16.vlgmr.msra.gmra.mrb[16].mxu1 %v6297_v31  ;;  %v5708_v23 = vcombine.high %v1626_v18, %v1634_v19  ;;  %v5705_v28 = vcombine.low %v1625_v16, %v1633_v17  ;;  %v5707_v30 = vcombine.low %v1626_v18, %v1634_v19  ;;  %v1666_v27 = vld [vmem:[#allocation6 + $0xbc8] sm:$0xff]  ;;  %v1689_v55 = vld [vmem:[#allocation6 + $0xc80] sm:$0xff] }
 0x1d3   :  { %4405 = vmatpush1.bf16.msra.mxu0 %v5625_v13  ;;  %4491 = vmatpush1.bf16.msra.mxu1 %v5627_v14  ;;  %v1609_v13 = vld [vmem:[#allocation6 + $0xa00] sm:$0xff]  ;;  %v5722_v32 = vcombine.high %v1641_v24, %v1649_v10  ;;  %v5724_v34 = vcombine.high %v1642_v25, %v1650_v26  ;;  %v5721_v40 = vcombine.low %v1641_v24, %v1649_v10  ;;  %v1674_v44 = vld [vmem:[#allocation6 + $0xc08] sm:$0xff] }
 0x1d4   :  { %4436 = vmatprep.mubr.bf16.mxu0 %v6303_v46  ;;  %4522 = vmatprep.mubr.bf16.mxu1 %v6303_v46  ;;  %v1617_v14 = vld [vmem:[#allocation6 + $0xa40] sm:$0xff]  ;;  %v5723_v41 = vcombine.low %v1642_v25, %v1650_v26  ;;  %v5738_v42 = vcombine.high %v1657_v37, %v1665_v39  ;;  %v5740_v43 = vcombine.high %v1658_v29, %v1666_v27  ;;  %v1682_v36 = vld [vmem:[#allocation6 + $0xc48] sm:$0xff] }
 0x1d5   :  { %4406 = vmatprep.subr.bf16.mxu0 %v5642_v53  ;;  %4492 = vmatprep.subr.bf16.mxu1 %v5644_v54  ;;  %v5690_v11 = vcombine.high %v1609_v13, %v1617_v14  ;;  %v5689_v20 = vcombine.low %v1609_v13, %v1617_v14  ;;  %v5737_v35 = vcombine.low %v1657_v37, %v1665_v39  ;;  %v1697_v56 = vld [vmem:[#allocation6 + $0xcc0] sm:$0xff]  ;;  %v1690_v57 = vld [vmem:[#allocation6 + $0xc88] sm:$0xff] }
 0x1d6   :  { %v5739_v49 = vcombine.low %v1658_v29, %v1666_v27  ;;  %v5754_v53 = vcombine.high %v1673_v33, %v1681_v0  ;;  %v5756_v54 = vcombine.high %v1674_v44, %v1682_v36  ;;  %v1705_v63 = vld [vmem:[#allocation6 + $0xd00] sm:$0xff]  ;;  %v1706_v2 = vld [vmem:[#allocation6 + $0xd08] sm:$0xff] }
 0x1d7   :  { %4407 = vmatpush1.bf16.msra.mxu0 %v5641_v58  ;;  %4493 = vmatpush1.bf16.msra.mxu1 %v5643_v59  ;;  %v1698_v58 = vld [vmem:[#allocation6 + $0xcc8] sm:$0xff]  ;;  %v5753_v59 = vcombine.low %v1673_v33, %v1681_v0  ;;  %v1713_v1 = vld [vmem:[#allocation6 + $0xd40] sm:$0xff] }
 0x1d8   :  { %4408 = vmatprep.subr.bf16.mxu0 %v5658_v60  ;;  %4494 = vmatprep.subr.bf16.mxu1 %v5660_v61  ;;  %v5755_v60 = vcombine.low %v1674_v44, %v1682_v36  ;;  %v5770_v61 = vcombine.high %v1689_v55, %v1697_v56  ;;  %v5772_v62 = vcombine.high %v1690_v57, %v1698_v58  ;;  %v1721_v14 = vld [vmem:[#allocation6 + $0xd80] sm:$0xff]  ;;  %v1722_v4 = vld [vmem:[#allocation6 + $0xd88] sm:$0xff] }
 0x1d9   :  { %v1729_v3 = vld [vmem:[#allocation6 + $0xdc0] sm:$0xff]  ;;  %v1738_v19 = vld [vmem:[#allocation6 + $0xe08] sm:$0xff] }
 0x1da   :  { %v1737_v17 = vld [vmem:[#allocation6 + $0xe00] sm:$0xff]  ;;  %v1754_v26 = vld [vmem:[#allocation6 + $0xe88] sm:$0xff] }
 0x1db   :  { %4409 = vmatpush1.bf16.msra.mxu0 %v5657_v7  ;;  %4495 = vmatpush1.bf16.msra.mxu1 %v5659_v8  ;;  %v1714_v7 = vld [vmem:[#allocation6 + $0xd48] sm:$0xff]  ;;  %v5769_v8 = vcombine.low %v1689_v55, %v1697_v56  ;;  %v1745_v18 = vld [vmem:[#allocation6 + $0xe40] sm:$0xff]  ;;  %v1291_v56 = vld [vmem:[#allocation6 + $0x10] sm:$0xff] }
 0x1dc   :  { %4410 = vmatprep.subr.bf16.mxu0 %v5674_v9  ;;  %4496 = vmatprep.subr.bf16.mxu1 %v5676_v12  ;;  %v5771_v9 = vcombine.low %v1690_v57, %v1698_v58  ;;  %v5786_v12 = vcombine.high %v1705_v63, %v1713_v1  ;;  %v5788_v13 = vcombine.high %v1706_v2, %v1714_v7  ;;  %v1753_v10 = vld [vmem:[#allocation6 + $0xe80] sm:$0xff]  ;;  %v1770_v27 = vld [vmem:[#allocation6 + $0xf08] sm:$0xff]  ;;  %v1299_v57 = vld [vmem:[#allocation6 + $0x50] sm:$0xff] }
 0x1dd   :  { %v1761_v25 = vld [vmem:[#allocation6 + $0xec0] sm:$0xff]  ;;  %v1786_v36 = vld [vmem:[#allocation6 + $0xf88] sm:$0xff]  ;;  %v1292_v58 = vld [vmem:[#allocation6 + $0x18] sm:$0xff] }
 0x1de   :  { %v1769_v39 = vld [vmem:[#allocation6 + $0xf00] sm:$0xff] }
 0x1df   :  { %4411 = vmatpush1.bf16.msra.mxu0 %v5673_v5  ;;  %4497 = vmatpush1.bf16.msra.mxu1 %v5675_v6  ;;  %v1730_v5 = vld [vmem:[#allocation6 + $0xdc8] sm:$0xff]  ;;  %v5785_v6 = vcombine.low %v1705_v63, %v1713_v1  ;;  %v1777_v29 = vld [vmem:[#allocation6 + $0xf40] sm:$0xff]  ;;  %v1307_v1 = vld [vmem:[#allocation6 + $0x90] sm:$0xff] }
 0x1e0   :  { %4412 = vmatprep.subr.bf16.mxu0 %v5690_v11  ;;  %4498 = vmatprep.subr.bf16.mxu1 %v5692_v15  ;;  %v5787_v11 = vcombine.low %v1706_v2, %v1714_v7  ;;  %v5802_v15 = vcombine.high %v1721_v14, %v1729_v3  ;;  %v5804_v16 = vcombine.high %v1722_v4, %v1730_v5  ;;  %v1785_v0 = vld [vmem:[#allocation6 + $0xf80] sm:$0xff]  ;;  %v1315_v2 = vld [vmem:[#allocation6 + $0xd0] sm:$0xff]  ;;  %v1308_v7 = vld [vmem:[#allocation6 + $0x98] sm:$0xff] }
 0x1e1   :  { %v1793_v44 = vld [vmem:[#allocation6 + $0xfc0] sm:$0xff] }
 0x1e3   :  { %4413 = vmatpush1.bf16.msra.mxu0 %v5689_v20  ;;  %4499 = vmatpush1.bf16.msra.mxu1 %v5691_v21  ;;  %v1746_v20 = vld [vmem:[#allocation6 + $0xe48] sm:$0xff]  ;;  %v5801_v21 = vcombine.low %v1721_v14, %v1729_v3  ;;  %v1323_v3 = vld [vmem:[#allocation6 + $0x110] sm:$0xff] }
 0x1e4   :  { %4414 = vmatprep.subr.bf16.mxu0 %v5706_v22  ;;  %4500 = vmatprep.subr.bf16.mxu1 %v5708_v23  ;;  %v5803_v22 = vcombine.low %v1722_v4, %v1730_v5  ;;  %v5818_v23 = vcombine.high %v1737_v17, %v1745_v18  ;;  %v5820_v24 = vcombine.high %v1738_v19, %v1746_v20  ;;  %v1331_v4 = vld [vmem:[#allocation6 + $0x150] sm:$0xff]  ;;  %v1324_v5 = vld [vmem:[#allocation6 + $0x118] sm:$0xff] }
 0x1e7   :  { %4415 = vmatpush1.bf16.msra.mxu0 %v5705_v28  ;;  %4501 = vmatpush1.bf16.msra.mxu1 %v5707_v30  ;;  %v1762_v28 = vld [vmem:[#allocation6 + $0xec8] sm:$0xff]  ;;  %v5817_v30 = vcombine.low %v1737_v17, %v1745_v18  ;;  %v1339_v18 = vld [vmem:[#allocation6 + $0x190] sm:$0xff] }
 0x1e8   :  { %4416 = vmatprep.subr.bf16.mxu0 %v5722_v32  ;;  %4502 = vmatprep.subr.bf16.mxu1 %v5724_v34  ;;  %v5819_v32 = vcombine.low %v1738_v19, %v1746_v20  ;;  %v5834_v34 = vcombine.high %v1753_v10, %v1761_v25  ;;  %v5836_v37 = vcombine.high %v1754_v26, %v1762_v28  ;;  %v1347_v19 = vld [vmem:[#allocation6 + $0x1d0] sm:$0xff]  ;;  %v1340_v20 = vld [vmem:[#allocation6 + $0x198] sm:$0xff] }
 0x1eb   :  { %4417 = vmatpush1.bf16.msra.mxu0 %v5721_v40  ;;  %4503 = vmatpush1.bf16.msra.mxu1 %v5723_v41  ;;  %v1778_v40 = vld [vmem:[#allocation6 + $0xf48] sm:$0xff]  ;;  %v5833_v41 = vcombine.low %v1753_v10, %v1761_v25  ;;  %v1355_v25 = vld [vmem:[#allocation6 + $0x210] sm:$0xff] }
 0x1ec   :  { %4418 = vmatprep.subr.bf16.mxu0 %v5738_v42  ;;  %4504 = vmatprep.subr.bf16.mxu1 %v5740_v43  ;;  %v5835_v42 = vcombine.low %v1754_v26, %v1762_v28  ;;  %v5850_v43 = vcombine.high %v1769_v39, %v1777_v29  ;;  %v5852_v33 = vcombine.high %v1770_v27, %v1778_v40  ;;  %v1363_v26 = vld [vmem:[#allocation6 + $0x250] sm:$0xff]  ;;  %v1356_v28 = vld [vmem:[#allocation6 + $0x218] sm:$0xff] }
 0x1ef   :  { %4419 = vmatpush1.bf16.msra.mxu0 %v5737_v35  ;;  %4505 = vmatpush1.bf16.msra.mxu1 %v5739_v49  ;;  %v1794_v35 = vld [vmem:[#allocation6 + $0xfc8] sm:$0xff]  ;;  %v5849_v49 = vcombine.low %v1769_v39, %v1777_v29  ;;  %v1371_v29 = vld [vmem:[#allocation6 + $0x290] sm:$0xff] }
 0x1f0   :  { %4420 = vmatprep.subr.bf16.mxu0 %v5754_v53  ;;  %4506 = vmatprep.subr.bf16.mxu1 %v5756_v54  ;;  %v5851_v53 = vcombine.low %v1770_v27, %v1778_v40  ;;  %v5866_v54 = vcombine.high %v1785_v0, %v1793_v44  ;;  %v5868_v55 = vcombine.high %v1786_v36, %v1794_v35  ;;  %v1379_v27 = vld [vmem:[#allocation6 + $0x2d0] sm:$0xff]  ;;  %v1372_v40 = vld [vmem:[#allocation6 + $0x298] sm:$0xff] }
 0x1f3   :  { %4421 = vmatpush1.bf16.msra.mxu0 %v5753_v59  ;;  %4507 = vmatpush1.bf16.msra.mxu1 %v5755_v60  ;;  %v1300_v59 = vld [vmem:[#allocation6 + $0x58] sm:$0xff]  ;;  %v5865_v60 = vcombine.low %v1785_v0, %v1793_v44  ;;  %v1387_v44 = vld [vmem:[#allocation6 + $0x310] sm:$0xff] }
 0x1f4   :  { %4422 = vmatprep.subr.bf16.mxu0 %v5770_v61  ;;  %4508 = vmatprep.subr.bf16.mxu1 %v5772_v62  ;;  %v5867_v61 = vcombine.low %v1786_v36, %v1794_v35  ;;  %v5374_v62 = vcombine.high %v1291_v56, %v1299_v57  ;;  %v5376_v63 = vcombine.high %v1292_v58, %v1300_v59  ;;  %v1395_v36 = vld [vmem:[#allocation6 + $0x350] sm:$0xff]  ;;  %v1388_v35 = vld [vmem:[#allocation6 + $0x318] sm:$0xff] }
 0x1f7   :  { %4423 = vmatpush1.bf16.msra.mxu0 %v5769_v8  ;;  %4509 = vmatpush1.bf16.msra.mxu1 %v5771_v9  ;;  %v1316_v8 = vld [vmem:[#allocation6 + $0xd8] sm:$0xff]  ;;  %v5373_v9 = vcombine.low %v1291_v56, %v1299_v57  ;;  %v1403_v57 = vld [vmem:[#allocation6 + $0x390] sm:$0xff] }
 0x1f8   :  { %4424 = vmatprep.subr.bf16.mxu0 %v5786_v12  ;;  %4510 = vmatprep.subr.bf16.mxu1 %v5788_v13  ;;  %v5375_v12 = vcombine.low %v1292_v58, %v1300_v59  ;;  %v5390_v13 = vcombine.high %v1307_v1, %v1315_v2  ;;  %v5392_v14 = vcombine.high %v1308_v7, %v1316_v8  ;;  %v1411_v58 = vld [vmem:[#allocation6 + $0x3d0] sm:$0xff]  ;;  %v1404_v59 = vld [vmem:[#allocation6 + $0x398] sm:$0xff] }
 0x1fb   :  { %4425 = vmatpush1.bf16.msra.mxu0 %v5785_v6  ;;  %4511 = vmatpush1.bf16.msra.mxu1 %v5787_v11  ;;  %v1332_v6 = vld [vmem:[#allocation6 + $0x158] sm:$0xff]  ;;  %v5389_v11 = vcombine.low %v1307_v1, %v1315_v2  ;;  %v1419_v2 = vld [vmem:[#allocation6 + $0x410] sm:$0xff] }
 0x1fc   :  { %4426 = vmatprep.subr.bf16.mxu0 %v5802_v15  ;;  %4512 = vmatprep.subr.bf16.mxu1 %v5804_v16  ;;  %v5391_v15 = vcombine.low %v1308_v7, %v1316_v8  ;;  %v5406_v16 = vcombine.high %v1323_v3, %v1331_v4  ;;  %v5408_v17 = vcombine.high %v1324_v5, %v1332_v6  ;;  %v1427_v7 = vld [vmem:[#allocation6 + $0x450] sm:$0xff]  ;;  %v1420_v8 = vld [vmem:[#allocation6 + $0x418] sm:$0xff] }
 0x1ff   :  { %4427 = vmatpush1.bf16.msra.mxu0 %v5801_v21  ;;  %4513 = vmatpush1.bf16.msra.mxu1 %v5803_v22  ;;  %v1348_v21 = vld [vmem:[#allocation6 + $0x1d8] sm:$0xff]  ;;  %v5405_v22 = vcombine.low %v1323_v3, %v1331_v4  ;;  %v1435_v4 = vld [vmem:[#allocation6 + $0x490] sm:$0xff] }
 0x200   :  { %4428 = vmatprep.subr.bf16.mxu0 %v5818_v23  ;;  %4514 = vmatprep.subr.bf16.mxu1 %v5820_v24  ;;  %v5407_v23 = vcombine.low %v1324_v5, %v1332_v6  ;;  %v5422_v24 = vcombine.high %v1339_v18, %v1347_v19  ;;  %v5424_v10 = vcombine.high %v1340_v20, %v1348_v21  ;;  %v1443_v5 = vld [vmem:[#allocation6 + $0x4d0] sm:$0xff]  ;;  %v1436_v6 = vld [vmem:[#allocation6 + $0x498] sm:$0xff] }
 0x203   :  { %4429 = vmatpush1.bf16.msra.mxu0 %v5817_v30  ;;  %4515 = vmatpush1.bf16.msra.mxu1 %v5819_v32  ;;  %v1364_v30 = vld [vmem:[#allocation6 + $0x258] sm:$0xff]  ;;  %v5421_v32 = vcombine.low %v1339_v18, %v1347_v19  ;;  %v1451_v19 = vld [vmem:[#allocation6 + $0x510] sm:$0xff] }
 0x204   :  { %4430 = vmatprep.subr.bf16.mxu0 %v5834_v34  ;;  %4516 = vmatprep.subr.bf16.mxu1 %v5836_v37  ;;  %v5423_v34 = vcombine.low %v1340_v20, %v1348_v21  ;;  %v5438_v37 = vcombine.high %v1355_v25, %v1363_v26  ;;  %v5440_v39 = vcombine.high %v1356_v28, %v1364_v30  ;;  %v1459_v20 = vld [vmem:[#allocation6 + $0x550] sm:$0xff]  ;;  %v1452_v21 = vld [vmem:[#allocation6 + $0x518] sm:$0xff] }
 0x207   :  { %4431 = vmatpush1.bf16.msra.mxu0 %v5833_v41  ;;  %4517 = vmatpush1.bf16.msra.mxu1 %v5835_v42  ;;  %v1380_v41 = vld [vmem:[#allocation6 + $0x2d8] sm:$0xff]  ;;  %v5437_v42 = vcombine.low %v1355_v25, %v1363_v26  ;;  %v1467_v26 = vld [vmem:[#allocation6 + $0x590] sm:$0xff] }
 0x208   :  { %4432 = vmatprep.subr.bf16.mxu0 %v5850_v43  ;;  %4518 = vmatprep.subr.bf16.mxu1 %v5852_v33  ;;  %v5439_v43 = vcombine.low %v1356_v28, %v1364_v30  ;;  %v5454_v33 = vcombine.high %v1371_v29, %v1379_v27  ;;  %v5456_v0 = vcombine.high %v1372_v40, %v1380_v41  ;;  %v1475_v28 = vld [vmem:[#allocation6 + $0x5d0] sm:$0xff]  ;;  %v1468_v30 = vld [vmem:[#allocation6 + $0x598] sm:$0xff] }
 0x20b   :  { %4433 = vmatpush1.bf16.msra.mxu0 %v5849_v49  ;;  %4519 = vmatpush1.bf16.msra.mxu1 %v5851_v53  ;;  %v1396_v49 = vld [vmem:[#allocation6 + $0x358] sm:$0xff]  ;;  %v5453_v53 = vcombine.low %v1371_v29, %v1379_v27  ;;  %v1483_v27 = vld [vmem:[#allocation6 + $0x610] sm:$0xff] }
 0x20c   :  { %4434 = vmatprep.subr.bf16.mxu0 %v5866_v54  ;;  %4520 = vmatprep.subr.bf16.mxu1 %v5868_v55  ;;  %v5455_v54 = vcombine.low %v1372_v40, %v1380_v41  ;;  %v5470_v55 = vcombine.high %v1387_v44, %v1395_v36  ;;  %v5472_v56 = vcombine.high %v1388_v35, %v1396_v49  ;;  %v1491_v40 = vld [vmem:[#allocation6 + $0x650] sm:$0xff]  ;;  %v1484_v41 = vld [vmem:[#allocation6 + $0x618] sm:$0xff] }
 0x20f   :  { %4435 = vmatpush1.bf16.msra.mxu0 %v5865_v60  ;;  %4521 = vmatpush1.bf16.msra.mxu1 %v5867_v61  ;;  %v1412_v60 = vld [vmem:[#allocation6 + $0x3d8] sm:$0xff]  ;;  %v5469_v61 = vcombine.low %v1387_v44, %v1395_v36  ;;  %v1499_v36 = vld [vmem:[#allocation6 + $0x690] sm:$0xff] }
 0x210   :  { %4533 = vmatprep.subr.bf16.mxu0 %v5374_v62  ;;  %4619 = vmatprep.subr.bf16.mxu1 %v5376_v63  ;;  %v5471_v62 = vcombine.low %v1388_v35, %v1396_v49  ;;  %v5486_v63 = vcombine.high %v1403_v57, %v1411_v58  ;;  %v5488_v1 = vcombine.high %v1404_v59, %v1412_v60  ;;  %v1507_v35 = vld [vmem:[#allocation6 + $0x6d0] sm:$0xff]  ;;  %v1500_v49 = vld [vmem:[#allocation6 + $0x698] sm:$0xff] }
 0x212   :  { %4437 = vmatmul.mubr.bf16.vlgmr.msra.gmra.mrb[16].mxu0 %v6299_v45  ;;  %4523 = vmatmul.mubr.bf16.vlgmr.msra.gmra.mrb[16].mxu1 %v6299_v45 }
 0x213   :  { %4534 = vmatpush1.bf16.msra.mxu0 %v5373_v9  ;;  %4565 = vmatprep.mubr.bf16.mxu0 %v6301_v38  ;;  %v1428_v9 = vld [vmem:[#allocation6 + $0x458] sm:$0xff] }
 0x214   :  { %4620 = vmatpush1.bf16.msra.mxu1 %v5375_v12  ;;  %4651 = vmatprep.mubr.bf16.mxu1 %v6301_v38  ;;  %v5485_v12 = vcombine.low %v1403_v57, %v1411_v58  ;;  %v5504_v3 = vcombine.high %v1420_v8, %v1428_v9  ;;  %v1515_v58 = vld [vmem:[#allocation6 + $0x710] sm:$0xff] }
 0x215   :  { %4535 = vmatprep.subr.bf16.mxu0 %v5390_v13  ;;  %4621 = vmatprep.subr.bf16.mxu1 %v5392_v14  ;;  %v5487_v13 = vcombine.low %v1404_v59, %v1412_v60  ;;  %v5502_v14 = vcombine.high %v1419_v2, %v1427_v7  ;;  %v1523_v59 = vld [vmem:[#allocation6 + $0x750] sm:$0xff]  ;;  %v1516_v60 = vld [vmem:[#allocation6 + $0x718] sm:$0xff] }
 0x217   :  { %4536 = vmatpush1.bf16.msra.mxu0 %v5389_v11  ;;  %v1444_v11 = vld [vmem:[#allocation6 + $0x4d8] sm:$0xff] }
 0x218   :  { %4622 = vmatpush1.bf16.msra.mxu1 %v5391_v15  ;;  %4537 = vmatprep.subr.bf16.mxu0 %v5406_v16  ;;  %v5501_v15 = vcombine.low %v1419_v2, %v1427_v7  ;;  %v5503_v16 = vcombine.low %v1420_v8, %v1428_v9  ;;  %v5520_v18 = vcombine.high %v1436_v6, %v1444_v11  ;;  %v1531_v7 = vld [vmem:[#allocation6 + $0x790] sm:$0xff]  ;;  %v1532_v9 = vld [vmem:[#allocation6 + $0x798] sm:$0xff] }
 0x219   :  { %4623 = vmatprep.subr.bf16.mxu1 %v5408_v17  ;;  %v5518_v17 = vcombine.high %v1435_v4, %v1443_v5  ;;  %v1539_v8 = vld [vmem:[#allocation6 + $0x7d0] sm:$0xff] }
 0x21b   :  { %4538 = vmatpush1.bf16.msra.mxu0 %v5405_v22  ;;  %v1460_v22 = vld [vmem:[#allocation6 + $0x558] sm:$0xff] }
 0x21c   :  { %4624 = vmatpush1.bf16.msra.mxu1 %v5407_v23  ;;  %4539 = vmatprep.subr.bf16.mxu0 %v5422_v24  ;;  %v5517_v23 = vcombine.low %v1435_v4, %v1443_v5  ;;  %v5519_v24 = vcombine.low %v1436_v6, %v1444_v11  ;;  %v5536_v25 = vcombine.high %v1452_v21, %v1460_v22  ;;  %v1547_v5 = vld [vmem:[#allocation6 + $0x810] sm:$0xff]  ;;  %v1548_v11 = vld [vmem:[#allocation6 + $0x818] sm:$0xff] }
 0x21d   :  { %4625 = vmatprep.subr.bf16.mxu1 %v5424_v10  ;;  %v5534_v10 = vcombine.high %v1451_v19, %v1459_v20  ;;  %v1555_v6 = vld [vmem:[#allocation6 + $0x850] sm:$0xff] }
 0x21f   :  { %4540 = vmatpush1.bf16.msra.mxu0 %v5421_v32  ;;  %v1476_v32 = vld [vmem:[#allocation6 + $0x5d8] sm:$0xff] }
 0x220   :  { %4626 = vmatpush1.bf16.msra.mxu1 %v5423_v34  ;;  %4541 = vmatprep.subr.bf16.mxu0 %v5438_v37  ;;  %v5533_v34 = vcombine.low %v1451_v19, %v1459_v20  ;;  %v5535_v37 = vcombine.low %v1452_v21, %v1460_v22  ;;  %v5552_v29 = vcombine.high %v1468_v30, %v1476_v32  ;;  %v1563_v20 = vld [vmem:[#allocation6 + $0x890] sm:$0xff] }
 0x221   :  { %4627 = vmatprep.subr.bf16.mxu1 %v5440_v39  ;;  %v5550_v39 = vcombine.high %v1467_v26, %v1475_v28  ;;  %v1571_v21 = vld [vmem:[#allocation6 + $0x8d0] sm:$0xff]  ;;  %v5629_v22 = vcombine.low %v1547_v5, %v1555_v6 }
 0x223   :  { %4542 = vmatpush1.bf16.msra.mxu0 %v5437_v42  ;;  %v1492_v42 = vld [vmem:[#allocation6 + $0x658] sm:$0xff] }
 0x224   :  { %4628 = vmatpush1.bf16.msra.mxu1 %v5439_v43  ;;  %4543 = vmatprep.subr.bf16.mxu0 %v5454_v33  ;;  %v5549_v43 = vcombine.low %v1467_v26, %v1475_v28  ;;  %v5551_v33 = vcombine.low %v1468_v30, %v1476_v32  ;;  %v5568_v44 = vcombine.high %v1484_v41, %v1492_v42  ;;  %v1579_v26 = vld [vmem:[#allocation6 + $0x910] sm:$0xff]  ;;  %v1580_v32 = vld [vmem:[#allocation6 + $0x918] sm:$0xff] }
 0x225   :  { %4629 = vmatprep.subr.bf16.mxu1 %v5456_v0  ;;  %v5566_v0 = vcombine.high %v1483_v27, %v1491_v40  ;;  %v1587_v28 = vld [vmem:[#allocation6 + $0x950] sm:$0xff] }
 0x227   :  { %4544 = vmatpush1.bf16.msra.mxu0 %v5453_v53  ;;  %v1508_v53 = vld [vmem:[#allocation6 + $0x6d8] sm:$0xff] }
 0x228   :  { %4630 = vmatpush1.bf16.msra.mxu1 %v5455_v54  ;;  %4545 = vmatprep.subr.bf16.mxu0 %v5470_v55  ;;  %v5565_v54 = vcombine.low %v1483_v27, %v1491_v40  ;;  %v5567_v55 = vcombine.low %v1484_v41, %v1492_v42  ;;  %v5584_v57 = vcombine.high %v1500_v49, %v1508_v53  ;;  %v1595_v40 = vld [vmem:[#allocation6 + $0x990] sm:$0xff]  ;;  %v1596_v42 = vld [vmem:[#allocation6 + $0x998] sm:$0xff] }
 0x229   :  { %4631 = vmatprep.subr.bf16.mxu1 %v5472_v56  ;;  %v5582_v56 = vcombine.high %v1499_v36, %v1507_v35  ;;  %v1603_v41 = vld [vmem:[#allocation6 + $0x9d0] sm:$0xff] }
 0x22b   :  { %4546 = vmatpush1.bf16.msra.mxu0 %v5469_v61  ;;  %v1524_v61 = vld [vmem:[#allocation6 + $0x758] sm:$0xff] }
 0x22c   :  { %4632 = vmatpush1.bf16.msra.mxu1 %v5471_v62  ;;  %4547 = vmatprep.subr.bf16.mxu0 %v5486_v63  ;;  %v5581_v62 = vcombine.low %v1499_v36, %v1507_v35  ;;  %v5583_v63 = vcombine.low %v1500_v49, %v1508_v53  ;;  %v5600_v2 = vcombine.high %v1516_v60, %v1524_v61  ;;  %v1611_v35 = vld [vmem:[#allocation6 + $0xa10] sm:$0xff]  ;;  %v1612_v53 = vld [vmem:[#allocation6 + $0xa18] sm:$0xff] }
 0x22d   :  { %4633 = vmatprep.subr.bf16.mxu1 %v5488_v1  ;;  %v5598_v1 = vcombine.high %v1515_v58, %v1523_v59  ;;  %v1619_v49 = vld [vmem:[#allocation6 + $0xa50] sm:$0xff] }
 0x22f   :  { %4548 = vmatpush1.bf16.msra.mxu0 %v5485_v12  ;;  %v1540_v12 = vld [vmem:[#allocation6 + $0x7d8] sm:$0xff] }
 0x230   :  { %4634 = vmatpush1.bf16.msra.mxu1 %v5487_v13  ;;  %4549 = vmatprep.subr.bf16.mxu0 %v5502_v14  ;;  %v5597_v13 = vcombine.low %v1515_v58, %v1523_v59  ;;  %v5599_v14 = vcombine.low %v1516_v60, %v1524_v61  ;;  %v5616_v4 = vcombine.high %v1532_v9, %v1540_v12  ;;  %v1627_v59 = vld [vmem:[#allocation6 + $0xa90] sm:$0xff]  ;;  %v1628_v61 = vld [vmem:[#allocation6 + $0xa98] sm:$0xff] }
 0x231   :  { %4635 = vmatprep.subr.bf16.mxu1 %v5504_v3  ;;  %v5614_v3 = vcombine.high %v1531_v7, %v1539_v8  ;;  %v1635_v60 = vld [vmem:[#allocation6 + $0xad0] sm:$0xff] }
 0x233   :  { %4550 = vmatpush1.bf16.msra.mxu0 %v5501_v15  ;;  %v1556_v15 = vld [vmem:[#allocation6 + $0x858] sm:$0xff] }
 0x234   :  { %4636 = vmatpush1.bf16.msra.mxu1 %v5503_v16  ;;  %4551 = vmatprep.subr.bf16.mxu0 %v5518_v17  ;;  %v5613_v16 = vcombine.low %v1531_v7, %v1539_v8  ;;  %v5615_v17 = vcombine.low %v1532_v9, %v1540_v12  ;;  %v5632_v19 = vcombine.high %v1548_v11, %v1556_v15  ;;  %v1643_v8 = vld [vmem:[#allocation6 + $0xb10] sm:$0xff]  ;;  %v1644_v12 = vld [vmem:[#allocation6 + $0xb18] sm:$0xff] }
 0x235   :  { %4637 = vmatprep.subr.bf16.mxu1 %v5520_v18  ;;  %v5630_v18 = vcombine.high %v1547_v5, %v1555_v6  ;;  %v1651_v9 = vld [vmem:[#allocation6 + $0xb50] sm:$0xff] }
 0x236   :  { %v1659_v6 = vld [vmem:[#allocation6 + $0xb90] sm:$0xff] }
 0x237   :  { %4552 = vmatpush1.bf16.msra.mxu0 %v5517_v23  ;;  %v1564_v23 = vld [vmem:[#allocation6 + $0x898] sm:$0xff] }
 0x238   :  { %4638 = vmatpush1.bf16.msra.mxu1 %v5519_v24  ;;  %4553 = vmatprep.subr.bf16.mxu0 %v5534_v10  ;;  %v1572_v24 = vld [vmem:[#allocation6 + $0x8d8] sm:$0xff]  ;;  %v5631_v10 = vcombine.low %v1548_v11, %v1556_v15  ;;  %v1667_v11 = vld [vmem:[#allocation6 + $0xbd0] sm:$0xff] }
 0x239   :  { %4639 = vmatprep.subr.bf16.mxu1 %v5536_v25  ;;  %v5646_v25 = vcombine.high %v1563_v20, %v1571_v21  ;;  %v5648_v30 = vcombine.high %v1564_v23, %v1572_v24  ;;  %v1660_v15 = vld [vmem:[#allocation6 + $0xb98] sm:$0xff] }
 0x23b   :  { %4554 = vmatpush1.bf16.msra.mxu0 %v5533_v34  ;;  %v1588_v34 = vld [vmem:[#allocation6 + $0x958] sm:$0xff] }
 0x23c   :  { %4640 = vmatpush1.bf16.msra.mxu1 %v5535_v37  ;;  %4555 = vmatprep.subr.bf16.mxu0 %v5550_v39  ;;  %v5645_v37 = vcombine.low %v1563_v20, %v1571_v21  ;;  %v5647_v39 = vcombine.low %v1564_v23, %v1572_v24  ;;  %v5664_v27 = vcombine.high %v1580_v32, %v1588_v34  ;;  %v1675_v21 = vld [vmem:[#allocation6 + $0xc10] sm:$0xff]  ;;  %v1676_v23 = vld [vmem:[#allocation6 + $0xc18] sm:$0xff] }
 0x23d   :  { %4641 = vmatprep.subr.bf16.mxu1 %v5552_v29  ;;  %v5662_v29 = vcombine.high %v1579_v26, %v1587_v28  ;;  %v1684_v24 = vld [vmem:[#allocation6 + $0xc58] sm:$0xff] }
 0x23f   :  { %4556 = vmatpush1.bf16.msra.mxu0 %v5549_v43  ;;  %v1604_v43 = vld [vmem:[#allocation6 + $0x9d8] sm:$0xff] }
 0x240   :  { %4642 = vmatpush1.bf16.msra.mxu1 %v5551_v33  ;;  %4557 = vmatprep.subr.bf16.mxu0 %v5566_v0  ;;  %v5661_v33 = vcombine.low %v1579_v26, %v1587_v28  ;;  %v5663_v0 = vcombine.low %v1580_v32, %v1588_v34  ;;  %v5680_v36 = vcombine.high %v1596_v42, %v1604_v43  ;;  %v1699_v32 = vld [vmem:[#allocation6 + $0xcd0] sm:$0xff]  ;;  %v1692_v34 = vld [vmem:[#allocation6 + $0xc98] sm:$0xff] }
 0x241   :  { %4643 = vmatprep.subr.bf16.mxu1 %v5568_v44  ;;  %v5678_v44 = vcombine.high %v1595_v40, %v1603_v41  ;;  %v5760_v28 = vcombine.high %v1676_v23, %v1684_v24 }
 0x243   :  { %4558 = vmatpush1.bf16.msra.mxu0 %v5565_v54  ;;  %v1620_v54 = vld [vmem:[#allocation6 + $0xa58] sm:$0xff] }
 0x244   :  { %4644 = vmatpush1.bf16.msra.mxu1 %v5567_v55  ;;  %4559 = vmatprep.subr.bf16.mxu0 %v5582_v56  ;;  %v5677_v55 = vcombine.low %v1595_v40, %v1603_v41  ;;  %v5679_v56 = vcombine.low %v1596_v42, %v1604_v43  ;;  %v5696_v58 = vcombine.high %v1612_v53, %v1620_v54  ;;  %v1707_v41 = vld [vmem:[#allocation6 + $0xd10] sm:$0xff]  ;;  %v1708_v43 = vld [vmem:[#allocation6 + $0xd18] sm:$0xff] }
 0x245   :  { %4645 = vmatprep.subr.bf16.mxu1 %v5584_v57  ;;  %v5694_v57 = vcombine.high %v1611_v35, %v1619_v49  ;;  %v1715_v42 = vld [vmem:[#allocation6 + $0xd50] sm:$0xff] }
 0x247   :  { %4560 = vmatpush1.bf16.msra.mxu0 %v5581_v62  ;;  %v1636_v62 = vld [vmem:[#allocation6 + $0xad8] sm:$0xff] }
 0x248   :  { %4646 = vmatpush1.bf16.msra.mxu1 %v5583_v63  ;;  %4561 = vmatprep.subr.bf16.mxu0 %v5598_v1  ;;  %v5693_v63 = vcombine.low %v1611_v35, %v1619_v49  ;;  %v5695_v1 = vcombine.low %v1612_v53, %v1620_v54  ;;  %v5712_v7 = vcombine.high %v1628_v61, %v1636_v62  ;;  %v1723_v49 = vld [vmem:[#allocation6 + $0xd90] sm:$0xff]  ;;  %v1724_v54 = vld [vmem:[#allocation6 + $0xd98] sm:$0xff] }
 0x249   :  { %4647 = vmatprep.subr.bf16.mxu1 %v5600_v2  ;;  %v5710_v2 = vcombine.high %v1627_v59, %v1635_v60  ;;  %v1731_v53 = vld [vmem:[#allocation6 + $0xdd0] sm:$0xff] }
 0x24b   :  { %4562 = vmatpush1.bf16.msra.mxu0 %v5597_v13  ;;  %v1652_v13 = vld [vmem:[#allocation6 + $0xb58] sm:$0xff] }
 0x24c   :  { %4648 = vmatpush1.bf16.msra.mxu1 %v5599_v14  ;;  %4563 = vmatprep.subr.bf16.mxu0 %v5614_v3  ;;  %v5709_v14 = vcombine.low %v1627_v59, %v1635_v60  ;;  %v5711_v3 = vcombine.low %v1628_v61, %v1636_v62  ;;  %v5728_v5 = vcombine.high %v1644_v12, %v1652_v13  ;;  %v1739_v60 = vld [vmem:[#allocation6 + $0xe10] sm:$0xff]  ;;  %v1740_v62 = vld [vmem:[#allocation6 + $0xe18] sm:$0xff] }
 0x24d   :  { %4649 = vmatprep.subr.bf16.mxu1 %v5616_v4  ;;  %v5726_v4 = vcombine.high %v1643_v8, %v1651_v9  ;;  %v1747_v61 = vld [vmem:[#allocation6 + $0xe50] sm:$0xff] }
 0x24f   :  { %4564 = vmatpush1.bf16.msra.mxu0 %v5613_v16  ;;  %v1668_v16 = vld [vmem:[#allocation6 + $0xbd8] sm:$0xff] }
 0x250   :  { %4650 = vmatpush1.bf16.msra.mxu1 %v5615_v17  ;;  %4576 = vmatprep.subr.bf16.mxu0 %v5630_v18  ;;  %v5725_v17 = vcombine.low %v1643_v8, %v1651_v9  ;;  %v5727_v18 = vcombine.low %v1644_v12, %v1652_v13  ;;  %v5744_v20 = vcombine.high %v1660_v15, %v1668_v16  ;;  %v1755_v9 = vld [vmem:[#allocation6 + $0xe90] sm:$0xff]  ;;  %v1756_v13 = vld [vmem:[#allocation6 + $0xe98] sm:$0xff] }
 0x251   :  { %4662 = vmatprep.subr.bf16.mxu1 %v5632_v19  ;;  %v5742_v19 = vcombine.high %v1659_v6, %v1667_v11  ;;  %v1763_v12 = vld [vmem:[#allocation6 + $0xed0] sm:$0xff] }
 0x252   :  { %4566 = vmatmul.mubr.bf16.vlgmr.msra.gmra.mrb[20].mxu0 %v6297_v31 }
 0x253   :  { %4652 = vmatmul.mubr.bf16.vlgmr.msra.gmra.mrb[20].mxu1 %v6297_v31  ;;  %4577 = vmatpush1.bf16.msra.mxu0 %v5629_v22  ;;  %v1683_v22 = vld [vmem:[#allocation6 + $0xc50] sm:$0xff] }
 0x254   :  { %4608 = vmatprep.mubr.bf16.mxu0 %v6303_v46  ;;  %4663 = vmatpush1.bf16.msra.mxu1 %v5631_v10  ;;  %v5741_v10 = vcombine.low %v1659_v6, %v1667_v11  ;;  %v5758_v26 = vcombine.high %v1675_v21, %v1683_v22  ;;  %v1771_v11 = vld [vmem:[#allocation6 + $0xf10] sm:$0xff] }
 0x255   :  { %4694 = vmatprep.mubr.bf16.mxu1 %v6303_v46  ;;  %4578 = vmatprep.subr.bf16.mxu0 %v5646_v25  ;;  %v5743_v25 = vcombine.low %v1660_v15, %v1668_v16  ;;  %v1779_v15 = vld [vmem:[#allocation6 + $0xf50] sm:$0xff]  ;;  %v1772_v16 = vld [vmem:[#allocation6 + $0xf18] sm:$0xff] }
 0x256   :  { %4664 = vmatprep.subr.bf16.mxu1 %v5648_v30  ;;  %v1691_v30 = vld [vmem:[#allocation6 + $0xc90] sm:$0xff] }
 0x257   :  { %4579 = vmatpush1.bf16.msra.mxu0 %v5645_v37  ;;  %v1700_v37 = vld [vmem:[#allocation6 + $0xcd8] sm:$0xff] }
 0x258   :  { %4665 = vmatpush1.bf16.msra.mxu1 %v5647_v39  ;;  %4580 = vmatprep.subr.bf16.mxu0 %v5662_v29  ;;  %v5757_v39 = vcombine.low %v1675_v21, %v1683_v22  ;;  %v5759_v29 = vcombine.low %v1676_v23, %v1684_v24  ;;  %v5776_v40 = vcombine.high %v1692_v34, %v1700_v37  ;;  %v1787_v22 = vld [vmem:[#allocation6 + $0xf90] sm:$0xff]  ;;  %v1788_v24 = vld [vmem:[#allocation6 + $0xf98] sm:$0xff] }
 0x259   :  { %4666 = vmatprep.subr.bf16.mxu1 %v5664_v27  ;;  %v5774_v27 = vcombine.high %v1691_v30, %v1699_v32  ;;  %v1795_v23 = vld [vmem:[#allocation6 + $0xfd0] sm:$0xff] }
 0x25b   :  { %4581 = vmatpush1.bf16.msra.mxu0 %v5661_v33  ;;  %v1716_v33 = vld [vmem:[#allocation6 + $0xd58] sm:$0xff] }
 0x25c   :  { %4667 = vmatpush1.bf16.msra.mxu1 %v5663_v0  ;;  %4582 = vmatprep.subr.bf16.mxu0 %v5678_v44  ;;  %v5773_v0 = vcombine.low %v1691_v30, %v1699_v32  ;;  %v5775_v44 = vcombine.low %v1692_v34, %v1700_v37  ;;  %v5792_v35 = vcombine.high %v1708_v43, %v1716_v33  ;;  %v1293_v32 = vld [vmem:[#allocation6 + $0x20] sm:$0xff]  ;;  %v1294_v37 = vld [vmem:[#allocation6 + $0x28] sm:$0xff] }
 0x25d   :  { %4668 = vmatprep.subr.bf16.mxu1 %v5680_v36  ;;  %v5790_v36 = vcombine.high %v1707_v41, %v1715_v42  ;;  %v1301_v34 = vld [vmem:[#allocation6 + $0x60] sm:$0xff] }
 0x25f   :  { %4583 = vmatpush1.bf16.msra.mxu0 %v5677_v55  ;;  %v1732_v55 = vld [vmem:[#allocation6 + $0xdd8] sm:$0xff] }
 0x260   :  { %4669 = vmatpush1.bf16.msra.mxu1 %v5679_v56  ;;  %4584 = vmatprep.subr.bf16.mxu0 %v5694_v57  ;;  %v5789_v56 = vcombine.low %v1707_v41, %v1715_v42  ;;  %v5791_v57 = vcombine.low %v1708_v43, %v1716_v33  ;;  %v5808_v59 = vcombine.high %v1724_v54, %v1732_v55  ;;  %v1309_v42 = vld [vmem:[#allocation6 + $0xa0] sm:$0xff] }
 0x261   :  { %4670 = vmatprep.subr.bf16.mxu1 %v5696_v58  ;;  %v5806_v58 = vcombine.high %v1723_v49, %v1731_v53  ;;  %v1317_v43 = vld [vmem:[#allocation6 + $0xe0] sm:$0xff]  ;;  %v5377_v33 = vcombine.low %v1293_v32, %v1301_v34 }
 0x263   :  { %4585 = vmatpush1.bf16.msra.mxu0 %v5693_v63  ;;  %v1748_v63 = vld [vmem:[#allocation6 + $0xe58] sm:$0xff] }
 0x264   :  { %4671 = vmatpush1.bf16.msra.mxu1 %v5695_v1  ;;  %4586 = vmatprep.subr.bf16.mxu0 %v5710_v2  ;;  %v5805_v1 = vcombine.low %v1723_v49, %v1731_v53  ;;  %v5807_v2 = vcombine.low %v1724_v54, %v1732_v55  ;;  %v5824_v8 = vcombine.high %v1740_v62, %v1748_v63  ;;  %v1325_v49 = vld [vmem:[#allocation6 + $0x120] sm:$0xff]  ;;  %v1326_v55 = vld [vmem:[#allocation6 + $0x128] sm:$0xff] }
 0x265   :  { %4672 = vmatprep.subr.bf16.mxu1 %v5712_v7  ;;  %v5822_v7 = vcombine.high %v1739_v60, %v1747_v61  ;;  %v1333_v53 = vld [vmem:[#allocation6 + $0x160] sm:$0xff] }
 0x267   :  { %4587 = vmatpush1.bf16.msra.mxu0 %v5709_v14  ;;  %v1764_v14 = vld [vmem:[#allocation6 + $0xed8] sm:$0xff] }
 0x268   :  { %4673 = vmatpush1.bf16.msra.mxu1 %v5711_v3  ;;  %4588 = vmatprep.subr.bf16.mxu0 %v5726_v4  ;;  %v5821_v3 = vcombine.low %v1739_v60, %v1747_v61  ;;  %v5823_v4 = vcombine.low %v1740_v62, %v1748_v63  ;;  %v5840_v6 = vcombine.high %v1756_v13, %v1764_v14  ;;  %v1341_v61 = vld [vmem:[#allocation6 + $0x1a0] sm:$0xff]  ;;  %v1342_v63 = vld [vmem:[#allocation6 + $0x1a8] sm:$0xff] }
 0x269   :  { %4674 = vmatprep.subr.bf16.mxu1 %v5728_v5  ;;  %v5838_v5 = vcombine.high %v1755_v9, %v1763_v12  ;;  %v1349_v62 = vld [vmem:[#allocation6 + $0x1e0] sm:$0xff] }
 0x26b   :  { %4589 = vmatpush1.bf16.msra.mxu0 %v5725_v17  ;;  %v1780_v17 = vld [vmem:[#allocation6 + $0xf58] sm:$0xff] }
 0x26c   :  { %4675 = vmatpush1.bf16.msra.mxu1 %v5727_v18  ;;  %4590 = vmatprep.subr.bf16.mxu0 %v5742_v19  ;;  %v5837_v18 = vcombine.low %v1755_v9, %v1763_v12  ;;  %v5839_v19 = vcombine.low %v1756_v13, %v1764_v14  ;;  %v5856_v21 = vcombine.high %v1772_v16, %v1780_v17  ;;  %v1357_v12 = vld [vmem:[#allocation6 + $0x220] sm:$0xff]  ;;  %v1358_v14 = vld [vmem:[#allocation6 + $0x228] sm:$0xff] }
 0x26d   :  { %4676 = vmatprep.subr.bf16.mxu1 %v5744_v20  ;;  %v5854_v20 = vcombine.high %v1771_v11, %v1779_v15  ;;  %v1365_v13 = vld [vmem:[#allocation6 + $0x260] sm:$0xff] }
 0x26f   :  { %4591 = vmatpush1.bf16.msra.mxu0 %v5741_v10  ;;  %v1796_v10 = vld [vmem:[#allocation6 + $0xfd8] sm:$0xff] }
 0x270   :  { %4677 = vmatpush1.bf16.msra.mxu1 %v5743_v25  ;;  %4592 = vmatprep.subr.bf16.mxu0 %v5758_v26  ;;  %v5853_v25 = vcombine.low %v1771_v11, %v1779_v15  ;;  %v5855_v26 = vcombine.low %v1772_v16, %v1780_v17  ;;  %v5872_v30 = vcombine.high %v1788_v24, %v1796_v10  ;;  %v1373_v15 = vld [vmem:[#allocation6 + $0x2a0] sm:$0xff]  ;;  %v1374_v17 = vld [vmem:[#allocation6 + $0x2a8] sm:$0xff] }
 0x271   :  { %4678 = vmatprep.subr.bf16.mxu1 %v5760_v28  ;;  %v5870_v28 = vcombine.high %v1787_v22, %v1795_v23  ;;  %v1381_v16 = vld [vmem:[#allocation6 + $0x2e0] sm:$0xff] }
 0x273   :  { %4593 = vmatpush1.bf16.msra.mxu0 %v5757_v39  ;;  %v1302_v39 = vld [vmem:[#allocation6 + $0x68] sm:$0xff] }
 0x274   :  { %4679 = vmatpush1.bf16.msra.mxu1 %v5759_v29  ;;  %4594 = vmatprep.subr.bf16.mxu0 %v5774_v27  ;;  %v5869_v29 = vcombine.low %v1787_v22, %v1795_v23  ;;  %v5871_v27 = vcombine.low %v1788_v24, %v1796_v10  ;;  %v5380_v41 = vcombine.high %v1294_v37, %v1302_v39  ;;  %v1389_v23 = vld [vmem:[#allocation6 + $0x320] sm:$0xff]  ;;  %v1390_v10 = vld [vmem:[#allocation6 + $0x328] sm:$0xff] }
 0x275   :  { %4680 = vmatprep.subr.bf16.mxu1 %v5776_v40  ;;  %v5378_v40 = vcombine.high %v1293_v32, %v1301_v34  ;;  %v1397_v24 = vld [vmem:[#allocation6 + $0x360] sm:$0xff] }
 0x276   :  { %v1405_v34 = vld [vmem:[#allocation6 + $0x3a0] sm:$0xff] }
 0x277   :  { %4595 = vmatpush1.bf16.msra.mxu0 %v5773_v0  ;;  %v1310_v0 = vld [vmem:[#allocation6 + $0xa8] sm:$0xff] }
 0x278   :  { %4681 = vmatpush1.bf16.msra.mxu1 %v5775_v44  ;;  %4596 = vmatprep.subr.bf16.mxu0 %v5790_v36  ;;  %v1318_v44 = vld [vmem:[#allocation6 + $0xe8] sm:$0xff]  ;;  %v5379_v36 = vcombine.low %v1294_v37, %v1302_v39  ;;  %v1413_v37 = vld [vmem:[#allocation6 + $0x3e0] sm:$0xff] }
 0x279   :  { %4682 = vmatprep.subr.bf16.mxu1 %v5792_v35  ;;  %v5394_v35 = vcombine.high %v1309_v42, %v1317_v43  ;;  %v5396_v54 = vcombine.high %v1310_v0, %v1318_v44  ;;  %v1406_v39 = vld [vmem:[#allocation6 + $0x3a8] sm:$0xff] }
 0x27b   :  { %4597 = vmatpush1.bf16.msra.mxu0 %v5789_v56  ;;  %v1334_v56 = vld [vmem:[#allocation6 + $0x168] sm:$0xff] }
 0x27c   :  { %4683 = vmatpush1.bf16.msra.mxu1 %v5791_v57  ;;  %4598 = vmatprep.subr.bf16.mxu0 %v5806_v58  ;;  %v5393_v57 = vcombine.low %v1309_v42, %v1317_v43  ;;  %v5395_v58 = vcombine.low %v1310_v0, %v1318_v44  ;;  %v5412_v60 = vcombine.high %v1326_v55, %v1334_v56  ;;  %v1421_v43 = vld [vmem:[#allocation6 + $0x420] sm:$0xff]  ;;  %v1422_v0 = vld [vmem:[#allocation6 + $0x428] sm:$0xff] }
 0x27d   :  { %4684 = vmatprep.subr.bf16.mxu1 %v5808_v59  ;;  %v5410_v59 = vcombine.high %v1325_v49, %v1333_v53  ;;  %v1430_v44 = vld [vmem:[#allocation6 + $0x468] sm:$0xff] }
 0x27f   :  { %4599 = vmatpush1.bf16.msra.mxu0 %v5805_v1  ;;  %v1350_v1 = vld [vmem:[#allocation6 + $0x1e8] sm:$0xff] }
 0x280   :  { %4685 = vmatpush1.bf16.msra.mxu1 %v5807_v2  ;;  %4600 = vmatprep.subr.bf16.mxu0 %v5822_v7  ;;  %v5409_v2 = vcombine.low %v1325_v49, %v1333_v53  ;;  %v5411_v7 = vcombine.low %v1326_v55, %v1334_v56  ;;  %v5428_v9 = vcombine.high %v1342_v63, %v1350_v1  ;;  %v1445_v55 = vld [vmem:[#allocation6 + $0x4e0] sm:$0xff]  ;;  %v1438_v56 = vld [vmem:[#allocation6 + $0x4a8] sm:$0xff] }
 0x281   :  { %4686 = vmatprep.subr.bf16.mxu1 %v5824_v8  ;;  %v5426_v8 = vcombine.high %v1341_v61, %v1349_v62  ;;  %v5508_v53 = vcombine.high %v1422_v0, %v1430_v44 }
 0x283   :  { %4601 = vmatpush1.bf16.msra.mxu0 %v5821_v3  ;;  %v1366_v3 = vld [vmem:[#allocation6 + $0x268] sm:$0xff] }
 0x284   :  { %4687 = vmatpush1.bf16.msra.mxu1 %v5823_v4  ;;  %4602 = vmatprep.subr.bf16.mxu0 %v5838_v5  ;;  %v5425_v4 = vcombine.low %v1341_v61, %v1349_v62  ;;  %v5427_v5 = vcombine.low %v1342_v63, %v1350_v1  ;;  %v5444_v11 = vcombine.high %v1358_v14, %v1366_v3  ;;  %v1453_v62 = vld [vmem:[#allocation6 + $0x520] sm:$0xff]  ;;  %v1454_v1 = vld [vmem:[#allocation6 + $0x528] sm:$0xff] }
 0x285   :  { %4688 = vmatprep.subr.bf16.mxu1 %v5840_v6  ;;  %v5442_v6 = vcombine.high %v1357_v12, %v1365_v13  ;;  %v1461_v63 = vld [vmem:[#allocation6 + $0x560] sm:$0xff] }
 0x287   :  { %4603 = vmatpush1.bf16.msra.mxu0 %v5837_v18  ;;  %v1382_v18 = vld [vmem:[#allocation6 + $0x2e8] sm:$0xff] }
 0x288   :  { %4689 = vmatpush1.bf16.msra.mxu1 %v5839_v19  ;;  %4604 = vmatprep.subr.bf16.mxu0 %v5854_v20  ;;  %v5441_v19 = vcombine.low %v1357_v12, %v1365_v13  ;;  %v5443_v20 = vcombine.low %v1358_v14, %v1366_v3  ;;  %v5460_v22 = vcombine.high %v1374_v17, %v1382_v18  ;;  %v1469_v13 = vld [vmem:[#allocation6 + $0x5a0] sm:$0xff]  ;;  %v1470_v3 = vld [vmem:[#allocation6 + $0x5a8] sm:$0xff] }
 0x289   :  { %4690 = vmatprep.subr.bf16.mxu1 %v5856_v21  ;;  %v5458_v21 = vcombine.high %v1373_v15, %v1381_v16  ;;  %v1477_v14 = vld [vmem:[#allocation6 + $0x5e0] sm:$0xff] }
 0x28b   :  { %4605 = vmatpush1.bf16.msra.mxu0 %v5853_v25  ;;  %v1398_v25 = vld [vmem:[#allocation6 + $0x368] sm:$0xff] }
 0x28c   :  { %4691 = vmatpush1.bf16.msra.mxu1 %v5855_v26  ;;  %4606 = vmatprep.subr.bf16.mxu0 %v5870_v28  ;;  %v5457_v26 = vcombine.low %v1373_v15, %v1381_v16  ;;  %v5459_v28 = vcombine.low %v1374_v17, %v1382_v18  ;;  %v5476_v32 = vcombine.high %v1390_v10, %v1398_v25  ;;  %v1485_v16 = vld [vmem:[#allocation6 + $0x620] sm:$0xff]  ;;  %v1486_v18 = vld [vmem:[#allocation6 + $0x628] sm:$0xff] }
 0x28d   :  { %4692 = vmatprep.subr.bf16.mxu1 %v5872_v30  ;;  %v5474_v30 = vcombine.high %v1389_v23, %v1397_v24  ;;  %v1493_v17 = vld [vmem:[#allocation6 + $0x660] sm:$0xff] }
 0x28f   :  { %4607 = vmatpush1.bf16.msra.mxu0 %v5869_v29  ;;  %v1414_v29 = vld [vmem:[#allocation6 + $0x3e8] sm:$0xff] }
 0x290   :  { %4693 = vmatpush1.bf16.msra.mxu1 %v5871_v27  ;;  %4705 = vmatprep.subr.bf16.mxu0 %v5378_v40  ;;  %v5473_v27 = vcombine.low %v1389_v23, %v1397_v24  ;;  %v5475_v40 = vcombine.low %v1390_v10, %v1398_v25  ;;  %v5492_v42 = vcombine.high %v1406_v39, %v1414_v29  ;;  %v1501_v24 = vld [vmem:[#allocation6 + $0x6a0] sm:$0xff]  ;;  %v1502_v25 = vld [vmem:[#allocation6 + $0x6a8] sm:$0xff] }
 0x291   :  { %4791 = vmatprep.subr.bf16.mxu1 %v5380_v41  ;;  %v5490_v41 = vcombine.high %v1405_v34, %v1413_v37  ;;  %v1509_v10 = vld [vmem:[#allocation6 + $0x6e0] sm:$0xff] }
 0x292   :  { %4609 = vmatmul.mubr.bf16.vlgmr.msra.gmra.mrb[20].mxu0 %v6299_v45 }
 0x293   :  { %4695 = vmatmul.mubr.bf16.vlgmr.msra.gmra.mrb[20].mxu1 %v6299_v45  ;;  %4706 = vmatpush1.bf16.msra.mxu0 %v5377_v33  ;;  %v1429_v33 = vld [vmem:[#allocation6 + $0x460] sm:$0xff] }
 0x294   :  { %4737 = vmatprep.mubr.bf16.mxu0 %v6301_v38  ;;  %4792 = vmatpush1.bf16.msra.mxu1 %v5379_v36  ;;  %v5489_v36 = vcombine.low %v1405_v34, %v1413_v37  ;;  %v5506_v49 = vcombine.high %v1421_v43, %v1429_v33  ;;  %v1517_v37 = vld [vmem:[#allocation6 + $0x720] sm:$0xff] }
 0x295   :  { %4823 = vmatprep.mubr.bf16.mxu1 %v6301_v38  ;;  %4707 = vmatprep.subr.bf16.mxu0 %v5394_v35  ;;  %v5491_v35 = vcombine.low %v1406_v39, %v1414_v29  ;;  %v1525_v39 = vld [vmem:[#allocation6 + $0x760] sm:$0xff]  ;;  %v1518_v29 = vld [vmem:[#allocation6 + $0x728] sm:$0xff] }
 0x296   :  { %4793 = vmatprep.subr.bf16.mxu1 %v5396_v54  ;;  %v1437_v54 = vld [vmem:[#allocation6 + $0x4a0] sm:$0xff] }
 0x297   :  { %4708 = vmatpush1.bf16.msra.mxu0 %v5393_v57  ;;  %v1446_v57 = vld [vmem:[#allocation6 + $0x4e8] sm:$0xff] }
 0x298   :  { %4794 = vmatpush1.bf16.msra.mxu1 %v5395_v58  ;;  %4709 = vmatprep.subr.bf16.mxu0 %v5410_v59  ;;  %v5505_v58 = vcombine.low %v1421_v43, %v1429_v33  ;;  %v5507_v59 = vcombine.low %v1422_v0, %v1430_v44  ;;  %v5524_v61 = vcombine.high %v1438_v56, %v1446_v57  ;;  %v1533_v33 = vld [vmem:[#allocation6 + $0x7a0] sm:$0xff]  ;;  %v1534_v44 = vld [vmem:[#allocation6 + $0x7a8] sm:$0xff] }
 0x299   :  { %4795 = vmatprep.subr.bf16.mxu1 %v5412_v60  ;;  %v5522_v60 = vcombine.high %v1437_v54, %v1445_v55  ;;  %v1541_v0 = vld [vmem:[#allocation6 + $0x7e0] sm:$0xff] }
 0x29b   :  { %4710 = vmatpush1.bf16.msra.mxu0 %v5409_v2  ;;  %v1462_v2 = vld [vmem:[#allocation6 + $0x568] sm:$0xff] }
 0x29c   :  { %4796 = vmatpush1.bf16.msra.mxu1 %v5411_v7  ;;  %4711 = vmatprep.subr.bf16.mxu0 %v5426_v8  ;;  %v5521_v7 = vcombine.low %v1437_v54, %v1445_v55  ;;  %v5523_v8 = vcombine.low %v1438_v56, %v1446_v57  ;;  %v5540_v12 = vcombine.high %v1454_v1, %v1462_v2  ;;  %v1549_v55 = vld [vmem:[#allocation6 + $0x820] sm:$0xff]  ;;  %v1550_v57 = vld [vmem:[#allocation6 + $0x828] sm:$0xff] }
 0x29d   :  { %4797 = vmatprep.subr.bf16.mxu1 %v5428_v9  ;;  %v5538_v9 = vcombine.high %v1453_v62, %v1461_v63  ;;  %v1557_v56 = vld [vmem:[#allocation6 + $0x860] sm:$0xff] }
 0x29f   :  { %4712 = vmatpush1.bf16.msra.mxu0 %v5425_v4  ;;  %v1478_v4 = vld [vmem:[#allocation6 + $0x5e8] sm:$0xff] }
 0x2a0   :  { %4798 = vmatpush1.bf16.msra.mxu1 %v5427_v5  ;;  %4713 = vmatprep.subr.bf16.mxu0 %v5442_v6  ;;  %v5537_v5 = vcombine.low %v1453_v62, %v1461_v63  ;;  %v5539_v6 = vcombine.low %v1454_v1, %v1462_v2  ;;  %v5556_v15 = vcombine.high %v1470_v3, %v1478_v4  ;;  %v1565_v63 = vld [vmem:[#allocation6 + $0x8a0] sm:$0xff] }
 0x2a1   :  { %4799 = vmatprep.subr.bf16.mxu1 %v5444_v11  ;;  %v5554_v11 = vcombine.high %v1469_v13, %v1477_v14  ;;  %v1573_v1 = vld [vmem:[#allocation6 + $0x8e0] sm:$0xff]  ;;  %v5633_v2 = vcombine.low %v1549_v55, %v1557_v56 }
 0x2a3   :  { %4714 = vmatpush1.bf16.msra.mxu0 %v5441_v19  ;;  %v1494_v19 = vld [vmem:[#allocation6 + $0x668] sm:$0xff] }
 0x2a4   :  { %4800 = vmatpush1.bf16.msra.mxu1 %v5443_v20  ;;  %4715 = vmatprep.subr.bf16.mxu0 %v5458_v21  ;;  %v5553_v20 = vcombine.low %v1469_v13, %v1477_v14  ;;  %v5555_v21 = vcombine.low %v1470_v3, %v1478_v4  ;;  %v5572_v23 = vcombine.high %v1486_v18, %v1494_v19  ;;  %v1581_v13 = vld [vmem:[#allocation6 + $0x920] sm:$0xff]  ;;  %v1582_v4 = vld [vmem:[#allocation6 + $0x928] sm:$0xff] }
 0x2a5   :  { %4801 = vmatprep.subr.bf16.mxu1 %v5460_v22  ;;  %v5570_v22 = vcombine.high %v1485_v16, %v1493_v17  ;;  %v1589_v14 = vld [vmem:[#allocation6 + $0x960] sm:$0xff] }
 0x2a7   :  { %4716 = vmatpush1.bf16.msra.mxu0 %v5457_v26  ;;  %v1510_v26 = vld [vmem:[#allocation6 + $0x6e8] sm:$0xff] }
 0x2a8   :  { %4802 = vmatpush1.bf16.msra.mxu1 %v5459_v28  ;;  %4717 = vmatprep.subr.bf16.mxu0 %v5474_v30  ;;  %v5569_v28 = vcombine.low %v1485_v16, %v1493_v17  ;;  %v5571_v30 = vcombine.low %v1486_v18, %v1494_v19  ;;  %v5588_v34 = vcombine.high %v1502_v25, %v1510_v26  ;;  %v1597_v17 = vld [vmem:[#allocation6 + $0x9a0] sm:$0xff]  ;;  %v1598_v19 = vld [vmem:[#allocation6 + $0x9a8] sm:$0xff] }
 0x2a9   :  { %4803 = vmatprep.subr.bf16.mxu1 %v5476_v32  ;;  %v5586_v32 = vcombine.high %v1501_v24, %v1509_v10  ;;  %v1605_v18 = vld [vmem:[#allocation6 + $0x9e0] sm:$0xff] }
 0x2ab   :  { %4718 = vmatpush1.bf16.msra.mxu0 %v5473_v27  ;;  %v1526_v27 = vld [vmem:[#allocation6 + $0x768] sm:$0xff] }
 0x2ac   :  { %4804 = vmatpush1.bf16.msra.mxu1 %v5475_v40  ;;  %4719 = vmatprep.subr.bf16.mxu0 %v5490_v41  ;;  %v5585_v40 = vcombine.low %v1501_v24, %v1509_v10  ;;  %v5587_v41 = vcombine.low %v1502_v25, %v1510_v26  ;;  %v5604_v43 = vcombine.high %v1518_v29, %v1526_v27  ;;  %v1613_v10 = vld [vmem:[#allocation6 + $0xa20] sm:$0xff]  ;;  %v1614_v26 = vld [vmem:[#allocation6 + $0xa28] sm:$0xff] }
 0x2ad   :  { %4805 = vmatprep.subr.bf16.mxu1 %v5492_v42  ;;  %v5602_v42 = vcombine.high %v1517_v37, %v1525_v39  ;;  %v1621_v25 = vld [vmem:[#allocation6 + $0xa60] sm:$0xff] }
 0x2af   :  { %4720 = vmatpush1.bf16.msra.mxu0 %v5489_v36  ;;  %v1542_v36 = vld [vmem:[#allocation6 + $0x7e8] sm:$0xff] }
 0x2b0   :  { %4806 = vmatpush1.bf16.msra.mxu1 %v5491_v35  ;;  %4721 = vmatprep.subr.bf16.mxu0 %v5506_v49  ;;  %v5601_v35 = vcombine.low %v1517_v37, %v1525_v39  ;;  %v5603_v49 = vcombine.low %v1518_v29, %v1526_v27  ;;  %v5620_v54 = vcombine.high %v1534_v44, %v1542_v36  ;;  %v1629_v39 = vld [vmem:[#allocation6 + $0xaa0] sm:$0xff]  ;;  %v1630_v27 = vld [vmem:[#allocation6 + $0xaa8] sm:$0xff] }
 0x2b1   :  { %4807 = vmatprep.subr.bf16.mxu1 %v5508_v53  ;;  %v5618_v53 = vcombine.high %v1533_v33, %v1541_v0  ;;  %v1637_v29 = vld [vmem:[#allocation6 + $0xae0] sm:$0xff] }
 0x2b3   :  { %4722 = vmatpush1.bf16.msra.mxu0 %v5505_v58  ;;  %v1558_v58 = vld [vmem:[#allocation6 + $0x868] sm:$0xff] }
 0x2b4   :  { %4808 = vmatpush1.bf16.msra.mxu1 %v5507_v59  ;;  %4723 = vmatprep.subr.bf16.mxu0 %v5522_v60  ;;  %v5617_v59 = vcombine.low %v1533_v33, %v1541_v0  ;;  %v5619_v60 = vcombine.low %v1534_v44, %v1542_v36  ;;  %v5636_v62 = vcombine.high %v1550_v57, %v1558_v58  ;;  %v1645_v0 = vld [vmem:[#allocation6 + $0xb20] sm:$0xff]  ;;  %v1646_v36 = vld [vmem:[#allocation6 + $0xb28] sm:$0xff] }
 0x2b5   :  { %4809 = vmatprep.subr.bf16.mxu1 %v5524_v61  ;;  %v5634_v61 = vcombine.high %v1549_v55, %v1557_v56  ;;  %v1653_v44 = vld [vmem:[#allocation6 + $0xb60] sm:$0xff] }
 0x2b7   :  { %4724 = vmatpush1.bf16.msra.mxu0 %v5521_v7  ;;  %v1566_v7 = vld [vmem:[#allocation6 + $0x8a8] sm:$0xff] }
 0x2b8   :  { %4810 = vmatpush1.bf16.msra.mxu1 %v5523_v8  ;;  %4725 = vmatprep.subr.bf16.mxu0 %v5538_v9  ;;  %v1574_v8 = vld [vmem:[#allocation6 + $0x8e8] sm:$0xff]  ;;  %v5635_v9 = vcombine.low %v1550_v57, %v1558_v58  ;;  %v1661_v58 = vld [vmem:[#allocation6 + $0xba0] sm:$0xff] }
 0x2b9   :  { %4811 = vmatprep.subr.bf16.mxu1 %v5540_v12  ;;  %v5650_v12 = vcombine.high %v1565_v63, %v1573_v1  ;;  %v5652_v3 = vcombine.high %v1566_v7, %v1574_v8 }
 0x2bb   :  { %4726 = vmatpush1.bf16.msra.mxu0 %v5537_v5  ;;  %v1590_v5 = vld [vmem:[#allocation6 + $0x968] sm:$0xff] }
 0x2bc   :  { %4812 = vmatpush1.bf16.msra.mxu1 %v5539_v6  ;;  %4727 = vmatprep.subr.bf16.mxu0 %v5554_v11  ;;  %v5649_v6 = vcombine.low %v1565_v63, %v1573_v1  ;;  %v5651_v11 = vcombine.low %v1566_v7, %v1574_v8  ;;  %v5668_v16 = vcombine.high %v1582_v4, %v1590_v5  ;;  %v1670_v63 = vld [vmem:[#allocation6 + $0xbe8] sm:$0xff] }
 0x2bd   :  { %4813 = vmatprep.subr.bf16.mxu1 %v5556_v15  ;;  %v5666_v15 = vcombine.high %v1581_v13, %v1589_v14  ;;  %v5729_v7 = vcombine.low %v1645_v0, %v1653_v44 }
 0x2bf   :  { %4728 = vmatpush1.bf16.msra.mxu0 %v5553_v20  ;;  %v1606_v20 = vld [vmem:[#allocation6 + $0x9e8] sm:$0xff] }
 0x2c0   :  { %4814 = vmatpush1.bf16.msra.mxu1 %v5555_v21  ;;  %4729 = vmatprep.subr.bf16.mxu0 %v5570_v22  ;;  %v5665_v21 = vcombine.low %v1581_v13, %v1589_v14  ;;  %v5667_v22 = vcombine.low %v1582_v4, %v1590_v5  ;;  %v5684_v24 = vcombine.high %v1598_v19, %v1606_v20  ;;  %v1685_v4 = vld [vmem:[#allocation6 + $0xc60] sm:$0xff]  ;;  %v1678_v5 = vld [vmem:[#allocation6 + $0xc28] sm:$0xff] }
 0x2c1   :  { %4815 = vmatprep.subr.bf16.mxu1 %v5572_v23  ;;  %v5682_v23 = vcombine.high %v1597_v17, %v1605_v18 }
 0x2c3   :  { %4730 = vmatpush1.bf16.msra.mxu0 %v5569_v28  ;;  %v1622_v28 = vld [vmem:[#allocation6 + $0xa68] sm:$0xff] }
 0x2c4   :  { %4816 = vmatpush1.bf16.msra.mxu1 %v5571_v30  ;;  %4731 = vmatprep.subr.bf16.mxu0 %v5586_v32  ;;  %v5681_v30 = vcombine.low %v1597_v17, %v1605_v18  ;;  %v5683_v32 = vcombine.low %v1598_v19, %v1606_v20  ;;  %v5700_v37 = vcombine.high %v1614_v26, %v1622_v28  ;;  %v1693_v18 = vld [vmem:[#allocation6 + $0xca0] sm:$0xff]  ;;  %v1694_v20 = vld [vmem:[#allocation6 + $0xca8] sm:$0xff] }
 0x2c5   :  { %4817 = vmatprep.subr.bf16.mxu1 %v5588_v34  ;;  %v5698_v34 = vcombine.high %v1613_v10, %v1621_v25  ;;  %v1701_v19 = vld [vmem:[#allocation6 + $0xce0] sm:$0xff] }
 0x2c7   :  { %4732 = vmatpush1.bf16.msra.mxu0 %v5585_v40  ;;  %v1638_v40 = vld [vmem:[#allocation6 + $0xae8] sm:$0xff] }
 0x2c8   :  { %4818 = vmatpush1.bf16.msra.mxu1 %v5587_v41  ;;  %4733 = vmatprep.subr.bf16.mxu0 %v5602_v42  ;;  %v5697_v41 = vcombine.low %v1613_v10, %v1621_v25  ;;  %v5699_v42 = vcombine.low %v1614_v26, %v1622_v28  ;;  %v5716_v33 = vcombine.high %v1630_v27, %v1638_v40  ;;  %v1709_v25 = vld [vmem:[#allocation6 + $0xd20] sm:$0xff]  ;;  %v1710_v28 = vld [vmem:[#allocation6 + $0xd28] sm:$0xff] }
 0x2c9   :  { %4819 = vmatprep.subr.bf16.mxu1 %v5604_v43  ;;  %v5714_v43 = vcombine.high %v1629_v39, %v1637_v29  ;;  %v1717_v26 = vld [vmem:[#allocation6 + $0xd60] sm:$0xff] }
 0x2cb   :  { %4734 = vmatpush1.bf16.msra.mxu0 %v5601_v35  ;;  %v1654_v35 = vld [vmem:[#allocation6 + $0xb68] sm:$0xff] }
 0x2cc   :  { %4820 = vmatpush1.bf16.msra.mxu1 %v5603_v49  ;;  %4735 = vmatprep.subr.bf16.mxu0 %v5618_v53  ;;  %v5713_v49 = vcombine.low %v1629_v39, %v1637_v29  ;;  %v5715_v53 = vcombine.low %v1630_v27, %v1638_v40  ;;  %v5732_v57 = vcombine.high %v1646_v36, %v1654_v35  ;;  %v1725_v29 = vld [vmem:[#allocation6 + $0xda0] sm:$0xff]  ;;  %v1726_v40 = vld [vmem:[#allocation6 + $0xda8] sm:$0xff] }
 0x2cd   :  { %4821 = vmatprep.subr.bf16.mxu1 %v5620_v54  ;;  %v5730_v54 = vcombine.high %v1645_v0, %v1653_v44  ;;  %v1733_v27 = vld [vmem:[#allocation6 + $0xde0] sm:$0xff] }
 0x2ce   :  { %v1741_v44 = vld [vmem:[#allocation6 + $0xe20] sm:$0xff] }
 0x2cf   :  { %4736 = vmatpush1.bf16.msra.mxu0 %v5617_v59  ;;  %v1669_v59 = vld [vmem:[#allocation6 + $0xbe0] sm:$0xff] }
 0x2d0   :  { %4822 = vmatpush1.bf16.msra.mxu1 %v5619_v60  ;;  %4748 = vmatprep.subr.bf16.mxu0 %v5634_v61  ;;  %v5746_v13 = vcombine.high %v1661_v58, %v1669_v59 }
 0x2d1   :  { %4834 = vmatprep.subr.bf16.mxu1 %v5636_v62  ;;  %v1662_v62 = vld [vmem:[#allocation6 + $0xba8] sm:$0xff] }
 0x2d2   :  { %4738 = vmatmul.mubr.bf16.vlgmr.msra.gmra.mrb[24].mxu0 %v6297_v31  ;;  %v5748_v14 = vcombine.high %v1662_v62, %v1670_v63 }
 0x2d3   :  { %4824 = vmatmul.mubr.bf16.vlgmr.msra.gmra.mrb[24].mxu1 %v6297_v31  ;;  %4749 = vmatpush1.bf16.msra.mxu0 %v5633_v2 }
 0x2d4   :  { %4780 = vmatprep.mubr.bf16.mxu0 %v6303_v46  ;;  %4835 = vmatpush1.bf16.msra.mxu1 %v5635_v9 }
 0x2d5   :  { %4866 = vmatprep.mubr.bf16.mxu1 %v6303_v46  ;;  %4750 = vmatprep.subr.bf16.mxu0 %v5650_v12  ;;  %v5731_v12 = vcombine.low %v1646_v36, %v1654_v35  ;;  %v1749_v36 = vld [vmem:[#allocation6 + $0xe60] sm:$0xff]  ;;  %v1742_v35 = vld [vmem:[#allocation6 + $0xe28] sm:$0xff] }
 0x2d6   :  { %4836 = vmatprep.subr.bf16.mxu1 %v5652_v3  ;;  %v1677_v3 = vld [vmem:[#allocation6 + $0xc20] sm:$0xff] }
 0x2d7   :  { %4751 = vmatpush1.bf16.msra.mxu0 %v5649_v6  ;;  %v1686_v6 = vld [vmem:[#allocation6 + $0xc68] sm:$0xff] }
 0x2d8   :  { %4837 = vmatpush1.bf16.msra.mxu1 %v5651_v11  ;;  %4752 = vmatprep.subr.bf16.mxu0 %v5666_v15  ;;  %v5745_v11 = vcombine.low %v1661_v58, %v1669_v59  ;;  %v5747_v15 = vcombine.low %v1662_v62, %v1670_v63  ;;  %v5764_v17 = vcombine.high %v1678_v5, %v1686_v6  ;;  %v1757_v59 = vld [vmem:[#allocation6 + $0xea0] sm:$0xff]  ;;  %v1758_v63 = vld [vmem:[#allocation6 + $0xea8] sm:$0xff] }
 0x2d9   :  { %4838 = vmatprep.subr.bf16.mxu1 %v5668_v16  ;;  %v5762_v16 = vcombine.high %v1677_v3, %v1685_v4  ;;  %v1765_v62 = vld [vmem:[#allocation6 + $0xee0] sm:$0xff] }
 0x2db   :  { %4753 = vmatpush1.bf16.msra.mxu0 %v5665_v21  ;;  %v1702_v21 = vld [vmem:[#allocation6 + $0xce8] sm:$0xff] }
 0x2dc   :  { %4839 = vmatpush1.bf16.msra.mxu1 %v5667_v22  ;;  %4754 = vmatprep.subr.bf16.mxu0 %v5682_v23  ;;  %v5761_v22 = vcombine.low %v1677_v3, %v1685_v4  ;;  %v5763_v23 = vcombine.low %v1678_v5, %v1686_v6  ;;  %v5780_v10 = vcombine.high %v1694_v20, %v1702_v21  ;;  %v1773_v4 = vld [vmem:[#allocation6 + $0xf20] sm:$0xff]  ;;  %v1774_v6 = vld [vmem:[#allocation6 + $0xf28] sm:$0xff] }
 0x2dd   :  { %4840 = vmatprep.subr.bf16.mxu1 %v5684_v24  ;;  %v5778_v24 = vcombine.high %v1693_v18, %v1701_v19  ;;  %v1781_v5 = vld [vmem:[#allocation6 + $0xf60] sm:$0xff] }
 0x2df   :  { %4755 = vmatpush1.bf16.msra.mxu0 %v5681_v30  ;;  %v1718_v30 = vld [vmem:[#allocation6 + $0xd68] sm:$0xff] }
 0x2e0   :  { %4841 = vmatpush1.bf16.msra.mxu1 %v5683_v32  ;;  %4756 = vmatprep.subr.bf16.mxu0 %v5698_v34  ;;  %v5777_v32 = vcombine.low %v1693_v18, %v1701_v19  ;;  %v5779_v34 = vcombine.low %v1694_v20, %v1702_v21  ;;  %v5796_v39 = vcombine.high %v1710_v28, %v1718_v30  ;;  %v1789_v19 = vld [vmem:[#allocation6 + $0xfa0] sm:$0xff]  ;;  %v1790_v21 = vld [vmem:[#allocation6 + $0xfa8] sm:$0xff] }
 0x2e1   :  { %4842 = vmatprep.subr.bf16.mxu1 %v5700_v37  ;;  %v5794_v37 = vcombine.high %v1709_v25, %v1717_v26  ;;  %v1797_v20 = vld [vmem:[#allocation6 + $0xfe0] sm:$0xff] }
 0x2e3   :  { %4757 = vmatpush1.bf16.msra.mxu0 %v5697_v41  ;;  %v1734_v41 = vld [vmem:[#allocation6 + $0xde8] sm:$0xff] }
 0x2e4   :  { %4843 = vmatpush1.bf16.msra.mxu1 %v5699_v42  ;;  %4758 = vmatprep.subr.bf16.mxu0 %v5714_v43  ;;  %v5793_v42 = vcombine.low %v1709_v25, %v1717_v26  ;;  %v5795_v43 = vcombine.low %v1710_v28, %v1718_v30  ;;  %v5812_v0 = vcombine.high %v1726_v40, %v1734_v41  ;;  %v1295_v26 = vld [vmem:[#allocation6 + $0x30] sm:$0xff]  ;;  %v1296_v30 = vld [vmem:[#allocation6 + $0x38] sm:$0xff] }
 0x2e5   :  { %v6333_v55 = vpop.f32.mrb[16].mxu0  ;;  %v6335_v56 = vpop.f32.mrb[16].mxu1  ;;  %4844 = vmatprep.subr.bf16.mxu1 %v5716_v33  ;;  %v5810_v33 = vcombine.high %v1725_v29, %v1733_v27  ;;  %v1303_v28 = vld [vmem:[#allocation6 + $0x70] sm:$0xff] }
 0x2e6   :  { %v6337_v60 = vpop.f32.mrb[17].mxu0  ;;  %v6339_v61 = vpop.f32.mrb[17].mxu1 }
 0x2e7   :  { %v6341_v1 = vpop.f32.mrb[18].mxu0  ;;  %v6343_v2 = vpop.f32.mrb[18].mxu1  ;;  %4759 = vmatpush1.bf16.msra.mxu0 %v5713_v49  ;;  %v1750_v49 = vld [vmem:[#allocation6 + $0xe68] sm:$0xff] }
 0x2e8   :  { %4845 = vmatpush1.bf16.msra.mxu1 %v5715_v53  ;;  %v6345_v8 = vpop.f32.mrb[19].mxu0  ;;  %v6347_v9 = vpop.f32.mrb[19].mxu1  ;;  %4760 = vmatprep.subr.bf16.mxu0 %v5730_v54  ;;  %v5809_v53 = vcombine.low %v1725_v29, %v1733_v27  ;;  %v5811_v54 = vcombine.low %v1726_v40, %v1734_v41  ;;  %v5828_v58 = vcombine.high %v1742_v35, %v1750_v49  ;;  %v1311_v27 = vld [vmem:[#allocation6 + $0xb0] sm:$0xff] }
 0x2e9   :  { %4846 = vmatprep.subr.bf16.mxu1 %v5732_v57  ;;  %v5826_v57 = vcombine.high %v1741_v44, %v1749_v36  ;;  %v1319_v40 = vld [vmem:[#allocation6 + $0xf0] sm:$0xff]  ;;  %v5381_v41 = vcombine.low %v1295_v26, %v1303_v28 }
 0x2eb   :  { %4761 = vmatpush1.bf16.msra.mxu0 %v5729_v7  ;;  %v1766_v7 = vld [vmem:[#allocation6 + $0xee8] sm:$0xff] }
 0x2ec   :  { %4847 = vmatpush1.bf16.msra.mxu1 %v5731_v12  ;;  %4762 = vmatprep.subr.bf16.mxu0 %v5746_v13  ;;  %v5825_v12 = vcombine.low %v1741_v44, %v1749_v36  ;;  %v5827_v13 = vcombine.low %v1742_v35, %v1750_v49  ;;  %v5844_v3 = vcombine.high %v1758_v63, %v1766_v7  ;;  %v1327_v44 = vld [vmem:[#allocation6 + $0x130] sm:$0xff]  ;;  %v1328_v49 = vld [vmem:[#allocation6 + $0x138] sm:$0xff] }
 0x2ed   :  { %4848 = vmatprep.subr.bf16.mxu1 %v5748_v14  ;;  %v5842_v14 = vcombine.high %v1757_v59, %v1765_v62  ;;  %v1335_v36 = vld [vmem:[#allocation6 + $0x170] sm:$0xff] }
 0x2ef   :  { %4763 = vmatpush1.bf16.msra.mxu0 %v5745_v11  ;;  %v1782_v11 = vld [vmem:[#allocation6 + $0xf68] sm:$0xff] }
 0x2f0   :  { %4849 = vmatpush1.bf16.msra.mxu1 %v5747_v15  ;;  %4764 = vmatprep.subr.bf16.mxu0 %v5762_v16  ;;  %v5841_v15 = vcombine.low %v1757_v59, %v1765_v62  ;;  %v5843_v16 = vcombine.low %v1758_v63, %v1766_v7  ;;  %v5860_v18 = vcombine.high %v1774_v6, %v1782_v11  ;;  %v1343_v62 = vld [vmem:[#allocation6 + $0x1b0] sm:$0xff]  ;;  %v1344_v7 = vld [vmem:[#allocation6 + $0x1b8] sm:$0xff] }
 0x2f1   :  { %4850 = vmatprep.subr.bf16.mxu1 %v5764_v17  ;;  %v5858_v17 = vcombine.high %v1773_v4, %v1781_v5  ;;  %v1351_v63 = vld [vmem:[#allocation6 + $0x1f0] sm:$0xff] }
 0x2f3   :  { %4765 = vmatpush1.bf16.msra.mxu0 %v5761_v22  ;;  %v1798_v22 = vld [vmem:[#allocation6 + $0xfe8] sm:$0xff] }
 0x2f4   :  { %4851 = vmatpush1.bf16.msra.mxu1 %v5763_v23  ;;  %4766 = vmatprep.subr.bf16.mxu0 %v5778_v24  ;;  %v5857_v23 = vcombine.low %v1773_v4, %v1781_v5  ;;  %v5859_v24 = vcombine.low %v1774_v6, %v1782_v11  ;;  %v5876_v25 = vcombine.high %v1790_v21, %v1798_v22  ;;  %v1359_v5 = vld [vmem:[#allocation6 + $0x230] sm:$0xff]  ;;  %v1360_v11 = vld [vmem:[#allocation6 + $0x238] sm:$0xff] }
 0x2f5   :  { %4852 = vmatprep.subr.bf16.mxu1 %v5780_v10  ;;  %v5874_v10 = vcombine.high %v1789_v19, %v1797_v20  ;;  %v1367_v6 = vld [vmem:[#allocation6 + $0x270] sm:$0xff] }
 0x2f7   :  { %4767 = vmatpush1.bf16.msra.mxu0 %v5777_v32  ;;  %v1304_v32 = vld [vmem:[#allocation6 + $0x78] sm:$0xff] }
 0x2f8   :  { %4853 = vmatpush1.bf16.msra.mxu1 %v5779_v34  ;;  %4768 = vmatprep.subr.bf16.mxu0 %v5794_v37  ;;  %v5873_v34 = vcombine.low %v1789_v19, %v1797_v20  ;;  %v5875_v37 = vcombine.low %v1790_v21, %v1798_v22  ;;  %v5384_v29 = vcombine.high %v1296_v30, %v1304_v32  ;;  %v1375_v19 = vld [vmem:[#allocation6 + $0x2b0] sm:$0xff]  ;;  %v1376_v21 = vld [vmem:[#allocation6 + $0x2b8] sm:$0xff] }
 0x2f9   :  { %4854 = vmatprep.subr.bf16.mxu1 %v5796_v39  ;;  %v5382_v39 = vcombine.high %v1295_v26, %v1303_v28  ;;  %v1383_v20 = vld [vmem:[#allocation6 + $0x2f0] sm:$0xff]  ;;  %v1384_v22 = vld [vmem:[#allocation6 + $0x2f8] sm:$0xff] }
 0x2fa   :  { %v1391_v26 = vld [vmem:[#allocation6 + $0x330] sm:$0xff] }
 0x2fb   :  { %4769 = vmatpush1.bf16.msra.mxu0 %v5793_v42  ;;  %v1312_v42 = vld [vmem:[#allocation6 + $0xb8] sm:$0xff]  ;;  %v1399_v28 = vld [vmem:[#allocation6 + $0x370] sm:$0xff] }
 0x2fc   :  { %4855 = vmatpush1.bf16.msra.mxu1 %v5795_v43  ;;  %4770 = vmatprep.subr.bf16.mxu0 %v5810_v33  ;;  %v1320_v43 = vld [vmem:[#allocation6 + $0xf8] sm:$0xff]  ;;  %v5383_v33 = vcombine.low %v1296_v30, %v1304_v32 }
 0x2fd   :  { %4856 = vmatprep.subr.bf16.mxu1 %v5812_v0  ;;  %v5398_v0 = vcombine.high %v1311_v27, %v1319_v40  ;;  %v5400_v35 = vcombine.high %v1312_v42, %v1320_v43  ;;  %v1392_v30 = vld [vmem:[#allocation6 + $0x338] sm:$0xff] }
 0x2fe   :  { %v1400_v32 = vld [vmem:[#allocation6 + $0x378] sm:$0xff] }
 0x2ff   :  { %4771 = vmatpush1.bf16.msra.mxu0 %v5809_v53  ;;  %v1336_v53 = vld [vmem:[#allocation6 + $0x178] sm:$0xff] }
 0x300   :  { %4857 = vmatpush1.bf16.msra.mxu1 %v5811_v54  ;;  %4772 = vmatprep.subr.bf16.mxu0 %v5826_v57  ;;  %v5397_v54 = vcombine.low %v1311_v27, %v1319_v40  ;;  %v5399_v57 = vcombine.low %v1312_v42, %v1320_v43  ;;  %v5416_v59 = vcombine.high %v1328_v49, %v1336_v53  ;;  %v1407_v27 = vld [vmem:[#allocation6 + $0x3b0] sm:$0xff]  ;;  %v1416_v42 = vld [vmem:[#allocation6 + $0x3f8] sm:$0xff] }
 0x301   :  { %4858 = vmatprep.subr.bf16.mxu1 %v5828_v58  ;;  %v5414_v58 = vcombine.high %v1327_v44, %v1335_v36  ;;  %v1415_v40 = vld [vmem:[#allocation6 + $0x3f0] sm:$0xff]  ;;  %v5477_v43 = vcombine.low %v1391_v26, %v1399_v28 }
 0x303   :  { %4773 = vmatpush1.bf16.msra.mxu0 %v5825_v12  ;;  %v1352_v12 = vld [vmem:[#allocation6 + $0x1f8] sm:$0xff] }
 0x304   :  { %4859 = vmatpush1.bf16.msra.mxu1 %v5827_v13  ;;  %4774 = vmatprep.subr.bf16.mxu0 %v5842_v14  ;;  %v5413_v13 = vcombine.low %v1327_v44, %v1335_v36  ;;  %v5415_v14 = vcombine.low %v1328_v49, %v1336_v53  ;;  %v5432_v4 = vcombine.high %v1344_v7, %v1352_v12  ;;  %v1423_v36 = vld [vmem:[#allocation6 + $0x430] sm:$0xff]  ;;  %v1424_v49 = vld [vmem:[#allocation6 + $0x438] sm:$0xff] }
 0x305   :  { %4860 = vmatprep.subr.bf16.mxu1 %v5844_v3  ;;  %v5430_v3 = vcombine.high %v1343_v62, %v1351_v63  ;;  %v1432_v53 = vld [vmem:[#allocation6 + $0x478] sm:$0xff] }
 0x307   :  { %4775 = vmatpush1.bf16.msra.mxu0 %v5841_v15  ;;  %v1368_v15 = vld [vmem:[#allocation6 + $0x278] sm:$0xff] }
 0x308   :  { %4861 = vmatpush1.bf16.msra.mxu1 %v5843_v16  ;;  %4776 = vmatprep.subr.bf16.mxu0 %v5858_v17  ;;  %v5431_v16 = vcombine.low %v1344_v7, %v1352_v12  ;;  %v5446_v17 = vcombine.high %v1359_v5, %v1367_v6  ;;  %v1440_v7 = vld [vmem:[#allocation6 + $0x4b8] sm:$0xff] }
 0x309   :  { %4862 = vmatprep.subr.bf16.mxu1 %v5860_v18  ;;  %v5448_v18 = vcombine.high %v1360_v11, %v1368_v15  ;;  %v1448_v12 = vld [vmem:[#allocation6 + $0x4f8] sm:$0xff] }
 0x30b   :  { %4777 = vmatpush1.bf16.msra.mxu0 %v5857_v23  ;;  %v5445_v23 = vcombine.low %v1359_v5, %v1367_v6  ;;  %v1455_v5 = vld [vmem:[#allocation6 + $0x530] sm:$0xff] }
 0x30c   :  { %4863 = vmatpush1.bf16.msra.mxu1 %v5859_v24  ;;  %4778 = vmatprep.subr.bf16.mxu0 %v5874_v10  ;;  %v5447_v24 = vcombine.low %v1360_v11, %v1368_v15  ;;  %v5462_v10 = vcombine.high %v1375_v19, %v1383_v20  ;;  %v1463_v6 = vld [vmem:[#allocation6 + $0x570] sm:$0xff]  ;;  %v1456_v11 = vld [vmem:[#allocation6 + $0x538] sm:$0xff] }
 0x30d   :  { %4864 = vmatprep.subr.bf16.mxu1 %v5876_v25  ;;  %v5464_v25 = vcombine.high %v1376_v21, %v1384_v22  ;;  %v1464_v15 = vld [vmem:[#allocation6 + $0x578] sm:$0xff] }
 0x30f   :  { %4779 = vmatpush1.bf16.msra.mxu0 %v5873_v34  ;;  %v5461_v34 = vcombine.low %v1375_v19, %v1383_v20  ;;  %v1471_v19 = vld [vmem:[#allocation6 + $0x5b0] sm:$0xff] }
 0x310   :  { %4865 = vmatpush1.bf16.msra.mxu1 %v5875_v37  ;;  %4877 = vmatprep.subr.bf16.mxu0 %v5382_v39  ;;  %v5463_v37 = vcombine.low %v1376_v21, %v1384_v22  ;;  %v5478_v39 = vcombine.high %v1391_v26, %v1399_v28  ;;  %v1479_v20 = vld [vmem:[#allocation6 + $0x5f0] sm:$0xff]  ;;  %v1472_v21 = vld [vmem:[#allocation6 + $0x5b8] sm:$0xff] }
 0x311   :  { %4963 = vmatprep.subr.bf16.mxu1 %v5384_v29  ;;  %v5480_v29 = vcombine.high %v1392_v30, %v1400_v32  ;;  %v1480_v22 = vld [vmem:[#allocation6 + $0x5f8] sm:$0xff]  ;;  %v1487_v26 = vld [vmem:[#allocation6 + $0x630] sm:$0xff] }
 0x312   :  { %4781 = vmatmul.mubr.bf16.vlgmr.msra.gmra.mrb[24].mxu0 %v6299_v45  ;;  %v1495_v28 = vld [vmem:[#allocation6 + $0x670] sm:$0xff] }
 0x313   :  { %4867 = vmatmul.mubr.bf16.vlgmr.msra.gmra.mrb[24].mxu1 %v6299_v45  ;;  %4878 = vmatpush1.bf16.msra.mxu0 %v5381_v41  ;;  %v1408_v41 = vld [vmem:[#allocation6 + $0x3b8] sm:$0xff] }
 0x314   :  { %4909 = vmatprep.mubr.bf16.mxu0 %v6301_v38  ;;  %4964 = vmatpush1.bf16.msra.mxu1 %v5383_v33  ;;  %v5479_v33 = vcombine.low %v1392_v30, %v1400_v32  ;;  %v5496_v44 = vcombine.high %v1408_v41, %v1416_v42  ;;  %v1488_v30 = vld [vmem:[#allocation6 + $0x638] sm:$0xff] }
 0x315   :  { %4995 = vmatprep.mubr.bf16.mxu1 %v6301_v38  ;;  %4879 = vmatprep.subr.bf16.mxu0 %v5398_v0  ;;  %v5429_v38 = vcombine.low %v1343_v62, %v1351_v63  ;;  %v5494_v0 = vcombine.high %v1407_v27, %v1415_v40  ;;  %v1439_v62 = vld [vmem:[#allocation6 + $0x4b0] sm:$0xff]  ;;  %v1496_v32 = vld [vmem:[#allocation6 + $0x678] sm:$0xff] }
 0x316   :  { %4965 = vmatprep.subr.bf16.mxu1 %v5400_v35  ;;  %v1431_v35 = vld [vmem:[#allocation6 + $0x470] sm:$0xff] }
 0x317   :  { %4880 = vmatpush1.bf16.msra.mxu0 %v5397_v54  ;;  %v5493_v54 = vcombine.low %v1407_v27, %v1415_v40  ;;  %v1447_v63 = vld [vmem:[#allocation6 + $0x4f0] sm:$0xff] }
 0x318   :  { %4966 = vmatpush1.bf16.msra.mxu1 %v5399_v57  ;;  %4881 = vmatprep.subr.bf16.mxu0 %v5414_v58  ;;  %v5495_v57 = vcombine.low %v1408_v41, %v1416_v42  ;;  %v5510_v58 = vcombine.high %v1423_v36, %v1431_v35  ;;  %v1503_v27 = vld [vmem:[#allocation6 + $0x6b0] sm:$0xff]  ;;  %v1504_v41 = vld [vmem:[#allocation6 + $0x6b8] sm:$0xff] }
 0x319   :  { %4967 = vmatprep.subr.bf16.mxu1 %v5416_v59  ;;  %v5512_v59 = vcombine.high %v1424_v49, %v1432_v53  ;;  %v1511_v40 = vld [vmem:[#allocation6 + $0x6f0] sm:$0xff]  ;;  %v1512_v42 = vld [vmem:[#allocation6 + $0x6f8] sm:$0xff] }
 0x31b   :  { %4882 = vmatpush1.bf16.msra.mxu0 %v5413_v13  ;;  %v5509_v13 = vcombine.low %v1423_v36, %v1431_v35  ;;  %v1519_v36 = vld [vmem:[#allocation6 + $0x730] sm:$0xff] }
 0x31c   :  { %4968 = vmatpush1.bf16.msra.mxu1 %v5415_v14  ;;  %4883 = vmatprep.subr.bf16.mxu0 %v5430_v3  ;;  %v5511_v14 = vcombine.low %v1424_v49, %v1432_v53  ;;  %v5526_v3 = vcombine.high %v1439_v62, %v1447_v63  ;;  %v1527_v35 = vld [vmem:[#allocation6 + $0x770] sm:$0xff]  ;;  %v1520_v49 = vld [vmem:[#allocation6 + $0x738] sm:$0xff] }
 0x31d   :  { %4969 = vmatprep.subr.bf16.mxu1 %v5432_v4  ;;  %v5528_v4 = vcombine.high %v1440_v7, %v1448_v12  ;;  %v1528_v53 = vld [vmem:[#allocation6 + $0x778] sm:$0xff] }
 0x31f   :  { %4884 = vmatpush1.bf16.msra.mxu0 %v5429_v38  ;;  %v5525_v38 = vcombine.low %v1439_v62, %v1447_v63  ;;  %v1535_v62 = vld [vmem:[#allocation6 + $0x7b0] sm:$0xff] }
 0x320   :  { %4970 = vmatpush1.bf16.msra.mxu1 %v5431_v16  ;;  %4885 = vmatprep.subr.bf16.mxu0 %v5446_v17  ;;  %v5527_v16 = vcombine.low %v1440_v7, %v1448_v12  ;;  %v5542_v17 = vcombine.high %v1455_v5, %v1463_v6  ;;  %v1543_v63 = vld [vmem:[#allocation6 + $0x7f0] sm:$0xff]  ;;  %v1536_v7 = vld [vmem:[#allocation6 + $0x7b8] sm:$0xff] }
 0x321   :  { %4971 = vmatprep.subr.bf16.mxu1 %v5448_v18  ;;  %v5544_v18 = vcombine.high %v1456_v11, %v1464_v15  ;;  %v1544_v12 = vld [vmem:[#allocation6 + $0x7f8] sm:$0xff] }
 0x323   :  { %4886 = vmatpush1.bf16.msra.mxu0 %v5445_v23  ;;  %v5541_v23 = vcombine.low %v1455_v5, %v1463_v6  ;;  %v1551_v5 = vld [vmem:[#allocation6 + $0x830] sm:$0xff] }
 0x324   :  { %4972 = vmatpush1.bf16.msra.mxu1 %v5447_v24  ;;  %4887 = vmatprep.subr.bf16.mxu0 %v5462_v10  ;;  %v5543_v24 = vcombine.low %v1456_v11, %v1464_v15  ;;  %v5558_v10 = vcombine.high %v1471_v19, %v1479_v20  ;;  %v1559_v6 = vld [vmem:[#allocation6 + $0x870] sm:$0xff]  ;;  %v1552_v11 = vld [vmem:[#allocation6 + $0x838] sm:$0xff] }
 0x325   :  { %4973 = vmatprep.subr.bf16.mxu1 %v5464_v25  ;;  %v5560_v25 = vcombine.high %v1472_v21, %v1480_v22  ;;  %v1560_v15 = vld [vmem:[#allocation6 + $0x878] sm:$0xff] }
 0x327   :  { %4888 = vmatpush1.bf16.msra.mxu0 %v5461_v34  ;;  %v5557_v34 = vcombine.low %v1471_v19, %v1479_v20  ;;  %v1567_v19 = vld [vmem:[#allocation6 + $0x8b0] sm:$0xff] }
 0x328   :  { %4974 = vmatpush1.bf16.msra.mxu1 %v5463_v37  ;;  %4889 = vmatprep.subr.bf16.mxu0 %v5478_v39  ;;  %v5559_v37 = vcombine.low %v1472_v21, %v1480_v22  ;;  %v5574_v39 = vcombine.high %v1487_v26, %v1495_v28  ;;  %v1575_v20 = vld [vmem:[#allocation6 + $0x8f0] sm:$0xff]  ;;  %v5637_v21 = vcombine.low %v1551_v5, %v1559_v6  ;;  %v1568_v22 = vld [vmem:[#allocation6 + $0x8b8] sm:$0xff] }
 0x329   :  { %4975 = vmatprep.subr.bf16.mxu1 %v5480_v29  ;;  %v5576_v29 = vcombine.high %v1488_v30, %v1496_v32 }
 0x32b   :  { %4890 = vmatpush1.bf16.msra.mxu0 %v5477_v43  ;;  %v5573_v43 = vcombine.low %v1487_v26, %v1495_v28  ;;  %v1591_v26 = vld [vmem:[#allocation6 + $0x970] sm:$0xff] }
 0x32c   :  { %4976 = vmatpush1.bf16.msra.mxu1 %v5479_v33  ;;  %4891 = vmatprep.subr.bf16.mxu0 %v5494_v0  ;;  %v5575_v33 = vcombine.low %v1488_v30, %v1496_v32  ;;  %v5590_v0 = vcombine.high %v1503_v27, %v1511_v40  ;;  %v1584_v30 = vld [vmem:[#allocation6 + $0x938] sm:$0xff] }
 0x32d   :  { %4977 = vmatprep.subr.bf16.mxu1 %v5496_v44  ;;  %v5592_v44 = vcombine.high %v1504_v41, %v1512_v42  ;;  %v1592_v32 = vld [vmem:[#allocation6 + $0x978] sm:$0xff] }
 0x32f   :  { %4892 = vmatpush1.bf16.msra.mxu0 %v5493_v54  ;;  %v5589_v54 = vcombine.low %v1503_v27, %v1511_v40  ;;  %v1599_v27 = vld [vmem:[#allocation6 + $0x9b0] sm:$0xff] }
 0x330   :  { %4978 = vmatpush1.bf16.msra.mxu1 %v5495_v57  ;;  %4893 = vmatprep.subr.bf16.mxu0 %v5510_v58  ;;  %v5591_v57 = vcombine.low %v1504_v41, %v1512_v42  ;;  %v5606_v58 = vcombine.high %v1519_v36, %v1527_v35  ;;  %v1607_v40 = vld [vmem:[#allocation6 + $0x9f0] sm:$0xff]  ;;  %v1600_v41 = vld [vmem:[#allocation6 + $0x9b8] sm:$0xff] }
 0x331   :  { %4979 = vmatprep.subr.bf16.mxu1 %v5512_v59  ;;  %v5608_v59 = vcombine.high %v1520_v49, %v1528_v53  ;;  %v1608_v42 = vld [vmem:[#allocation6 + $0x9f8] sm:$0xff] }
 0x333   :  { %4894 = vmatpush1.bf16.msra.mxu0 %v5509_v13  ;;  %v5605_v13 = vcombine.low %v1519_v36, %v1527_v35  ;;  %v1623_v36 = vld [vmem:[#allocation6 + $0xa70] sm:$0xff]  ;;  %v1616_v35 = vld [vmem:[#allocation6 + $0xa38] sm:$0xff] }
 0x334   :  { %4980 = vmatpush1.bf16.msra.mxu1 %v5511_v14  ;;  %4895 = vmatprep.subr.bf16.mxu0 %v5526_v3  ;;  %v5607_v14 = vcombine.low %v1520_v49, %v1528_v53  ;;  %v5622_v3 = vcombine.high %v1535_v62, %v1543_v63  ;;  %v1624_v49 = vld [vmem:[#allocation6 + $0xa78] sm:$0xff]  ;;  %v5687_v53 = vcombine.low %v1600_v41, %v1608_v42 }
 0x335   :  { %4981 = vmatprep.subr.bf16.mxu1 %v5528_v4  ;;  %v5624_v4 = vcombine.high %v1536_v7, %v1544_v12 }
 0x337   :  { %4896 = vmatpush1.bf16.msra.mxu0 %v5525_v38  ;;  %v5621_v38 = vcombine.low %v1535_v62, %v1543_v63  ;;  %v1632_v62 = vld [vmem:[#allocation6 + $0xab8] sm:$0xff] }
 0x338   :  { %4982 = vmatpush1.bf16.msra.mxu1 %v5527_v16  ;;  %4897 = vmatprep.subr.bf16.mxu0 %v5542_v17  ;;  %v5623_v16 = vcombine.low %v1536_v7, %v1544_v12  ;;  %v5638_v17 = vcombine.high %v1551_v5, %v1559_v6  ;;  %v1640_v63 = vld [vmem:[#allocation6 + $0xaf8] sm:$0xff]  ;;  %v5703_v12 = vcombine.low %v1616_v35, %v1624_v49 }
 0x339   :  { %4983 = vmatprep.subr.bf16.mxu1 %v5544_v18  ;;  %v5640_v18 = vcombine.high %v1552_v11, %v1560_v15  ;;  %v1648_v5 = vld [vmem:[#allocation6 + $0xb38] sm:$0xff] }
 0x33a   :  { %v1656_v6 = vld [vmem:[#allocation6 + $0xb78] sm:$0xff] }
 0x33b   :  { %4898 = vmatpush1.bf16.msra.mxu0 %v5541_v23  ;;  %v1576_v23 = vld [vmem:[#allocation6 + $0x8f8] sm:$0xff] }
 0x33c   :  { %4984 = vmatpush1.bf16.msra.mxu1 %v5543_v24  ;;  %4899 = vmatprep.subr.bf16.mxu0 %v5558_v10  ;;  %v5639_v24 = vcombine.low %v1552_v11, %v1560_v15  ;;  %v5654_v10 = vcombine.high %v1567_v19, %v1575_v20  ;;  %v5656_v28 = vcombine.high %v1568_v22, %v1576_v23 }
 0x33d   :  { %4985 = vmatprep.subr.bf16.mxu1 %v5560_v25  ;;  %v1583_v25 = vld [vmem:[#allocation6 + $0x930] sm:$0xff]  ;;  %v5719_v15 = vcombine.low %v1632_v62, %v1640_v63 }
 0x33f   :  { %4900 = vmatpush1.bf16.msra.mxu0 %v5557_v34  ;;  %v5653_v34 = vcombine.low %v1567_v19, %v1575_v20  ;;  %v1671_v19 = vld [vmem:[#allocation6 + $0xbf0] sm:$0xff] }
 0x340   :  { %4986 = vmatpush1.bf16.msra.mxu1 %v5559_v37  ;;  %4901 = vmatprep.subr.bf16.mxu0 %v5574_v39  ;;  %v5655_v37 = vcombine.low %v1568_v22, %v1576_v23  ;;  %v5670_v39 = vcombine.high %v1583_v25, %v1591_v26  ;;  %v1664_v23 = vld [vmem:[#allocation6 + $0xbb8] sm:$0xff] }
 0x341   :  { %4987 = vmatprep.subr.bf16.mxu1 %v5576_v29  ;;  %v5672_v29 = vcombine.high %v1584_v30, %v1592_v32 }
 0x343   :  { %4902 = vmatpush1.bf16.msra.mxu0 %v5573_v43  ;;  %v5669_v43 = vcombine.low %v1583_v25, %v1591_v26 }
 0x344   :  { %4988 = vmatpush1.bf16.msra.mxu1 %v5575_v33  ;;  %4903 = vmatprep.subr.bf16.mxu0 %v5590_v0  ;;  %v5686_v33 = vcombine.high %v1599_v27, %v1607_v40  ;;  %v5688_v0 = vcombine.high %v1600_v41, %v1608_v42 }
 0x345   :  { %4989 = vmatprep.subr.bf16.mxu1 %v5592_v44  ;;  %v1615_v44 = vld [vmem:[#allocation6 + $0xa30] sm:$0xff] }
 0x346   :  { %v5701_v7 = vcombine.low %v1615_v44, %v1623_v36 }
 0x347   :  { %4904 = vmatpush1.bf16.msra.mxu0 %v5589_v54  ;;  %v5702_v54 = vcombine.high %v1615_v44, %v1623_v36  ;;  %v1680_v44 = vld [vmem:[#allocation6 + $0xc38] sm:$0xff] }
 0x348   :  { %4990 = vmatpush1.bf16.msra.mxu1 %v5591_v57  ;;  %4905 = vmatprep.subr.bf16.mxu0 %v5606_v58  ;;  %v5704_v57 = vcombine.high %v1616_v35, %v1624_v49  ;;  %v1631_v58 = vld [vmem:[#allocation6 + $0xab0] sm:$0xff]  ;;  %v1688_v36 = vld [vmem:[#allocation6 + $0xc78] sm:$0xff] }
 0x349   :  { %4991 = vmatprep.subr.bf16.mxu1 %v5608_v59  ;;  %v1639_v59 = vld [vmem:[#allocation6 + $0xaf0] sm:$0xff] }
 0x34a   :  { %v5717_v11 = vcombine.low %v1631_v58, %v1639_v59 }
 0x34b   :  { %4906 = vmatpush1.bf16.msra.mxu0 %v5605_v13  ;;  %v5718_v13 = vcombine.high %v1631_v58, %v1639_v59  ;;  %v1696_v58 = vld [vmem:[#allocation6 + $0xcb8] sm:$0xff] }
 0x34c   :  { %4992 = vmatpush1.bf16.msra.mxu1 %v5607_v14  ;;  %4907 = vmatprep.subr.bf16.mxu0 %v5622_v3  ;;  %v5720_v14 = vcombine.high %v1632_v62, %v1640_v63  ;;  %v1647_v3 = vld [vmem:[#allocation6 + $0xb30] sm:$0xff]  ;;  %v1704_v59 = vld [vmem:[#allocation6 + $0xcf8] sm:$0xff]  ;;  %v5767_v63 = vcombine.low %v1680_v44, %v1688_v36 }
 0x34d   :  { %4993 = vmatprep.subr.bf16.mxu1 %v5624_v4  ;;  %v1655_v4 = vld [vmem:[#allocation6 + $0xb70] sm:$0xff] }
 0x34f   :  { %4908 = vmatpush1.bf16.msra.mxu0 %v5621_v38  ;;  %v5734_v38 = vcombine.high %v1647_v3, %v1655_v4 }
 0x350   :  { %4994 = vmatpush1.bf16.msra.mxu1 %v5623_v16  ;;  %4920 = vmatprep.subr.bf16.mxu0 %v5638_v17  ;;  %v5736_v17 = vcombine.high %v1648_v5, %v1656_v6 }
 0x351   :  { %5006 = vmatprep.subr.bf16.mxu1 %v5640_v18  ;;  %v1663_v18 = vld [vmem:[#allocation6 + $0xbb0] sm:$0xff] }
 0x352   :  { %4910 = vmatmul.mubr.bf16.vlgmr.msra.gmra.mrb[28].mxu0 %v6297_v31  ;;  %v5749_v35 = vcombine.low %v1663_v18, %v1671_v19 }
 0x353   :  { %4996 = vmatmul.mubr.bf16.vlgmr.msra.gmra.mrb[28].mxu1 %v6297_v31  ;;  %4921 = vmatpush1.bf16.msra.mxu0 %v5637_v21  ;;  %v5671_v31 = vcombine.low %v1584_v30, %v1592_v32  ;;  %v5733_v30 = vcombine.low %v1647_v3, %v1655_v4  ;;  %v5735_v32 = vcombine.low %v1648_v5, %v1656_v6  ;;  %v1712_v3 = vld [vmem:[#allocation6 + $0xd38] sm:$0xff] }
 0x354   :  { %4952 = vmatprep.mubr.bf16.mxu0 %v6303_v46  ;;  %5007 = vmatpush1.bf16.msra.mxu1 %v5639_v24  ;;  %v1672_v24 = vld [vmem:[#allocation6 + $0xbf8] sm:$0xff]  ;;  %v5783_v6 = vcombine.low %v1696_v58, %v1704_v59 }
 0x355   :  { %5038 = vmatprep.mubr.bf16.mxu1 %v6303_v46  ;;  %4922 = vmatprep.subr.bf16.mxu0 %v5654_v10  ;;  %v5685_v46 = vcombine.low %v1599_v27, %v1607_v40  ;;  %v5750_v27 = vcombine.high %v1663_v18, %v1671_v19  ;;  %v5751_v49 = vcombine.low %v1664_v23, %v1672_v24  ;;  %v1720_v4 = vld [vmem:[#allocation6 + $0xd78] sm:$0xff] }
 0x356   :  { %5008 = vmatprep.subr.bf16.mxu1 %v5656_v28  ;;  %v1728_v18 = vld [vmem:[#allocation6 + $0xdb8] sm:$0xff] }
 0x357   :  { %4923 = vmatpush1.bf16.msra.mxu0 %v5653_v34  ;;  %v1736_v19 = vld [vmem:[#allocation6 + $0xdf8] sm:$0xff] }
 0x358   :  { %5009 = vmatpush1.bf16.msra.mxu1 %v5655_v37  ;;  %4924 = vmatprep.subr.bf16.mxu0 %v5670_v39 }
 0x359   :  { %5010 = vmatprep.subr.bf16.mxu1 %v5672_v29 }
 0x35b   :  { %4925 = vmatpush1.bf16.msra.mxu0 %v5669_v43  ;;  %v5752_v43 = vcombine.high %v1664_v23, %v1672_v24  ;;  %v5799_v24 = vcombine.low %v1712_v3, %v1720_v4 }
 0x35c   :  { %5011 = vmatpush1.bf16.msra.mxu1 %v5671_v31  ;;  %4926 = vmatprep.subr.bf16.mxu0 %v5686_v33  ;;  %v1679_v31 = vld [vmem:[#allocation6 + $0xc30] sm:$0xff] }
 0x35d   :  { %5012 = vmatprep.subr.bf16.mxu1 %v5688_v0  ;;  %v1687_v33 = vld [vmem:[#allocation6 + $0xc70] sm:$0xff] }
 0x35e   :  { %v5765_v62 = vcombine.low %v1679_v31, %v1687_v33 }
 0x35f   :  { %4927 = vmatpush1.bf16.msra.mxu0 %v5685_v46  ;;  %v5766_v46 = vcombine.high %v1679_v31, %v1687_v33  ;;  %v1744_v31 = vld [vmem:[#allocation6 + $0xe38] sm:$0xff] }
 0x360   :  { %5013 = vmatpush1.bf16.msra.mxu1 %v5687_v53  ;;  %4928 = vmatprep.subr.bf16.mxu0 %v5702_v54  ;;  %v5768_v53 = vcombine.high %v1680_v44, %v1688_v36  ;;  %v1695_v54 = vld [vmem:[#allocation6 + $0xcb0] sm:$0xff]  ;;  %v1752_v33 = vld [vmem:[#allocation6 + $0xe78] sm:$0xff]  ;;  %v5815_v36 = vcombine.low %v1728_v18, %v1736_v19 }
 0x361   :  { %5014 = vmatprep.subr.bf16.mxu1 %v5704_v57  ;;  %v1703_v57 = vld [vmem:[#allocation6 + $0xcf0] sm:$0xff] }
 0x362   :  { %v5781_v5 = vcombine.low %v1695_v54, %v1703_v57 }
 0x363   :  { %4929 = vmatpush1.bf16.msra.mxu0 %v5701_v7  ;;  %v5782_v7 = vcombine.high %v1695_v54, %v1703_v57  ;;  %v1760_v54 = vld [vmem:[#allocation6 + $0xeb8] sm:$0xff] }
 0x364   :  { %5015 = vmatpush1.bf16.msra.mxu1 %v5703_v12  ;;  %4930 = vmatprep.subr.bf16.mxu0 %v5718_v13  ;;  %v5784_v12 = vcombine.high %v1696_v58, %v1704_v59  ;;  %v1711_v13 = vld [vmem:[#allocation6 + $0xd30] sm:$0xff]  ;;  %v1768_v57 = vld [vmem:[#allocation6 + $0xef8] sm:$0xff]  ;;  %v5831_v59 = vcombine.low %v1744_v31, %v1752_v33 }
 0x365   :  { %v6357_v16 = vpop.f32.mrb[20].mxu0  ;;  %5016 = vmatprep.subr.bf16.mxu1 %v5720_v14  ;;  %v1719_v14 = vld [vmem:[#allocation6 + $0xd70] sm:$0xff] }
 0x366   :  { %v5049_v20 = vmax.f32 %v6333_v55, %v6357_v16  ;;  %v6361_v21 = vpop.f32.mrb[20].mxu1  ;;  %v6363_v22 = vpop.f32.mrb[21].mxu0  ;;  %v5797_v23 = vcombine.low %v1711_v13, %v1719_v14 }
 0x367   :  { %v5051_v10 = vmax.f32 %v6335_v56, %v6361_v21  ;;  %v5050_v25 = vmax.f32 %v6337_v60, %v6363_v22  ;;  %v6369_v26 = vpop.f32.mrb[21].mxu1  ;;  %v6371_v28 = vpop.f32.mrb[22].mxu0  ;;  %4931 = vmatpush1.bf16.msra.mxu0 %v5717_v11  ;;  %v5798_v11 = vcombine.high %v1711_v13, %v1719_v14  ;;  %v1776_v13 = vld [vmem:[#allocation6 + $0xf38] sm:$0xff] }
 0x368   :  { %v5052_v34 = vmax.f32 %v6339_v61, %v6369_v26  ;;  %v5053_v37 = vmax.f32 %v6341_v1, %v6371_v28  ;;  %v6377_v39 = vpop.f32.mrb[22].mxu1  ;;  %5017 = vmatpush1.bf16.msra.mxu1 %v5719_v15  ;;  %v6379_v29 = vpop.f32.mrb[23].mxu0  ;;  %4932 = vmatprep.subr.bf16.mxu0 %v5734_v38  ;;  %v5800_v15 = vcombine.high %v1712_v3, %v1720_v4  ;;  %v1727_v38 = vld [vmem:[#allocation6 + $0xdb0] sm:$0xff]  ;;  %v1784_v14 = vld [vmem:[#allocation6 + $0xf78] sm:$0xff] }
 0x369   :  { %v5055_v40 = vmax.f32 %v6343_v2, %v6377_v39  ;;  %v5054_v41 = vmax.f32 %v6345_v8, %v6379_v29  ;;  %v6385_v42 = vpop.f32.mrb[23].mxu1  ;;  %5018 = vmatprep.subr.bf16.mxu1 %v5736_v17  ;;  %v1735_v17 = vld [vmem:[#allocation6 + $0xdf0] sm:$0xff]  ;;  %v5847_v4 = vcombine.low %v1760_v54, %v1768_v57 }
 0x36a   :  { %v5056_v0 = vmax.f32 %v6347_v9, %v6385_v42  ;;  %v5813_v44 = vcombine.low %v1727_v38, %v1735_v17  ;;  %v5881_v9 = vld [vmem:[#allocation10] ss:$0 sm:$0xff] }
 0x36b   :  { %4933 = vmatpush1.bf16.msra.mxu0 %v5733_v30  ;;  %v5814_v30 = vcombine.high %v1727_v38, %v1735_v17  ;;  %v1792_v38 = vld [vmem:[#allocation6 + $0xfb8] sm:$0xff] }
 0x36c   :  { %5019 = vmatpush1.bf16.msra.mxu1 %v5735_v32  ;;  %4934 = vmatprep.subr.bf16.mxu0 %v5750_v27  ;;  %v5816_v32 = vcombine.high %v1728_v18, %v1736_v19  ;;  %v1743_v27 = vld [vmem:[#allocation6 + $0xe30] sm:$0xff]  ;;  %v1800_v17 = vld [vmem:[#allocation6 + $0xff8] sm:$0xff]  ;;  %v5863_v19 = vcombine.low %v1776_v13, %v1784_v14 }
 0x36d   :  { %5020 = vmatprep.subr.bf16.mxu1 %v5752_v43  ;;  %v1751_v43 = vld [vmem:[#allocation6 + $0xe70] sm:$0xff] }
 0x36e   :  { %v5829_v58 = vcombine.low %v1743_v27, %v1751_v43 }
 0x36f   :  { %4935 = vmatpush1.bf16.msra.mxu0 %v5749_v35  ;;  %v5830_v35 = vcombine.high %v1743_v27, %v1751_v43  ;;  %v5964_v27 = vld [vmem:[#allocation9] sm:$0xff]   ;;  %v6122_v43 = vmov 0.0  }
 0x370   :  { %5021 = vmatpush1.bf16.msra.mxu1 %v5751_v49  ;;  %4936 = vmatprep.subr.bf16.mxu0 %v5766_v46  ;;  %v5832_v49 = vcombine.high %v1744_v31, %v1752_v33  ;;  %v1759_v46 = vld [vmem:[#allocation6 + $0xeb0] sm:$0xff] }
 0x371   :  { %5022 = vmatprep.subr.bf16.mxu1 %v5768_v53  ;;  %v1767_v53 = vld [vmem:[#allocation6 + $0xef0] sm:$0xff] }
 0x372   :  { %v5845_v3 = vcombine.low %v1759_v46, %v1767_v53  ;;  %v5965_v31 = vld [vmem:[#allocation9 + $0x8] sm:$0xff]   ;;  %v5966_v33 = vld [vmem:[#allocation9 + $0x10] sm:$0xff]  }
 0x373   :  { %4937 = vmatpush1.bf16.msra.mxu0 %v5765_v62  ;;  %v5846_v62 = vcombine.high %v1759_v46, %v1767_v53 }
 0x374   :  { %5023 = vmatpush1.bf16.msra.mxu1 %v5767_v63  ;;  %4938 = vmatprep.subr.bf16.mxu0 %v5782_v7  ;;  %v5848_v63 = vcombine.high %v1760_v54, %v1768_v57  ;;  %v1775_v7 = vld [vmem:[#allocation6 + $0xf30] sm:$0xff] }
 0x375   :  { %5024 = vmatprep.subr.bf16.mxu1 %v5784_v12  ;;  %v1783_v12 = vld [vmem:[#allocation6 + $0xf70] sm:$0xff] }
 0x376   :  { %v5861_v18 = vcombine.low %v1775_v7, %v1783_v12 }
 0x377   :  { %4939 = vmatpush1.bf16.msra.mxu0 %v5781_v5  ;;  %v5862_v5 = vcombine.high %v1775_v7, %v1783_v12  ;;  %v5073_v7 = vld [vmem:[#allocation7] sm:$0xf] }
 0x378   :  { %5025 = vmatpush1.bf16.msra.mxu1 %v5783_v6  ;;  %4940 = vmatprep.subr.bf16.mxu0 %v5798_v11  ;;  %v5864_v6 = vcombine.high %v1776_v13, %v1784_v14  ;;  %v1791_v11 = vld [vmem:[#allocation6 + $0xfb0] sm:$0xff]  ;;  %v5078_v14 = vrot.slane %v5073_v7, %v1251_v48  ;;  %v5090_v48 = vrot.slane %v5073_v7, %v1263_v52 }
 0x379   :  { %5026 = vmatprep.subr.bf16.mxu1 %v5800_v15  ;;  %v1799_v15 = vld [vmem:[#allocation6 + $0xff0] sm:$0xff] }
 0x37b   :  { %4941 = vmatpush1.bf16.msra.mxu0 %v5797_v23  ;;  %v5878_v23 = vcombine.high %v1791_v11, %v1799_v15 }
 0x37c   :  { %5027 = vmatpush1.bf16.msra.mxu1 %v5799_v24  ;;  %4942 = vmatprep.subr.bf16.mxu0 %v5814_v30  ;;  %v5880_v24 = vcombine.high %v1792_v38, %v1800_v17  ;;  %v5877_v30 = vcombine.low %v1791_v11, %v1799_v15  ;;  %v5082_v15 = vrot.slane %v5073_v7, %v1255_v51 }
 0x37d   :  { %5028 = vmatprep.subr.bf16.mxu1 %v5816_v32  ;;  %v5879_v32 = vcombine.low %v1792_v38, %v1800_v17 }
 0x37f   :  { %4943 = vmatpush1.bf16.msra.mxu0 %v5813_v44 }
 0x380   :  { %5029 = vmatpush1.bf16.msra.mxu1 %v5815_v36  ;;  %4944 = vmatprep.subr.bf16.mxu0 %v5830_v35 }
 0x381   :  { %5030 = vmatprep.subr.bf16.mxu1 %v5832_v49  ;;  %v5967_v49 = vld [vmem:[#allocation9 + $0x18] sm:$0xff]  }
 0x383   :  { %4945 = vmatpush1.bf16.msra.mxu0 %v5829_v58 }
 0x384   :  { %5031 = vmatpush1.bf16.msra.mxu1 %v5831_v59  ;;  %4946 = vmatprep.subr.bf16.mxu0 %v5846_v62  ;;  %v5969_v59 = vld [vmem:[#allocation9 + $0x28] sm:$0xff]   ;;  %v5970_v62 = vld [vmem:[#allocation9 + $0x30] sm:$0xff]  }
 0x385   :  { %5032 = vmatprep.subr.bf16.mxu1 %v5848_v63  ;;  %v5971_v63 = vld [vmem:[#allocation9 + $0x38] sm:$0xff]  }
 0x387   :  { %4947 = vmatpush1.bf16.msra.mxu0 %v5845_v3 }
 0x388   :  { %5033 = vmatpush1.bf16.msra.mxu1 %v5847_v4  ;;  %4948 = vmatprep.subr.bf16.mxu0 %v5862_v5 }
 0x389   :  { %5034 = vmatprep.subr.bf16.mxu1 %v5864_v6  ;;  %v5086_v6 = vrot.slane %v5073_v7, %v1259_v50 }
 0x38b   :  { %4949 = vmatpush1.bf16.msra.mxu0 %v5861_v18 }
 0x38c   :  { %5035 = vmatpush1.bf16.msra.mxu1 %v5863_v19  ;;  %4950 = vmatprep.subr.bf16.mxu0 %v5878_v23 }
 0x38d   :  { %5036 = vmatprep.subr.bf16.mxu1 %v5880_v24 }
 0x38f   :  { %4951 = vmatpush1.bf16.msra.mxu0 %v5877_v30 }
 0x390   :  { %5037 = vmatpush1.bf16.msra.mxu1 %v5879_v32  ;;  %5899 = vmatprep.subr.bf16.mxu0 %v6122_v43 }
 0x392   :  { %4953 = vmatmul.mubr.bf16.vlgmr.msra.gmra.mrb[28].mxu0 %v6299_v45 }
 0x393   :  { %5039 = vmatmul.mubr.bf16.vlgmr.msra.gmra.mrb[28].mxu1 %v6299_v45  ;;  %5900 = vmatpush3.bf16.msra.mxu0 %v5964_v27  ;;  %v5968_v45 = vld [vmem:[#allocation9 + $0x20] sm:$0xff]  }
 0x394   :  { %5901 = vmatprep.subr.bf16.mxu0 %v6122_v43  ;;  %5915 = vmatprep.mubr.msk.bf16.mxu0 %vm6123_vm0, %v6122_v43 }
 0x397   :  { %5902 = vmatpush3.bf16.msra.mxu0 %v5965_v31 }
 0x398   :  { %5903 = vmatprep.subr.bf16.mxu0 %v6122_v43 }
 0x39b   :  { %5904 = vmatpush3.bf16.msra.mxu0 %v5966_v33 }
 0x39c   :  { %5905 = vmatprep.subr.bf16.mxu0 %v6122_v43 }
 0x39f   :  { %5906 = vmatpush3.bf16.msra.mxu0 %v5967_v49 }
 0x3a0   :  { %5907 = vmatprep.subr.bf16.mxu0 %v6122_v43 }
 0x3a3   :  { %5908 = vmatpush3.bf16.msra.mxu0 %v5968_v45 }
 0x3a4   :  { %5909 = vmatprep.subr.bf16.mxu0 %v6122_v43 }
 0x3a7   :  { %5910 = vmatpush3.bf16.msra.mxu0 %v5969_v59 }
 0x3a8   :  { %5911 = vmatprep.subr.bf16.mxu0 %v6122_v43 }
 0x3ab   :  { %5912 = vmatpush3.bf16.msra.mxu0 %v5970_v62 }
 0x3ac   :  { %5913 = vmatprep.subr.bf16.mxu0 %v6122_v43 }
 0x3af   :  { %5914 = vmatpush3.bf16.msra.mxu0 %v5971_v63 }
 0x3e5   :  { %v4782_v44 = vpop.f32.mrb[24].mxu0 }
 0x3e6   :  { %v4868_v36 = vpop.f32.mrb[24].mxu1  ;;  %v4784_v35 = vpop.f32.mrb[25].mxu0 }
 0x3e7   :  { %v4870_v46 = vpop.f32.mrb[25].mxu1  ;;  %v4786_v53 = vpop.f32.mrb[26].mxu0 }
 0x3e8   :  { %v4872_v54 = vpop.f32.mrb[26].mxu1  ;;  %v4788_v57 = vpop.f32.mrb[27].mxu0 }
 0x3e9   :  { %v4874_v58 = vpop.f32.mrb[27].mxu1 }
 0x465   :  { %v4954_v12 = vpop.f32.mrb[28].mxu0 }
 0x466   :  { %v5057_v13 = vmax.f32 %v4782_v44, %v4954_v12  ;;  %v5040_v3 = vpop.f32.mrb[28].mxu1  ;;  %v4956_v4 = vpop.f32.mrb[29].mxu0 }
 0x467   :  { %v5059_v5 = vmax.f32 %v4868_v36, %v5040_v3  ;;  %v5058_v11 = vmax.f32 %v4784_v35, %v4956_v4  ;;  %v5042_v38 = vpop.f32.mrb[29].mxu1  ;;  %v4958_v17 = vpop.f32.mrb[30].mxu0 }
 0x468   :  { %v5065_v18 = vmax.f32 %v5049_v20, %v5057_v13  ;;  %v5060_v19 = vmax.f32 %v4870_v46, %v5042_v38  ;;  %v5061_v23 = vmax.f32 %v4786_v53, %v4958_v17  ;;  %v5044_v24 = vpop.f32.mrb[30].mxu1  ;;  %v4960_v30 = vpop.f32.mrb[31].mxu0 }
 0x469   :  { %v5067_v50 = vmax.f32 %v5051_v10, %v5059_v5  ;;  %v5066_v51 = vmax.f32 %v5050_v25, %v5058_v11  ;;  %v5063_v32 = vmax.f32 %v4872_v54, %v5044_v24  ;;  %v5062_v27 = vmax.f32 %v4788_v57, %v4960_v30  ;;  %v5046_v43 = vpop.f32.mrb[31].mxu1 }
 0x46a   :  { %v5095_v55 = vadd.f32 %v5078_v14, %v5065_v18  ;;  %v5068_v47 = vmax.f32 %v5052_v34, %v5060_v19  ;;  %v5069_v52 = vmax.f32 %v5053_v37, %v5061_v23  ;;  %v5064_v16 = vmax.f32 %v4874_v58, %v5046_v43 }
 0x46b   :  { %v5097_v20 = vadd.f32 %v5086_v6, %v5067_v50  ;;  %v5096_v56 = vadd.f32 %v5082_v15, %v5066_v51  ;;  %v5071_v60 = vmax.f32 %v5055_v40, %v5063_v32  ;;  %v5070_v21 = vmax.f32 %v5054_v41, %v5062_v27 }
 0x46c   :  { %v5103_v22 = vmax.f32 %v5095_v55, 0.0  ;;  %v5099_v10 = vadd.f32 %v5078_v14, %v5069_v52  ;;  %v5072_v61 = vmax.f32 %v5056_v0, %v5064_v16  ;;  %v5098_v1 = vadd.f32 %v5090_v48, %v5068_v47 }
 0x46d   :  { %v5104_v25 = vmax.f32 %v5096_v56, 0.0  ;;  %v5101_v26 = vadd.f32 %v5086_v6, %v5071_v60  ;;  %v5100_v28 = vadd.f32 %v5082_v15, %v5070_v21  ;;  %v5105_v37 = vmax.f32 %v5097_v20, 0.0 }
 0x46e   :  { %v5107_v34 = vmax.f32 %v5099_v10, 0.0  ;;  %v5102_v2 = vadd.f32 %v5090_v48, %v5072_v61  ;;  %v5106_v39 = vmax.f32 %v5098_v1, 0.0 }
 0x46f   :  { %v5111_v31 = vadd.f32 %v5104_v25, %v5103_v22  ;;  %v5108_v33 = vmax.f32 %v5100_v28, 0.0  ;;  %v5109_v44 = vmax.f32 %v5101_v26, 0.0 }
 0x470   :  { %v5110_v41 = vmax.f32 %v5102_v2, 0.0 }
 0x471   :  { %v5113_v40 = vadd.f32 %v5111_v31, %v5105_v37  ;;  %v5112_v8 = vadd.f32 %v5108_v33, %v5107_v34 }
 0x473   :  { %v5115_v29 = vadd.f32 %v5113_v40, %v5106_v39  ;;  %v5114_v36 = vadd.f32 %v5112_v8, %v5109_v44 }
 0x475   :  { %v5116_v35 = vadd.f32 %v5114_v36, %v5110_v41 }
 0x477   :  { %v5117_v49 = vpack.c.bf16 %v5116_v35, %v5115_v29 }
 0x479   :  { %5916 = vmatmul.mubr.bf16.vlgmr.msra.gmra.mrb[32].mxu0 %v5117_v49 }
 0x54c   :  { %v5223_v42 = vpop.f32.mrb[32].mxu0 }
 0x54d   :  { %v5224_v0 = vadd.f32 %v5881_v9, %v5223_v42  ;;  %v5917_v46 = vpop.f32.mrb[33].mxu0 }
 0x54e   :  { %v5226_v53 = vpop.f32.mrb[34].mxu0 }
 0x54f   :  { %5230 = vst [vmem:[%s6436_s7] sm:$0xff] %v5224_v0  ;;  %v5227_v54 = vadd.f32 %v5881_v9, %v5226_v53  ;;  %v5918_v57 = vpop.f32.mrb[35].mxu0 }
 0x551   :  { %5231 = vst [vmem:[%s6436_s7 + $0x8] sm:$0xff] %v5227_v54 }
 0x552   :  { %5236 = vsyncpa [#allocation3], 1 }
 0x553   :  { %5237 = vsyncpa [#allocation5], 1 }
 0x554   :  { %5238 = vsyncpa [#allocation8], 1 }
 0x555   :  { %5239 = vsyncpa [#allocation11], 1 }

// kernel: _forward_jit.1
= control target key start
LH: loop header
LB: loop body
LE: loop exit
PB: predicated region body
PF: predicated region fallthrough
CT: control target
= control target key end

     0   :  { %12 = vsyncpa [#allocation3], 0  ;;  %s6429_s0 = inlined_call_operand.vmem [shape: bf16[16,128], index: 0, kind: input, shape index: {}]   ;;  %s6430_s1 = inlined_call_operand.hbm [shape: bf16[128,2048], index: 1, kind: input, shape index: {}]   ;;  %s6431_s2 = inlined_call_operand.hbm [shape: f32[1,512], index: 2, kind: input, shape index: {}]   ;;  %s6432_s3 = inlined_call_operand.hbm [shape: bf16[512,2048], index: 3, kind: input, shape index: {}]   ;;  %s6433_s4 = inlined_call_operand.hbm [shape: f32[1,512], index: 4, kind: input, shape index: {}]   ;;  %s6434_s5 = inlined_call_operand.hbm [shape: bf16[128,128], index: 5, kind: input, shape index: {}]   ;;  %s6435_s6 = inlined_call_operand.hbm [shape: f32[1,128], index: 6, kind: input, shape index: {}]   ;;  %s6436_s7 = inlined_call_operand.vmem [shape: f32[16,128], index: 7, kind: output, shape index: {}]  }
   0x1   :  { %13 = vsyncpa [#allocation5], 0 }
   0x2   :  { %14 = vsyncpa [#allocation8], 0 }
   0x3   :  { %15 = vsyncpa [#allocation11], 0  ;;  %s6112_s24 = smov [#allocation4]   ;;  %s6113_s26 = smov [#allocation7]  }
   0x4   :  { %s36_s25 = sshll.u32 %s6112_s24, 4  ;;  %s58_s27 = sshll.u32 %s6113_s26, 4  ;;  %s37_s25 = int_to_ptr.vmem [resolvable:$true] %s36_s25  ;;  %s59_s27 = int_to_ptr.vmem [resolvable:$true] %s58_s27 }
   0x5   :  { %s5972_s30 = scalar_lea.hbm %s6431_s2, 64 }
   0x6   :  { %p5973_p0 = scmp.ne.s32.totalorder %s6431_s2, %s5972_s30  ;;  %p5976_p1 = scmp.lt.u32.totalorder %s5972_s30, %s6431_s2 }
   0x8   :  { %p5978_p2 = pnand %p5976_p1, %p5973_p0 }
   0xa   :  { %5981 = shalt.err (!%p5978_p2)
}
   0xb   :  { %s5982_s12 = scalar_lea.vmem %s37_s25, 64  ;;  %p5987_p4 = scmp.lt.s32.totalorder %s37_s25, %s37_s25 }
   0xc   :  { %p5983_p3 = scmp.ne.s32.totalorder %s37_s25, %s5982_s12  ;;  %p5988_p5 = scmp.lt.s32.totalorder %s5982_s12, %s5982_s12 }
   0xe   :  { %p5989_p6 = por %p5988_p5, %p5987_p4 }
  0x10   :  { %p5990_p7 = pnand %p5989_p6, %p5983_p3 }
  0x12   :  { %5993 = shalt.err (!%p5990_p7)
}
  0x13   :  { %39 = dma.hbm_to_vmem [thread:$0]  %s6431_s2, 64, %s37_s25, [#allocation5]  }
  0x14   :  { %s5994_s17 = scalar_lea.hbm %s6433_s4, 64 }
  0x15   :  { %p5995_p8 = scmp.ne.s32.totalorder %s6433_s4, %s5994_s17  ;;  %p5998_p9 = scmp.lt.u32.totalorder %s5994_s17, %s6433_s4 }
  0x17   :  { %p6000_p10 = pnand %p5998_p9, %p5995_p8 }
  0x19   :  { %6003 = shalt.err (!%p6000_p10)
}
  0x1a   :  { %s6004_s22 = scalar_lea.vmem %s59_s27, 64  ;;  %p6009_p12 = scmp.lt.s32.totalorder %s59_s27, %s59_s27 }
  0x1b   :  { %p6005_p11 = scmp.ne.s32.totalorder %s59_s27, %s6004_s22  ;;  %p6010_p13 = scmp.lt.s32.totalorder %s6004_s22, %s6004_s22 }
  0x1d   :  { %p6011_p0 = por %p6010_p13, %p6009_p12 }
  0x1f   :  { %p6012_p1 = pnand %p6011_p0, %p6005_p11 }
  0x21   :  { %6015 = shalt.err (!%p6012_p1)
}
  0x22   :  { %61 = dma.hbm_to_vmem [thread:$0]  %s6433_s4, 64, %s59_s27, [#allocation8]  }
  0x23   :  { %s6114_s24 = smov [#allocation2]   ;;  %s6016_s29 = scalar_lea.hbm %s6430_s1, 16384 }
  0x24   :  { %s23_s25 = sshll.u32 %s6114_s24, 4  ;;  %p6017_p2 = scmp.ne.s32.totalorder %s6430_s1, %s6016_s29  ;;  %s24_s25 = int_to_ptr.vmem [resolvable:$true] %s23_s25 }
  0x25   :  { %p6020_p3 = scmp.lt.u32.totalorder %s6016_s29, %s6430_s1 }
  0x27   :  { %p6022_p4 = pnand %p6020_p3, %p6017_p2 }
  0x29   :  { %6025 = shalt.err (!%p6022_p4)
}
  0x2a   :  { %s6026_s11 = scalar_lea.vmem %s24_s25, 16384  ;;  %p6031_p6 = scmp.lt.s32.totalorder %s24_s25, %s24_s25 }
  0x2b   :  { %p6027_p5 = scmp.ne.s32.totalorder %s24_s25, %s6026_s11  ;;  %p6032_p7 = scmp.lt.s32.totalorder %s6026_s11, %s6026_s11 }
  0x2d   :  { %p6033_p8 = por %p6032_p7, %p6031_p6 }
  0x2f   :  { %p6034_p9 = pnand %p6033_p8, %p6027_p5 }
  0x31   :  { %6037 = shalt.err (!%p6034_p9)
}
  0x32   :  { %s6115_s4 = smov 1024   ;;  %s6116_s27 = smov 64  }
  0x33   :  { %29 = dma.hbm_to_vmem [thread:$0]  %s6430_s1, 16384, %s24_s25, [#allocation3], %s6115_s4, %s6115_s4, %s6116_s27  }
  0x34   :  { %s6117_s14 = smov [#allocation6]   ;;  %s6118_s16 = smov [#allocation9]  }
  0x35   :  { %s45_s15 = sshll.u32 %s6117_s14, 4  ;;  %s67_s17 = sshll.u32 %s6118_s16, 4  ;;  %s46_s15 = int_to_ptr.vmem [resolvable:$true] %s45_s15  ;;  %s68_s17 = int_to_ptr.vmem [resolvable:$true] %s67_s17 }
  0x36   :  { %s6038_s20 = scalar_lea.hbm %s6432_s3, 65536 }
  0x37   :  { %p6039_p10 = scmp.ne.s32.totalorder %s6432_s3, %s6038_s20  ;;  %p6042_p11 = scmp.lt.u32.totalorder %s6038_s20, %s6432_s3 }
  0x39   :  { %p6044_p12 = pnand %p6042_p11, %p6039_p10 }
  0x3b   :  { %6047 = shalt.err (!%p6044_p12)
}
  0x3c   :  { %s6048_s1 = scalar_lea.vmem %s46_s15, 65536  ;;  %p6053_p0 = scmp.lt.s32.totalorder %s46_s15, %s46_s15 }
  0x3d   :  { %p6049_p13 = scmp.ne.s32.totalorder %s46_s15, %s6048_s1  ;;  %p6054_p1 = scmp.lt.s32.totalorder %s6048_s1, %s6048_s1 }
  0x3f   :  { %p6055_p2 = por %p6054_p1, %p6053_p0 }
  0x41   :  { %p6056_p3 = pnand %p6055_p2, %p6049_p13 }
  0x43   :  { %6059 = shalt.err (!%p6056_p3)
}
  0x44   :  { %51 = dma.hbm_to_vmem [thread:$0]  %s6432_s3, 65536, %s46_s15, [#allocation5], %s6115_s4, %s6115_s4, %s6116_s27  }
  0x45   :  { %s6060_s29 = scalar_lea.hbm %s6434_s5, 1024 }
  0x46   :  { %p6061_p4 = scmp.ne.s32.totalorder %s6434_s5, %s6060_s29  ;;  %p6064_p5 = scmp.lt.u32.totalorder %s6060_s29, %s6434_s5 }
  0x48   :  { %p6066_p6 = pnand %p6064_p5, %p6061_p4 }
  0x4a   :  { %6069 = shalt.err (!%p6066_p6)
}
  0x4b   :  { %s6070_s11 = scalar_lea.vmem %s68_s17, 1024  ;;  %p6075_p8 = scmp.lt.s32.totalorder %s68_s17, %s68_s17 }
  0x4c   :  { %p6071_p7 = scmp.ne.s32.totalorder %s68_s17, %s6070_s11  ;;  %p6076_p9 = scmp.lt.s32.totalorder %s6070_s11, %s6070_s11 }
  0x4e   :  { %p6077_p10 = por %p6076_p9, %p6075_p8 }
  0x50   :  { %p6078_p11 = pnand %p6077_p10, %p6071_p7 }
  0x52   :  { %6081 = shalt.err (!%p6078_p11)
}
  0x53   :  { %s6119_s3 = smov 4   ;;  %s6120_s13 = smov [#allocation10]  }
  0x54   :  { %73 = dma.hbm_to_vmem [thread:$0]  %s6434_s5, 1024, %s68_s17, [#allocation8], %s6116_s27, %s6116_s27, %s6119_s3  }
  0x55   :  { %s80_s14 = sshll.u32 %s6120_s13, 4  ;;  %s6082_s18 = scalar_lea.hbm %s6435_s6, 16  ;;  %s81_s14 = int_to_ptr.vmem [resolvable:$true] %s80_s14 }
  0x56   :  { %p6083_p12 = scmp.ne.s32.totalorder %s6435_s6, %s6082_s18  ;;  %p6086_p13 = scmp.lt.u32.totalorder %s6082_s18, %s6435_s6 }
  0x58   :  { %p6088_p0 = pnand %p6086_p13, %p6083_p12 }
  0x5a   :  { %6091 = shalt.err (!%p6088_p0)
}
  0x5b   :  { %s6092_s2 = scalar_lea.vmem %s81_s14, 16  ;;  %s6096_s5 = scalar_lea.vmem %s81_s14, 32 }
  0x5c   :  { %p6093_p1 = scmp.ne.s32.totalorder %s81_s14, %s6092_s2  ;;  %p6097_p2 = scmp.lt.s32.totalorder %s81_s14, %s81_s14 }
  0x5d   :  { %p6098_p3 = scmp.lt.s32.totalorder %s6096_s5, %s6092_s2 }
  0x5f   :  { %p6099_p4 = por %p6098_p3, %p6097_p2 }
  0x61   :  { %p6100_p5 = pnand %p6099_p4, %p6093_p1 }
  0x63   :  { %6103 = shalt.err (!%p6100_p5)
}
  0x64   :  { %83 = dma.hbm_to_vmem [thread:$0]  %s6435_s6, 16, %s81_s14, [#allocation11]  }
  0x65   :  { %6104 = dma.done.wait [#allocation3], 16384  }
  0x66   :  { %6105 = vsyncadd [#allocation3], 4294950912 }
  0x67   :  { %6106 = dma.done.wait [#allocation5], 65600  }
  0x68   :  { %6107 = vsyncadd [#allocation5], 4294901696 }
  0x69   :  { %6108 = dma.done.wait [#allocation8], 1088  }
  0x6a   :  { %6109 = vsyncadd [#allocation8], 4294966208 }
  0x6b   :  { %6110 = dma.done.wait [#allocation11], 16  }
  0x6c   :  { %6111 = vsyncadd [#allocation11], 4294967280  ;;  %v6121_v0 = vmov 0   ;;  %v105_v1 = vld [vmem:[#allocation2] sm:$0xff]  ;;  %v106_v3 = vld [vmem:[#allocation2 + $0x8] sm:$0xff]  ;;  %vm6123_vm0 = vmmov 0  }
  0x6d   :  { %911 = vmatprep.mubr.bf16.mxu0 %v6121_v0  ;;  %954 = vmatprep.mubr.bf16.mxu1 %v6121_v0  ;;  %v113_v2 = vld [vmem:[#allocation2 + $0x40] sm:$0xff]  ;;  %v114_v5 = vld [vmem:[#allocation2 + $0x48] sm:$0xff]  ;;  %v107_v63 = vld [vmem:[#allocation2 + $0x10] sm:$0xff] }
  0x6e   :  { %v5242_v4 = vcombine.high %v105_v1, %v113_v2  ;;  %v5241_v6 = vcombine.low %v105_v1, %v113_v2  ;;  %v121_v7 = vld [vmem:[#allocation2 + $0x80] sm:$0xff]  ;;  %v5244_v9 = vcombine.high %v106_v3, %v114_v5  ;;  %v5243_v10 = vcombine.low %v106_v3, %v114_v5  ;;  %v122_v12 = vld [vmem:[#allocation2 + $0x88] sm:$0xff]  ;;  %v115_v1 = vld [vmem:[#allocation2 + $0x50] sm:$0xff] }
  0x6f   :  { %v129_v8 = vld [vmem:[#allocation2 + $0xc0] sm:$0xff]  ;;  %v130_v13 = vld [vmem:[#allocation2 + $0xc8] sm:$0xff]  ;;  %v108_v2 = vld [vmem:[#allocation2 + $0x18] sm:$0xff] }
  0x70   :  { %v5258_v11 = vcombine.high %v121_v7, %v129_v8  ;;  %v137_v14 = vld [vmem:[#allocation2 + $0x100] sm:$0xff]  ;;  %879 = vmatprep.subr.bf16.mxu0 %v5242_v4  ;;  %v5260_v15 = vcombine.high %v122_v12, %v130_v13  ;;  %v138_v17 = vld [vmem:[#allocation2 + $0x108] sm:$0xff]  ;;  %922 = vmatprep.subr.bf16.mxu1 %v5244_v9  ;;  %v5257_v19 = vcombine.low %v121_v7, %v129_v8  ;;  %v116_v3 = vld [vmem:[#allocation2 + $0x58] sm:$0xff] }
  0x71   :  { %v145_v16 = vld [vmem:[#allocation2 + $0x140] sm:$0xff]  ;;  %v146_v18 = vld [vmem:[#allocation2 + $0x148] sm:$0xff]  ;;  %880 = vmatpush1.bf16.msra.mxu0 %v5241_v6  ;;  %923 = vmatpush1.bf16.msra.mxu1 %v5243_v10  ;;  %v5259_v20 = vcombine.low %v122_v12, %v130_v13  ;;  %v5246_v6 = vcombine.high %v107_v63, %v115_v1  ;;  %v5248_v7 = vcombine.high %v108_v2, %v116_v3  ;;  %v123_v8 = vld [vmem:[#allocation2 + $0x90] sm:$0xff] }
  0x72   :  { %881 = vmatprep.subr.bf16.mxu0 %v5258_v11  ;;  %v5274_v21 = vcombine.high %v137_v14, %v145_v16  ;;  %924 = vmatprep.subr.bf16.mxu1 %v5260_v15  ;;  %v5276_v22 = vcombine.high %v138_v17, %v146_v18  ;;  %v153_v23 = vld [vmem:[#allocation2 + $0x180] sm:$0xff]  ;;  %v154_v25 = vld [vmem:[#allocation2 + $0x188] sm:$0xff]  ;;  %v5273_v27 = vcombine.low %v137_v14, %v145_v16  ;;  %v131_v9 = vld [vmem:[#allocation2 + $0xd0] sm:$0xff] }
  0x73   :  { %v161_v24 = vld [vmem:[#allocation2 + $0x1c0] sm:$0xff]  ;;  %v162_v26 = vld [vmem:[#allocation2 + $0x1c8] sm:$0xff]  ;;  %v5275_v28 = vcombine.low %v138_v17, %v146_v18  ;;  %v124_v11 = vld [vmem:[#allocation2 + $0x98] sm:$0xff]  ;;  %v5245_v13 = vcombine.low %v107_v63, %v115_v1  ;;  %v5247_v14 = vcombine.low %v108_v2, %v116_v3  ;;  %v5262_v15 = vcombine.high %v123_v8, %v131_v9 }
  0x74   :  { %v5290_v29 = vcombine.high %v153_v23, %v161_v24  ;;  %v5292_v30 = vcombine.high %v154_v25, %v162_v26  ;;  %v169_v31 = vld [vmem:[#allocation2 + $0x200] sm:$0xff]  ;;  %v170_v33 = vld [vmem:[#allocation2 + $0x208] sm:$0xff]  ;;  %v5289_v35 = vcombine.low %v153_v23, %v161_v24  ;;  %v5291_v36 = vcombine.low %v154_v25, %v162_v26  ;;  %v132_v12 = vld [vmem:[#allocation2 + $0xd8] sm:$0xff] }
  0x75   :  { %882 = vmatpush1.bf16.msra.mxu0 %v5257_v19  ;;  %925 = vmatpush1.bf16.msra.mxu1 %v5259_v20  ;;  %v177_v32 = vld [vmem:[#allocation2 + $0x240] sm:$0xff]  ;;  %v178_v34 = vld [vmem:[#allocation2 + $0x248] sm:$0xff]  ;;  %v5264_v16 = vcombine.high %v124_v11, %v132_v12  ;;  %v139_v17 = vld [vmem:[#allocation2 + $0x110] sm:$0xff] }
  0x76   :  { %883 = vmatprep.subr.bf16.mxu0 %v5274_v21  ;;  %926 = vmatprep.subr.bf16.mxu1 %v5276_v22  ;;  %v5306_v37 = vcombine.high %v169_v31, %v177_v32  ;;  %v5308_v38 = vcombine.high %v170_v33, %v178_v34  ;;  %v185_v39 = vld [vmem:[#allocation2 + $0x280] sm:$0xff]  ;;  %v186_v41 = vld [vmem:[#allocation2 + $0x288] sm:$0xff]  ;;  %v5305_v43 = vcombine.low %v169_v31, %v177_v32  ;;  %v147_v18 = vld [vmem:[#allocation2 + $0x150] sm:$0xff] }
  0x77   :  { %v193_v40 = vld [vmem:[#allocation2 + $0x2c0] sm:$0xff]  ;;  %v194_v42 = vld [vmem:[#allocation2 + $0x2c8] sm:$0xff]  ;;  %v5307_v44 = vcombine.low %v170_v33, %v178_v34  ;;  %v140_v19 = vld [vmem:[#allocation2 + $0x118] sm:$0xff]  ;;  %v5261_v21 = vcombine.low %v123_v8, %v131_v9  ;;  %v5263_v22 = vcombine.low %v124_v11, %v132_v12  ;;  %v5278_v23 = vcombine.high %v139_v17, %v147_v18 }
  0x78   :  { %v5322_v45 = vcombine.high %v185_v39, %v193_v40  ;;  %v5324_v46 = vcombine.high %v186_v41, %v194_v42  ;;  %v201_v47 = vld [vmem:[#allocation2 + $0x300] sm:$0xff]  ;;  %v202_v49 = vld [vmem:[#allocation2 + $0x308] sm:$0xff]  ;;  %v5321_v51 = vcombine.low %v185_v39, %v193_v40  ;;  %v5323_v52 = vcombine.low %v186_v41, %v194_v42  ;;  %v148_v20 = vld [vmem:[#allocation2 + $0x158] sm:$0xff] }
  0x79   :  { %884 = vmatpush1.bf16.msra.mxu0 %v5273_v27  ;;  %927 = vmatpush1.bf16.msra.mxu1 %v5275_v28  ;;  %v209_v48 = vld [vmem:[#allocation2 + $0x340] sm:$0xff]  ;;  %v210_v50 = vld [vmem:[#allocation2 + $0x348] sm:$0xff]  ;;  %v5280_v24 = vcombine.high %v140_v19, %v148_v20  ;;  %v155_v25 = vld [vmem:[#allocation2 + $0x190] sm:$0xff] }
  0x7a   :  { %885 = vmatprep.subr.bf16.mxu0 %v5290_v29  ;;  %928 = vmatprep.subr.bf16.mxu1 %v5292_v30  ;;  %v5338_v53 = vcombine.high %v201_v47, %v209_v48  ;;  %v5340_v54 = vcombine.high %v202_v49, %v210_v50  ;;  %v217_v55 = vld [vmem:[#allocation2 + $0x380] sm:$0xff]  ;;  %v218_v57 = vld [vmem:[#allocation2 + $0x388] sm:$0xff]  ;;  %v5337_v59 = vcombine.low %v201_v47, %v209_v48  ;;  %v163_v26 = vld [vmem:[#allocation2 + $0x1d0] sm:$0xff] }
  0x7b   :  { %v225_v56 = vld [vmem:[#allocation2 + $0x3c0] sm:$0xff]  ;;  %v226_v58 = vld [vmem:[#allocation2 + $0x3c8] sm:$0xff]  ;;  %v5339_v60 = vcombine.low %v202_v49, %v210_v50  ;;  %v156_v27 = vld [vmem:[#allocation2 + $0x198] sm:$0xff]  ;;  %v5277_v29 = vcombine.low %v139_v17, %v147_v18  ;;  %v5279_v30 = vcombine.low %v140_v19, %v148_v20  ;;  %v5294_v31 = vcombine.high %v155_v25, %v163_v26 }
  0x7c   :  { %v5354_v61 = vcombine.high %v217_v55, %v225_v56  ;;  %v5356_v62 = vcombine.high %v218_v57, %v226_v58  ;;  %v5353_v4 = vcombine.low %v217_v55, %v225_v56  ;;  %v5355_v5 = vcombine.low %v218_v57, %v226_v58  ;;  %v6245_v10 = vld [vmem:[%s6429_s0] sm:$0xff]   ;;  %v164_v28 = vld [vmem:[#allocation2 + $0x1d8] sm:$0xff]  ;;  %v171_v33 = vld [vmem:[#allocation2 + $0x210] sm:$0xff] }
  0x7d   :  { %886 = vmatpush1.bf16.msra.mxu0 %v5289_v35  ;;  %929 = vmatpush1.bf16.msra.mxu1 %v5291_v36  ;;  %v5296_v32 = vcombine.high %v156_v27, %v164_v28  ;;  %v179_v34 = vld [vmem:[#allocation2 + $0x250] sm:$0xff]  ;;  %v172_v35 = vld [vmem:[#allocation2 + $0x218] sm:$0xff]  ;;  %v5295_v40 = vcombine.low %v156_v27, %v164_v28  ;;  %v109_v2 = vld [vmem:[#allocation2 + $0x20] sm:$0xff] }
  0x7e   :  { %887 = vmatprep.subr.bf16.mxu0 %v5306_v37  ;;  %930 = vmatprep.subr.bf16.mxu1 %v5308_v38  ;;  %v180_v36 = vld [vmem:[#allocation2 + $0x258] sm:$0xff]  ;;  %v5293_v37 = vcombine.low %v155_v25, %v163_v26  ;;  %v187_v38 = vld [vmem:[#allocation2 + $0x290] sm:$0xff]  ;;  %v5310_v41 = vcombine.high %v171_v33, %v179_v34  ;;  %v117_v3 = vld [vmem:[#allocation2 + $0x60] sm:$0xff] }
  0x7f   :  { %v195_v39 = vld [vmem:[#allocation2 + $0x2d0] sm:$0xff]  ;;  %v188_v42 = vld [vmem:[#allocation2 + $0x298] sm:$0xff]  ;;  %v5250_v8 = vcombine.high %v109_v2, %v117_v3  ;;  %v125_v11 = vld [vmem:[#allocation2 + $0xa0] sm:$0xff] }
  0x80   :  { %v5326_v47 = vcombine.high %v187_v38, %v195_v39  ;;  %v203_v49 = vld [vmem:[#allocation2 + $0x310] sm:$0xff]  ;;  %v133_v12 = vld [vmem:[#allocation2 + $0xe0] sm:$0xff] }
  0x81   :  { %888 = vmatpush1.bf16.msra.mxu0 %v5305_v43  ;;  %931 = vmatpush1.bf16.msra.mxu1 %v5307_v44  ;;  %v196_v43 = vld [vmem:[#allocation2 + $0x2d8] sm:$0xff]  ;;  %v5312_v44 = vcombine.high %v172_v35, %v180_v36  ;;  %v211_v50 = vld [vmem:[#allocation2 + $0x350] sm:$0xff]  ;;  %v5266_v17 = vcombine.high %v125_v11, %v133_v12  ;;  %v141_v19 = vld [vmem:[#allocation2 + $0x120] sm:$0xff] }
  0x82   :  { %889 = vmatprep.subr.bf16.mxu0 %v5322_v45  ;;  %932 = vmatprep.subr.bf16.mxu1 %v5324_v46  ;;  %v5309_v45 = vcombine.low %v171_v33, %v179_v34  ;;  %v5311_v46 = vcombine.low %v172_v35, %v180_v36  ;;  %v5328_v48 = vcombine.high %v188_v42, %v196_v43  ;;  %v219_v57 = vld [vmem:[#allocation2 + $0x390] sm:$0xff]  ;;  %v149_v20 = vld [vmem:[#allocation2 + $0x160] sm:$0xff] }
  0x83   :  { %v5342_v55 = vcombine.high %v203_v49, %v211_v50  ;;  %v227_v58 = vld [vmem:[#allocation2 + $0x3d0] sm:$0xff]  ;;  %v5282_v25 = vcombine.high %v141_v19, %v149_v20  ;;  %v157_v27 = vld [vmem:[#allocation2 + $0x1a0] sm:$0xff] }
  0x84   :  { %v5358_v63 = vcombine.high %v219_v57, %v227_v58  ;;  %v165_v28 = vld [vmem:[#allocation2 + $0x1e0] sm:$0xff] }
  0x85   :  { %890 = vmatpush1.bf16.msra.mxu0 %v5321_v51  ;;  %933 = vmatpush1.bf16.msra.mxu1 %v5323_v52  ;;  %v204_v51 = vld [vmem:[#allocation2 + $0x318] sm:$0xff]  ;;  %v5298_v33 = vcombine.high %v157_v27, %v165_v28  ;;  %v173_v35 = vld [vmem:[#allocation2 + $0x220] sm:$0xff] }
  0x86   :  { %891 = vmatprep.subr.bf16.mxu0 %v5338_v53  ;;  %934 = vmatprep.subr.bf16.mxu1 %v5340_v54  ;;  %v212_v52 = vld [vmem:[#allocation2 + $0x358] sm:$0xff]  ;;  %v5325_v53 = vcombine.low %v187_v38, %v195_v39  ;;  %v5327_v54 = vcombine.low %v188_v42, %v196_v43  ;;  %v181_v36 = vld [vmem:[#allocation2 + $0x260] sm:$0xff]  ;;  %v182_v38 = vld [vmem:[#allocation2 + $0x268] sm:$0xff]  ;;  %v5297_v39 = vcombine.low %v157_v27, %v165_v28 }
  0x87   :  { %v5344_v56 = vcombine.high %v204_v51, %v212_v52  ;;  %v189_v43 = vld [vmem:[#allocation2 + $0x2a0] sm:$0xff] }
  0x89   :  { %892 = vmatpush1.bf16.msra.mxu0 %v5337_v59  ;;  %935 = vmatpush1.bf16.msra.mxu1 %v5339_v60  ;;  %v220_v59 = vld [vmem:[#allocation2 + $0x398] sm:$0xff] }
  0x8a   :  { %893 = vmatprep.subr.bf16.mxu0 %v5354_v61  ;;  %936 = vmatprep.subr.bf16.mxu1 %v5356_v62  ;;  %v228_v60 = vld [vmem:[#allocation2 + $0x3d8] sm:$0xff]  ;;  %v5341_v61 = vcombine.low %v203_v49, %v211_v50  ;;  %v5343_v62 = vcombine.low %v204_v51, %v212_v52  ;;  %v205_v51 = vld [vmem:[#allocation2 + $0x320] sm:$0xff] }
  0x8b   :  { %v5360_v1 = vcombine.high %v220_v59, %v228_v60  ;;  %v213_v52 = vld [vmem:[#allocation2 + $0x360] sm:$0xff] }
  0x8d   :  { %894 = vmatpush1.bf16.msra.mxu0 %v5353_v4  ;;  %937 = vmatpush1.bf16.msra.mxu1 %v5355_v5  ;;  %v110_v4 = vld [vmem:[#allocation2 + $0x28] sm:$0xff] }
  0x8e   :  { %965 = vmatprep.subr.bf16.mxu0 %v5246_v6  ;;  %1008 = vmatprep.subr.bf16.mxu1 %v5248_v7  ;;  %v118_v5 = vld [vmem:[#allocation2 + $0x68] sm:$0xff]  ;;  %v5357_v6 = vcombine.low %v219_v57, %v227_v58  ;;  %v5359_v7 = vcombine.low %v220_v59, %v228_v60  ;;  %v5346_v57 = vcombine.high %v205_v51, %v213_v52  ;;  %v221_v59 = vld [vmem:[#allocation2 + $0x3a0] sm:$0xff] }
  0x8f   :  { %v5252_v9 = vcombine.high %v110_v4, %v118_v5  ;;  %v229_v60 = vld [vmem:[#allocation2 + $0x3e0] sm:$0xff] }
  0x90   :  { %912 = vmatmul.mubr.bf16.vlgmr.msra.gmra.mrb[0].mxu0 %v6245_v10  ;;  %955 = vmatmul.mubr.bf16.vlgmr.msra.gmra.mrb[0].mxu1 %v6245_v10 }
  0x91   :  { %966 = vmatpush1.bf16.msra.mxu0 %v5245_v13  ;;  %1009 = vmatpush1.bf16.msra.mxu1 %v5247_v14  ;;  %v126_v13 = vld [vmem:[#allocation2 + $0xa8] sm:$0xff] }
  0x92   :  { %967 = vmatprep.subr.bf16.mxu0 %v5262_v15  ;;  %1010 = vmatprep.subr.bf16.mxu1 %v5264_v16  ;;  %v134_v14 = vld [vmem:[#allocation2 + $0xe8] sm:$0xff]  ;;  %v5249_v15 = vcombine.low %v109_v2, %v117_v3  ;;  %v5251_v16 = vcombine.low %v110_v4, %v118_v5  ;;  %v5362_v2 = vcombine.high %v221_v59, %v229_v60  ;;  %v111_v4 = vld [vmem:[#allocation2 + $0x30] sm:$0xff] }
  0x93   :  { %997 = vmatprep.mubr.bf16.mxu0 %v6121_v0  ;;  %1040 = vmatprep.mubr.bf16.mxu1 %v6121_v0  ;;  %v5268_v18 = vcombine.high %v126_v13, %v134_v14  ;;  %v119_v5 = vld [vmem:[#allocation2 + $0x70] sm:$0xff] }
  0x95   :  { %968 = vmatpush1.bf16.msra.mxu0 %v5261_v21  ;;  %1011 = vmatpush1.bf16.msra.mxu1 %v5263_v22  ;;  %v142_v21 = vld [vmem:[#allocation2 + $0x128] sm:$0xff] }
  0x96   :  { %969 = vmatprep.subr.bf16.mxu0 %v5278_v23  ;;  %1012 = vmatprep.subr.bf16.mxu1 %v5280_v24  ;;  %v150_v22 = vld [vmem:[#allocation2 + $0x168] sm:$0xff]  ;;  %v5265_v23 = vcombine.low %v125_v11, %v133_v12  ;;  %v5267_v24 = vcombine.low %v126_v13, %v134_v14  ;;  %v5254_v11 = vcombine.high %v111_v4, %v119_v5  ;;  %v127_v13 = vld [vmem:[#allocation2 + $0xb0] sm:$0xff] }
  0x97   :  { %v5284_v26 = vcombine.high %v142_v21, %v150_v22  ;;  %v135_v14 = vld [vmem:[#allocation2 + $0xf0] sm:$0xff] }
  0x99   :  { %970 = vmatpush1.bf16.msra.mxu0 %v5277_v29  ;;  %1013 = vmatpush1.bf16.msra.mxu1 %v5279_v30  ;;  %v158_v29 = vld [vmem:[#allocation2 + $0x1a8] sm:$0xff] }
  0x9a   :  { %971 = vmatprep.subr.bf16.mxu0 %v5294_v31  ;;  %1014 = vmatprep.subr.bf16.mxu1 %v5296_v32  ;;  %v166_v30 = vld [vmem:[#allocation2 + $0x1e8] sm:$0xff]  ;;  %v5281_v31 = vcombine.low %v141_v19, %v149_v20  ;;  %v5283_v32 = vcombine.low %v142_v21, %v150_v22  ;;  %v5270_v19 = vcombine.high %v127_v13, %v135_v14  ;;  %v143_v21 = vld [vmem:[#allocation2 + $0x130] sm:$0xff] }
  0x9b   :  { %v5300_v34 = vcombine.high %v158_v29, %v166_v30  ;;  %v151_v22 = vld [vmem:[#allocation2 + $0x170] sm:$0xff] }
  0x9c   :  { %v5286_v27 = vcombine.high %v143_v21, %v151_v22 }
  0x9d   :  { %972 = vmatpush1.bf16.msra.mxu0 %v5293_v37  ;;  %1015 = vmatpush1.bf16.msra.mxu1 %v5295_v40  ;;  %v174_v37 = vld [vmem:[#allocation2 + $0x228] sm:$0xff]  ;;  %v5299_v40 = vcombine.low %v158_v29, %v166_v30  ;;  %v159_v29 = vld [vmem:[#allocation2 + $0x1b0] sm:$0xff] }
  0x9e   :  { %973 = vmatprep.subr.bf16.mxu0 %v5310_v41  ;;  %1016 = vmatprep.subr.bf16.mxu1 %v5312_v44  ;;  %v5314_v41 = vcombine.high %v173_v35, %v181_v36  ;;  %v5316_v42 = vcombine.high %v174_v37, %v182_v38  ;;  %v197_v44 = vld [vmem:[#allocation2 + $0x2e0] sm:$0xff]  ;;  %v167_v30 = vld [vmem:[#allocation2 + $0x1f0] sm:$0xff] }
  0x9f   :  { %v5330_v49 = vcombine.high %v189_v43, %v197_v44 }
  0xa1   :  { %974 = vmatpush1.bf16.msra.mxu0 %v5309_v45  ;;  %1017 = vmatpush1.bf16.msra.mxu1 %v5311_v46  ;;  %v190_v45 = vld [vmem:[#allocation2 + $0x2a8] sm:$0xff] }
  0xa2   :  { %975 = vmatprep.subr.bf16.mxu0 %v5326_v47  ;;  %1018 = vmatprep.subr.bf16.mxu1 %v5328_v48  ;;  %v198_v46 = vld [vmem:[#allocation2 + $0x2e8] sm:$0xff]  ;;  %v5313_v47 = vcombine.low %v173_v35, %v181_v36  ;;  %v5315_v48 = vcombine.low %v174_v37, %v182_v38  ;;  %v5302_v35 = vcombine.high %v159_v29, %v167_v30  ;;  %v175_v37 = vld [vmem:[#allocation2 + $0x230] sm:$0xff] }
  0xa3   :  { %v5332_v50 = vcombine.high %v190_v45, %v198_v46  ;;  %v183_v38 = vld [vmem:[#allocation2 + $0x270] sm:$0xff] }
  0xa5   :  { %976 = vmatpush1.bf16.msra.mxu0 %v5325_v53  ;;  %1019 = vmatpush1.bf16.msra.mxu1 %v5327_v54  ;;  %v206_v53 = vld [vmem:[#allocation2 + $0x328] sm:$0xff] }
  0xa6   :  { %977 = vmatprep.subr.bf16.mxu0 %v5342_v55  ;;  %1020 = vmatprep.subr.bf16.mxu1 %v5344_v56  ;;  %v214_v54 = vld [vmem:[#allocation2 + $0x368] sm:$0xff]  ;;  %v5329_v55 = vcombine.low %v189_v43, %v197_v44  ;;  %v5331_v56 = vcombine.low %v190_v45, %v198_v46  ;;  %v5318_v43 = vcombine.high %v175_v37, %v183_v38  ;;  %v191_v44 = vld [vmem:[#allocation2 + $0x2b0] sm:$0xff]  ;;  %v192_v46 = vld [vmem:[#allocation2 + $0x2b8] sm:$0xff] }
  0xa7   :  { %v5348_v58 = vcombine.high %v206_v53, %v214_v54  ;;  %v199_v45 = vld [vmem:[#allocation2 + $0x2f0] sm:$0xff] }
  0xa9   :  { %978 = vmatpush1.bf16.msra.mxu0 %v5341_v61  ;;  %1021 = vmatpush1.bf16.msra.mxu1 %v5343_v62  ;;  %v222_v61 = vld [vmem:[#allocation2 + $0x3a8] sm:$0xff] }
  0xaa   :  { %979 = vmatprep.subr.bf16.mxu0 %v5358_v63  ;;  %1022 = vmatprep.subr.bf16.mxu1 %v5360_v1  ;;  %v230_v62 = vld [vmem:[#allocation2 + $0x3e8] sm:$0xff]  ;;  %v5345_v63 = vcombine.low %v205_v51, %v213_v52  ;;  %v5347_v1 = vcombine.low %v206_v53, %v214_v54  ;;  %v207_v52 = vld [vmem:[#allocation2 + $0x330] sm:$0xff]  ;;  %v208_v54 = vld [vmem:[#allocation2 + $0x338] sm:$0xff] }
  0xab   :  { %v5364_v3 = vcombine.high %v222_v61, %v230_v62  ;;  %v215_v53 = vld [vmem:[#allocation2 + $0x370] sm:$0xff] }
  0xad   :  { %980 = vmatpush1.bf16.msra.mxu0 %v5357_v6  ;;  %1023 = vmatpush1.bf16.msra.mxu1 %v5359_v7  ;;  %v112_v6 = vld [vmem:[#allocation2 + $0x38] sm:$0xff] }
  0xae   :  { %1051 = vmatprep.subr.bf16.mxu0 %v5250_v8  ;;  %1094 = vmatprep.subr.bf16.mxu1 %v5252_v9  ;;  %v120_v7 = vld [vmem:[#allocation2 + $0x78] sm:$0xff]  ;;  %v5361_v8 = vcombine.low %v221_v59, %v229_v60  ;;  %v5363_v9 = vcombine.low %v222_v61, %v230_v62  ;;  %v223_v60 = vld [vmem:[#allocation2 + $0x3b0] sm:$0xff] }
  0xaf   :  { %v5256_v12 = vcombine.high %v112_v6, %v120_v7  ;;  %v231_v61 = vld [vmem:[#allocation2 + $0x3f0] sm:$0xff]  ;;  %v224_v62 = vld [vmem:[#allocation2 + $0x3b8] sm:$0xff] }
  0xb0   :  { %998 = vmatmul.mubr.bf16.vlgmr.msra.gmra.mrb[4].mxu0 %v6245_v10  ;;  %1041 = vmatmul.mubr.bf16.vlgmr.msra.gmra.mrb[4].mxu1 %v6245_v10 }
  0xb1   :  { %1052 = vmatpush1.bf16.msra.mxu0 %v5249_v15  ;;  %1095 = vmatpush1.bf16.msra.mxu1 %v5251_v16  ;;  %v128_v15 = vld [vmem:[#allocation2 + $0xb8] sm:$0xff] }
  0xb2   :  { %1053 = vmatprep.subr.bf16.mxu0 %v5266_v17  ;;  %1096 = vmatprep.subr.bf16.mxu1 %v5268_v18  ;;  %v136_v16 = vld [vmem:[#allocation2 + $0xf8] sm:$0xff]  ;;  %v5253_v17 = vcombine.low %v111_v4, %v119_v5  ;;  %v5255_v18 = vcombine.low %v112_v6, %v120_v7  ;;  %v5365_v5 = vcombine.low %v223_v60, %v231_v61  ;;  %v1289_v7 = vld [vmem:[#allocation6] sm:$0xff] }
  0xb3   :  { %1083 = vmatprep.mubr.bf16.mxu0 %v6121_v0  ;;  %1126 = vmatprep.mubr.bf16.mxu1 %v6121_v0  ;;  %v5272_v20 = vcombine.high %v128_v15, %v136_v16 }
  0xb5   :  { %1054 = vmatpush1.bf16.msra.mxu0 %v5265_v23  ;;  %1097 = vmatpush1.bf16.msra.mxu1 %v5267_v24  ;;  %v144_v23 = vld [vmem:[#allocation2 + $0x138] sm:$0xff] }
  0xb6   :  { %1055 = vmatprep.subr.bf16.mxu0 %v5282_v25  ;;  %1098 = vmatprep.subr.bf16.mxu1 %v5284_v26  ;;  %v152_v24 = vld [vmem:[#allocation2 + $0x178] sm:$0xff]  ;;  %v5269_v25 = vcombine.low %v127_v13, %v135_v14  ;;  %v5271_v26 = vcombine.low %v128_v15, %v136_v16  ;;  %v1298_v13 = vld [vmem:[#allocation6 + $0x48] sm:$0xff]  ;;  %v1305_v14 = vld [vmem:[#allocation6 + $0x80] sm:$0xff] }
  0xb7   :  { %v5288_v28 = vcombine.high %v144_v23, %v152_v24  ;;  %v1313_v15 = vld [vmem:[#allocation6 + $0xc0] sm:$0xff] }
  0xb9   :  { %1056 = vmatpush1.bf16.msra.mxu0 %v5281_v31  ;;  %1099 = vmatpush1.bf16.msra.mxu1 %v5283_v32  ;;  %v160_v31 = vld [vmem:[#allocation2 + $0x1b8] sm:$0xff] }
  0xba   :  { %1057 = vmatprep.subr.bf16.mxu0 %v5298_v33  ;;  %1100 = vmatprep.subr.bf16.mxu1 %v5300_v34  ;;  %v168_v32 = vld [vmem:[#allocation2 + $0x1f8] sm:$0xff]  ;;  %v5285_v33 = vcombine.low %v143_v21, %v151_v22  ;;  %v5287_v34 = vcombine.low %v144_v23, %v152_v24  ;;  %v1321_v21 = vld [vmem:[#allocation6 + $0x100] sm:$0xff]  ;;  %v1322_v24 = vld [vmem:[#allocation6 + $0x108] sm:$0xff] }
  0xbb   :  { %v5304_v36 = vcombine.high %v160_v31, %v168_v32  ;;  %v1329_v23 = vld [vmem:[#allocation6 + $0x140] sm:$0xff] }
  0xbd   :  { %1058 = vmatpush1.bf16.msra.mxu0 %v5297_v39  ;;  %1101 = vmatpush1.bf16.msra.mxu1 %v5299_v40  ;;  %v176_v39 = vld [vmem:[#allocation2 + $0x238] sm:$0xff] }
  0xbe   :  { %1059 = vmatprep.subr.bf16.mxu0 %v5314_v41  ;;  %1102 = vmatprep.subr.bf16.mxu1 %v5316_v42  ;;  %v184_v40 = vld [vmem:[#allocation2 + $0x278] sm:$0xff]  ;;  %v5301_v41 = vcombine.low %v159_v29, %v167_v30  ;;  %v5303_v42 = vcombine.low %v160_v31, %v168_v32  ;;  %v1337_v29 = vld [vmem:[#allocation6 + $0x180] sm:$0xff]  ;;  %v1338_v31 = vld [vmem:[#allocation6 + $0x188] sm:$0xff] }
  0xbf   :  { %v1345_v30 = vld [vmem:[#allocation6 + $0x1c0] sm:$0xff]  ;;  %v1346_v32 = vld [vmem:[#allocation6 + $0x1c8] sm:$0xff] }
  0xc1   :  { %1060 = vmatpush1.bf16.msra.mxu0 %v5313_v47  ;;  %1103 = vmatpush1.bf16.msra.mxu1 %v5315_v48  ;;  %v200_v47 = vld [vmem:[#allocation2 + $0x2f8] sm:$0xff]  ;;  %v5317_v48 = vcombine.low %v175_v37, %v183_v38  ;;  %v1353_v37 = vld [vmem:[#allocation6 + $0x200] sm:$0xff] }
  0xc2   :  { %1061 = vmatprep.subr.bf16.mxu0 %v5330_v49  ;;  %1104 = vmatprep.subr.bf16.mxu1 %v5332_v50  ;;  %v5319_v49 = vcombine.low %v176_v39, %v184_v40  ;;  %v5334_v50 = vcombine.high %v191_v44, %v199_v45  ;;  %v5336_v51 = vcombine.high %v192_v46, %v200_v47  ;;  %v1361_v38 = vld [vmem:[#allocation6 + $0x240] sm:$0xff] }
  0xc5   :  { %1062 = vmatpush1.bf16.msra.mxu0 %v5329_v55  ;;  %1105 = vmatpush1.bf16.msra.mxu1 %v5331_v56  ;;  %v216_v55 = vld [vmem:[#allocation2 + $0x378] sm:$0xff]  ;;  %v5333_v56 = vcombine.low %v191_v44, %v199_v45  ;;  %v5433_v44 = vcombine.low %v1353_v37, %v1361_v38 }
  0xc6   :  { %1063 = vmatprep.subr.bf16.mxu0 %v5346_v57  ;;  %1106 = vmatprep.subr.bf16.mxu1 %v5348_v58  ;;  %v5335_v57 = vcombine.low %v192_v46, %v200_v47  ;;  %v5350_v58 = vcombine.high %v207_v52, %v215_v53  ;;  %v5352_v59 = vcombine.high %v208_v54, %v216_v55  ;;  %v1369_v46 = vld [vmem:[#allocation6 + $0x280] sm:$0xff] }
  0xc7   :  { %v1377_v47 = vld [vmem:[#allocation6 + $0x2c0] sm:$0xff] }
  0xc9   :  { %1064 = vmatpush1.bf16.msra.mxu0 %v5345_v63  ;;  %1107 = vmatpush1.bf16.msra.mxu1 %v5347_v1  ;;  %v232_v63 = vld [vmem:[#allocation2 + $0x3f8] sm:$0xff]  ;;  %v5349_v1 = vcombine.low %v207_v52, %v215_v53 }
  0xca   :  { %1065 = vmatprep.subr.bf16.mxu0 %v5362_v2  ;;  %1108 = vmatprep.subr.bf16.mxu1 %v5364_v3  ;;  %v5351_v2 = vcombine.low %v208_v54, %v216_v55  ;;  %v5366_v3 = vcombine.high %v223_v60, %v231_v61  ;;  %v5368_v4 = vcombine.high %v224_v62, %v232_v63  ;;  %v1385_v54 = vld [vmem:[#allocation6 + $0x300] sm:$0xff] }
  0xcb   :  { %v5367_v6 = vcombine.low %v224_v62, %v232_v63  ;;  %v1393_v55 = vld [vmem:[#allocation6 + $0x340] sm:$0xff] }
  0xcc   :  { %v1401_v60 = vld [vmem:[#allocation6 + $0x380] sm:$0xff] }
  0xcd   :  { %1066 = vmatpush1.bf16.msra.mxu0 %v5361_v8  ;;  %1109 = vmatpush1.bf16.msra.mxu1 %v5363_v9  ;;  %v1297_v8 = vld [vmem:[#allocation6 + $0x40] sm:$0xff]  ;;  %v1290_v9 = vld [vmem:[#allocation6 + $0x8] sm:$0xff] }
  0xce   :  { %1137 = vmatprep.subr.bf16.mxu0 %v5254_v11  ;;  %1180 = vmatprep.subr.bf16.mxu1 %v5256_v12  ;;  %v5369_v11 = vcombine.low %v1289_v7, %v1297_v8  ;;  %v5370_v12 = vcombine.high %v1289_v7, %v1297_v8  ;;  %v5371_v16 = vcombine.low %v1290_v9, %v1298_v13  ;;  %v1409_v61 = vld [vmem:[#allocation6 + $0x3c0] sm:$0xff]  ;;  %v1418_v7 = vld [vmem:[#allocation6 + $0x408] sm:$0xff] }
  0xcf   :  { %v1426_v8 = vld [vmem:[#allocation6 + $0x448] sm:$0xff] }
  0xd0   :  { %1084 = vmatmul.mubr.bf16.vlgmr.msra.gmra.mrb[8].mxu0 %v6245_v10  ;;  %1127 = vmatmul.mubr.bf16.vlgmr.msra.gmra.mrb[8].mxu1 %v6245_v10 }
  0xd1   :  { %1138 = vmatpush1.bf16.msra.mxu0 %v5253_v17  ;;  %1181 = vmatpush1.bf16.msra.mxu1 %v5255_v18  ;;  %v5372_v17 = vcombine.high %v1290_v9, %v1298_v13  ;;  %v5386_v18 = vcombine.high %v1305_v14, %v1313_v15  ;;  %v5481_v9 = vcombine.low %v1401_v60, %v1409_v61 }
  0xd2   :  { %1139 = vmatprep.subr.bf16.mxu0 %v5270_v19  ;;  %1182 = vmatprep.subr.bf16.mxu1 %v5272_v20  ;;  %v1306_v19 = vld [vmem:[#allocation6 + $0x88] sm:$0xff]  ;;  %v5500_v13 = vcombine.high %v1418_v7, %v1426_v8 }
  0xd3   :  { %1169 = vmatprep.mubr.bf16.mxu0 %v6121_v0  ;;  %1212 = vmatprep.mubr.bf16.mxu1 %v6121_v0  ;;  %v5320_v0 = vcombine.high %v176_v39, %v184_v40  ;;  %v1314_v20 = vld [vmem:[#allocation6 + $0xc8] sm:$0xff] }
  0xd4   :  { %v5388_v22 = vcombine.high %v1306_v19, %v1314_v20  ;;  %v1354_v39 = vld [vmem:[#allocation6 + $0x208] sm:$0xff] }
  0xd5   :  { %1140 = vmatpush1.bf16.msra.mxu0 %v5269_v25  ;;  %1183 = vmatpush1.bf16.msra.mxu1 %v5271_v26  ;;  %v1330_v25 = vld [vmem:[#allocation6 + $0x148] sm:$0xff]  ;;  %v5387_v26 = vcombine.low %v1306_v19, %v1314_v20  ;;  %v5499_v19 = vcombine.low %v1418_v7, %v1426_v8  ;;  %v6261_v7 = vld [vmem:[#allocation6 + $0x800] sm:$0xff] }
  0xd6   :  { %1141 = vmatprep.subr.bf16.mxu0 %v5286_v27  ;;  %1184 = vmatprep.subr.bf16.mxu1 %v5288_v28  ;;  %v5402_v27 = vcombine.high %v1321_v21, %v1329_v23  ;;  %v5404_v28 = vcombine.high %v1322_v24, %v1330_v25  ;;  %v1362_v40 = vld [vmem:[#allocation6 + $0x248] sm:$0xff]  ;;  %v6263_v8 = vld [vmem:[#allocation6 + $0x840] sm:$0xff] }
  0xd7   :  { %v5435_v45 = vcombine.low %v1354_v39, %v1362_v40 }
  0xd9   :  { %1142 = vmatpush1.bf16.msra.mxu0 %v5285_v33  ;;  %1185 = vmatpush1.bf16.msra.mxu1 %v5287_v34  ;;  %v5401_v33 = vcombine.low %v1321_v21, %v1329_v23  ;;  %v5403_v34 = vcombine.low %v1322_v24, %v1330_v25  ;;  %v1457_v23 = vld [vmem:[#allocation6 + $0x540] sm:$0xff]  ;;  %v1450_v24 = vld [vmem:[#allocation6 + $0x508] sm:$0xff] }
  0xda   :  { %1143 = vmatprep.subr.bf16.mxu0 %v5302_v35  ;;  %1186 = vmatprep.subr.bf16.mxu1 %v5304_v36  ;;  %v5418_v35 = vcombine.high %v1337_v29, %v1345_v30  ;;  %v5420_v36 = vcombine.high %v1338_v31, %v1346_v32  ;;  %v1458_v25 = vld [vmem:[#allocation6 + $0x548] sm:$0xff] }
  0xdd   :  { %1144 = vmatpush1.bf16.msra.mxu0 %v5301_v41  ;;  %1187 = vmatpush1.bf16.msra.mxu1 %v5303_v42  ;;  %v5417_v41 = vcombine.low %v1337_v29, %v1345_v30  ;;  %v5419_v42 = vcombine.low %v1338_v31, %v1346_v32  ;;  %v1465_v29 = vld [vmem:[#allocation6 + $0x580] sm:$0xff]  ;;  %v1466_v31 = vld [vmem:[#allocation6 + $0x588] sm:$0xff] }
  0xde   :  { %1145 = vmatprep.subr.bf16.mxu0 %v5318_v43  ;;  %1188 = vmatprep.subr.bf16.mxu1 %v5320_v0  ;;  %v5434_v43 = vcombine.high %v1353_v37, %v1361_v38  ;;  %v5436_v0 = vcombine.high %v1354_v39, %v1362_v40  ;;  %v1473_v30 = vld [vmem:[#allocation6 + $0x5c0] sm:$0xff]  ;;  %v1474_v32 = vld [vmem:[#allocation6 + $0x5c8] sm:$0xff] }
  0xdf   :  { %v1481_v37 = vld [vmem:[#allocation6 + $0x600] sm:$0xff]  ;;  %v1482_v39 = vld [vmem:[#allocation6 + $0x608] sm:$0xff] }
  0xe0   :  { %v1489_v38 = vld [vmem:[#allocation6 + $0x640] sm:$0xff]  ;;  %v1490_v40 = vld [vmem:[#allocation6 + $0x648] sm:$0xff] }
  0xe1   :  { %1146 = vmatpush1.bf16.msra.mxu0 %v5317_v48  ;;  %1189 = vmatpush1.bf16.msra.mxu1 %v5319_v49  ;;  %v1370_v48 = vld [vmem:[#allocation6 + $0x288] sm:$0xff]  ;;  %v5450_v49 = vcombine.high %v1369_v46, %v1377_v47 }
  0xe2   :  { %1147 = vmatprep.subr.bf16.mxu0 %v5334_v50  ;;  %1190 = vmatprep.subr.bf16.mxu1 %v5336_v51  ;;  %v1378_v50 = vld [vmem:[#allocation6 + $0x2c8] sm:$0xff]  ;;  %v5449_v51 = vcombine.low %v1369_v46, %v1377_v47  ;;  %v1497_v46 = vld [vmem:[#allocation6 + $0x680] sm:$0xff] }
  0xe3   :  { %v5451_v52 = vcombine.low %v1370_v48, %v1378_v50  ;;  %v5452_v53 = vcombine.high %v1370_v48, %v1378_v50  ;;  %v1505_v47 = vld [vmem:[#allocation6 + $0x6c0] sm:$0xff]  ;;  %v1498_v48 = vld [vmem:[#allocation6 + $0x688] sm:$0xff] }
  0xe4   :  { %v1506_v50 = vld [vmem:[#allocation6 + $0x6c8] sm:$0xff] }
  0xe5   :  { %1148 = vmatpush1.bf16.msra.mxu0 %v5333_v56  ;;  %1191 = vmatpush1.bf16.msra.mxu1 %v5335_v57  ;;  %v1386_v56 = vld [vmem:[#allocation6 + $0x308] sm:$0xff]  ;;  %v5465_v57 = vcombine.low %v1385_v54, %v1393_v55 }
  0xe6   :  { %1149 = vmatprep.subr.bf16.mxu0 %v5350_v58  ;;  %1192 = vmatprep.subr.bf16.mxu1 %v5352_v59  ;;  %v5466_v58 = vcombine.high %v1385_v54, %v1393_v55  ;;  %v1394_v59 = vld [vmem:[#allocation6 + $0x348] sm:$0xff]  ;;  %v1513_v54 = vld [vmem:[#allocation6 + $0x700] sm:$0xff] }
  0xe7   :  { %v5467_v62 = vcombine.low %v1386_v56, %v1394_v59  ;;  %v5468_v63 = vcombine.high %v1386_v56, %v1394_v59  ;;  %v1521_v55 = vld [vmem:[#allocation6 + $0x740] sm:$0xff]  ;;  %v1514_v56 = vld [vmem:[#allocation6 + $0x708] sm:$0xff] }
  0xe8   :  { %v5593_v59 = vcombine.low %v1513_v54, %v1521_v55 }
  0xe9   :  { %1150 = vmatpush1.bf16.msra.mxu0 %v5349_v1  ;;  %1193 = vmatpush1.bf16.msra.mxu1 %v5351_v2  ;;  %v5482_v1 = vcombine.high %v1401_v60, %v1409_v61  ;;  %v1402_v2 = vld [vmem:[#allocation6 + $0x388] sm:$0xff] }
  0xea   :  { %1151 = vmatprep.subr.bf16.mxu0 %v5366_v3  ;;  %1194 = vmatprep.subr.bf16.mxu1 %v5368_v4  ;;  %v1410_v3 = vld [vmem:[#allocation6 + $0x3c8] sm:$0xff] }
  0xeb   :  { %v5484_v4 = vcombine.high %v1402_v2, %v1410_v3 }
  0xed   :  { %1152 = vmatpush1.bf16.msra.mxu0 %v5365_v5  ;;  %1195 = vmatpush1.bf16.msra.mxu1 %v5367_v6  ;;  %v1417_v5 = vld [vmem:[#allocation6 + $0x400] sm:$0xff] }
  0xee   :  { %4361 = vmatprep.subr.bf16.mxu0 %v5370_v12  ;;  %4447 = vmatprep.subr.bf16.mxu1 %v5372_v17  ;;  %v1425_v6 = vld [vmem:[#allocation6 + $0x440] sm:$0xff]  ;;  %v1442_v17 = vld [vmem:[#allocation6 + $0x4c8] sm:$0xff] }
  0xef   :  { %v5498_v12 = vcombine.high %v1417_v5, %v1425_v6 }
  0xf0   :  { %1170 = vmatmul.mubr.bf16.vlgmr.msra.gmra.mrb[12].mxu0 %v6245_v10  ;;  %1213 = vmatmul.mubr.bf16.vlgmr.msra.gmra.mrb[12].mxu1 %v6245_v10  ;;  %v5385_v10 = vcombine.low %v1305_v14, %v1313_v15  ;;  %v1433_v14 = vld [vmem:[#allocation6 + $0x480] sm:$0xff] }
  0xf1   :  { %4362 = vmatpush1.bf16.msra.mxu0 %v5369_v11  ;;  %4448 = vmatpush1.bf16.msra.mxu1 %v5371_v16  ;;  %v5483_v11 = vcombine.low %v1402_v2, %v1410_v3  ;;  %v1441_v15 = vld [vmem:[#allocation6 + $0x4c0] sm:$0xff]  ;;  %v1434_v16 = vld [vmem:[#allocation6 + $0x488] sm:$0xff] }
  0xf2   :  { %4363 = vmatprep.subr.bf16.mxu0 %v5386_v18  ;;  %4449 = vmatprep.subr.bf16.mxu1 %v5388_v22  ;;  %v5497_v18 = vcombine.low %v1417_v5, %v1425_v6  ;;  %v5514_v20 = vcombine.high %v1433_v14, %v1441_v15  ;;  %v5516_v21 = vcombine.high %v1434_v16, %v1442_v17  ;;  %v1449_v22 = vld [vmem:[#allocation6 + $0x500] sm:$0xff]  ;;  %v1538_v3 = vld [vmem:[#allocation6 + $0x7c8] sm:$0xff] }
  0xf5   :  { %4364 = vmatpush1.bf16.msra.mxu0 %v5385_v10  ;;  %4450 = vmatpush1.bf16.msra.mxu1 %v5387_v26  ;;  %v5513_v10 = vcombine.low %v1433_v14, %v1441_v15  ;;  %v5515_v26 = vcombine.low %v1434_v16, %v1442_v17 }
  0xf6   :  { %4365 = vmatprep.subr.bf16.mxu0 %v5402_v27  ;;  %4451 = vmatprep.subr.bf16.mxu1 %v5404_v28  ;;  %v5530_v27 = vcombine.high %v1449_v22, %v1457_v23  ;;  %v5532_v28 = vcombine.high %v1450_v24, %v1458_v25 }
  0xf9   :  { %4366 = vmatpush1.bf16.msra.mxu0 %v5401_v33  ;;  %4452 = vmatpush1.bf16.msra.mxu1 %v5403_v34  ;;  %v5529_v33 = vcombine.low %v1449_v22, %v1457_v23  ;;  %v5531_v34 = vcombine.low %v1450_v24, %v1458_v25 }
  0xfa   :  { %4367 = vmatprep.subr.bf16.mxu0 %v5418_v35  ;;  %4453 = vmatprep.subr.bf16.mxu1 %v5420_v36  ;;  %v5546_v35 = vcombine.high %v1465_v29, %v1473_v30  ;;  %v5548_v36 = vcombine.high %v1466_v31, %v1474_v32 }
  0xfd   :  { %4368 = vmatpush1.bf16.msra.mxu0 %v5417_v41  ;;  %4454 = vmatpush1.bf16.msra.mxu1 %v5419_v42  ;;  %v5545_v41 = vcombine.low %v1465_v29, %v1473_v30  ;;  %v5547_v42 = vcombine.low %v1466_v31, %v1474_v32 }
  0xfe   :  { %4369 = vmatprep.subr.bf16.mxu0 %v5434_v43  ;;  %4455 = vmatprep.subr.bf16.mxu1 %v5436_v0  ;;  %v5562_v43 = vcombine.high %v1481_v37, %v1489_v38  ;;  %v5564_v0 = vcombine.high %v1482_v39, %v1490_v40 }
 0x101   :  { %4370 = vmatpush1.bf16.msra.mxu0 %v5433_v44  ;;  %4456 = vmatpush1.bf16.msra.mxu1 %v5435_v45  ;;  %v5561_v44 = vcombine.low %v1481_v37, %v1489_v38  ;;  %v5563_v45 = vcombine.low %v1482_v39, %v1490_v40 }
 0x102   :  { %4371 = vmatprep.subr.bf16.mxu0 %v5450_v49  ;;  %4457 = vmatprep.subr.bf16.mxu1 %v5452_v53  ;;  %v5578_v49 = vcombine.high %v1497_v46, %v1505_v47  ;;  %v5580_v53 = vcombine.high %v1498_v48, %v1506_v50 }
 0x105   :  { %4372 = vmatpush1.bf16.msra.mxu0 %v5449_v51  ;;  %4458 = vmatpush1.bf16.msra.mxu1 %v5451_v52  ;;  %v5577_v51 = vcombine.low %v1497_v46, %v1505_v47  ;;  %v5579_v52 = vcombine.low %v1498_v48, %v1506_v50  ;;  %v1249_v46 = vlaneseq }
 0x106   :  { %4373 = vmatprep.subr.bf16.mxu0 %v5466_v58  ;;  %4459 = vmatprep.subr.bf16.mxu1 %v5468_v63  ;;  %v1522_v58 = vld [vmem:[#allocation6 + $0x748] sm:$0xff]  ;;  %v1537_v63 = vld [vmem:[#allocation6 + $0x7c0] sm:$0xff] }
 0x107   :  { %v5595_v60 = vcombine.low %v1514_v56, %v1522_v58  ;;  %v5596_v61 = vcombine.high %v1514_v56, %v1522_v58  ;;  %v6283_v47 = vshrl.u32 %v1249_v46, 7 }
 0x109   :  { %4374 = vmatpush1.bf16.msra.mxu0 %v5465_v57  ;;  %4460 = vmatpush1.bf16.msra.mxu1 %v5467_v62  ;;  %v5594_v57 = vcombine.high %v1513_v54, %v1521_v55  ;;  %v1529_v62 = vld [vmem:[#allocation6 + $0x780] sm:$0xff]  ;;  %v1251_v48 = vsub.s32 0, %v6283_v47  ;;  %v1259_v50 = vsub.s32 2, %v6283_v47 }
 0x10a   :  { %4375 = vmatprep.subr.bf16.mxu0 %v5482_v1  ;;  %4461 = vmatprep.subr.bf16.mxu1 %v5484_v4  ;;  %v1530_v1 = vld [vmem:[#allocation6 + $0x788] sm:$0xff]  ;;  %v5610_v2 = vcombine.high %v1529_v62, %v1537_v63  ;;  %v5609_v4 = vcombine.low %v1529_v62, %v1537_v63 }
 0x10b   :  { %v5611_v5 = vcombine.low %v1530_v1, %v1538_v3  ;;  %v5612_v6 = vcombine.high %v1530_v1, %v1538_v3 }
 0x10d   :  { %4376 = vmatpush1.bf16.msra.mxu0 %v5481_v9  ;;  %4462 = vmatpush1.bf16.msra.mxu1 %v5483_v11  ;;  %v6265_v9 = vld [vmem:[#allocation6 + $0x808] sm:$0xff]  ;;  %v5626_v11 = vcombine.high %v6261_v7, %v6263_v8 }
 0x10e   :  { %4377 = vmatprep.subr.bf16.mxu0 %v5498_v12  ;;  %4463 = vmatprep.subr.bf16.mxu1 %v5500_v13  ;;  %v6269_v12 = vld [vmem:[#allocation6 + $0x848] sm:$0xff]  ;;  %v5625_v13 = vcombine.low %v6261_v7, %v6263_v8 }
 0x10f   :  { %v5627_v14 = vcombine.low %v6265_v9, %v6269_v12  ;;  %v5628_v15 = vcombine.high %v6265_v9, %v6269_v12 }
 0x111   :  { %4378 = vmatpush1.bf16.msra.mxu0 %v5497_v18  ;;  %4464 = vmatpush1.bf16.msra.mxu1 %v5499_v19 }
 0x112   :  { %4379 = vmatprep.subr.bf16.mxu0 %v5514_v20  ;;  %4465 = vmatprep.subr.bf16.mxu1 %v5516_v21 }
 0x115   :  { %4380 = vmatpush1.bf16.msra.mxu0 %v5513_v10  ;;  %4466 = vmatpush1.bf16.msra.mxu1 %v5515_v26 }
 0x116   :  { %4381 = vmatprep.subr.bf16.mxu0 %v5530_v27  ;;  %4467 = vmatprep.subr.bf16.mxu1 %v5532_v28 }
 0x119   :  { %4382 = vmatpush1.bf16.msra.mxu0 %v5529_v33  ;;  %4468 = vmatpush1.bf16.msra.mxu1 %v5531_v34 }
 0x11a   :  { %4383 = vmatprep.subr.bf16.mxu0 %v5546_v35  ;;  %4469 = vmatprep.subr.bf16.mxu1 %v5548_v36 }
 0x11d   :  { %4384 = vmatpush1.bf16.msra.mxu0 %v5545_v41  ;;  %4470 = vmatpush1.bf16.msra.mxu1 %v5547_v42 }
 0x11e   :  { %4385 = vmatprep.subr.bf16.mxu0 %v5562_v43  ;;  %4471 = vmatprep.subr.bf16.mxu1 %v5564_v0 }
 0x121   :  { %4386 = vmatpush1.bf16.msra.mxu0 %v5561_v44  ;;  %4472 = vmatpush1.bf16.msra.mxu1 %v5563_v45 }
 0x122   :  { %4387 = vmatprep.subr.bf16.mxu0 %v5578_v49  ;;  %4473 = vmatprep.subr.bf16.mxu1 %v5580_v53  ;;  %v1247_v49 = vld [vmem:[#allocation4] sm:$0xf] }
 0x123   :  { %v1252_v55 = vrot.slane %v1247_v49, %v1251_v48 }
 0x125   :  { %4388 = vmatpush1.bf16.msra.mxu0 %v5577_v51  ;;  %4474 = vmatpush1.bf16.msra.mxu1 %v5579_v52  ;;  %v1255_v51 = vsub.s32 1, %v6283_v47  ;;  %v1263_v52 = vsub.s32 3, %v6283_v47 }
 0x126   :  { %4389 = vmatprep.subr.bf16.mxu0 %v5594_v57  ;;  %4475 = vmatprep.subr.bf16.mxu1 %v5596_v61 }
 0x127   :  { %v1256_v61 = vrot.slane %v1247_v49, %v1255_v51  ;;  %v1264_v3 = vrot.slane %v1247_v49, %v1263_v52 }
 0x129   :  { %4390 = vmatpush1.bf16.msra.mxu0 %v5593_v59  ;;  %4476 = vmatpush1.bf16.msra.mxu1 %v5595_v60  ;;  %v1260_v59 = vrot.slane %v1247_v49, %v1259_v50  ;;  %v1577_v49 = vld [vmem:[#allocation6 + $0x900] sm:$0xff] }
 0x12a   :  { %4391 = vmatprep.subr.bf16.mxu0 %v5610_v2  ;;  %4477 = vmatprep.subr.bf16.mxu1 %v5612_v6 }
 0x12d   :  { %4392 = vmatpush1.bf16.msra.mxu0 %v5609_v4  ;;  %4478 = vmatpush1.bf16.msra.mxu1 %v5611_v5 }
 0x12e   :  { %4404 = vmatprep.subr.bf16.mxu0 %v5626_v11  ;;  %4490 = vmatprep.subr.bf16.mxu1 %v5628_v15 }
 0x163   :  { %v913_v16 = vpop.f32.mrb[0].mxu0  ;;  %v956_v18 = vpop.f32.mrb[0].mxu1 }
 0x164   :  { %v915_v17 = vpop.f32.mrb[1].mxu0  ;;  %v958_v20 = vpop.f32.mrb[1].mxu1 }
 0x165   :  { %v917_v19 = vpop.f32.mrb[2].mxu0  ;;  %v960_v22 = vpop.f32.mrb[2].mxu1 }
 0x166   :  { %v6277_v21 = vpop.f32.mrb[3].mxu0  ;;  %v6279_v23 = vpop.f32.mrb[3].mxu1 }
 0x183   :  { %v999_v24 = vpop.f32.mrb[4].mxu0  ;;  %v1042_v26 = vpop.f32.mrb[4].mxu1 }
 0x184   :  { %v1223_v25 = vmax.f32 %v913_v16, %v999_v24  ;;  %v1001_v10 = vpop.f32.mrb[5].mxu0  ;;  %v1225_v29 = vmax.f32 %v956_v18, %v1042_v26  ;;  %v1044_v30 = vpop.f32.mrb[5].mxu1 }
 0x185   :  { %v1224_v27 = vmax.f32 %v915_v17, %v1001_v10  ;;  %v1003_v28 = vpop.f32.mrb[6].mxu0  ;;  %v1226_v33 = vmax.f32 %v958_v20, %v1044_v30  ;;  %v1046_v34 = vpop.f32.mrb[6].mxu1 }
 0x186   :  { %v1227_v31 = vmax.f32 %v917_v19, %v1003_v28  ;;  %v1005_v32 = vpop.f32.mrb[7].mxu0  ;;  %v1229_v36 = vmax.f32 %v960_v22, %v1046_v34  ;;  %v1048_v37 = vpop.f32.mrb[7].mxu1 }
 0x187   :  { %v1228_v35 = vmax.f32 %v6277_v21, %v1005_v32  ;;  %v1230_v38 = vmax.f32 %v6279_v23, %v1048_v37 }
 0x1a3   :  { %v1085_v39 = vpop.f32.mrb[8].mxu0  ;;  %v1128_v41 = vpop.f32.mrb[8].mxu1 }
 0x1a4   :  { %v1087_v40 = vpop.f32.mrb[9].mxu0  ;;  %v1130_v43 = vpop.f32.mrb[9].mxu1 }
 0x1a5   :  { %v1089_v42 = vpop.f32.mrb[10].mxu0  ;;  %v1132_v44 = vpop.f32.mrb[10].mxu1 }
 0x1a6   :  { %v1091_v0 = vpop.f32.mrb[11].mxu0  ;;  %v1134_v45 = vpop.f32.mrb[11].mxu1 }
 0x1c3   :  { %v1171_v53 = vpop.f32.mrb[12].mxu0  ;;  %v1214_v56 = vpop.f32.mrb[12].mxu1 }
 0x1c4   :  { %v1231_v54 = vmax.f32 %v1085_v39, %v1171_v53  ;;  %v1173_v57 = vpop.f32.mrb[13].mxu0  ;;  %v1233_v58 = vmax.f32 %v1128_v41, %v1214_v56  ;;  %v1216_v62 = vpop.f32.mrb[13].mxu1  ;;  %v1578_v56 = vld [vmem:[#allocation6 + $0x908] sm:$0xff] }
 0x1c5   :  { %v1232_v60 = vmax.f32 %v1087_v40, %v1173_v57  ;;  %v1175_v63 = vpop.f32.mrb[14].mxu0  ;;  %v1234_v2 = vmax.f32 %v1130_v43, %v1216_v62  ;;  %v1218_v5 = vpop.f32.mrb[14].mxu1  ;;  %v1561_v43 = vld [vmem:[#allocation6 + $0x880] sm:$0xff]  ;;  %v1586_v57 = vld [vmem:[#allocation6 + $0x948] sm:$0xff] }
 0x1c6   :  { %v1239_v1 = vmax.f32 %v1223_v25, %v1231_v54  ;;  %v1235_v4 = vmax.f32 %v1089_v42, %v1175_v63  ;;  %v1177_v6 = vpop.f32.mrb[15].mxu0  ;;  %v1241_v11 = vmax.f32 %v1225_v29, %v1233_v58  ;;  %v1237_v16 = vmax.f32 %v1132_v44, %v1218_v5  ;;  %v1220_v18 = vpop.f32.mrb[15].mxu1  ;;  %v1569_v44 = vld [vmem:[#allocation6 + $0x8c0] sm:$0xff] }
 0x1c7   :  { %v1240_v15 = vmax.f32 %v1224_v27, %v1232_v60  ;;  %v1236_v17 = vmax.f32 %v1091_v0, %v1177_v6  ;;  %v1242_v20 = vmax.f32 %v1226_v33, %v1234_v2  ;;  %v1238_v22 = vmax.f32 %v1134_v45, %v1220_v18  ;;  %v1593_v62 = vld [vmem:[#allocation6 + $0x980] sm:$0xff]  ;;  %v1602_v2 = vld [vmem:[#allocation6 + $0x9c8] sm:$0xff] }
 0x1c8   :  { %v1269_v19 = vadd.f32 %v1252_v55, %v1239_v1  ;;  %v1243_v21 = vmax.f32 %v1227_v31, %v1235_v4  ;;  %v1271_v23 = vadd.f32 %v1260_v59, %v1241_v11  ;;  %v1245_v10 = vmax.f32 %v1229_v36, %v1237_v16  ;;  %v1562_v36 = vld [vmem:[#allocation6 + $0x888] sm:$0xff]  ;;  %v1601_v63 = vld [vmem:[#allocation6 + $0x9c0] sm:$0xff] }
 0x1c9   :  { %v1270_v24 = vadd.f32 %v1256_v61, %v1240_v15  ;;  %v1244_v25 = vmax.f32 %v1228_v35, %v1236_v17  ;;  %v1272_v26 = vadd.f32 %v1264_v3, %v1242_v20  ;;  %v1246_v30 = vmax.f32 %v1230_v38, %v1238_v22  ;;  %v1570_v35 = vld [vmem:[#allocation6 + $0x8c8] sm:$0xff]  ;;  %v1625_v16 = vld [vmem:[#allocation6 + $0xa80] sm:$0xff] }
 0x1ca   :  { %v1273_v28 = vadd.f32 %v1252_v55, %v1243_v21  ;;  %v1275_v32 = vadd.f32 %v1260_v59, %v1245_v10  ;;  %v1277_v37 = vmax.f32 %v1269_v19, 0.0  ;;  %v1279_v27 = vmax.f32 %v1271_v23, 0.0  ;;  %v1585_v55 = vld [vmem:[#allocation6 + $0x940] sm:$0xff]  ;;  %v1594_v1 = vld [vmem:[#allocation6 + $0x988] sm:$0xff] }
 0x1cb   :  { %v1274_v34 = vadd.f32 %v1256_v61, %v1244_v25  ;;  %v1276_v29 = vadd.f32 %v1264_v3, %v1246_v30  ;;  %v1278_v40 = vmax.f32 %v1270_v24, 0.0  ;;  %v1280_v33 = vmax.f32 %v1272_v26, 0.0  ;;  %v1610_v3 = vld [vmem:[#allocation6 + $0xa08] sm:$0xff]  ;;  %v1633_v17 = vld [vmem:[#allocation6 + $0xac0] sm:$0xff] }
 0x1cc   :  { %v1281_v39 = vmax.f32 %v1273_v28, 0.0  ;;  %v1283_v41 = vmax.f32 %v1275_v32, 0.0  ;;  %v5642_v53 = vcombine.high %v1561_v43, %v1569_v44  ;;  %v5644_v54 = vcombine.high %v1562_v36, %v1570_v35  ;;  %v1618_v4 = vld [vmem:[#allocation6 + $0xa48] sm:$0xff]  ;;  %v1641_v24 = vld [vmem:[#allocation6 + $0xb00] sm:$0xff] }
 0x1cd   :  { %v1282_v42 = vmax.f32 %v1274_v34, 0.0  ;;  %v1284_v0 = vmax.f32 %v1276_v29, 0.0  ;;  %v5641_v58 = vcombine.low %v1561_v43, %v1569_v44  ;;  %v5643_v59 = vcombine.low %v1562_v36, %v1570_v35  ;;  %v1626_v18 = vld [vmem:[#allocation6 + $0xa88] sm:$0xff]  ;;  %v1649_v10 = vld [vmem:[#allocation6 + $0xb40] sm:$0xff] }
 0x1ce   :  { %v6297_v31 = vpack.c.bf16 %v1281_v39, %v1277_v37  ;;  %v6299_v45 = vpack.c.bf16 %v1283_v41, %v1279_v27  ;;  %v5658_v60 = vcombine.high %v1577_v49, %v1585_v55  ;;  %v5660_v61 = vcombine.high %v1578_v56, %v1586_v57  ;;  %v1634_v19 = vld [vmem:[#allocation6 + $0xac8] sm:$0xff]  ;;  %v1657_v37 = vld [vmem:[#allocation6 + $0xb80] sm:$0xff] }
 0x1cf   :  { %v6301_v38 = vpack.c.bf16 %v1282_v42, %v1278_v40  ;;  %v6303_v46 = vpack.c.bf16 %v1284_v0, %v1280_v33  ;;  %v5657_v7 = vcombine.low %v1577_v49, %v1585_v55  ;;  %v5659_v8 = vcombine.low %v1578_v56, %v1586_v57  ;;  %v1642_v25 = vld [vmem:[#allocation6 + $0xb08] sm:$0xff]  ;;  %v1665_v39 = vld [vmem:[#allocation6 + $0xbc0] sm:$0xff] }
 0x1d0   :  { %v5674_v9 = vcombine.high %v1593_v62, %v1601_v63  ;;  %v5676_v12 = vcombine.high %v1594_v1, %v1602_v2  ;;  %v5673_v5 = vcombine.low %v1593_v62, %v1601_v63  ;;  %v5675_v6 = vcombine.low %v1594_v1, %v1602_v2  ;;  %v1650_v26 = vld [vmem:[#allocation6 + $0xb48] sm:$0xff]  ;;  %v1673_v33 = vld [vmem:[#allocation6 + $0xc00] sm:$0xff] }
 0x1d1   :  { %4393 = vmatprep.mubr.bf16.mxu0 %v6301_v38  ;;  %4479 = vmatprep.mubr.bf16.mxu1 %v6301_v38  ;;  %v5692_v15 = vcombine.high %v1610_v3, %v1618_v4  ;;  %v5691_v21 = vcombine.low %v1610_v3, %v1618_v4  ;;  %v5706_v22 = vcombine.high %v1625_v16, %v1633_v17  ;;  %v1658_v29 = vld [vmem:[#allocation6 + $0xb88] sm:$0xff]  ;;  %v1681_v0 = vld [vmem:[#allocation6 + $0xc40] sm:$0xff] }
 0x1d2   :  { %4394 = vmatmul.mubr.bf16.vlgmr.msra.gmra.mrb[16].mxu0 %v6297_v31  ;;  %4480 = vmatmul.mubr.bf16.vlgmr.msra.gmra.mrb[16].mxu1 %v6297_v31  ;;  %v5708_v23 = vcombine.high %v1626_v18, %v1634_v19  ;;  %v5705_v28 = vcombine.low %v1625_v16, %v1633_v17  ;;  %v5707_v30 = vcombine.low %v1626_v18, %v1634_v19  ;;  %v1666_v27 = vld [vmem:[#allocation6 + $0xbc8] sm:$0xff]  ;;  %v1689_v55 = vld [vmem:[#allocation6 + $0xc80] sm:$0xff] }
 0x1d3   :  { %4405 = vmatpush1.bf16.msra.mxu0 %v5625_v13  ;;  %4491 = vmatpush1.bf16.msra.mxu1 %v5627_v14  ;;  %v1609_v13 = vld [vmem:[#allocation6 + $0xa00] sm:$0xff]  ;;  %v5722_v32 = vcombine.high %v1641_v24, %v1649_v10  ;;  %v5724_v34 = vcombine.high %v1642_v25, %v1650_v26  ;;  %v5721_v40 = vcombine.low %v1641_v24, %v1649_v10  ;;  %v1674_v44 = vld [vmem:[#allocation6 + $0xc08] sm:$0xff] }
 0x1d4   :  { %4436 = vmatprep.mubr.bf16.mxu0 %v6303_v46  ;;  %4522 = vmatprep.mubr.bf16.mxu1 %v6303_v46  ;;  %v1617_v14 = vld [vmem:[#allocation6 + $0xa40] sm:$0xff]  ;;  %v5723_v41 = vcombine.low %v1642_v25, %v1650_v26  ;;  %v5738_v42 = vcombine.high %v1657_v37, %v1665_v39  ;;  %v5740_v43 = vcombine.high %v1658_v29, %v1666_v27  ;;  %v1682_v36 = vld [vmem:[#allocation6 + $0xc48] sm:$0xff] }
 0x1d5   :  { %4406 = vmatprep.subr.bf16.mxu0 %v5642_v53  ;;  %4492 = vmatprep.subr.bf16.mxu1 %v5644_v54  ;;  %v5690_v11 = vcombine.high %v1609_v13, %v1617_v14  ;;  %v5689_v20 = vcombine.low %v1609_v13, %v1617_v14  ;;  %v5737_v35 = vcombine.low %v1657_v37, %v1665_v39  ;;  %v1697_v56 = vld [vmem:[#allocation6 + $0xcc0] sm:$0xff]  ;;  %v1690_v57 = vld [vmem:[#allocation6 + $0xc88] sm:$0xff] }
 0x1d6   :  { %v5739_v49 = vcombine.low %v1658_v29, %v1666_v27  ;;  %v5754_v53 = vcombine.high %v1673_v33, %v1681_v0  ;;  %v5756_v54 = vcombine.high %v1674_v44, %v1682_v36  ;;  %v1705_v63 = vld [vmem:[#allocation6 + $0xd00] sm:$0xff]  ;;  %v1706_v2 = vld [vmem:[#allocation6 + $0xd08] sm:$0xff] }
 0x1d7   :  { %4407 = vmatpush1.bf16.msra.mxu0 %v5641_v58  ;;  %4493 = vmatpush1.bf16.msra.mxu1 %v5643_v59  ;;  %v1698_v58 = vld [vmem:[#allocation6 + $0xcc8] sm:$0xff]  ;;  %v5753_v59 = vcombine.low %v1673_v33, %v1681_v0  ;;  %v1713_v1 = vld [vmem:[#allocation6 + $0xd40] sm:$0xff] }
 0x1d8   :  { %4408 = vmatprep.subr.bf16.mxu0 %v5658_v60  ;;  %4494 = vmatprep.subr.bf16.mxu1 %v5660_v61  ;;  %v5755_v60 = vcombine.low %v1674_v44, %v1682_v36  ;;  %v5770_v61 = vcombine.high %v1689_v55, %v1697_v56  ;;  %v5772_v62 = vcombine.high %v1690_v57, %v1698_v58  ;;  %v1721_v14 = vld [vmem:[#allocation6 + $0xd80] sm:$0xff]  ;;  %v1722_v4 = vld [vmem:[#allocation6 + $0xd88] sm:$0xff] }
 0x1d9   :  { %v1729_v3 = vld [vmem:[#allocation6 + $0xdc0] sm:$0xff]  ;;  %v1738_v19 = vld [vmem:[#allocation6 + $0xe08] sm:$0xff] }
 0x1da   :  { %v1737_v17 = vld [vmem:[#allocation6 + $0xe00] sm:$0xff]  ;;  %v1754_v26 = vld [vmem:[#allocation6 + $0xe88] sm:$0xff] }
 0x1db   :  { %4409 = vmatpush1.bf16.msra.mxu0 %v5657_v7  ;;  %4495 = vmatpush1.bf16.msra.mxu1 %v5659_v8  ;;  %v1714_v7 = vld [vmem:[#allocation6 + $0xd48] sm:$0xff]  ;;  %v5769_v8 = vcombine.low %v1689_v55, %v1697_v56  ;;  %v1745_v18 = vld [vmem:[#allocation6 + $0xe40] sm:$0xff]  ;;  %v1291_v56 = vld [vmem:[#allocation6 + $0x10] sm:$0xff] }
 0x1dc   :  { %4410 = vmatprep.subr.bf16.mxu0 %v5674_v9  ;;  %4496 = vmatprep.subr.bf16.mxu1 %v5676_v12  ;;  %v5771_v9 = vcombine.low %v1690_v57, %v1698_v58  ;;  %v5786_v12 = vcombine.high %v1705_v63, %v1713_v1  ;;  %v5788_v13 = vcombine.high %v1706_v2, %v1714_v7  ;;  %v1753_v10 = vld [vmem:[#allocation6 + $0xe80] sm:$0xff]  ;;  %v1770_v27 = vld [vmem:[#allocation6 + $0xf08] sm:$0xff]  ;;  %v1299_v57 = vld [vmem:[#allocation6 + $0x50] sm:$0xff] }
 0x1dd   :  { %v1761_v25 = vld [vmem:[#allocation6 + $0xec0] sm:$0xff]  ;;  %v1786_v36 = vld [vmem:[#allocation6 + $0xf88] sm:$0xff]  ;;  %v1292_v58 = vld [vmem:[#allocation6 + $0x18] sm:$0xff] }
 0x1de   :  { %v1769_v39 = vld [vmem:[#allocation6 + $0xf00] sm:$0xff] }
 0x1df   :  { %4411 = vmatpush1.bf16.msra.mxu0 %v5673_v5  ;;  %4497 = vmatpush1.bf16.msra.mxu1 %v5675_v6  ;;  %v1730_v5 = vld [vmem:[#allocation6 + $0xdc8] sm:$0xff]  ;;  %v5785_v6 = vcombine.low %v1705_v63, %v1713_v1  ;;  %v1777_v29 = vld [vmem:[#allocation6 + $0xf40] sm:$0xff]  ;;  %v1307_v1 = vld [vmem:[#allocation6 + $0x90] sm:$0xff] }
 0x1e0   :  { %4412 = vmatprep.subr.bf16.mxu0 %v5690_v11  ;;  %4498 = vmatprep.subr.bf16.mxu1 %v5692_v15  ;;  %v5787_v11 = vcombine.low %v1706_v2, %v1714_v7  ;;  %v5802_v15 = vcombine.high %v1721_v14, %v1729_v3  ;;  %v5804_v16 = vcombine.high %v1722_v4, %v1730_v5  ;;  %v1785_v0 = vld [vmem:[#allocation6 + $0xf80] sm:$0xff]  ;;  %v1315_v2 = vld [vmem:[#allocation6 + $0xd0] sm:$0xff]  ;;  %v1308_v7 = vld [vmem:[#allocation6 + $0x98] sm:$0xff] }
 0x1e1   :  { %v1793_v44 = vld [vmem:[#allocation6 + $0xfc0] sm:$0xff] }
 0x1e3   :  { %4413 = vmatpush1.bf16.msra.mxu0 %v5689_v20  ;;  %4499 = vmatpush1.bf16.msra.mxu1 %v5691_v21  ;;  %v1746_v20 = vld [vmem:[#allocation6 + $0xe48] sm:$0xff]  ;;  %v5801_v21 = vcombine.low %v1721_v14, %v1729_v3  ;;  %v1323_v3 = vld [vmem:[#allocation6 + $0x110] sm:$0xff] }
 0x1e4   :  { %4414 = vmatprep.subr.bf16.mxu0 %v5706_v22  ;;  %4500 = vmatprep.subr.bf16.mxu1 %v5708_v23  ;;  %v5803_v22 = vcombine.low %v1722_v4, %v1730_v5  ;;  %v5818_v23 = vcombine.high %v1737_v17, %v1745_v18  ;;  %v5820_v24 = vcombine.high %v1738_v19, %v1746_v20  ;;  %v1331_v4 = vld [vmem:[#allocation6 + $0x150] sm:$0xff]  ;;  %v1324_v5 = vld [vmem:[#allocation6 + $0x118] sm:$0xff] }
 0x1e7   :  { %4415 = vmatpush1.bf16.msra.mxu0 %v5705_v28  ;;  %4501 = vmatpush1.bf16.msra.mxu1 %v5707_v30  ;;  %v1762_v28 = vld [vmem:[#allocation6 + $0xec8] sm:$0xff]  ;;  %v5817_v30 = vcombine.low %v1737_v17, %v1745_v18  ;;  %v1339_v18 = vld [vmem:[#allocation6 + $0x190] sm:$0xff] }
 0x1e8   :  { %4416 = vmatprep.subr.bf16.mxu0 %v5722_v32  ;;  %4502 = vmatprep.subr.bf16.mxu1 %v5724_v34  ;;  %v5819_v32 = vcombine.low %v1738_v19, %v1746_v20  ;;  %v5834_v34 = vcombine.high %v1753_v10, %v1761_v25  ;;  %v5836_v37 = vcombine.high %v1754_v26, %v1762_v28  ;;  %v1347_v19 = vld [vmem:[#allocation6 + $0x1d0] sm:$0xff]  ;;  %v1340_v20 = vld [vmem:[#allocation6 + $0x198] sm:$0xff] }
 0x1eb   :  { %4417 = vmatpush1.bf16.msra.mxu0 %v5721_v40  ;;  %4503 = vmatpush1.bf16.msra.mxu1 %v5723_v41  ;;  %v1778_v40 = vld [vmem:[#allocation6 + $0xf48] sm:$0xff]  ;;  %v5833_v41 = vcombine.low %v1753_v10, %v1761_v25  ;;  %v1355_v25 = vld [vmem:[#allocation6 + $0x210] sm:$0xff] }
 0x1ec   :  { %4418 = vmatprep.subr.bf16.mxu0 %v5738_v42  ;;  %4504 = vmatprep.subr.bf16.mxu1 %v5740_v43  ;;  %v5835_v42 = vcombine.low %v1754_v26, %v1762_v28  ;;  %v5850_v43 = vcombine.high %v1769_v39, %v1777_v29  ;;  %v5852_v33 = vcombine.high %v1770_v27, %v1778_v40  ;;  %v1363_v26 = vld [vmem:[#allocation6 + $0x250] sm:$0xff]  ;;  %v1356_v28 = vld [vmem:[#allocation6 + $0x218] sm:$0xff] }
 0x1ef   :  { %4419 = vmatpush1.bf16.msra.mxu0 %v5737_v35  ;;  %4505 = vmatpush1.bf16.msra.mxu1 %v5739_v49  ;;  %v1794_v35 = vld [vmem:[#allocation6 + $0xfc8] sm:$0xff]  ;;  %v5849_v49 = vcombine.low %v1769_v39, %v1777_v29  ;;  %v1371_v29 = vld [vmem:[#allocation6 + $0x290] sm:$0xff] }
 0x1f0   :  { %4420 = vmatprep.subr.bf16.mxu0 %v5754_v53  ;;  %4506 = vmatprep.subr.bf16.mxu1 %v5756_v54  ;;  %v5851_v53 = vcombine.low %v1770_v27, %v1778_v40  ;;  %v5866_v54 = vcombine.high %v1785_v0, %v1793_v44  ;;  %v5868_v55 = vcombine.high %v1786_v36, %v1794_v35  ;;  %v1379_v27 = vld [vmem:[#allocation6 + $0x2d0] sm:$0xff]  ;;  %v1372_v40 = vld [vmem:[#allocation6 + $0x298] sm:$0xff] }
 0x1f3   :  { %4421 = vmatpush1.bf16.msra.mxu0 %v5753_v59  ;;  %4507 = vmatpush1.bf16.msra.mxu1 %v5755_v60  ;;  %v1300_v59 = vld [vmem:[#allocation6 + $0x58] sm:$0xff]  ;;  %v5865_v60 = vcombine.low %v1785_v0, %v1793_v44  ;;  %v1387_v44 = vld [vmem:[#allocation6 + $0x310] sm:$0xff] }
 0x1f4   :  { %4422 = vmatprep.subr.bf16.mxu0 %v5770_v61  ;;  %4508 = vmatprep.subr.bf16.mxu1 %v5772_v62  ;;  %v5867_v61 = vcombine.low %v1786_v36, %v1794_v35  ;;  %v5374_v62 = vcombine.high %v1291_v56, %v1299_v57  ;;  %v5376_v63 = vcombine.high %v1292_v58, %v1300_v59  ;;  %v1395_v36 = vld [vmem:[#allocation6 + $0x350] sm:$0xff]  ;;  %v1388_v35 = vld [vmem:[#allocation6 + $0x318] sm:$0xff] }
 0x1f7   :  { %4423 = vmatpush1.bf16.msra.mxu0 %v5769_v8  ;;  %4509 = vmatpush1.bf16.msra.mxu1 %v5771_v9  ;;  %v1316_v8 = vld [vmem:[#allocation6 + $0xd8] sm:$0xff]  ;;  %v5373_v9 = vcombine.low %v1291_v56, %v1299_v57  ;;  %v1403_v57 = vld [vmem:[#allocation6 + $0x390] sm:$0xff] }
 0x1f8   :  { %4424 = vmatprep.subr.bf16.mxu0 %v5786_v12  ;;  %4510 = vmatprep.subr.bf16.mxu1 %v5788_v13  ;;  %v5375_v12 = vcombine.low %v1292_v58, %v1300_v59  ;;  %v5390_v13 = vcombine.high %v1307_v1, %v1315_v2  ;;  %v5392_v14 = vcombine.high %v1308_v7, %v1316_v8  ;;  %v1411_v58 = vld [vmem:[#allocation6 + $0x3d0] sm:$0xff]  ;;  %v1404_v59 = vld [vmem:[#allocation6 + $0x398] sm:$0xff] }
 0x1fb   :  { %4425 = vmatpush1.bf16.msra.mxu0 %v5785_v6  ;;  %4511 = vmatpush1.bf16.msra.mxu1 %v5787_v11  ;;  %v1332_v6 = vld [vmem:[#allocation6 + $0x158] sm:$0xff]  ;;  %v5389_v11 = vcombine.low %v1307_v1, %v1315_v2  ;;  %v1419_v2 = vld [vmem:[#allocation6 + $0x410] sm:$0xff] }
 0x1fc   :  { %4426 = vmatprep.subr.bf16.mxu0 %v5802_v15  ;;  %4512 = vmatprep.subr.bf16.mxu1 %v5804_v16  ;;  %v5391_v15 = vcombine.low %v1308_v7, %v1316_v8  ;;  %v5406_v16 = vcombine.high %v1323_v3, %v1331_v4  ;;  %v5408_v17 = vcombine.high %v1324_v5, %v1332_v6  ;;  %v1427_v7 = vld [vmem:[#allocation6 + $0x450] sm:$0xff]  ;;  %v1420_v8 = vld [vmem:[#allocation6 + $0x418] sm:$0xff] }
 0x1ff   :  { %4427 = vmatpush1.bf16.msra.mxu0 %v5801_v21  ;;  %4513 = vmatpush1.bf16.msra.mxu1 %v5803_v22  ;;  %v1348_v21 = vld [vmem:[#allocation6 + $0x1d8] sm:$0xff]  ;;  %v5405_v22 = vcombine.low %v1323_v3, %v1331_v4  ;;  %v1435_v4 = vld [vmem:[#allocation6 + $0x490] sm:$0xff] }
 0x200   :  { %4428 = vmatprep.subr.bf16.mxu0 %v5818_v23  ;;  %4514 = vmatprep.subr.bf16.mxu1 %v5820_v24  ;;  %v5407_v23 = vcombine.low %v1324_v5, %v1332_v6  ;;  %v5422_v24 = vcombine.high %v1339_v18, %v1347_v19  ;;  %v5424_v10 = vcombine.high %v1340_v20, %v1348_v21  ;;  %v1443_v5 = vld [vmem:[#allocation6 + $0x4d0] sm:$0xff]  ;;  %v1436_v6 = vld [vmem:[#allocation6 + $0x498] sm:$0xff] }
 0x203   :  { %4429 = vmatpush1.bf16.msra.mxu0 %v5817_v30  ;;  %4515 = vmatpush1.bf16.msra.mxu1 %v5819_v32  ;;  %v1364_v30 = vld [vmem:[#allocation6 + $0x258] sm:$0xff]  ;;  %v5421_v32 = vcombine.low %v1339_v18, %v1347_v19  ;;  %v1451_v19 = vld [vmem:[#allocation6 + $0x510] sm:$0xff] }
 0x204   :  { %4430 = vmatprep.subr.bf16.mxu0 %v5834_v34  ;;  %4516 = vmatprep.subr.bf16.mxu1 %v5836_v37  ;;  %v5423_v34 = vcombine.low %v1340_v20, %v1348_v21  ;;  %v5438_v37 = vcombine.high %v1355_v25, %v1363_v26  ;;  %v5440_v39 = vcombine.high %v1356_v28, %v1364_v30  ;;  %v1459_v20 = vld [vmem:[#allocation6 + $0x550] sm:$0xff]  ;;  %v1452_v21 = vld [vmem:[#allocation6 + $0x518] sm:$0xff] }
 0x207   :  { %4431 = vmatpush1.bf16.msra.mxu0 %v5833_v41  ;;  %4517 = vmatpush1.bf16.msra.mxu1 %v5835_v42  ;;  %v1380_v41 = vld [vmem:[#allocation6 + $0x2d8] sm:$0xff]  ;;  %v5437_v42 = vcombine.low %v1355_v25, %v1363_v26  ;;  %v1467_v26 = vld [vmem:[#allocation6 + $0x590] sm:$0xff] }
 0x208   :  { %4432 = vmatprep.subr.bf16.mxu0 %v5850_v43  ;;  %4518 = vmatprep.subr.bf16.mxu1 %v5852_v33  ;;  %v5439_v43 = vcombine.low %v1356_v28, %v1364_v30  ;;  %v5454_v33 = vcombine.high %v1371_v29, %v1379_v27  ;;  %v5456_v0 = vcombine.high %v1372_v40, %v1380_v41  ;;  %v1475_v28 = vld [vmem:[#allocation6 + $0x5d0] sm:$0xff]  ;;  %v1468_v30 = vld [vmem:[#allocation6 + $0x598] sm:$0xff] }
 0x20b   :  { %4433 = vmatpush1.bf16.msra.mxu0 %v5849_v49  ;;  %4519 = vmatpush1.bf16.msra.mxu1 %v5851_v53  ;;  %v1396_v49 = vld [vmem:[#allocation6 + $0x358] sm:$0xff]  ;;  %v5453_v53 = vcombine.low %v1371_v29, %v1379_v27  ;;  %v1483_v27 = vld [vmem:[#allocation6 + $0x610] sm:$0xff] }
 0x20c   :  { %4434 = vmatprep.subr.bf16.mxu0 %v5866_v54  ;;  %4520 = vmatprep.subr.bf16.mxu1 %v5868_v55  ;;  %v5455_v54 = vcombine.low %v1372_v40, %v1380_v41  ;;  %v5470_v55 = vcombine.high %v1387_v44, %v1395_v36  ;;  %v5472_v56 = vcombine.high %v1388_v35, %v1396_v49  ;;  %v1491_v40 = vld [vmem:[#allocation6 + $0x650] sm:$0xff]  ;;  %v1484_v41 = vld [vmem:[#allocation6 + $0x618] sm:$0xff] }
 0x20f   :  { %4435 = vmatpush1.bf16.msra.mxu0 %v5865_v60  ;;  %4521 = vmatpush1.bf16.msra.mxu1 %v5867_v61  ;;  %v1412_v60 = vld [vmem:[#allocation6 + $0x3d8] sm:$0xff]  ;;  %v5469_v61 = vcombine.low %v1387_v44, %v1395_v36  ;;  %v1499_v36 = vld [vmem:[#allocation6 + $0x690] sm:$0xff] }
 0x210   :  { %4533 = vmatprep.subr.bf16.mxu0 %v5374_v62  ;;  %4619 = vmatprep.subr.bf16.mxu1 %v5376_v63  ;;  %v5471_v62 = vcombine.low %v1388_v35, %v1396_v49  ;;  %v5486_v63 = vcombine.high %v1403_v57, %v1411_v58  ;;  %v5488_v1 = vcombine.high %v1404_v59, %v1412_v60  ;;  %v1507_v35 = vld [vmem:[#allocation6 + $0x6d0] sm:$0xff]  ;;  %v1500_v49 = vld [vmem:[#allocation6 + $0x698] sm:$0xff] }
 0x212   :  { %4437 = vmatmul.mubr.bf16.vlgmr.msra.gmra.mrb[16].mxu0 %v6299_v45  ;;  %4523 = vmatmul.mubr.bf16.vlgmr.msra.gmra.mrb[16].mxu1 %v6299_v45 }
 0x213   :  { %4534 = vmatpush1.bf16.msra.mxu0 %v5373_v9  ;;  %4565 = vmatprep.mubr.bf16.mxu0 %v6301_v38  ;;  %v1428_v9 = vld [vmem:[#allocation6 + $0x458] sm:$0xff] }
 0x214   :  { %4620 = vmatpush1.bf16.msra.mxu1 %v5375_v12  ;;  %4651 = vmatprep.mubr.bf16.mxu1 %v6301_v38  ;;  %v5485_v12 = vcombine.low %v1403_v57, %v1411_v58  ;;  %v5504_v3 = vcombine.high %v1420_v8, %v1428_v9  ;;  %v1515_v58 = vld [vmem:[#allocation6 + $0x710] sm:$0xff] }
 0x215   :  { %4535 = vmatprep.subr.bf16.mxu0 %v5390_v13  ;;  %4621 = vmatprep.subr.bf16.mxu1 %v5392_v14  ;;  %v5487_v13 = vcombine.low %v1404_v59, %v1412_v60  ;;  %v5502_v14 = vcombine.high %v1419_v2, %v1427_v7  ;;  %v1523_v59 = vld [vmem:[#allocation6 + $0x750] sm:$0xff]  ;;  %v1516_v60 = vld [vmem:[#allocation6 + $0x718] sm:$0xff] }
 0x217   :  { %4536 = vmatpush1.bf16.msra.mxu0 %v5389_v11  ;;  %v1444_v11 = vld [vmem:[#allocation6 + $0x4d8] sm:$0xff] }
 0x218   :  { %4622 = vmatpush1.bf16.msra.mxu1 %v5391_v15  ;;  %4537 = vmatprep.subr.bf16.mxu0 %v5406_v16  ;;  %v5501_v15 = vcombine.low %v1419_v2, %v1427_v7  ;;  %v5503_v16 = vcombine.low %v1420_v8, %v1428_v9  ;;  %v5520_v18 = vcombine.high %v1436_v6, %v1444_v11  ;;  %v1531_v7 = vld [vmem:[#allocation6 + $0x790] sm:$0xff]  ;;  %v1532_v9 = vld [vmem:[#allocation6 + $0x798] sm:$0xff] }
 0x219   :  { %4623 = vmatprep.subr.bf16.mxu1 %v5408_v17  ;;  %v5518_v17 = vcombine.high %v1435_v4, %v1443_v5  ;;  %v1539_v8 = vld [vmem:[#allocation6 + $0x7d0] sm:$0xff] }
 0x21b   :  { %4538 = vmatpush1.bf16.msra.mxu0 %v5405_v22  ;;  %v1460_v22 = vld [vmem:[#allocation6 + $0x558] sm:$0xff] }
 0x21c   :  { %4624 = vmatpush1.bf16.msra.mxu1 %v5407_v23  ;;  %4539 = vmatprep.subr.bf16.mxu0 %v5422_v24  ;;  %v5517_v23 = vcombine.low %v1435_v4, %v1443_v5  ;;  %v5519_v24 = vcombine.low %v1436_v6, %v1444_v11  ;;  %v5536_v25 = vcombine.high %v1452_v21, %v1460_v22  ;;  %v1547_v5 = vld [vmem:[#allocation6 + $0x810] sm:$0xff]  ;;  %v1548_v11 = vld [vmem:[#allocation6 + $0x818] sm:$0xff] }
 0x21d   :  { %4625 = vmatprep.subr.bf16.mxu1 %v5424_v10  ;;  %v5534_v10 = vcombine.high %v1451_v19, %v1459_v20  ;;  %v1555_v6 = vld [vmem:[#allocation6 + $0x850] sm:$0xff] }
 0x21f   :  { %4540 = vmatpush1.bf16.msra.mxu0 %v5421_v32  ;;  %v1476_v32 = vld [vmem:[#allocation6 + $0x5d8] sm:$0xff] }
 0x220   :  { %4626 = vmatpush1.bf16.msra.mxu1 %v5423_v34  ;;  %4541 = vmatprep.subr.bf16.mxu0 %v5438_v37  ;;  %v5533_v34 = vcombine.low %v1451_v19, %v1459_v20  ;;  %v5535_v37 = vcombine.low %v1452_v21, %v1460_v22  ;;  %v5552_v29 = vcombine.high %v1468_v30, %v1476_v32  ;;  %v1563_v20 = vld [vmem:[#allocation6 + $0x890] sm:$0xff] }
 0x221   :  { %4627 = vmatprep.subr.bf16.mxu1 %v5440_v39  ;;  %v5550_v39 = vcombine.high %v1467_v26, %v1475_v28  ;;  %v1571_v21 = vld [vmem:[#allocation6 + $0x8d0] sm:$0xff]  ;;  %v5629_v22 = vcombine.low %v1547_v5, %v1555_v6 }
 0x223   :  { %4542 = vmatpush1.bf16.msra.mxu0 %v5437_v42  ;;  %v1492_v42 = vld [vmem:[#allocation6 + $0x658] sm:$0xff] }
 0x224   :  { %4628 = vmatpush1.bf16.msra.mxu1 %v5439_v43  ;;  %4543 = vmatprep.subr.bf16.mxu0 %v5454_v33  ;;  %v5549_v43 = vcombine.low %v1467_v26, %v1475_v28  ;;  %v5551_v33 = vcombine.low %v1468_v30, %v1476_v32  ;;  %v5568_v44 = vcombine.high %v1484_v41, %v1492_v42  ;;  %v1579_v26 = vld [vmem:[#allocation6 + $0x910] sm:$0xff]  ;;  %v1580_v32 = vld [vmem:[#allocation6 + $0x918] sm:$0xff] }
 0x225   :  { %4629 = vmatprep.subr.bf16.mxu1 %v5456_v0  ;;  %v5566_v0 = vcombine.high %v1483_v27, %v1491_v40  ;;  %v1587_v28 = vld [vmem:[#allocation6 + $0x950] sm:$0xff] }
 0x227   :  { %4544 = vmatpush1.bf16.msra.mxu0 %v5453_v53  ;;  %v1508_v53 = vld [vmem:[#allocation6 + $0x6d8] sm:$0xff] }
 0x228   :  { %4630 = vmatpush1.bf16.msra.mxu1 %v5455_v54  ;;  %4545 = vmatprep.subr.bf16.mxu0 %v5470_v55  ;;  %v5565_v54 = vcombine.low %v1483_v27, %v1491_v40  ;;  %v5567_v55 = vcombine.low %v1484_v41, %v1492_v42  ;;  %v5584_v57 = vcombine.high %v1500_v49, %v1508_v53  ;;  %v1595_v40 = vld [vmem:[#allocation6 + $0x990] sm:$0xff]  ;;  %v1596_v42 = vld [vmem:[#allocation6 + $0x998] sm:$0xff] }
 0x229   :  { %4631 = vmatprep.subr.bf16.mxu1 %v5472_v56  ;;  %v5582_v56 = vcombine.high %v1499_v36, %v1507_v35  ;;  %v1603_v41 = vld [vmem:[#allocation6 + $0x9d0] sm:$0xff] }
 0x22b   :  { %4546 = vmatpush1.bf16.msra.mxu0 %v5469_v61  ;;  %v1524_v61 = vld [vmem:[#allocation6 + $0x758] sm:$0xff] }
 0x22c   :  { %4632 = vmatpush1.bf16.msra.mxu1 %v5471_v62  ;;  %4547 = vmatprep.subr.bf16.mxu0 %v5486_v63  ;;  %v5581_v62 = vcombine.low %v1499_v36, %v1507_v35  ;;  %v5583_v63 = vcombine.low %v1500_v49, %v1508_v53  ;;  %v5600_v2 = vcombine.high %v1516_v60, %v1524_v61  ;;  %v1611_v35 = vld [vmem:[#allocation6 + $0xa10] sm:$0xff]  ;;  %v1612_v53 = vld [vmem:[#allocation6 + $0xa18] sm:$0xff] }
 0x22d   :  { %4633 = vmatprep.subr.bf16.mxu1 %v5488_v1  ;;  %v5598_v1 = vcombine.high %v1515_v58, %v1523_v59  ;;  %v1619_v49 = vld [vmem:[#allocation6 + $0xa50] sm:$0xff] }
 0x22f   :  { %4548 = vmatpush1.bf16.msra.mxu0 %v5485_v12  ;;  %v1540_v12 = vld [vmem:[#allocation6 + $0x7d8] sm:$0xff] }
 0x230   :  { %4634 = vmatpush1.bf16.msra.mxu1 %v5487_v13  ;;  %4549 = vmatprep.subr.bf16.mxu0 %v5502_v14  ;;  %v5597_v13 = vcombine.low %v1515_v58, %v1523_v59  ;;  %v5599_v14 = vcombine.low %v1516_v60, %v1524_v61  ;;  %v5616_v4 = vcombine.high %v1532_v9, %v1540_v12  ;;  %v1627_v59 = vld [vmem:[#allocation6 + $0xa90] sm:$0xff]  ;;  %v1628_v61 = vld [vmem:[#allocation6 + $0xa98] sm:$0xff] }
 0x231   :  { %4635 = vmatprep.subr.bf16.mxu1 %v5504_v3  ;;  %v5614_v3 = vcombine.high %v1531_v7, %v1539_v8  ;;  %v1635_v60 = vld [vmem:[#allocation6 + $0xad0] sm:$0xff] }
 0x233   :  { %4550 = vmatpush1.bf16.msra.mxu0 %v5501_v15  ;;  %v1556_v15 = vld [vmem:[#allocation6 + $0x858] sm:$0xff] }
 0x234   :  { %4636 = vmatpush1.bf16.msra.mxu1 %v5503_v16  ;;  %4551 = vmatprep.subr.bf16.mxu0 %v5518_v17  ;;  %v5613_v16 = vcombine.low %v1531_v7, %v1539_v8  ;;  %v5615_v17 = vcombine.low %v1532_v9, %v1540_v12  ;;  %v5632_v19 = vcombine.high %v1548_v11, %v1556_v15  ;;  %v1643_v8 = vld [vmem:[#allocation6 + $0xb10] sm:$0xff]  ;;  %v1644_v12 = vld [vmem:[#allocation6 + $0xb18] sm:$0xff] }
 0x235   :  { %4637 = vmatprep.subr.bf16.mxu1 %v5520_v18  ;;  %v5630_v18 = vcombine.high %v1547_v5, %v1555_v6  ;;  %v1651_v9 = vld [vmem:[#allocation6 + $0xb50] sm:$0xff] }
 0x236   :  { %v1659_v6 = vld [vmem:[#allocation6 + $0xb90] sm:$0xff] }
 0x237   :  { %4552 = vmatpush1.bf16.msra.mxu0 %v5517_v23  ;;  %v1564_v23 = vld [vmem:[#allocation6 + $0x898] sm:$0xff] }
 0x238   :  { %4638 = vmatpush1.bf16.msra.mxu1 %v5519_v24  ;;  %4553 = vmatprep.subr.bf16.mxu0 %v5534_v10  ;;  %v1572_v24 = vld [vmem:[#allocation6 + $0x8d8] sm:$0xff]  ;;  %v5631_v10 = vcombine.low %v1548_v11, %v1556_v15  ;;  %v1667_v11 = vld [vmem:[#allocation6 + $0xbd0] sm:$0xff] }
 0x239   :  { %4639 = vmatprep.subr.bf16.mxu1 %v5536_v25  ;;  %v5646_v25 = vcombine.high %v1563_v20, %v1571_v21  ;;  %v5648_v30 = vcombine.high %v1564_v23, %v1572_v24  ;;  %v1660_v15 = vld [vmem:[#allocation6 + $0xb98] sm:$0xff] }
 0x23b   :  { %4554 = vmatpush1.bf16.msra.mxu0 %v5533_v34  ;;  %v1588_v34 = vld [vmem:[#allocation6 + $0x958] sm:$0xff] }
 0x23c   :  { %4640 = vmatpush1.bf16.msra.mxu1 %v5535_v37  ;;  %4555 = vmatprep.subr.bf16.mxu0 %v5550_v39  ;;  %v5645_v37 = vcombine.low %v1563_v20, %v1571_v21  ;;  %v5647_v39 = vcombine.low %v1564_v23, %v1572_v24  ;;  %v5664_v27 = vcombine.high %v1580_v32, %v1588_v34  ;;  %v1675_v21 = vld [vmem:[#allocation6 + $0xc10] sm:$0xff]  ;;  %v1676_v23 = vld [vmem:[#allocation6 + $0xc18] sm:$0xff] }
 0x23d   :  { %4641 = vmatprep.subr.bf16.mxu1 %v5552_v29  ;;  %v5662_v29 = vcombine.high %v1579_v26, %v1587_v28  ;;  %v1684_v24 = vld [vmem:[#allocation6 + $0xc58] sm:$0xff] }
 0x23f   :  { %4556 = vmatpush1.bf16.msra.mxu0 %v5549_v43  ;;  %v1604_v43 = vld [vmem:[#allocation6 + $0x9d8] sm:$0xff] }
 0x240   :  { %4642 = vmatpush1.bf16.msra.mxu1 %v5551_v33  ;;  %4557 = vmatprep.subr.bf16.mxu0 %v5566_v0  ;;  %v5661_v33 = vcombine.low %v1579_v26, %v1587_v28  ;;  %v5663_v0 = vcombine.low %v1580_v32, %v1588_v34  ;;  %v5680_v36 = vcombine.high %v1596_v42, %v1604_v43  ;;  %v1699_v32 = vld [vmem:[#allocation6 + $0xcd0] sm:$0xff]  ;;  %v1692_v34 = vld [vmem:[#allocation6 + $0xc98] sm:$0xff] }
 0x241   :  { %4643 = vmatprep.subr.bf16.mxu1 %v5568_v44  ;;  %v5678_v44 = vcombine.high %v1595_v40, %v1603_v41  ;;  %v5760_v28 = vcombine.high %v1676_v23, %v1684_v24 }
 0x243   :  { %4558 = vmatpush1.bf16.msra.mxu0 %v5565_v54  ;;  %v1620_v54 = vld [vmem:[#allocation6 + $0xa58] sm:$0xff] }
 0x244   :  { %4644 = vmatpush1.bf16.msra.mxu1 %v5567_v55  ;;  %4559 = vmatprep.subr.bf16.mxu0 %v5582_v56  ;;  %v5677_v55 = vcombine.low %v1595_v40, %v1603_v41  ;;  %v5679_v56 = vcombine.low %v1596_v42, %v1604_v43  ;;  %v5696_v58 = vcombine.high %v1612_v53, %v1620_v54  ;;  %v1707_v41 = vld [vmem:[#allocation6 + $0xd10] sm:$0xff]  ;;  %v1708_v43 = vld [vmem:[#allocation6 + $0xd18] sm:$0xff] }
 0x245   :  { %4645 = vmatprep.subr.bf16.mxu1 %v5584_v57  ;;  %v5694_v57 = vcombine.high %v1611_v35, %v1619_v49  ;;  %v1715_v42 = vld [vmem:[#allocation6 + $0xd50] sm:$0xff] }
 0x247   :  { %4560 = vmatpush1.bf16.msra.mxu0 %v5581_v62  ;;  %v1636_v62 = vld [vmem:[#allocation6 + $0xad8] sm:$0xff] }
 0x248   :  { %4646 = vmatpush1.bf16.msra.mxu1 %v5583_v63  ;;  %4561 = vmatprep.subr.bf16.mxu0 %v5598_v1  ;;  %v5693_v63 = vcombine.low %v1611_v35, %v1619_v49  ;;  %v5695_v1 = vcombine.low %v1612_v53, %v1620_v54  ;;  %v5712_v7 = vcombine.high %v1628_v61, %v1636_v62  ;;  %v1723_v49 = vld [vmem:[#allocation6 + $0xd90] sm:$0xff]  ;;  %v1724_v54 = vld [vmem:[#allocation6 + $0xd98] sm:$0xff] }
 0x249   :  { %4647 = vmatprep.subr.bf16.mxu1 %v5600_v2  ;;  %v5710_v2 = vcombine.high %v1627_v59, %v1635_v60  ;;  %v1731_v53 = vld [vmem:[#allocation6 + $0xdd0] sm:$0xff] }
 0x24b   :  { %4562 = vmatpush1.bf16.msra.mxu0 %v5597_v13  ;;  %v1652_v13 = vld [vmem:[#allocation6 + $0xb58] sm:$0xff] }
 0x24c   :  { %4648 = vmatpush1.bf16.msra.mxu1 %v5599_v14  ;;  %4563 = vmatprep.subr.bf16.mxu0 %v5614_v3  ;;  %v5709_v14 = vcombine.low %v1627_v59, %v1635_v60  ;;  %v5711_v3 = vcombine.low %v1628_v61, %v1636_v62  ;;  %v5728_v5 = vcombine.high %v1644_v12, %v1652_v13  ;;  %v1739_v60 = vld [vmem:[#allocation6 + $0xe10] sm:$0xff]  ;;  %v1740_v62 = vld [vmem:[#allocation6 + $0xe18] sm:$0xff] }
 0x24d   :  { %4649 = vmatprep.subr.bf16.mxu1 %v5616_v4  ;;  %v5726_v4 = vcombine.high %v1643_v8, %v1651_v9  ;;  %v1747_v61 = vld [vmem:[#allocation6 + $0xe50] sm:$0xff] }
 0x24f   :  { %4564 = vmatpush1.bf16.msra.mxu0 %v5613_v16  ;;  %v1668_v16 = vld [vmem:[#allocation6 + $0xbd8] sm:$0xff] }
 0x250   :  { %4650 = vmatpush1.bf16.msra.mxu1 %v5615_v17  ;;  %4576 = vmatprep.subr.bf16.mxu0 %v5630_v18  ;;  %v5725_v17 = vcombine.low %v1643_v8, %v1651_v9  ;;  %v5727_v18 = vcombine.low %v1644_v12, %v1652_v13  ;;  %v5744_v20 = vcombine.high %v1660_v15, %v1668_v16  ;;  %v1755_v9 = vld [vmem:[#allocation6 + $0xe90] sm:$0xff]  ;;  %v1756_v13 = vld [vmem:[#allocation6 + $0xe98] sm:$0xff] }
 0x251   :  { %4662 = vmatprep.subr.bf16.mxu1 %v5632_v19  ;;  %v5742_v19 = vcombine.high %v1659_v6, %v1667_v11  ;;  %v1763_v12 = vld [vmem:[#allocation6 + $0xed0] sm:$0xff] }
 0x252   :  { %4566 = vmatmul.mubr.bf16.vlgmr.msra.gmra.mrb[20].mxu0 %v6297_v31 }
 0x253   :  { %4652 = vmatmul.mubr.bf16.vlgmr.msra.gmra.mrb[20].mxu1 %v6297_v31  ;;  %4577 = vmatpush1.bf16.msra.mxu0 %v5629_v22  ;;  %v1683_v22 = vld [vmem:[#allocation6 + $0xc50] sm:$0xff] }
 0x254   :  { %4608 = vmatprep.mubr.bf16.mxu0 %v6303_v46  ;;  %4663 = vmatpush1.bf16.msra.mxu1 %v5631_v10  ;;  %v5741_v10 = vcombine.low %v1659_v6, %v1667_v11  ;;  %v5758_v26 = vcombine.high %v1675_v21, %v1683_v22  ;;  %v1771_v11 = vld [vmem:[#allocation6 + $0xf10] sm:$0xff] }
 0x255   :  { %4694 = vmatprep.mubr.bf16.mxu1 %v6303_v46  ;;  %4578 = vmatprep.subr.bf16.mxu0 %v5646_v25  ;;  %v5743_v25 = vcombine.low %v1660_v15, %v1668_v16  ;;  %v1779_v15 = vld [vmem:[#allocation6 + $0xf50] sm:$0xff]  ;;  %v1772_v16 = vld [vmem:[#allocation6 + $0xf18] sm:$0xff] }
 0x256   :  { %4664 = vmatprep.subr.bf16.mxu1 %v5648_v30  ;;  %v1691_v30 = vld [vmem:[#allocation6 + $0xc90] sm:$0xff] }
 0x257   :  { %4579 = vmatpush1.bf16.msra.mxu0 %v5645_v37  ;;  %v1700_v37 = vld [vmem:[#allocation6 + $0xcd8] sm:$0xff] }
 0x258   :  { %4665 = vmatpush1.bf16.msra.mxu1 %v5647_v39  ;;  %4580 = vmatprep.subr.bf16.mxu0 %v5662_v29  ;;  %v5757_v39 = vcombine.low %v1675_v21, %v1683_v22  ;;  %v5759_v29 = vcombine.low %v1676_v23, %v1684_v24  ;;  %v5776_v40 = vcombine.high %v1692_v34, %v1700_v37  ;;  %v1787_v22 = vld [vmem:[#allocation6 + $0xf90] sm:$0xff]  ;;  %v1788_v24 = vld [vmem:[#allocation6 + $0xf98] sm:$0xff] }
 0x259   :  { %4666 = vmatprep.subr.bf16.mxu1 %v5664_v27  ;;  %v5774_v27 = vcombine.high %v1691_v30, %v1699_v32  ;;  %v1795_v23 = vld [vmem:[#allocation6 + $0xfd0] sm:$0xff] }
 0x25b   :  { %4581 = vmatpush1.bf16.msra.mxu0 %v5661_v33  ;;  %v1716_v33 = vld [vmem:[#allocation6 + $0xd58] sm:$0xff] }
 0x25c   :  { %4667 = vmatpush1.bf16.msra.mxu1 %v5663_v0  ;;  %4582 = vmatprep.subr.bf16.mxu0 %v5678_v44  ;;  %v5773_v0 = vcombine.low %v1691_v30, %v1699_v32  ;;  %v5775_v44 = vcombine.low %v1692_v34, %v1700_v37  ;;  %v5792_v35 = vcombine.high %v1708_v43, %v1716_v33  ;;  %v1293_v32 = vld [vmem:[#allocation6 + $0x20] sm:$0xff]  ;;  %v1294_v37 = vld [vmem:[#allocation6 + $0x28] sm:$0xff] }
 0x25d   :  { %4668 = vmatprep.subr.bf16.mxu1 %v5680_v36  ;;  %v5790_v36 = vcombine.high %v1707_v41, %v1715_v42  ;;  %v1301_v34 = vld [vmem:[#allocation6 + $0x60] sm:$0xff] }
 0x25f   :  { %4583 = vmatpush1.bf16.msra.mxu0 %v5677_v55  ;;  %v1732_v55 = vld [vmem:[#allocation6 + $0xdd8] sm:$0xff] }
 0x260   :  { %4669 = vmatpush1.bf16.msra.mxu1 %v5679_v56  ;;  %4584 = vmatprep.subr.bf16.mxu0 %v5694_v57  ;;  %v5789_v56 = vcombine.low %v1707_v41, %v1715_v42  ;;  %v5791_v57 = vcombine.low %v1708_v43, %v1716_v33  ;;  %v5808_v59 = vcombine.high %v1724_v54, %v1732_v55  ;;  %v1309_v42 = vld [vmem:[#allocation6 + $0xa0] sm:$0xff] }
 0x261   :  { %4670 = vmatprep.subr.bf16.mxu1 %v5696_v58  ;;  %v5806_v58 = vcombine.high %v1723_v49, %v1731_v53  ;;  %v1317_v43 = vld [vmem:[#allocation6 + $0xe0] sm:$0xff]  ;;  %v5377_v33 = vcombine.low %v1293_v32, %v1301_v34 }
 0x263   :  { %4585 = vmatpush1.bf16.msra.mxu0 %v5693_v63  ;;  %v1748_v63 = vld [vmem:[#allocation6 + $0xe58] sm:$0xff] }
 0x264   :  { %4671 = vmatpush1.bf16.msra.mxu1 %v5695_v1  ;;  %4586 = vmatprep.subr.bf16.mxu0 %v5710_v2  ;;  %v5805_v1 = vcombine.low %v1723_v49, %v1731_v53  ;;  %v5807_v2 = vcombine.low %v1724_v54, %v1732_v55  ;;  %v5824_v8 = vcombine.high %v1740_v62, %v1748_v63  ;;  %v1325_v49 = vld [vmem:[#allocation6 + $0x120] sm:$0xff]  ;;  %v1326_v55 = vld [vmem:[#allocation6 + $0x128] sm:$0xff] }
 0x265   :  { %4672 = vmatprep.subr.bf16.mxu1 %v5712_v7  ;;  %v5822_v7 = vcombine.high %v1739_v60, %v1747_v61  ;;  %v1333_v53 = vld [vmem:[#allocation6 + $0x160] sm:$0xff] }
 0x267   :  { %4587 = vmatpush1.bf16.msra.mxu0 %v5709_v14  ;;  %v1764_v14 = vld [vmem:[#allocation6 + $0xed8] sm:$0xff] }
 0x268   :  { %4673 = vmatpush1.bf16.msra.mxu1 %v5711_v3  ;;  %4588 = vmatprep.subr.bf16.mxu0 %v5726_v4  ;;  %v5821_v3 = vcombine.low %v1739_v60, %v1747_v61  ;;  %v5823_v4 = vcombine.low %v1740_v62, %v1748_v63  ;;  %v5840_v6 = vcombine.high %v1756_v13, %v1764_v14  ;;  %v1341_v61 = vld [vmem:[#allocation6 + $0x1a0] sm:$0xff]  ;;  %v1342_v63 = vld [vmem:[#allocation6 + $0x1a8] sm:$0xff] }
 0x269   :  { %4674 = vmatprep.subr.bf16.mxu1 %v5728_v5  ;;  %v5838_v5 = vcombine.high %v1755_v9, %v1763_v12  ;;  %v1349_v62 = vld [vmem:[#allocation6 + $0x1e0] sm:$0xff] }
 0x26b   :  { %4589 = vmatpush1.bf16.msra.mxu0 %v5725_v17  ;;  %v1780_v17 = vld [vmem:[#allocation6 + $0xf58] sm:$0xff] }
 0x26c   :  { %4675 = vmatpush1.bf16.msra.mxu1 %v5727_v18  ;;  %4590 = vmatprep.subr.bf16.mxu0 %v5742_v19  ;;  %v5837_v18 = vcombine.low %v1755_v9, %v1763_v12  ;;  %v5839_v19 = vcombine.low %v1756_v13, %v1764_v14  ;;  %v5856_v21 = vcombine.high %v1772_v16, %v1780_v17  ;;  %v1357_v12 = vld [vmem:[#allocation6 + $0x220] sm:$0xff]  ;;  %v1358_v14 = vld [vmem:[#allocation6 + $0x228] sm:$0xff] }
 0x26d   :  { %4676 = vmatprep.subr.bf16.mxu1 %v5744_v20  ;;  %v5854_v20 = vcombine.high %v1771_v11, %v1779_v15  ;;  %v1365_v13 = vld [vmem:[#allocation6 + $0x260] sm:$0xff] }
 0x26f   :  { %4591 = vmatpush1.bf16.msra.mxu0 %v5741_v10  ;;  %v1796_v10 = vld [vmem:[#allocation6 + $0xfd8] sm:$0xff] }
 0x270   :  { %4677 = vmatpush1.bf16.msra.mxu1 %v5743_v25  ;;  %4592 = vmatprep.subr.bf16.mxu0 %v5758_v26  ;;  %v5853_v25 = vcombine.low %v1771_v11, %v1779_v15  ;;  %v5855_v26 = vcombine.low %v1772_v16, %v1780_v17  ;;  %v5872_v30 = vcombine.high %v1788_v24, %v1796_v10  ;;  %v1373_v15 = vld [vmem:[#allocation6 + $0x2a0] sm:$0xff]  ;;  %v1374_v17 = vld [vmem:[#allocation6 + $0x2a8] sm:$0xff] }
 0x271   :  { %4678 = vmatprep.subr.bf16.mxu1 %v5760_v28  ;;  %v5870_v28 = vcombine.high %v1787_v22, %v1795_v23  ;;  %v1381_v16 = vld [vmem:[#allocation6 + $0x2e0] sm:$0xff] }
 0x273   :  { %4593 = vmatpush1.bf16.msra.mxu0 %v5757_v39  ;;  %v1302_v39 = vld [vmem:[#allocation6 + $0x68] sm:$0xff] }
 0x274   :  { %4679 = vmatpush1.bf16.msra.mxu1 %v5759_v29  ;;  %4594 = vmatprep.subr.bf16.mxu0 %v5774_v27  ;;  %v5869_v29 = vcombine.low %v1787_v22, %v1795_v23  ;;  %v5871_v27 = vcombine.low %v1788_v24, %v1796_v10  ;;  %v5380_v41 = vcombine.high %v1294_v37, %v1302_v39  ;;  %v1389_v23 = vld [vmem:[#allocation6 + $0x320] sm:$0xff]  ;;  %v1390_v10 = vld [vmem:[#allocation6 + $0x328] sm:$0xff] }
 0x275   :  { %4680 = vmatprep.subr.bf16.mxu1 %v5776_v40  ;;  %v5378_v40 = vcombine.high %v1293_v32, %v1301_v34  ;;  %v1397_v24 = vld [vmem:[#allocation6 + $0x360] sm:$0xff] }
 0x276   :  { %v1405_v34 = vld [vmem:[#allocation6 + $0x3a0] sm:$0xff] }
 0x277   :  { %4595 = vmatpush1.bf16.msra.mxu0 %v5773_v0  ;;  %v1310_v0 = vld [vmem:[#allocation6 + $0xa8] sm:$0xff] }
 0x278   :  { %4681 = vmatpush1.bf16.msra.mxu1 %v5775_v44  ;;  %4596 = vmatprep.subr.bf16.mxu0 %v5790_v36  ;;  %v1318_v44 = vld [vmem:[#allocation6 + $0xe8] sm:$0xff]  ;;  %v5379_v36 = vcombine.low %v1294_v37, %v1302_v39  ;;  %v1413_v37 = vld [vmem:[#allocation6 + $0x3e0] sm:$0xff] }
 0x279   :  { %4682 = vmatprep.subr.bf16.mxu1 %v5792_v35  ;;  %v5394_v35 = vcombine.high %v1309_v42, %v1317_v43  ;;  %v5396_v54 = vcombine.high %v1310_v0, %v1318_v44  ;;  %v1406_v39 = vld [vmem:[#allocation6 + $0x3a8] sm:$0xff] }
 0x27b   :  { %4597 = vmatpush1.bf16.msra.mxu0 %v5789_v56  ;;  %v1334_v56 = vld [vmem:[#allocation6 + $0x168] sm:$0xff] }
 0x27c   :  { %4683 = vmatpush1.bf16.msra.mxu1 %v5791_v57  ;;  %4598 = vmatprep.subr.bf16.mxu0 %v5806_v58  ;;  %v5393_v57 = vcombine.low %v1309_v42, %v1317_v43  ;;  %v5395_v58 = vcombine.low %v1310_v0, %v1318_v44  ;;  %v5412_v60 = vcombine.high %v1326_v55, %v1334_v56  ;;  %v1421_v43 = vld [vmem:[#allocation6 + $0x420] sm:$0xff]  ;;  %v1422_v0 = vld [vmem:[#allocation6 + $0x428] sm:$0xff] }
 0x27d   :  { %4684 = vmatprep.subr.bf16.mxu1 %v5808_v59  ;;  %v5410_v59 = vcombine.high %v1325_v49, %v1333_v53  ;;  %v1430_v44 = vld [vmem:[#allocation6 + $0x468] sm:$0xff] }
 0x27f   :  { %4599 = vmatpush1.bf16.msra.mxu0 %v5805_v1  ;;  %v1350_v1 = vld [vmem:[#allocation6 + $0x1e8] sm:$0xff] }
 0x280   :  { %4685 = vmatpush1.bf16.msra.mxu1 %v5807_v2  ;;  %4600 = vmatprep.subr.bf16.mxu0 %v5822_v7  ;;  %v5409_v2 = vcombine.low %v1325_v49, %v1333_v53  ;;  %v5411_v7 = vcombine.low %v1326_v55, %v1334_v56  ;;  %v5428_v9 = vcombine.high %v1342_v63, %v1350_v1  ;;  %v1445_v55 = vld [vmem:[#allocation6 + $0x4e0] sm:$0xff]  ;;  %v1438_v56 = vld [vmem:[#allocation6 + $0x4a8] sm:$0xff] }
 0x281   :  { %4686 = vmatprep.subr.bf16.mxu1 %v5824_v8  ;;  %v5426_v8 = vcombine.high %v1341_v61, %v1349_v62  ;;  %v5508_v53 = vcombine.high %v1422_v0, %v1430_v44 }
 0x283   :  { %4601 = vmatpush1.bf16.msra.mxu0 %v5821_v3  ;;  %v1366_v3 = vld [vmem:[#allocation6 + $0x268] sm:$0xff] }
 0x284   :  { %4687 = vmatpush1.bf16.msra.mxu1 %v5823_v4  ;;  %4602 = vmatprep.subr.bf16.mxu0 %v5838_v5  ;;  %v5425_v4 = vcombine.low %v1341_v61, %v1349_v62  ;;  %v5427_v5 = vcombine.low %v1342_v63, %v1350_v1  ;;  %v5444_v11 = vcombine.high %v1358_v14, %v1366_v3  ;;  %v1453_v62 = vld [vmem:[#allocation6 + $0x520] sm:$0xff]  ;;  %v1454_v1 = vld [vmem:[#allocation6 + $0x528] sm:$0xff] }
 0x285   :  { %4688 = vmatprep.subr.bf16.mxu1 %v5840_v6  ;;  %v5442_v6 = vcombine.high %v1357_v12, %v1365_v13  ;;  %v1461_v63 = vld [vmem:[#allocation6 + $0x560] sm:$0xff] }
 0x287   :  { %4603 = vmatpush1.bf16.msra.mxu0 %v5837_v18  ;;  %v1382_v18 = vld [vmem:[#allocation6 + $0x2e8] sm:$0xff] }
 0x288   :  { %4689 = vmatpush1.bf16.msra.mxu1 %v5839_v19  ;;  %4604 = vmatprep.subr.bf16.mxu0 %v5854_v20  ;;  %v5441_v19 = vcombine.low %v1357_v12, %v1365_v13  ;;  %v5443_v20 = vcombine.low %v1358_v14, %v1366_v3  ;;  %v5460_v22 = vcombine.high %v1374_v17, %v1382_v18  ;;  %v1469_v13 = vld [vmem:[#allocation6 + $0x5a0] sm:$0xff]  ;;  %v1470_v3 = vld [vmem:[#allocation6 + $0x5a8] sm:$0xff] }
 0x289   :  { %4690 = vmatprep.subr.bf16.mxu1 %v5856_v21  ;;  %v5458_v21 = vcombine.high %v1373_v15, %v1381_v16  ;;  %v1477_v14 = vld [vmem:[#allocation6 + $0x5e0] sm:$0xff] }
 0x28b   :  { %4605 = vmatpush1.bf16.msra.mxu0 %v5853_v25  ;;  %v1398_v25 = vld [vmem:[#allocation6 + $0x368] sm:$0xff] }
 0x28c   :  { %4691 = vmatpush1.bf16.msra.mxu1 %v5855_v26  ;;  %4606 = vmatprep.subr.bf16.mxu0 %v5870_v28  ;;  %v5457_v26 = vcombine.low %v1373_v15, %v1381_v16  ;;  %v5459_v28 = vcombine.low %v1374_v17, %v1382_v18  ;;  %v5476_v32 = vcombine.high %v1390_v10, %v1398_v25  ;;  %v1485_v16 = vld [vmem:[#allocation6 + $0x620] sm:$0xff]  ;;  %v1486_v18 = vld [vmem:[#allocation6 + $0x628] sm:$0xff] }
 0x28d   :  { %4692 = vmatprep.subr.bf16.mxu1 %v5872_v30  ;;  %v5474_v30 = vcombine.high %v1389_v23, %v1397_v24  ;;  %v1493_v17 = vld [vmem:[#allocation6 + $0x660] sm:$0xff] }
 0x28f   :  { %4607 = vmatpush1.bf16.msra.mxu0 %v5869_v29  ;;  %v1414_v29 = vld [vmem:[#allocation6 + $0x3e8] sm:$0xff] }
 0x290   :  { %4693 = vmatpush1.bf16.msra.mxu1 %v5871_v27  ;;  %4705 = vmatprep.subr.bf16.mxu0 %v5378_v40  ;;  %v5473_v27 = vcombine.low %v1389_v23, %v1397_v24  ;;  %v5475_v40 = vcombine.low %v1390_v10, %v1398_v25  ;;  %v5492_v42 = vcombine.high %v1406_v39, %v1414_v29  ;;  %v1501_v24 = vld [vmem:[#allocation6 + $0x6a0] sm:$0xff]  ;;  %v1502_v25 = vld [vmem:[#allocation6 + $0x6a8] sm:$0xff] }
 0x291   :  { %4791 = vmatprep.subr.bf16.mxu1 %v5380_v41  ;;  %v5490_v41 = vcombine.high %v1405_v34, %v1413_v37  ;;  %v1509_v10 = vld [vmem:[#allocation6 + $0x6e0] sm:$0xff] }
 0x292   :  { %4609 = vmatmul.mubr.bf16.vlgmr.msra.gmra.mrb[20].mxu0 %v6299_v45 }
 0x293   :  { %4695 = vmatmul.mubr.bf16.vlgmr.msra.gmra.mrb[20].mxu1 %v6299_v45  ;;  %4706 = vmatpush1.bf16.msra.mxu0 %v5377_v33  ;;  %v1429_v33 = vld [vmem:[#allocation6 + $0x460] sm:$0xff] }
 0x294   :  { %4737 = vmatprep.mubr.bf16.mxu0 %v6301_v38  ;;  %4792 = vmatpush1.bf16.msra.mxu1 %v5379_v36  ;;  %v5489_v36 = vcombine.low %v1405_v34, %v1413_v37  ;;  %v5506_v49 = vcombine.high %v1421_v43, %v1429_v33  ;;  %v1517_v37 = vld [vmem:[#allocation6 + $0x720] sm:$0xff] }
 0x295   :  { %4823 = vmatprep.mubr.bf16.mxu1 %v6301_v38  ;;  %4707 = vmatprep.subr.bf16.mxu0 %v5394_v35  ;;  %v5491_v35 = vcombine.low %v1406_v39, %v1414_v29  ;;  %v1525_v39 = vld [vmem:[#allocation6 + $0x760] sm:$0xff]  ;;  %v1518_v29 = vld [vmem:[#allocation6 + $0x728] sm:$0xff] }
 0x296   :  { %4793 = vmatprep.subr.bf16.mxu1 %v5396_v54  ;;  %v1437_v54 = vld [vmem:[#allocation6 + $0x4a0] sm:$0xff] }
 0x297   :  { %4708 = vmatpush1.bf16.msra.mxu0 %v5393_v57  ;;  %v1446_v57 = vld [vmem:[#allocation6 + $0x4e8] sm:$0xff] }
 0x298   :  { %4794 = vmatpush1.bf16.msra.mxu1 %v5395_v58  ;;  %4709 = vmatprep.subr.bf16.mxu0 %v5410_v59  ;;  %v5505_v58 = vcombine.low %v1421_v43, %v1429_v33  ;;  %v5507_v59 = vcombine.low %v1422_v0, %v1430_v44  ;;  %v5524_v61 = vcombine.high %v1438_v56, %v1446_v57  ;;  %v1533_v33 = vld [vmem:[#allocation6 + $0x7a0] sm:$0xff]  ;;  %v1534_v44 = vld [vmem:[#allocation6 + $0x7a8] sm:$0xff] }
 0x299   :  { %4795 = vmatprep.subr.bf16.mxu1 %v5412_v60  ;;  %v5522_v60 = vcombine.high %v1437_v54, %v1445_v55  ;;  %v1541_v0 = vld [vmem:[#allocation6 + $0x7e0] sm:$0xff] }
 0x29b   :  { %4710 = vmatpush1.bf16.msra.mxu0 %v5409_v2  ;;  %v1462_v2 = vld [vmem:[#allocation6 + $0x568] sm:$0xff] }
 0x29c   :  { %4796 = vmatpush1.bf16.msra.mxu1 %v5411_v7  ;;  %4711 = vmatprep.subr.bf16.mxu0 %v5426_v8  ;;  %v5521_v7 = vcombine.low %v1437_v54, %v1445_v55  ;;  %v5523_v8 = vcombine.low %v1438_v56, %v1446_v57  ;;  %v5540_v12 = vcombine.high %v1454_v1, %v1462_v2  ;;  %v1549_v55 = vld [vmem:[#allocation6 + $0x820] sm:$0xff]  ;;  %v1550_v57 = vld [vmem:[#allocation6 + $0x828] sm:$0xff] }
 0x29d   :  { %4797 = vmatprep.subr.bf16.mxu1 %v5428_v9  ;;  %v5538_v9 = vcombine.high %v1453_v62, %v1461_v63  ;;  %v1557_v56 = vld [vmem:[#allocation6 + $0x860] sm:$0xff] }
 0x29f   :  { %4712 = vmatpush1.bf16.msra.mxu0 %v5425_v4  ;;  %v1478_v4 = vld [vmem:[#allocation6 + $0x5e8] sm:$0xff] }
 0x2a0   :  { %4798 = vmatpush1.bf16.msra.mxu1 %v5427_v5  ;;  %4713 = vmatprep.subr.bf16.mxu0 %v5442_v6  ;;  %v5537_v5 = vcombine.low %v1453_v62, %v1461_v63  ;;  %v5539_v6 = vcombine.low %v1454_v1, %v1462_v2  ;;  %v5556_v15 = vcombine.high %v1470_v3, %v1478_v4  ;;  %v1565_v63 = vld [vmem:[#allocation6 + $0x8a0] sm:$0xff] }
 0x2a1   :  { %4799 = vmatprep.subr.bf16.mxu1 %v5444_v11  ;;  %v5554_v11 = vcombine.high %v1469_v13, %v1477_v14  ;;  %v1573_v1 = vld [vmem:[#allocation6 + $0x8e0] sm:$0xff]  ;;  %v5633_v2 = vcombine.low %v1549_v55, %v1557_v56 }
 0x2a3   :  { %4714 = vmatpush1.bf16.msra.mxu0 %v5441_v19  ;;  %v1494_v19 = vld [vmem:[#allocation6 + $0x668] sm:$0xff] }
 0x2a4   :  { %4800 = vmatpush1.bf16.msra.mxu1 %v5443_v20  ;;  %4715 = vmatprep.subr.bf16.mxu0 %v5458_v21  ;;  %v5553_v20 = vcombine.low %v1469_v13, %v1477_v14  ;;  %v5555_v21 = vcombine.low %v1470_v3, %v1478_v4  ;;  %v5572_v23 = vcombine.high %v1486_v18, %v1494_v19  ;;  %v1581_v13 = vld [vmem:[#allocation6 + $0x920] sm:$0xff]  ;;  %v1582_v4 = vld [vmem:[#allocation6 + $0x928] sm:$0xff] }
 0x2a5   :  { %4801 = vmatprep.subr.bf16.mxu1 %v5460_v22  ;;  %v5570_v22 = vcombine.high %v1485_v16, %v1493_v17  ;;  %v1589_v14 = vld [vmem:[#allocation6 + $0x960] sm:$0xff] }
 0x2a7   :  { %4716 = vmatpush1.bf16.msra.mxu0 %v5457_v26  ;;  %v1510_v26 = vld [vmem:[#allocation6 + $0x6e8] sm:$0xff] }
 0x2a8   :  { %4802 = vmatpush1.bf16.msra.mxu1 %v5459_v28  ;;  %4717 = vmatprep.subr.bf16.mxu0 %v5474_v30  ;;  %v5569_v28 = vcombine.low %v1485_v16, %v1493_v17  ;;  %v5571_v30 = vcombine.low %v1486_v18, %v1494_v19  ;;  %v5588_v34 = vcombine.high %v1502_v25, %v1510_v26  ;;  %v1597_v17 = vld [vmem:[#allocation6 + $0x9a0] sm:$0xff]  ;;  %v1598_v19 = vld [vmem:[#allocation6 + $0x9a8] sm:$0xff] }
 0x2a9   :  { %4803 = vmatprep.subr.bf16.mxu1 %v5476_v32  ;;  %v5586_v32 = vcombine.high %v1501_v24, %v1509_v10  ;;  %v1605_v18 = vld [vmem:[#allocation6 + $0x9e0] sm:$0xff] }
 0x2ab   :  { %4718 = vmatpush1.bf16.msra.mxu0 %v5473_v27  ;;  %v1526_v27 = vld [vmem:[#allocation6 + $0x768] sm:$0xff] }
 0x2ac   :  { %4804 = vmatpush1.bf16.msra.mxu1 %v5475_v40  ;;  %4719 = vmatprep.subr.bf16.mxu0 %v5490_v41  ;;  %v5585_v40 = vcombine.low %v1501_v24, %v1509_v10  ;;  %v5587_v41 = vcombine.low %v1502_v25, %v1510_v26  ;;  %v5604_v43 = vcombine.high %v1518_v29, %v1526_v27  ;;  %v1613_v10 = vld [vmem:[#allocation6 + $0xa20] sm:$0xff]  ;;  %v1614_v26 = vld [vmem:[#allocation6 + $0xa28] sm:$0xff] }
 0x2ad   :  { %4805 = vmatprep.subr.bf16.mxu1 %v5492_v42  ;;  %v5602_v42 = vcombine.high %v1517_v37, %v1525_v39  ;;  %v1621_v25 = vld [vmem:[#allocation6 + $0xa60] sm:$0xff] }
 0x2af   :  { %4720 = vmatpush1.bf16.msra.mxu0 %v5489_v36  ;;  %v1542_v36 = vld [vmem:[#allocation6 + $0x7e8] sm:$0xff] }
 0x2b0   :  { %4806 = vmatpush1.bf16.msra.mxu1 %v5491_v35  ;;  %4721 = vmatprep.subr.bf16.mxu0 %v5506_v49  ;;  %v5601_v35 = vcombine.low %v1517_v37, %v1525_v39  ;;  %v5603_v49 = vcombine.low %v1518_v29, %v1526_v27  ;;  %v5620_v54 = vcombine.high %v1534_v44, %v1542_v36  ;;  %v1629_v39 = vld [vmem:[#allocation6 + $0xaa0] sm:$0xff]  ;;  %v1630_v27 = vld [vmem:[#allocation6 + $0xaa8] sm:$0xff] }
 0x2b1   :  { %4807 = vmatprep.subr.bf16.mxu1 %v5508_v53  ;;  %v5618_v53 = vcombine.high %v1533_v33, %v1541_v0  ;;  %v1637_v29 = vld [vmem:[#allocation6 + $0xae0] sm:$0xff] }
 0x2b3   :  { %4722 = vmatpush1.bf16.msra.mxu0 %v5505_v58  ;;  %v1558_v58 = vld [vmem:[#allocation6 + $0x868] sm:$0xff] }
 0x2b4   :  { %4808 = vmatpush1.bf16.msra.mxu1 %v5507_v59  ;;  %4723 = vmatprep.subr.bf16.mxu0 %v5522_v60  ;;  %v5617_v59 = vcombine.low %v1533_v33, %v1541_v0  ;;  %v5619_v60 = vcombine.low %v1534_v44, %v1542_v36  ;;  %v5636_v62 = vcombine.high %v1550_v57, %v1558_v58  ;;  %v1645_v0 = vld [vmem:[#allocation6 + $0xb20] sm:$0xff]  ;;  %v1646_v36 = vld [vmem:[#allocation6 + $0xb28] sm:$0xff] }
 0x2b5   :  { %4809 = vmatprep.subr.bf16.mxu1 %v5524_v61  ;;  %v5634_v61 = vcombine.high %v1549_v55, %v1557_v56  ;;  %v1653_v44 = vld [vmem:[#allocation6 + $0xb60] sm:$0xff] }
 0x2b7   :  { %4724 = vmatpush1.bf16.msra.mxu0 %v5521_v7  ;;  %v1566_v7 = vld [vmem:[#allocation6 + $0x8a8] sm:$0xff] }
 0x2b8   :  { %4810 = vmatpush1.bf16.msra.mxu1 %v5523_v8  ;;  %4725 = vmatprep.subr.bf16.mxu0 %v5538_v9  ;;  %v1574_v8 = vld [vmem:[#allocation6 + $0x8e8] sm:$0xff]  ;;  %v5635_v9 = vcombine.low %v1550_v57, %v1558_v58  ;;  %v1661_v58 = vld [vmem:[#allocation6 + $0xba0] sm:$0xff] }
 0x2b9   :  { %4811 = vmatprep.subr.bf16.mxu1 %v5540_v12  ;;  %v5650_v12 = vcombine.high %v1565_v63, %v1573_v1  ;;  %v5652_v3 = vcombine.high %v1566_v7, %v1574_v8 }
 0x2bb   :  { %4726 = vmatpush1.bf16.msra.mxu0 %v5537_v5  ;;  %v1590_v5 = vld [vmem:[#allocation6 + $0x968] sm:$0xff] }
 0x2bc   :  { %4812 = vmatpush1.bf16.msra.mxu1 %v5539_v6  ;;  %4727 = vmatprep.subr.bf16.mxu0 %v5554_v11  ;;  %v5649_v6 = vcombine.low %v1565_v63, %v1573_v1  ;;  %v5651_v11 = vcombine.low %v1566_v7, %v1574_v8  ;;  %v5668_v16 = vcombine.high %v1582_v4, %v1590_v5  ;;  %v1670_v63 = vld [vmem:[#allocation6 + $0xbe8] sm:$0xff] }
 0x2bd   :  { %4813 = vmatprep.subr.bf16.mxu1 %v5556_v15  ;;  %v5666_v15 = vcombine.high %v1581_v13, %v1589_v14  ;;  %v5729_v7 = vcombine.low %v1645_v0, %v1653_v44 }
 0x2bf   :  { %4728 = vmatpush1.bf16.msra.mxu0 %v5553_v20  ;;  %v1606_v20 = vld [vmem:[#allocation6 + $0x9e8] sm:$0xff] }
 0x2c0   :  { %4814 = vmatpush1.bf16.msra.mxu1 %v5555_v21  ;;  %4729 = vmatprep.subr.bf16.mxu0 %v5570_v22  ;;  %v5665_v21 = vcombine.low %v1581_v13, %v1589_v14  ;;  %v5667_v22 = vcombine.low %v1582_v4, %v1590_v5  ;;  %v5684_v24 = vcombine.high %v1598_v19, %v1606_v20  ;;  %v1685_v4 = vld [vmem:[#allocation6 + $0xc60] sm:$0xff]  ;;  %v1678_v5 = vld [vmem:[#allocation6 + $0xc28] sm:$0xff] }
 0x2c1   :  { %4815 = vmatprep.subr.bf16.mxu1 %v5572_v23  ;;  %v5682_v23 = vcombine.high %v1597_v17, %v1605_v18 }
 0x2c3   :  { %4730 = vmatpush1.bf16.msra.mxu0 %v5569_v28  ;;  %v1622_v28 = vld [vmem:[#allocation6 + $0xa68] sm:$0xff] }
 0x2c4   :  { %4816 = vmatpush1.bf16.msra.mxu1 %v5571_v30  ;;  %4731 = vmatprep.subr.bf16.mxu0 %v5586_v32  ;;  %v5681_v30 = vcombine.low %v1597_v17, %v1605_v18  ;;  %v5683_v32 = vcombine.low %v1598_v19, %v1606_v20  ;;  %v5700_v37 = vcombine.high %v1614_v26, %v1622_v28  ;;  %v1693_v18 = vld [vmem:[#allocation6 + $0xca0] sm:$0xff]  ;;  %v1694_v20 = vld [vmem:[#allocation6 + $0xca8] sm:$0xff] }
 0x2c5   :  { %4817 = vmatprep.subr.bf16.mxu1 %v5588_v34  ;;  %v5698_v34 = vcombine.high %v1613_v10, %v1621_v25  ;;  %v1701_v19 = vld [vmem:[#allocation6 + $0xce0] sm:$0xff] }
 0x2c7   :  { %4732 = vmatpush1.bf16.msra.mxu0 %v5585_v40  ;;  %v1638_v40 = vld [vmem:[#allocation6 + $0xae8] sm:$0xff] }
 0x2c8   :  { %4818 = vmatpush1.bf16.msra.mxu1 %v5587_v41  ;;  %4733 = vmatprep.subr.bf16.mxu0 %v5602_v42  ;;  %v5697_v41 = vcombine.low %v1613_v10, %v1621_v25  ;;  %v5699_v42 = vcombine.low %v1614_v26, %v1622_v28  ;;  %v5716_v33 = vcombine.high %v1630_v27, %v1638_v40  ;;  %v1709_v25 = vld [vmem:[#allocation6 + $0xd20] sm:$0xff]  ;;  %v1710_v28 = vld [vmem:[#allocation6 + $0xd28] sm:$0xff] }
 0x2c9   :  { %4819 = vmatprep.subr.bf16.mxu1 %v5604_v43  ;;  %v5714_v43 = vcombine.high %v1629_v39, %v1637_v29  ;;  %v1717_v26 = vld [vmem:[#allocation6 + $0xd60] sm:$0xff] }
 0x2cb   :  { %4734 = vmatpush1.bf16.msra.mxu0 %v5601_v35  ;;  %v1654_v35 = vld [vmem:[#allocation6 + $0xb68] sm:$0xff] }
 0x2cc   :  { %4820 = vmatpush1.bf16.msra.mxu1 %v5603_v49  ;;  %4735 = vmatprep.subr.bf16.mxu0 %v5618_v53  ;;  %v5713_v49 = vcombine.low %v1629_v39, %v1637_v29  ;;  %v5715_v53 = vcombine.low %v1630_v27, %v1638_v40  ;;  %v5732_v57 = vcombine.high %v1646_v36, %v1654_v35  ;;  %v1725_v29 = vld [vmem:[#allocation6 + $0xda0] sm:$0xff]  ;;  %v1726_v40 = vld [vmem:[#allocation6 + $0xda8] sm:$0xff] }
 0x2cd   :  { %4821 = vmatprep.subr.bf16.mxu1 %v5620_v54  ;;  %v5730_v54 = vcombine.high %v1645_v0, %v1653_v44  ;;  %v1733_v27 = vld [vmem:[#allocation6 + $0xde0] sm:$0xff] }
 0x2ce   :  { %v1741_v44 = vld [vmem:[#allocation6 + $0xe20] sm:$0xff] }
 0x2cf   :  { %4736 = vmatpush1.bf16.msra.mxu0 %v5617_v59  ;;  %v1669_v59 = vld [vmem:[#allocation6 + $0xbe0] sm:$0xff] }
 0x2d0   :  { %4822 = vmatpush1.bf16.msra.mxu1 %v5619_v60  ;;  %4748 = vmatprep.subr.bf16.mxu0 %v5634_v61  ;;  %v5746_v13 = vcombine.high %v1661_v58, %v1669_v59 }
 0x2d1   :  { %4834 = vmatprep.subr.bf16.mxu1 %v5636_v62  ;;  %v1662_v62 = vld [vmem:[#allocation6 + $0xba8] sm:$0xff] }
 0x2d2   :  { %4738 = vmatmul.mubr.bf16.vlgmr.msra.gmra.mrb[24].mxu0 %v6297_v31  ;;  %v5748_v14 = vcombine.high %v1662_v62, %v1670_v63 }
 0x2d3   :  { %4824 = vmatmul.mubr.bf16.vlgmr.msra.gmra.mrb[24].mxu1 %v6297_v31  ;;  %4749 = vmatpush1.bf16.msra.mxu0 %v5633_v2 }
 0x2d4   :  { %4780 = vmatprep.mubr.bf16.mxu0 %v6303_v46  ;;  %4835 = vmatpush1.bf16.msra.mxu1 %v5635_v9 }
 0x2d5   :  { %4866 = vmatprep.mubr.bf16.mxu1 %v6303_v46  ;;  %4750 = vmatprep.subr.bf16.mxu0 %v5650_v12  ;;  %v5731_v12 = vcombine.low %v1646_v36, %v1654_v35  ;;  %v1749_v36 = vld [vmem:[#allocation6 + $0xe60] sm:$0xff]  ;;  %v1742_v35 = vld [vmem:[#allocation6 + $0xe28] sm:$0xff] }
 0x2d6   :  { %4836 = vmatprep.subr.bf16.mxu1 %v5652_v3  ;;  %v1677_v3 = vld [vmem:[#allocation6 + $0xc20] sm:$0xff] }
 0x2d7   :  { %4751 = vmatpush1.bf16.msra.mxu0 %v5649_v6  ;;  %v1686_v6 = vld [vmem:[#allocation6 + $0xc68] sm:$0xff] }
 0x2d8   :  { %4837 = vmatpush1.bf16.msra.mxu1 %v5651_v11  ;;  %4752 = vmatprep.subr.bf16.mxu0 %v5666_v15  ;;  %v5745_v11 = vcombine.low %v1661_v58, %v1669_v59  ;;  %v5747_v15 = vcombine.low %v1662_v62, %v1670_v63  ;;  %v5764_v17 = vcombine.high %v1678_v5, %v1686_v6  ;;  %v1757_v59 = vld [vmem:[#allocation6 + $0xea0] sm:$0xff]  ;;  %v1758_v63 = vld [vmem:[#allocation6 + $0xea8] sm:$0xff] }
 0x2d9   :  { %4838 = vmatprep.subr.bf16.mxu1 %v5668_v16  ;;  %v5762_v16 = vcombine.high %v1677_v3, %v1685_v4  ;;  %v1765_v62 = vld [vmem:[#allocation6 + $0xee0] sm:$0xff] }
 0x2db   :  { %4753 = vmatpush1.bf16.msra.mxu0 %v5665_v21  ;;  %v1702_v21 = vld [vmem:[#allocation6 + $0xce8] sm:$0xff] }
 0x2dc   :  { %4839 = vmatpush1.bf16.msra.mxu1 %v5667_v22  ;;  %4754 = vmatprep.subr.bf16.mxu0 %v5682_v23  ;;  %v5761_v22 = vcombine.low %v1677_v3, %v1685_v4  ;;  %v5763_v23 = vcombine.low %v1678_v5, %v1686_v6  ;;  %v5780_v10 = vcombine.high %v1694_v20, %v1702_v21  ;;  %v1773_v4 = vld [vmem:[#allocation6 + $0xf20] sm:$0xff]  ;;  %v1774_v6 = vld [vmem:[#allocation6 + $0xf28] sm:$0xff] }
 0x2dd   :  { %4840 = vmatprep.subr.bf16.mxu1 %v5684_v24  ;;  %v5778_v24 = vcombine.high %v1693_v18, %v1701_v19  ;;  %v1781_v5 = vld [vmem:[#allocation6 + $0xf60] sm:$0xff] }
 0x2df   :  { %4755 = vmatpush1.bf16.msra.mxu0 %v5681_v30  ;;  %v1718_v30 = vld [vmem:[#allocation6 + $0xd68] sm:$0xff] }
 0x2e0   :  { %4841 = vmatpush1.bf16.msra.mxu1 %v5683_v32  ;;  %4756 = vmatprep.subr.bf16.mxu0 %v5698_v34  ;;  %v5777_v32 = vcombine.low %v1693_v18, %v1701_v19  ;;  %v5779_v34 = vcombine.low %v1694_v20, %v1702_v21  ;;  %v5796_v39 = vcombine.high %v1710_v28, %v1718_v30  ;;  %v1789_v19 = vld [vmem:[#allocation6 + $0xfa0] sm:$0xff]  ;;  %v1790_v21 = vld [vmem:[#allocation6 + $0xfa8] sm:$0xff] }
 0x2e1   :  { %4842 = vmatprep.subr.bf16.mxu1 %v5700_v37  ;;  %v5794_v37 = vcombine.high %v1709_v25, %v1717_v26  ;;  %v1797_v20 = vld [vmem:[#allocation6 + $0xfe0] sm:$0xff] }
 0x2e3   :  { %4757 = vmatpush1.bf16.msra.mxu0 %v5697_v41  ;;  %v1734_v41 = vld [vmem:[#allocation6 + $0xde8] sm:$0xff] }
 0x2e4   :  { %4843 = vmatpush1.bf16.msra.mxu1 %v5699_v42  ;;  %4758 = vmatprep.subr.bf16.mxu0 %v5714_v43  ;;  %v5793_v42 = vcombine.low %v1709_v25, %v1717_v26  ;;  %v5795_v43 = vcombine.low %v1710_v28, %v1718_v30  ;;  %v5812_v0 = vcombine.high %v1726_v40, %v1734_v41  ;;  %v1295_v26 = vld [vmem:[#allocation6 + $0x30] sm:$0xff]  ;;  %v1296_v30 = vld [vmem:[#allocation6 + $0x38] sm:$0xff] }
 0x2e5   :  { %v6333_v55 = vpop.f32.mrb[16].mxu0  ;;  %v6335_v56 = vpop.f32.mrb[16].mxu1  ;;  %4844 = vmatprep.subr.bf16.mxu1 %v5716_v33  ;;  %v5810_v33 = vcombine.high %v1725_v29, %v1733_v27  ;;  %v1303_v28 = vld [vmem:[#allocation6 + $0x70] sm:$0xff] }
 0x2e6   :  { %v6337_v60 = vpop.f32.mrb[17].mxu0  ;;  %v6339_v61 = vpop.f32.mrb[17].mxu1 }
 0x2e7   :  { %v6341_v1 = vpop.f32.mrb[18].mxu0  ;;  %v6343_v2 = vpop.f32.mrb[18].mxu1  ;;  %4759 = vmatpush1.bf16.msra.mxu0 %v5713_v49  ;;  %v1750_v49 = vld [vmem:[#allocation6 + $0xe68] sm:$0xff] }
 0x2e8   :  { %4845 = vmatpush1.bf16.msra.mxu1 %v5715_v53  ;;  %v6345_v8 = vpop.f32.mrb[19].mxu0  ;;  %v6347_v9 = vpop.f32.mrb[19].mxu1  ;;  %4760 = vmatprep.subr.bf16.mxu0 %v5730_v54  ;;  %v5809_v53 = vcombine.low %v1725_v29, %v1733_v27  ;;  %v5811_v54 = vcombine.low %v1726_v40, %v1734_v41  ;;  %v5828_v58 = vcombine.high %v1742_v35, %v1750_v49  ;;  %v1311_v27 = vld [vmem:[#allocation6 + $0xb0] sm:$0xff] }
 0x2e9   :  { %4846 = vmatprep.subr.bf16.mxu1 %v5732_v57  ;;  %v5826_v57 = vcombine.high %v1741_v44, %v1749_v36  ;;  %v1319_v40 = vld [vmem:[#allocation6 + $0xf0] sm:$0xff]  ;;  %v5381_v41 = vcombine.low %v1295_v26, %v1303_v28 }
 0x2eb   :  { %4761 = vmatpush1.bf16.msra.mxu0 %v5729_v7  ;;  %v1766_v7 = vld [vmem:[#allocation6 + $0xee8] sm:$0xff] }
 0x2ec   :  { %4847 = vmatpush1.bf16.msra.mxu1 %v5731_v12  ;;  %4762 = vmatprep.subr.bf16.mxu0 %v5746_v13  ;;  %v5825_v12 = vcombine.low %v1741_v44, %v1749_v36  ;;  %v5827_v13 = vcombine.low %v1742_v35, %v1750_v49  ;;  %v5844_v3 = vcombine.high %v1758_v63, %v1766_v7  ;;  %v1327_v44 = vld [vmem:[#allocation6 + $0x130] sm:$0xff]  ;;  %v1328_v49 = vld [vmem:[#allocation6 + $0x138] sm:$0xff] }
 0x2ed   :  { %4848 = vmatprep.subr.bf16.mxu1 %v5748_v14  ;;  %v5842_v14 = vcombine.high %v1757_v59, %v1765_v62  ;;  %v1335_v36 = vld [vmem:[#allocation6 + $0x170] sm:$0xff] }
 0x2ef   :  { %4763 = vmatpush1.bf16.msra.mxu0 %v5745_v11  ;;  %v1782_v11 = vld [vmem:[#allocation6 + $0xf68] sm:$0xff] }
 0x2f0   :  { %4849 = vmatpush1.bf16.msra.mxu1 %v5747_v15  ;;  %4764 = vmatprep.subr.bf16.mxu0 %v5762_v16  ;;  %v5841_v15 = vcombine.low %v1757_v59, %v1765_v62  ;;  %v5843_v16 = vcombine.low %v1758_v63, %v1766_v7  ;;  %v5860_v18 = vcombine.high %v1774_v6, %v1782_v11  ;;  %v1343_v62 = vld [vmem:[#allocation6 + $0x1b0] sm:$0xff]  ;;  %v1344_v7 = vld [vmem:[#allocation6 + $0x1b8] sm:$0xff] }
 0x2f1   :  { %4850 = vmatprep.subr.bf16.mxu1 %v5764_v17  ;;  %v5858_v17 = vcombine.high %v1773_v4, %v1781_v5  ;;  %v1351_v63 = vld [vmem:[#allocation6 + $0x1f0] sm:$0xff] }
 0x2f3   :  { %4765 = vmatpush1.bf16.msra.mxu0 %v5761_v22  ;;  %v1798_v22 = vld [vmem:[#allocation6 + $0xfe8] sm:$0xff] }
 0x2f4   :  { %4851 = vmatpush1.bf16.msra.mxu1 %v5763_v23  ;;  %4766 = vmatprep.subr.bf16.mxu0 %v5778_v24  ;;  %v5857_v23 = vcombine.low %v1773_v4, %v1781_v5  ;;  %v5859_v24 = vcombine.low %v1774_v6, %v1782_v11  ;;  %v5876_v25 = vcombine.high %v1790_v21, %v1798_v22  ;;  %v1359_v5 = vld [vmem:[#allocation6 + $0x230] sm:$0xff]  ;;  %v1360_v11 = vld [vmem:[#allocation6 + $0x238] sm:$0xff] }
 0x2f5   :  { %4852 = vmatprep.subr.bf16.mxu1 %v5780_v10  ;;  %v5874_v10 = vcombine.high %v1789_v19, %v1797_v20  ;;  %v1367_v6 = vld [vmem:[#allocation6 + $0x270] sm:$0xff] }
 0x2f7   :  { %4767 = vmatpush1.bf16.msra.mxu0 %v5777_v32  ;;  %v1304_v32 = vld [vmem:[#allocation6 + $0x78] sm:$0xff] }
 0x2f8   :  { %4853 = vmatpush1.bf16.msra.mxu1 %v5779_v34  ;;  %4768 = vmatprep.subr.bf16.mxu0 %v5794_v37  ;;  %v5873_v34 = vcombine.low %v1789_v19, %v1797_v20  ;;  %v5875_v37 = vcombine.low %v1790_v21, %v1798_v22  ;;  %v5384_v29 = vcombine.high %v1296_v30, %v1304_v32  ;;  %v1375_v19 = vld [vmem:[#allocation6 + $0x2b0] sm:$0xff]  ;;  %v1376_v21 = vld [vmem:[#allocation6 + $0x2b8] sm:$0xff] }
 0x2f9   :  { %4854 = vmatprep.subr.bf16.mxu1 %v5796_v39  ;;  %v5382_v39 = vcombine.high %v1295_v26, %v1303_v28  ;;  %v1383_v20 = vld [vmem:[#allocation6 + $0x2f0] sm:$0xff]  ;;  %v1384_v22 = vld [vmem:[#allocation6 + $0x2f8] sm:$0xff] }
 0x2fa   :  { %v1391_v26 = vld [vmem:[#allocation6 + $0x330] sm:$0xff] }
 0x2fb   :  { %4769 = vmatpush1.bf16.msra.mxu0 %v5793_v42  ;;  %v1312_v42 = vld [vmem:[#allocation6 + $0xb8] sm:$0xff]  ;;  %v1399_v28 = vld [vmem:[#allocation6 + $0x370] sm:$0xff] }
 0x2fc   :  { %4855 = vmatpush1.bf16.msra.mxu1 %v5795_v43  ;;  %4770 = vmatprep.subr.bf16.mxu0 %v5810_v33  ;;  %v1320_v43 = vld [vmem:[#allocation6 + $0xf8] sm:$0xff]  ;;  %v5383_v33 = vcombine.low %v1296_v30, %v1304_v32 }
 0x2fd   :  { %4856 = vmatprep.subr.bf16.mxu1 %v5812_v0  ;;  %v5398_v0 = vcombine.high %v1311_v27, %v1319_v40  ;;  %v5400_v35 = vcombine.high %v1312_v42, %v1320_v43  ;;  %v1392_v30 = vld [vmem:[#allocation6 + $0x338] sm:$0xff] }
 0x2fe   :  { %v1400_v32 = vld [vmem:[#allocation6 + $0x378] sm:$0xff] }
 0x2ff   :  { %4771 = vmatpush1.bf16.msra.mxu0 %v5809_v53  ;;  %v1336_v53 = vld [vmem:[#allocation6 + $0x178] sm:$0xff] }
 0x300   :  { %4857 = vmatpush1.bf16.msra.mxu1 %v5811_v54  ;;  %4772 = vmatprep.subr.bf16.mxu0 %v5826_v57  ;;  %v5397_v54 = vcombine.low %v1311_v27, %v1319_v40  ;;  %v5399_v57 = vcombine.low %v1312_v42, %v1320_v43  ;;  %v5416_v59 = vcombine.high %v1328_v49, %v1336_v53  ;;  %v1407_v27 = vld [vmem:[#allocation6 + $0x3b0] sm:$0xff]  ;;  %v1416_v42 = vld [vmem:[#allocation6 + $0x3f8] sm:$0xff] }
 0x301   :  { %4858 = vmatprep.subr.bf16.mxu1 %v5828_v58  ;;  %v5414_v58 = vcombine.high %v1327_v44, %v1335_v36  ;;  %v1415_v40 = vld [vmem:[#allocation6 + $0x3f0] sm:$0xff]  ;;  %v5477_v43 = vcombine.low %v1391_v26, %v1399_v28 }
 0x303   :  { %4773 = vmatpush1.bf16.msra.mxu0 %v5825_v12  ;;  %v1352_v12 = vld [vmem:[#allocation6 + $0x1f8] sm:$0xff] }
 0x304   :  { %4859 = vmatpush1.bf16.msra.mxu1 %v5827_v13  ;;  %4774 = vmatprep.subr.bf16.mxu0 %v5842_v14  ;;  %v5413_v13 = vcombine.low %v1327_v44, %v1335_v36  ;;  %v5415_v14 = vcombine.low %v1328_v49, %v1336_v53  ;;  %v5432_v4 = vcombine.high %v1344_v7, %v1352_v12  ;;  %v1423_v36 = vld [vmem:[#allocation6 + $0x430] sm:$0xff]  ;;  %v1424_v49 = vld [vmem:[#allocation6 + $0x438] sm:$0xff] }
 0x305   :  { %4860 = vmatprep.subr.bf16.mxu1 %v5844_v3  ;;  %v5430_v3 = vcombine.high %v1343_v62, %v1351_v63  ;;  %v1432_v53 = vld [vmem:[#allocation6 + $0x478] sm:$0xff] }
 0x307   :  { %4775 = vmatpush1.bf16.msra.mxu0 %v5841_v15  ;;  %v1368_v15 = vld [vmem:[#allocation6 + $0x278] sm:$0xff] }
 0x308   :  { %4861 = vmatpush1.bf16.msra.mxu1 %v5843_v16  ;;  %4776 = vmatprep.subr.bf16.mxu0 %v5858_v17  ;;  %v5431_v16 = vcombine.low %v1344_v7, %v1352_v12  ;;  %v5446_v17 = vcombine.high %v1359_v5, %v1367_v6  ;;  %v1440_v7 = vld [vmem:[#allocation6 + $0x4b8] sm:$0xff] }
 0x309   :  { %4862 = vmatprep.subr.bf16.mxu1 %v5860_v18  ;;  %v5448_v18 = vcombine.high %v1360_v11, %v1368_v15  ;;  %v1448_v12 = vld [vmem:[#allocation6 + $0x4f8] sm:$0xff] }
 0x30b   :  { %4777 = vmatpush1.bf16.msra.mxu0 %v5857_v23  ;;  %v5445_v23 = vcombine.low %v1359_v5, %v1367_v6  ;;  %v1455_v5 = vld [vmem:[#allocation6 + $0x530] sm:$0xff] }
 0x30c   :  { %4863 = vmatpush1.bf16.msra.mxu1 %v5859_v24  ;;  %4778 = vmatprep.subr.bf16.mxu0 %v5874_v10  ;;  %v5447_v24 = vcombine.low %v1360_v11, %v1368_v15  ;;  %v5462_v10 = vcombine.high %v1375_v19, %v1383_v20  ;;  %v1463_v6 = vld [vmem:[#allocation6 + $0x570] sm:$0xff]  ;;  %v1456_v11 = vld [vmem:[#allocation6 + $0x538] sm:$0xff] }
 0x30d   :  { %4864 = vmatprep.subr.bf16.mxu1 %v5876_v25  ;;  %v5464_v25 = vcombine.high %v1376_v21, %v1384_v22  ;;  %v1464_v15 = vld [vmem:[#allocation6 + $0x578] sm:$0xff] }
 0x30f   :  { %4779 = vmatpush1.bf16.msra.mxu0 %v5873_v34  ;;  %v5461_v34 = vcombine.low %v1375_v19, %v1383_v20  ;;  %v1471_v19 = vld [vmem:[#allocation6 + $0x5b0] sm:$0xff] }
 0x310   :  { %4865 = vmatpush1.bf16.msra.mxu1 %v5875_v37  ;;  %4877 = vmatprep.subr.bf16.mxu0 %v5382_v39  ;;  %v5463_v37 = vcombine.low %v1376_v21, %v1384_v22  ;;  %v5478_v39 = vcombine.high %v1391_v26, %v1399_v28  ;;  %v1479_v20 = vld [vmem:[#allocation6 + $0x5f0] sm:$0xff]  ;;  %v1472_v21 = vld [vmem:[#allocation6 + $0x5b8] sm:$0xff] }
 0x311   :  { %4963 = vmatprep.subr.bf16.mxu1 %v5384_v29  ;;  %v5480_v29 = vcombine.high %v1392_v30, %v1400_v32  ;;  %v1480_v22 = vld [vmem:[#allocation6 + $0x5f8] sm:$0xff]  ;;  %v1487_v26 = vld [vmem:[#allocation6 + $0x630] sm:$0xff] }
 0x312   :  { %4781 = vmatmul.mubr.bf16.vlgmr.msra.gmra.mrb[24].mxu0 %v6299_v45  ;;  %v1495_v28 = vld [vmem:[#allocation6 + $0x670] sm:$0xff] }
 0x313   :  { %4867 = vmatmul.mubr.bf16.vlgmr.msra.gmra.mrb[24].mxu1 %v6299_v45  ;;  %4878 = vmatpush1.bf16.msra.mxu0 %v5381_v41  ;;  %v1408_v41 = vld [vmem:[#allocation6 + $0x3b8] sm:$0xff] }
 0x314   :  { %4909 = vmatprep.mubr.bf16.mxu0 %v6301_v38  ;;  %4964 = vmatpush1.bf16.msra.mxu1 %v5383_v33  ;;  %v5479_v33 = vcombine.low %v1392_v30, %v1400_v32  ;;  %v5496_v44 = vcombine.high %v1408_v41, %v1416_v42  ;;  %v1488_v30 = vld [vmem:[#allocation6 + $0x638] sm:$0xff] }
 0x315   :  { %4995 = vmatprep.mubr.bf16.mxu1 %v6301_v38  ;;  %4879 = vmatprep.subr.bf16.mxu0 %v5398_v0  ;;  %v5429_v38 = vcombine.low %v1343_v62, %v1351_v63  ;;  %v5494_v0 = vcombine.high %v1407_v27, %v1415_v40  ;;  %v1439_v62 = vld [vmem:[#allocation6 + $0x4b0] sm:$0xff]  ;;  %v1496_v32 = vld [vmem:[#allocation6 + $0x678] sm:$0xff] }
 0x316   :  { %4965 = vmatprep.subr.bf16.mxu1 %v5400_v35  ;;  %v1431_v35 = vld [vmem:[#allocation6 + $0x470] sm:$0xff] }
 0x317   :  { %4880 = vmatpush1.bf16.msra.mxu0 %v5397_v54  ;;  %v5493_v54 = vcombine.low %v1407_v27, %v1415_v40  ;;  %v1447_v63 = vld [vmem:[#allocation6 + $0x4f0] sm:$0xff] }
 0x318   :  { %4966 = vmatpush1.bf16.msra.mxu1 %v5399_v57  ;;  %4881 = vmatprep.subr.bf16.mxu0 %v5414_v58  ;;  %v5495_v57 = vcombine.low %v1408_v41, %v1416_v42  ;;  %v5510_v58 = vcombine.high %v1423_v36, %v1431_v35  ;;  %v1503_v27 = vld [vmem:[#allocation6 + $0x6b0] sm:$0xff]  ;;  %v1504_v41 = vld [vmem:[#allocation6 + $0x6b8] sm:$0xff] }
 0x319   :  { %4967 = vmatprep.subr.bf16.mxu1 %v5416_v59  ;;  %v5512_v59 = vcombine.high %v1424_v49, %v1432_v53  ;;  %v1511_v40 = vld [vmem:[#allocation6 + $0x6f0] sm:$0xff]  ;;  %v1512_v42 = vld [vmem:[#allocation6 + $0x6f8] sm:$0xff] }
 0x31b   :  { %4882 = vmatpush1.bf16.msra.mxu0 %v5413_v13  ;;  %v5509_v13 = vcombine.low %v1423_v36, %v1431_v35  ;;  %v1519_v36 = vld [vmem:[#allocation6 + $0x730] sm:$0xff] }
 0x31c   :  { %4968 = vmatpush1.bf16.msra.mxu1 %v5415_v14  ;;  %4883 = vmatprep.subr.bf16.mxu0 %v5430_v3  ;;  %v5511_v14 = vcombine.low %v1424_v49, %v1432_v53  ;;  %v5526_v3 = vcombine.high %v1439_v62, %v1447_v63  ;;  %v1527_v35 = vld [vmem:[#allocation6 + $0x770] sm:$0xff]  ;;  %v1520_v49 = vld [vmem:[#allocation6 + $0x738] sm:$0xff] }
 0x31d   :  { %4969 = vmatprep.subr.bf16.mxu1 %v5432_v4  ;;  %v5528_v4 = vcombine.high %v1440_v7, %v1448_v12  ;;  %v1528_v53 = vld [vmem:[#allocation6 + $0x778] sm:$0xff] }
 0x31f   :  { %4884 = vmatpush1.bf16.msra.mxu0 %v5429_v38  ;;  %v5525_v38 = vcombine.low %v1439_v62, %v1447_v63  ;;  %v1535_v62 = vld [vmem:[#allocation6 + $0x7b0] sm:$0xff] }
 0x320   :  { %4970 = vmatpush1.bf16.msra.mxu1 %v5431_v16  ;;  %4885 = vmatprep.subr.bf16.mxu0 %v5446_v17  ;;  %v5527_v16 = vcombine.low %v1440_v7, %v1448_v12  ;;  %v5542_v17 = vcombine.high %v1455_v5, %v1463_v6  ;;  %v1543_v63 = vld [vmem:[#allocation6 + $0x7f0] sm:$0xff]  ;;  %v1536_v7 = vld [vmem:[#allocation6 + $0x7b8] sm:$0xff] }
 0x321   :  { %4971 = vmatprep.subr.bf16.mxu1 %v5448_v18  ;;  %v5544_v18 = vcombine.high %v1456_v11, %v1464_v15  ;;  %v1544_v12 = vld [vmem:[#allocation6 + $0x7f8] sm:$0xff] }
 0x323   :  { %4886 = vmatpush1.bf16.msra.mxu0 %v5445_v23  ;;  %v5541_v23 = vcombine.low %v1455_v5, %v1463_v6  ;;  %v1551_v5 = vld [vmem:[#allocation6 + $0x830] sm:$0xff] }
 0x324   :  { %4972 = vmatpush1.bf16.msra.mxu1 %v5447_v24  ;;  %4887 = vmatprep.subr.bf16.mxu0 %v5462_v10  ;;  %v5543_v24 = vcombine.low %v1456_v11, %v1464_v15  ;;  %v5558_v10 = vcombine.high %v1471_v19, %v1479_v20  ;;  %v1559_v6 = vld [vmem:[#allocation6 + $0x870] sm:$0xff]  ;;  %v1552_v11 = vld [vmem:[#allocation6 + $0x838] sm:$0xff] }
 0x325   :  { %4973 = vmatprep.subr.bf16.mxu1 %v5464_v25  ;;  %v5560_v25 = vcombine.high %v1472_v21, %v1480_v22  ;;  %v1560_v15 = vld [vmem:[#allocation6 + $0x878] sm:$0xff] }
 0x327   :  { %4888 = vmatpush1.bf16.msra.mxu0 %v5461_v34  ;;  %v5557_v34 = vcombine.low %v1471_v19, %v1479_v20  ;;  %v1567_v19 = vld [vmem:[#allocation6 + $0x8b0] sm:$0xff] }
 0x328   :  { %4974 = vmatpush1.bf16.msra.mxu1 %v5463_v37  ;;  %4889 = vmatprep.subr.bf16.mxu0 %v5478_v39  ;;  %v5559_v37 = vcombine.low %v1472_v21, %v1480_v22  ;;  %v5574_v39 = vcombine.high %v1487_v26, %v1495_v28  ;;  %v1575_v20 = vld [vmem:[#allocation6 + $0x8f0] sm:$0xff]  ;;  %v5637_v21 = vcombine.low %v1551_v5, %v1559_v6  ;;  %v1568_v22 = vld [vmem:[#allocation6 + $0x8b8] sm:$0xff] }
 0x329   :  { %4975 = vmatprep.subr.bf16.mxu1 %v5480_v29  ;;  %v5576_v29 = vcombine.high %v1488_v30, %v1496_v32 }
 0x32b   :  { %4890 = vmatpush1.bf16.msra.mxu0 %v5477_v43  ;;  %v5573_v43 = vcombine.low %v1487_v26, %v1495_v28  ;;  %v1591_v26 = vld [vmem:[#allocation6 + $0x970] sm:$0xff] }
 0x32c   :  { %4976 = vmatpush1.bf16.msra.mxu1 %v5479_v33  ;;  %4891 = vmatprep.subr.bf16.mxu0 %v5494_v0  ;;  %v5575_v33 = vcombine.low %v1488_v30, %v1496_v32  ;;  %v5590_v0 = vcombine.high %v1503_v27, %v1511_v40  ;;  %v1584_v30 = vld [vmem:[#allocation6 + $0x938] sm:$0xff] }
 0x32d   :  { %4977 = vmatprep.subr.bf16.mxu1 %v5496_v44  ;;  %v5592_v44 = vcombine.high %v1504_v41, %v1512_v42  ;;  %v1592_v32 = vld [vmem:[#allocation6 + $0x978] sm:$0xff] }
 0x32f   :  { %4892 = vmatpush1.bf16.msra.mxu0 %v5493_v54  ;;  %v5589_v54 = vcombine.low %v1503_v27, %v1511_v40  ;;  %v1599_v27 = vld [vmem:[#allocation6 + $0x9b0] sm:$0xff] }
 0x330   :  { %4978 = vmatpush1.bf16.msra.mxu1 %v5495_v57  ;;  %4893 = vmatprep.subr.bf16.mxu0 %v5510_v58  ;;  %v5591_v57 = vcombine.low %v1504_v41, %v1512_v42  ;;  %v5606_v58 = vcombine.high %v1519_v36, %v1527_v35  ;;  %v1607_v40 = vld [vmem:[#allocation6 + $0x9f0] sm:$0xff]  ;;  %v1600_v41 = vld [vmem:[#allocation6 + $0x9b8] sm:$0xff] }
 0x331   :  { %4979 = vmatprep.subr.bf16.mxu1 %v5512_v59  ;;  %v5608_v59 = vcombine.high %v1520_v49, %v1528_v53  ;;  %v1608_v42 = vld [vmem:[#allocation6 + $0x9f8] sm:$0xff] }
 0x333   :  { %4894 = vmatpush1.bf16.msra.mxu0 %v5509_v13  ;;  %v5605_v13 = vcombine.low %v1519_v36, %v1527_v35  ;;  %v1623_v36 = vld [vmem:[#allocation6 + $0xa70] sm:$0xff]  ;;  %v1616_v35 = vld [vmem:[#allocation6 + $0xa38] sm:$0xff] }
 0x334   :  { %4980 = vmatpush1.bf16.msra.mxu1 %v5511_v14  ;;  %4895 = vmatprep.subr.bf16.mxu0 %v5526_v3  ;;  %v5607_v14 = vcombine.low %v1520_v49, %v1528_v53  ;;  %v5622_v3 = vcombine.high %v1535_v62, %v1543_v63  ;;  %v1624_v49 = vld [vmem:[#allocation6 + $0xa78] sm:$0xff]  ;;  %v5687_v53 = vcombine.low %v1600_v41, %v1608_v42 }
 0x335   :  { %4981 = vmatprep.subr.bf16.mxu1 %v5528_v4  ;;  %v5624_v4 = vcombine.high %v1536_v7, %v1544_v12 }
 0x337   :  { %4896 = vmatpush1.bf16.msra.mxu0 %v5525_v38  ;;  %v5621_v38 = vcombine.low %v1535_v62, %v1543_v63  ;;  %v1632_v62 = vld [vmem:[#allocation6 + $0xab8] sm:$0xff] }
 0x338   :  { %4982 = vmatpush1.bf16.msra.mxu1 %v5527_v16  ;;  %4897 = vmatprep.subr.bf16.mxu0 %v5542_v17  ;;  %v5623_v16 = vcombine.low %v1536_v7, %v1544_v12  ;;  %v5638_v17 = vcombine.high %v1551_v5, %v1559_v6  ;;  %v1640_v63 = vld [vmem:[#allocation6 + $0xaf8] sm:$0xff]  ;;  %v5703_v12 = vcombine.low %v1616_v35, %v1624_v49 }
 0x339   :  { %4983 = vmatprep.subr.bf16.mxu1 %v5544_v18  ;;  %v5640_v18 = vcombine.high %v1552_v11, %v1560_v15  ;;  %v1648_v5 = vld [vmem:[#allocation6 + $0xb38] sm:$0xff] }
 0x33a   :  { %v1656_v6 = vld [vmem:[#allocation6 + $0xb78] sm:$0xff] }
 0x33b   :  { %4898 = vmatpush1.bf16.msra.mxu0 %v5541_v23  ;;  %v1576_v23 = vld [vmem:[#allocation6 + $0x8f8] sm:$0xff] }
 0x33c   :  { %4984 = vmatpush1.bf16.msra.mxu1 %v5543_v24  ;;  %4899 = vmatprep.subr.bf16.mxu0 %v5558_v10  ;;  %v5639_v24 = vcombine.low %v1552_v11, %v1560_v15  ;;  %v5654_v10 = vcombine.high %v1567_v19, %v1575_v20  ;;  %v5656_v28 = vcombine.high %v1568_v22, %v1576_v23 }
 0x33d   :  { %4985 = vmatprep.subr.bf16.mxu1 %v5560_v25  ;;  %v1583_v25 = vld [vmem:[#allocation6 + $0x930] sm:$0xff]  ;;  %v5719_v15 = vcombine.low %v1632_v62, %v1640_v63 }
 0x33f   :  { %4900 = vmatpush1.bf16.msra.mxu0 %v5557_v34  ;;  %v5653_v34 = vcombine.low %v1567_v19, %v1575_v20  ;;  %v1671_v19 = vld [vmem:[#allocation6 + $0xbf0] sm:$0xff] }
 0x340   :  { %4986 = vmatpush1.bf16.msra.mxu1 %v5559_v37  ;;  %4901 = vmatprep.subr.bf16.mxu0 %v5574_v39  ;;  %v5655_v37 = vcombine.low %v1568_v22, %v1576_v23  ;;  %v5670_v39 = vcombine.high %v1583_v25, %v1591_v26  ;;  %v1664_v23 = vld [vmem:[#allocation6 + $0xbb8] sm:$0xff] }
 0x341   :  { %4987 = vmatprep.subr.bf16.mxu1 %v5576_v29  ;;  %v5672_v29 = vcombine.high %v1584_v30, %v1592_v32 }
 0x343   :  { %4902 = vmatpush1.bf16.msra.mxu0 %v5573_v43  ;;  %v5669_v43 = vcombine.low %v1583_v25, %v1591_v26 }
 0x344   :  { %4988 = vmatpush1.bf16.msra.mxu1 %v5575_v33  ;;  %4903 = vmatprep.subr.bf16.mxu0 %v5590_v0  ;;  %v5686_v33 = vcombine.high %v1599_v27, %v1607_v40  ;;  %v5688_v0 = vcombine.high %v1600_v41, %v1608_v42 }
 0x345   :  { %4989 = vmatprep.subr.bf16.mxu1 %v5592_v44  ;;  %v1615_v44 = vld [vmem:[#allocation6 + $0xa30] sm:$0xff] }
 0x346   :  { %v5701_v7 = vcombine.low %v1615_v44, %v1623_v36 }
 0x347   :  { %4904 = vmatpush1.bf16.msra.mxu0 %v5589_v54  ;;  %v5702_v54 = vcombine.high %v1615_v44, %v1623_v36  ;;  %v1680_v44 = vld [vmem:[#allocation6 + $0xc38] sm:$0xff] }
 0x348   :  { %4990 = vmatpush1.bf16.msra.mxu1 %v5591_v57  ;;  %4905 = vmatprep.subr.bf16.mxu0 %v5606_v58  ;;  %v5704_v57 = vcombine.high %v1616_v35, %v1624_v49  ;;  %v1631_v58 = vld [vmem:[#allocation6 + $0xab0] sm:$0xff]  ;;  %v1688_v36 = vld [vmem:[#allocation6 + $0xc78] sm:$0xff] }
 0x349   :  { %4991 = vmatprep.subr.bf16.mxu1 %v5608_v59  ;;  %v1639_v59 = vld [vmem:[#allocation6 + $0xaf0] sm:$0xff] }
 0x34a   :  { %v5717_v11 = vcombine.low %v1631_v58, %v1639_v59 }
 0x34b   :  { %4906 = vmatpush1.bf16.msra.mxu0 %v5605_v13  ;;  %v5718_v13 = vcombine.high %v1631_v58, %v1639_v59  ;;  %v1696_v58 = vld [vmem:[#allocation6 + $0xcb8] sm:$0xff] }
 0x34c   :  { %4992 = vmatpush1.bf16.msra.mxu1 %v5607_v14  ;;  %4907 = vmatprep.subr.bf16.mxu0 %v5622_v3  ;;  %v5720_v14 = vcombine.high %v1632_v62, %v1640_v63  ;;  %v1647_v3 = vld [vmem:[#allocation6 + $0xb30] sm:$0xff]  ;;  %v1704_v59 = vld [vmem:[#allocation6 + $0xcf8] sm:$0xff]  ;;  %v5767_v63 = vcombine.low %v1680_v44, %v1688_v36 }
 0x34d   :  { %4993 = vmatprep.subr.bf16.mxu1 %v5624_v4  ;;  %v1655_v4 = vld [vmem:[#allocation6 + $0xb70] sm:$0xff] }
 0x34f   :  { %4908 = vmatpush1.bf16.msra.mxu0 %v5621_v38  ;;  %v5734_v38 = vcombine.high %v1647_v3, %v1655_v4 }
 0x350   :  { %4994 = vmatpush1.bf16.msra.mxu1 %v5623_v16  ;;  %4920 = vmatprep.subr.bf16.mxu0 %v5638_v17  ;;  %v5736_v17 = vcombine.high %v1648_v5, %v1656_v6 }
 0x351   :  { %5006 = vmatprep.subr.bf16.mxu1 %v5640_v18  ;;  %v1663_v18 = vld [vmem:[#allocation6 + $0xbb0] sm:$0xff] }
 0x352   :  { %4910 = vmatmul.mubr.bf16.vlgmr.msra.gmra.mrb[28].mxu0 %v6297_v31  ;;  %v5749_v35 = vcombine.low %v1663_v18, %v1671_v19 }
 0x353   :  { %4996 = vmatmul.mubr.bf16.vlgmr.msra.gmra.mrb[28].mxu1 %v6297_v31  ;;  %4921 = vmatpush1.bf16.msra.mxu0 %v5637_v21  ;;  %v5671_v31 = vcombine.low %v1584_v30, %v1592_v32  ;;  %v5733_v30 = vcombine.low %v1647_v3, %v1655_v4  ;;  %v5735_v32 = vcombine.low %v1648_v5, %v1656_v6  ;;  %v1712_v3 = vld [vmem:[#allocation6 + $0xd38] sm:$0xff] }
 0x354   :  { %4952 = vmatprep.mubr.bf16.mxu0 %v6303_v46  ;;  %5007 = vmatpush1.bf16.msra.mxu1 %v5639_v24  ;;  %v1672_v24 = vld [vmem:[#allocation6 + $0xbf8] sm:$0xff]  ;;  %v5783_v6 = vcombine.low %v1696_v58, %v1704_v59 }
 0x355   :  { %5038 = vmatprep.mubr.bf16.mxu1 %v6303_v46  ;;  %4922 = vmatprep.subr.bf16.mxu0 %v5654_v10  ;;  %v5685_v46 = vcombine.low %v1599_v27, %v1607_v40  ;;  %v5750_v27 = vcombine.high %v1663_v18, %v1671_v19  ;;  %v5751_v49 = vcombine.low %v1664_v23, %v1672_v24  ;;  %v1720_v4 = vld [vmem:[#allocation6 + $0xd78] sm:$0xff] }
 0x356   :  { %5008 = vmatprep.subr.bf16.mxu1 %v5656_v28  ;;  %v1728_v18 = vld [vmem:[#allocation6 + $0xdb8] sm:$0xff] }
 0x357   :  { %4923 = vmatpush1.bf16.msra.mxu0 %v5653_v34  ;;  %v1736_v19 = vld [vmem:[#allocation6 + $0xdf8] sm:$0xff] }
 0x358   :  { %5009 = vmatpush1.bf16.msra.mxu1 %v5655_v37  ;;  %4924 = vmatprep.subr.bf16.mxu0 %v5670_v39 }
 0x359   :  { %5010 = vmatprep.subr.bf16.mxu1 %v5672_v29 }
 0x35b   :  { %4925 = vmatpush1.bf16.msra.mxu0 %v5669_v43  ;;  %v5752_v43 = vcombine.high %v1664_v23, %v1672_v24  ;;  %v5799_v24 = vcombine.low %v1712_v3, %v1720_v4 }
 0x35c   :  { %5011 = vmatpush1.bf16.msra.mxu1 %v5671_v31  ;;  %4926 = vmatprep.subr.bf16.mxu0 %v5686_v33  ;;  %v1679_v31 = vld [vmem:[#allocation6 + $0xc30] sm:$0xff] }
 0x35d   :  { %5012 = vmatprep.subr.bf16.mxu1 %v5688_v0  ;;  %v1687_v33 = vld [vmem:[#allocation6 + $0xc70] sm:$0xff] }
 0x35e   :  { %v5765_v62 = vcombine.low %v1679_v31, %v1687_v33 }
 0x35f   :  { %4927 = vmatpush1.bf16.msra.mxu0 %v5685_v46  ;;  %v5766_v46 = vcombine.high %v1679_v31, %v1687_v33  ;;  %v1744_v31 = vld [vmem:[#allocation6 + $0xe38] sm:$0xff] }
 0x360   :  { %5013 = vmatpush1.bf16.msra.mxu1 %v5687_v53  ;;  %4928 = vmatprep.subr.bf16.mxu0 %v5702_v54  ;;  %v5768_v53 = vcombine.high %v1680_v44, %v1688_v36  ;;  %v1695_v54 = vld [vmem:[#allocation6 + $0xcb0] sm:$0xff]  ;;  %v1752_v33 = vld [vmem:[#allocation6 + $0xe78] sm:$0xff]  ;;  %v5815_v36 = vcombine.low %v1728_v18, %v1736_v19 }
 0x361   :  { %5014 = vmatprep.subr.bf16.mxu1 %v5704_v57  ;;  %v1703_v57 = vld [vmem:[#allocation6 + $0xcf0] sm:$0xff] }
 0x362   :  { %v5781_v5 = vcombine.low %v1695_v54, %v1703_v57 }
 0x363   :  { %4929 = vmatpush1.bf16.msra.mxu0 %v5701_v7  ;;  %v5782_v7 = vcombine.high %v1695_v54, %v1703_v57  ;;  %v1760_v54 = vld [vmem:[#allocation6 + $0xeb8] sm:$0xff] }
 0x364   :  { %5015 = vmatpush1.bf16.msra.mxu1 %v5703_v12  ;;  %4930 = vmatprep.subr.bf16.mxu0 %v5718_v13  ;;  %v5784_v12 = vcombine.high %v1696_v58, %v1704_v59  ;;  %v1711_v13 = vld [vmem:[#allocation6 + $0xd30] sm:$0xff]  ;;  %v1768_v57 = vld [vmem:[#allocation6 + $0xef8] sm:$0xff]  ;;  %v5831_v59 = vcombine.low %v1744_v31, %v1752_v33 }
 0x365   :  { %v6357_v16 = vpop.f32.mrb[20].mxu0  ;;  %5016 = vmatprep.subr.bf16.mxu1 %v5720_v14  ;;  %v1719_v14 = vld [vmem:[#allocation6 + $0xd70] sm:$0xff] }
 0x366   :  { %v5049_v20 = vmax.f32 %v6333_v55, %v6357_v16  ;;  %v6361_v21 = vpop.f32.mrb[20].mxu1  ;;  %v6363_v22 = vpop.f32.mrb[21].mxu0  ;;  %v5797_v23 = vcombine.low %v1711_v13, %v1719_v14 }
 0x367   :  { %v5051_v10 = vmax.f32 %v6335_v56, %v6361_v21  ;;  %v5050_v25 = vmax.f32 %v6337_v60, %v6363_v22  ;;  %v6369_v26 = vpop.f32.mrb[21].mxu1  ;;  %v6371_v28 = vpop.f32.mrb[22].mxu0  ;;  %4931 = vmatpush1.bf16.msra.mxu0 %v5717_v11  ;;  %v5798_v11 = vcombine.high %v1711_v13, %v1719_v14  ;;  %v1776_v13 = vld [vmem:[#allocation6 + $0xf38] sm:$0xff] }
 0x368   :  { %v5052_v34 = vmax.f32 %v6339_v61, %v6369_v26  ;;  %v5053_v37 = vmax.f32 %v6341_v1, %v6371_v28  ;;  %v6377_v39 = vpop.f32.mrb[22].mxu1  ;;  %5017 = vmatpush1.bf16.msra.mxu1 %v5719_v15  ;;  %v6379_v29 = vpop.f32.mrb[23].mxu0  ;;  %4932 = vmatprep.subr.bf16.mxu0 %v5734_v38  ;;  %v5800_v15 = vcombine.high %v1712_v3, %v1720_v4  ;;  %v1727_v38 = vld [vmem:[#allocation6 + $0xdb0] sm:$0xff]  ;;  %v1784_v14 = vld [vmem:[#allocation6 + $0xf78] sm:$0xff] }
 0x369   :  { %v5055_v40 = vmax.f32 %v6343_v2, %v6377_v39  ;;  %v5054_v41 = vmax.f32 %v6345_v8, %v6379_v29  ;;  %v6385_v42 = vpop.f32.mrb[23].mxu1  ;;  %5018 = vmatprep.subr.bf16.mxu1 %v5736_v17  ;;  %v1735_v17 = vld [vmem:[#allocation6 + $0xdf0] sm:$0xff]  ;;  %v5847_v4 = vcombine.low %v1760_v54, %v1768_v57 }
 0x36a   :  { %v5056_v0 = vmax.f32 %v6347_v9, %v6385_v42  ;;  %v5813_v44 = vcombine.low %v1727_v38, %v1735_v17  ;;  %v5881_v9 = vld [vmem:[#allocation10] ss:$0 sm:$0xff] }
 0x36b   :  { %4933 = vmatpush1.bf16.msra.mxu0 %v5733_v30  ;;  %v5814_v30 = vcombine.high %v1727_v38, %v1735_v17  ;;  %v1792_v38 = vld [vmem:[#allocation6 + $0xfb8] sm:$0xff] }
 0x36c   :  { %5019 = vmatpush1.bf16.msra.mxu1 %v5735_v32  ;;  %4934 = vmatprep.subr.bf16.mxu0 %v5750_v27  ;;  %v5816_v32 = vcombine.high %v1728_v18, %v1736_v19  ;;  %v1743_v27 = vld [vmem:[#allocation6 + $0xe30] sm:$0xff]  ;;  %v1800_v17 = vld [vmem:[#allocation6 + $0xff8] sm:$0xff]  ;;  %v5863_v19 = vcombine.low %v1776_v13, %v1784_v14 }
 0x36d   :  { %5020 = vmatprep.subr.bf16.mxu1 %v5752_v43  ;;  %v1751_v43 = vld [vmem:[#allocation6 + $0xe70] sm:$0xff] }
 0x36e   :  { %v5829_v58 = vcombine.low %v1743_v27, %v1751_v43 }
 0x36f   :  { %4935 = vmatpush1.bf16.msra.mxu0 %v5749_v35  ;;  %v5830_v35 = vcombine.high %v1743_v27, %v1751_v43  ;;  %v5964_v27 = vld [vmem:[#allocation9] sm:$0xff]   ;;  %v6122_v43 = vmov 0.0  }
 0x370   :  { %5021 = vmatpush1.bf16.msra.mxu1 %v5751_v49  ;;  %4936 = vmatprep.subr.bf16.mxu0 %v5766_v46  ;;  %v5832_v49 = vcombine.high %v1744_v31, %v1752_v33  ;;  %v1759_v46 = vld [vmem:[#allocation6 + $0xeb0] sm:$0xff] }
 0x371   :  { %5022 = vmatprep.subr.bf16.mxu1 %v5768_v53  ;;  %v1767_v53 = vld [vmem:[#allocation6 + $0xef0] sm:$0xff] }
 0x372   :  { %v5845_v3 = vcombine.low %v1759_v46, %v1767_v53  ;;  %v5965_v31 = vld [vmem:[#allocation9 + $0x8] sm:$0xff]   ;;  %v5966_v33 = vld [vmem:[#allocation9 + $0x10] sm:$0xff]  }
 0x373   :  { %4937 = vmatpush1.bf16.msra.mxu0 %v5765_v62  ;;  %v5846_v62 = vcombine.high %v1759_v46, %v1767_v53 }
 0x374   :  { %5023 = vmatpush1.bf16.msra.mxu1 %v5767_v63  ;;  %4938 = vmatprep.subr.bf16.mxu0 %v5782_v7  ;;  %v5848_v63 = vcombine.high %v1760_v54, %v1768_v57  ;;  %v1775_v7 = vld [vmem:[#allocation6 + $0xf30] sm:$0xff] }
 0x375   :  { %5024 = vmatprep.subr.bf16.mxu1 %v5784_v12  ;;  %v1783_v12 = vld [vmem:[#allocation6 + $0xf70] sm:$0xff] }
 0x376   :  { %v5861_v18 = vcombine.low %v1775_v7, %v1783_v12 }
 0x377   :  { %4939 = vmatpush1.bf16.msra.mxu0 %v5781_v5  ;;  %v5862_v5 = vcombine.high %v1775_v7, %v1783_v12  ;;  %v5073_v7 = vld [vmem:[#allocation7] sm:$0xf] }
 0x378   :  { %5025 = vmatpush1.bf16.msra.mxu1 %v5783_v6  ;;  %4940 = vmatprep.subr.bf16.mxu0 %v5798_v11  ;;  %v5864_v6 = vcombine.high %v1776_v13, %v1784_v14  ;;  %v1791_v11 = vld [vmem:[#allocation6 + $0xfb0] sm:$0xff]  ;;  %v5078_v14 = vrot.slane %v5073_v7, %v1251_v48  ;;  %v5090_v48 = vrot.slane %v5073_v7, %v1263_v52 }
 0x379   :  { %5026 = vmatprep.subr.bf16.mxu1 %v5800_v15  ;;  %v1799_v15 = vld [vmem:[#allocation6 + $0xff0] sm:$0xff] }
 0x37b   :  { %4941 = vmatpush1.bf16.msra.mxu0 %v5797_v23  ;;  %v5878_v23 = vcombine.high %v1791_v11, %v1799_v15 }
 0x37c   :  { %5027 = vmatpush1.bf16.msra.mxu1 %v5799_v24  ;;  %4942 = vmatprep.subr.bf16.mxu0 %v5814_v30  ;;  %v5880_v24 = vcombine.high %v1792_v38, %v1800_v17  ;;  %v5877_v30 = vcombine.low %v1791_v11, %v1799_v15  ;;  %v5082_v15 = vrot.slane %v5073_v7, %v1255_v51 }
 0x37d   :  { %5028 = vmatprep.subr.bf16.mxu1 %v5816_v32  ;;  %v5879_v32 = vcombine.low %v1792_v38, %v1800_v17 }
 0x37f   :  { %4943 = vmatpush1.bf16.msra.mxu0 %v5813_v44 }
 0x380   :  { %5029 = vmatpush1.bf16.msra.mxu1 %v5815_v36  ;;  %4944 = vmatprep.subr.bf16.mxu0 %v5830_v35 }
 0x381   :  { %5030 = vmatprep.subr.bf16.mxu1 %v5832_v49  ;;  %v5967_v49 = vld [vmem:[#allocation9 + $0x18] sm:$0xff]  }
 0x383   :  { %4945 = vmatpush1.bf16.msra.mxu0 %v5829_v58 }
 0x384   :  { %5031 = vmatpush1.bf16.msra.mxu1 %v5831_v59  ;;  %4946 = vmatprep.subr.bf16.mxu0 %v5846_v62  ;;  %v5969_v59 = vld [vmem:[#allocation9 + $0x28] sm:$0xff]   ;;  %v5970_v62 = vld [vmem:[#allocation9 + $0x30] sm:$0xff]  }
 0x385   :  { %5032 = vmatprep.subr.bf16.mxu1 %v5848_v63  ;;  %v5971_v63 = vld [vmem:[#allocation9 + $0x38] sm:$0xff]  }
 0x387   :  { %4947 = vmatpush1.bf16.msra.mxu0 %v5845_v3 }
 0x388   :  { %5033 = vmatpush1.bf16.msra.mxu1 %v5847_v4  ;;  %4948 = vmatprep.subr.bf16.mxu0 %v5862_v5 }
 0x389   :  { %5034 = vmatprep.subr.bf16.mxu1 %v5864_v6  ;;  %v5086_v6 = vrot.slane %v5073_v7, %v1259_v50 }
 0x38b   :  { %4949 = vmatpush1.bf16.msra.mxu0 %v5861_v18 }
 0x38c   :  { %5035 = vmatpush1.bf16.msra.mxu1 %v5863_v19  ;;  %4950 = vmatprep.subr.bf16.mxu0 %v5878_v23 }
 0x38d   :  { %5036 = vmatprep.subr.bf16.mxu1 %v5880_v24 }
 0x38f   :  { %4951 = vmatpush1.bf16.msra.mxu0 %v5877_v30 }
 0x390   :  { %5037 = vmatpush1.bf16.msra.mxu1 %v5879_v32  ;;  %5899 = vmatprep.subr.bf16.mxu0 %v6122_v43 }
 0x392   :  { %4953 = vmatmul.mubr.bf16.vlgmr.msra.gmra.mrb[28].mxu0 %v6299_v45 }
 0x393   :  { %5039 = vmatmul.mubr.bf16.vlgmr.msra.gmra.mrb[28].mxu1 %v6299_v45  ;;  %5900 = vmatpush3.bf16.msra.mxu0 %v5964_v27  ;;  %v5968_v45 = vld [vmem:[#allocation9 + $0x20] sm:$0xff]  }
 0x394   :  { %5901 = vmatprep.subr.bf16.mxu0 %v6122_v43  ;;  %5915 = vmatprep.mubr.msk.bf16.mxu0 %vm6123_vm0, %v6122_v43 }
 0x397   :  { %5902 = vmatpush3.bf16.msra.mxu0 %v5965_v31 }
 0x398   :  { %5903 = vmatprep.subr.bf16.mxu0 %v6122_v43 }
 0x39b   :  { %5904 = vmatpush3.bf16.msra.mxu0 %v5966_v33 }
 0x39c   :  { %5905 = vmatprep.subr.bf16.mxu0 %v6122_v43 }
 0x39f   :  { %5906 = vmatpush3.bf16.msra.mxu0 %v5967_v49 }
 0x3a0   :  { %5907 = vmatprep.subr.bf16.mxu0 %v6122_v43 }
 0x3a3   :  { %5908 = vmatpush3.bf16.msra.mxu0 %v5968_v45 }
 0x3a4   :  { %5909 = vmatprep.subr.bf16.mxu0 %v6122_v43 }
 0x3a7   :  { %5910 = vmatpush3.bf16.msra.mxu0 %v5969_v59 }
 0x3a8   :  { %5911 = vmatprep.subr.bf16.mxu0 %v6122_v43 }
 0x3ab   :  { %5912 = vmatpush3.bf16.msra.mxu0 %v5970_v62 }
 0x3ac   :  { %5913 = vmatprep.subr.bf16.mxu0 %v6122_v43 }
 0x3af   :  { %5914 = vmatpush3.bf16.msra.mxu0 %v5971_v63 }
 0x3e5   :  { %v4782_v44 = vpop.f32.mrb[24].mxu0 }
 0x3e6   :  { %v4868_v36 = vpop.f32.mrb[24].mxu1  ;;  %v4784_v35 = vpop.f32.mrb[25].mxu0 }
 0x3e7   :  { %v4870_v46 = vpop.f32.mrb[25].mxu1  ;;  %v4786_v53 = vpop.f32.mrb[26].mxu0 }
 0x3e8   :  { %v4872_v54 = vpop.f32.mrb[26].mxu1  ;;  %v4788_v57 = vpop.f32.mrb[27].mxu0 }
 0x3e9   :  { %v4874_v58 = vpop.f32.mrb[27].mxu1 }
 0x465   :  { %v4954_v12 = vpop.f32.mrb[28].mxu0 }
 0x466   :  { %v5057_v13 = vmax.f32 %v4782_v44, %v4954_v12  ;;  %v5040_v3 = vpop.f32.mrb[28].mxu1  ;;  %v4956_v4 = vpop.f32.mrb[29].mxu0 }
 0x467   :  { %v5059_v5 = vmax.f32 %v4868_v36, %v5040_v3  ;;  %v5058_v11 = vmax.f32 %v4784_v35, %v4956_v4  ;;  %v5042_v38 = vpop.f32.mrb[29].mxu1  ;;  %v4958_v17 = vpop.f32.mrb[30].mxu0 }
 0x468   :  { %v5065_v18 = vmax.f32 %v5049_v20, %v5057_v13  ;;  %v5060_v19 = vmax.f32 %v4870_v46, %v5042_v38  ;;  %v5061_v23 = vmax.f32 %v4786_v53, %v4958_v17  ;;  %v5044_v24 = vpop.f32.mrb[30].mxu1  ;;  %v4960_v30 = vpop.f32.mrb[31].mxu0 }
 0x469   :  { %v5067_v50 = vmax.f32 %v5051_v10, %v5059_v5  ;;  %v5066_v51 = vmax.f32 %v5050_v25, %v5058_v11  ;;  %v5063_v32 = vmax.f32 %v4872_v54, %v5044_v24  ;;  %v5062_v27 = vmax.f32 %v4788_v57, %v4960_v30  ;;  %v5046_v43 = vpop.f32.mrb[31].mxu1 }
 0x46a   :  { %v5095_v55 = vadd.f32 %v5078_v14, %v5065_v18  ;;  %v5068_v47 = vmax.f32 %v5052_v34, %v5060_v19  ;;  %v5069_v52 = vmax.f32 %v5053_v37, %v5061_v23  ;;  %v5064_v16 = vmax.f32 %v4874_v58, %v5046_v43 }
 0x46b   :  { %v5097_v20 = vadd.f32 %v5086_v6, %v5067_v50  ;;  %v5096_v56 = vadd.f32 %v5082_v15, %v5066_v51  ;;  %v5071_v60 = vmax.f32 %v5055_v40, %v5063_v32  ;;  %v5070_v21 = vmax.f32 %v5054_v41, %v5062_v27 }
 0x46c   :  { %v5103_v22 = vmax.f32 %v5095_v55, 0.0  ;;  %v5099_v10 = vadd.f32 %v5078_v14, %v5069_v52  ;;  %v5072_v61 = vmax.f32 %v5056_v0, %v5064_v16  ;;  %v5098_v1 = vadd.f32 %v5090_v48, %v5068_v47 }
 0x46d   :  { %v5104_v25 = vmax.f32 %v5096_v56, 0.0  ;;  %v5101_v26 = vadd.f32 %v5086_v6, %v5071_v60  ;;  %v5100_v28 = vadd.f32 %v5082_v15, %v5070_v21  ;;  %v5105_v37 = vmax.f32 %v5097_v20, 0.0 }
 0x46e   :  { %v5107_v34 = vmax.f32 %v5099_v10, 0.0  ;;  %v5102_v2 = vadd.f32 %v5090_v48, %v5072_v61  ;;  %v5106_v39 = vmax.f32 %v5098_v1, 0.0 }
 0x46f   :  { %v5111_v31 = vadd.f32 %v5104_v25, %v5103_v22  ;;  %v5108_v33 = vmax.f32 %v5100_v28, 0.0  ;;  %v5109_v44 = vmax.f32 %v5101_v26, 0.0 }
 0x470   :  { %v5110_v41 = vmax.f32 %v5102_v2, 0.0 }
 0x471   :  { %v5113_v40 = vadd.f32 %v5111_v31, %v5105_v37  ;;  %v5112_v8 = vadd.f32 %v5108_v33, %v5107_v34 }
 0x473   :  { %v5115_v29 = vadd.f32 %v5113_v40, %v5106_v39  ;;  %v5114_v36 = vadd.f32 %v5112_v8, %v5109_v44 }
 0x475   :  { %v5116_v35 = vadd.f32 %v5114_v36, %v5110_v41 }
 0x477   :  { %v5117_v49 = vpack.c.bf16 %v5116_v35, %v5115_v29 }
 0x479   :  { %5916 = vmatmul.mubr.bf16.vlgmr.msra.gmra.mrb[32].mxu0 %v5117_v49 }
 0x54c   :  { %v5223_v42 = vpop.f32.mrb[32].mxu0 }
 0x54d   :  { %v5224_v0 = vadd.f32 %v5881_v9, %v5223_v42  ;;  %v5917_v46 = vpop.f32.mrb[33].mxu0 }
 0x54e   :  { %v5226_v53 = vpop.f32.mrb[34].mxu0 }
 0x54f   :  { %5230 = vst [vmem:[%s6436_s7] sm:$0xff] %v5224_v0  ;;  %v5227_v54 = vadd.f32 %v5881_v9, %v5226_v53  ;;  %v5918_v57 = vpop.f32.mrb[35].mxu0 }
 0x551   :  { %5231 = vst [vmem:[%s6436_s7 + $0x8] sm:$0xff] %v5227_v54 }
 0x552   :  { %5236 = vsyncpa [#allocation3], 1 }
 0x553   :  { %5237 = vsyncpa [#allocation5], 1 }
 0x554   :  { %5238 = vsyncpa [#allocation8], 1 }
 0x555   :  { %5239 = vsyncpa [#allocation11], 1 }

</bundles_post_ra>
